<compile_context>
chip_gen: v7x
topology: tpu7x:2x2x1
jax: 0.10.0
libtpu: 0.0.40
codegen_flags: <defaults>
</compile_context>

<pallas_src>
import functools

import jax
import jax.numpy as jnp
from jax.experimental import pallas as pl
from jax.experimental.pallas import tpu as pltpu

NEG_SLOPE = 0.1
BN_EPS = 1e-5


# ----------------------------- small helpers -----------------------------

def _lrelu(x):
    return jnp.where(x >= 0, x, NEG_SLOPE * x)


def _apply_bn(y, bn):
    # bn rows: [gamma, beta, running_mean, running_var]  (inference-mode batchnorm)
    gamma, beta, mean, var = bn[0:1, :], bn[1:2, :], bn[2:3, :], bn[3:4, :]
    return (y - mean) * jax.lax.rsqrt(var + BN_EPS) * gamma + beta


def _round_up(x, m):
    return ((x + m - 1) // m) * m


def _fold_bn(w, b, bn):
    """Fold an inference BatchNorm into the preceding Linear: y = (xW+b)*s + t."""
    gamma, beta, mean, var = bn[0], bn[1], bn[2], bn[3]
    s = gamma * jax.lax.rsqrt(var + BN_EPS)
    return w * s[None, :], (b - mean[None, :]) * s[None, :] + beta[None, :]


# ----------------------------- fused Pallas kernel -----------------------------

def fused_resblock_kernel(ni_ref, rel_ref, w1_ref, b1_ref, kpt_ref, kpw_ref, kpb_ref,
                          w2_ref, b2_ref, scw_ref, scb_ref, o_ref, *,
                          n_kp, extent, with_sc_conv):
    """Conv1D(in,mid)+BN+LReLU -> KPConv(+BN)+LReLU -> Conv1D(mid,out)
       fused with shortcut MaxPoolNeighbors(+Conv1D/BN) -> residual add -> LeakyReLU.

    ni_ref : [tm, K, Cin]   gathered raw input features (bf16, zero shadow rows)
    rel_ref: [3, tm, K]     neighbor_xyz - query_xyz, axis-major (f32, shadow ~1e6 away)
    kpt_ref: [3, P_pad, 1]  kernel-point dispositions (padded columns sit far away & unused)
    kpw_ref: [P, mid, mid]  per-kernel-point weights, BN folded (bf16) - real points only
    """
    ni = ni_ref[...]                                   # [tm, K, Cin] bf16
    tm, K, Cin = ni.shape
    mid = w1_ref.shape[1]

    # --- Conv1D(in -> mid) + folded BN + LReLU applied directly to the gathered neighbors ---
    # Shadow neighbors evaluate to LReLU(b1) here, but their kernel-point influences are 0 for
    # every real kernel point, so they contribute nothing downstream (matches the reference,
    # which gathers a zeroed shadow row of the conv1 output).
    nf = jnp.dot(ni.reshape(tm * K, Cin), w1_ref[...],
                 preferred_element_type=jnp.float32) + b1_ref[...]
    nf = _lrelu(nf).astype(jnp.bfloat16).reshape(tm, K, mid)

    # --- kernel-point linear-correlation influences (f32 VPU/EUP), layout [tm, P, K] ---
    rx = rel_ref[0][:, None, :]                        # [tm, 1, K]
    ry = rel_ref[1][:, None, :]
    rz = rel_ref[2][:, None, :]
    kx = kpt_ref[0][None]                              # [1, P_pad, 1]
    ky = kpt_ref[1][None]
    kz = kpt_ref[2][None]
    d0, d1, d2 = rx - kx, ry - ky, rz - kz
    sq = d0 * d0 + d1 * d1 + d2 * d2                   # [tm, P_pad, K]
    infl = jnp.maximum(1.0 - jnp.sqrt(sq) * (1.0 / extent), 0.0)

    # --- influence-weighted neighbor sums: canonical batched matmul over the K axis ---
    weighted = jnp.einsum("mpk,mkc->mpc", infl.astype(jnp.bfloat16), nf,
                          preferred_element_type=jnp.float32)      # [tm, P_pad, mid]
    weighted = weighted.astype(jnp.bfloat16)

    # --- per-kernel-point output weights: unrolled, well-shaped [tm,mid]x[mid,mid] dots over
    #     the REAL kernel points only (no [tm, P*mid] flatten relayout, padded column unused) ---
    y = jnp.dot(weighted[:, 0, :], kpw_ref[0], preferred_element_type=jnp.float32)
    for p in range(1, n_kp):
        y = y + jnp.dot(weighted[:, p, :], kpw_ref[p],
                        preferred_element_type=jnp.float32)
    y = _lrelu(y + kpb_ref[...])                       # KPConv + folded BN + LeakyReLU

    # --- Conv1D(mid -> out), no BN / activation inside the main branch ---
    y = jnp.dot(y.astype(jnp.bfloat16), w2_ref[...],
                preferred_element_type=jnp.float32) + b2_ref[...]

    # --- shortcut: MaxPoolNeighbors (bf16 max, widen afterwards) + optional Conv1D + folded BN ---
    pooled = jnp.max(ni, axis=1)                       # [tm, Cin] bf16 (max commutes with cast)
    if with_sc_conv:
        s = jnp.dot(pooled, scw_ref[...], preferred_element_type=jnp.float32) + scb_ref[...]
    else:
        s = pooled.astype(jnp.float32)

    # TODO(synk): if the consumer takes bf16 and Cout is padded to a multiple of 128, emit bf16
    # here to get unmasked lane-dense stores.
    o_ref[...] = _lrelu(s + y).astype(o_ref.dtype)


# ----------------------------- wrapper -----------------------------

def res_block_a_forward(params, features, points, q_points, pools, extent, tm_m=128):
    N, Cin = features.shape
    M, K = pools.shape
    mid = params["conv1_w"].shape[1]
    Cout = params["conv2_w"].shape[1]
    P = params["kp_w"].shape[0]
    with_sc_conv = (Cin != Cout)

    # ---- fold all inference BatchNorms into the adjacent linear weights ----
    w1, b1 = _fold_bn(params["conv1_w"], params["conv1_b"], params["conv1_bn"])
    gamma, beta, mean, var = params["kp_bn"]
    s_kp = gamma * jax.lax.rsqrt(var + BN_EPS)
    kpw = params["kp_w"] * s_kp[None, None, :]                       # [P, mid, mid]
    kpb = (beta - mean * s_kp)[None, :]                              # [1, mid]
    if with_sc_conv:
        ws, bs = _fold_bn(params["sc_w"], params["sc_b"], params["sc_bn"])
    else:
        ws = jnp.zeros((Cin, Cout), jnp.float32)
        bs = jnp.zeros((1, Cout), jnp.float32)

    # ---- pad the kernel-point table to a sublane-friendly width (padded columns never used) ----
    P_pad = _round_up(P, 8)
    kp_t = params["kp_points_t"]                                     # [3, P]
    if P_pad != P:
        kp_t = jnp.concatenate([kp_t, jnp.full((3, P_pad - P), 1e9, kp_t.dtype)], axis=1)
    kp_t = kp_t[:, :, None]                                          # [3, P_pad, 1]

    # ---- pad the pooling tables (NOT the gathered tensors) to the row tile ----
    tm_m = min(tm_m, _round_up(M, 8))
    M_pad = _round_up(M, tm_m)
    pools_p, q_p = pools, q_points
    if M_pad != M:
        pools_p = jnp.pad(pools, ((0, M_pad - M), (0, 0)), constant_values=N)   # shadow index
        q_p = jnp.pad(q_points, ((0, M_pad - M), (0, 0)))

    # ---- data-dependent neighbor gathers (XLA glue): raw bf16 features + axis-major rel ----
    # TODO(synk): replace with in-kernel scalar-prefetched pools + manual HBM DMA gather.
    f_pad = jnp.concatenate([features.astype(jnp.bfloat16),
                             jnp.zeros((1, Cin), jnp.bfloat16)], axis=0)        # zero shadow row
    p_pad = jnp.concatenate([points, jnp.full((1, 3), 1e6, points.dtype)], axis=0)
    neigh_in = jnp.take(f_pad, pools_p, axis=0)                                  # [M_pad, K, Cin]
    rel_t = jnp.transpose(jnp.take(p_pad, pools_p, axis=0) - q_p[:, None, :],
                          (2, 0, 1))                                             # [3, M_pad, K]

    # ---- one fused M-grid kernel: conv1 -> KPConv+BN+LReLU -> conv2 -> +shortcut -> LReLU ----
    out = pl.pallas_call(
        functools.partial(fused_resblock_kernel, n_kp=P, extent=float(extent),
                          with_sc_conv=with_sc_conv),
        out_shape=jax.ShapeDtypeStruct((M_pad, Cout), jnp.float32),
        grid=(pl.cdiv(M_pad, tm_m),),
        in_specs=[pl.BlockSpec((tm_m, K, Cin), lambda i: (i, 0, 0)),
                  pl.BlockSpec((3, tm_m, K), lambda i: (0, i, 0)),
                  pl.BlockSpec((Cin, mid), lambda i: (0, 0)),
                  pl.BlockSpec((1, mid), lambda i: (0, 0)),
                  pl.BlockSpec((3, P_pad, 1), lambda i: (0, 0, 0)),
                  pl.BlockSpec((P, mid, mid), lambda i: (0, 0, 0)),
                  pl.BlockSpec((1, mid), lambda i: (0, 0)),
                  pl.BlockSpec((mid, Cout), lambda i: (0, 0)),
                  pl.BlockSpec((1, Cout), lambda i: (0, 0)),
                  pl.BlockSpec((Cin, Cout), lambda i: (0, 0)),
                  pl.BlockSpec((1, Cout), lambda i: (0, 0))],
        out_specs=pl.BlockSpec((tm_m, Cout), lambda i: (i, 0)),
        compiler_params=pltpu.CompilerParams(
            dimension_semantics=("parallel",),
            vmem_limit_bytes=32 * 1024 * 1024),
    )(neigh_in, rel_t,
      w1.astype(jnp.bfloat16), b1,
      kp_t, kpw.astype(jnp.bfloat16), kpb,
      params["conv2_w"].astype(jnp.bfloat16), params["conv2_b"],
      ws.astype(jnp.bfloat16), bs)
    out = out[:M]

    skip_connection = features  # self.skip_connection = cloud.features.clone()
    return out, skip_connection


# ----------------------------- pure-JAX f32 reference -----------------------------

def reference_forward(params, features, points, q_points, pools, extent):
    N, Cin = features.shape
    mid = params["conv1_w"].shape[1]
    Cout = params["conv2_w"].shape[1]
    f_pad = jnp.concatenate([features, jnp.zeros((1, Cin))], 0)
    p_pad = jnp.concatenate([points, jnp.full((1, 3), 1e6)], 0)

    x = _lrelu(_apply_bn(features @ params["conv1_w"] + params["conv1_b"], params["conv1_bn"]))
    x_pad = jnp.concatenate([x, jnp.zeros((1, mid))], 0)
    nfeat = jnp.take(x_pad, pools, axis=0)
    rel = jnp.take(p_pad, pools, axis=0) - q_points[:, None, :]
    kp = params["kp_points_t"].T                                     # [P, 3]
    sq = jnp.sum((rel[:, :, None, :] - kp[None, None, :, :]) ** 2, -1)
    infl = jnp.maximum(1.0 - jnp.sqrt(sq) / extent, 0.0)
    weighted = jnp.einsum("mkp,mkc->mpc", infl, nfeat)
    y = jnp.einsum("mpc,pco->mo", weighted, params["kp_w"])
    y = _lrelu(_apply_bn(y, params["kp_bn"]))
    y = y @ params["conv2_w"] + params["conv2_b"]

    pooled = jnp.max(jnp.take(f_pad, pools, axis=0), axis=1)
    if Cin != Cout:
        s = _apply_bn(pooled @ params["sc_w"] + params["sc_b"], params["sc_bn"])
    else:
        s = pooled
    return _lrelu(s + y)


# ----------------------------- deterministic init -----------------------------

def init_params(key, in_dim, out_dim, radius, n_kp=15):
    mid = out_dim // 4
    ks = jax.random.split(key, 12)

    def dense(k, fi, fo):
        return (1.0 / jnp.sqrt(float(fi))) * jax.random.normal(k, (fi, fo), jnp.float32)

    def bias(k, d):
        return 0.05 * jax.random.normal(k, (1, d), jnp.float32)

    def bn_init(k, d):
        k1, k2, k3, k4 = jax.random.split(k, 4)
        gamma = 1.0 + 0.1 * jax.random.normal(k1, (d,), jnp.float32)
        beta = 0.1 * jax.random.normal(k2, (d,), jnp.float32)
        mean = 0.1 * jax.random.normal(k3, (d,), jnp.float32)
        var = 1.0 + 0.1 * jax.random.uniform(k4, (d,), jnp.float32)
        return jnp.stack([gamma, beta, mean, var], axis=0)

    # synthetic rigid kernel-point dispositions: center + 14 points on a sphere
    # TODO(synk): original KPConv loads optimized kernel dispositions / KP_extent from config
    dirs = jax.random.normal(ks[10], (n_kp - 1, 3), jnp.float32)
    dirs = dirs / jnp.linalg.norm(dirs, axis=1, keepdims=True)
    kp_pts = jnp.concatenate([jnp.zeros((1, 3), jnp.float32), 0.66 * radius * dirs], 0)

    params = {
        "conv1_w": dense(ks[0], in_dim, mid),
        "conv1_b": bias(ks[1], mid),
        "conv1_bn": bn_init(ks[2], mid),
        "kp_points_t": kp_pts.T,                                     # [3, P]
        "kp_w": (1.0 / jnp.sqrt(float(n_kp * mid)))
                * jax.random.normal(ks[3], (n_kp, mid, mid), jnp.float32),
        "kp_bn": bn_init(ks[4], mid),
        "conv2_w": dense(ks[5], mid, out_dim),
        "conv2_b": bias(ks[6], out_dim),
        "sc_w": dense(ks[7], in_dim, out_dim),
        "sc_b": bias(ks[8], out_dim),
        "sc_bn": bn_init(ks[9], out_dim),
    }
    extent = float(0.6 * radius)
    return params, extent


# ----------------------------- main -----------------------------

if __name__ == "__main__":
    in_dim, out_dim, radius = 8, 32, 0.5
    N, M, K, P = 64, 32, 16, 15

    key = jax.random.PRNGKey(0)
    k_pts, k_feat, k_param = jax.random.split(key, 3)
    points = jax.random.uniform(k_pts, (N, 3), jnp.float32)
    features = jax.random.normal(k_feat, (N, in_dim), jnp.float32)
    q_points = points[:M]                                            # pooled query points
    d2 = jnp.sum((q_points[:, None, :] - points[None, :, :]) ** 2, axis=-1)
    pools = jnp.argsort(d2, axis=1)[:, :K].astype(jnp.int32)         # cloud.pools

    params, extent = init_params(k_param, in_dim, out_dim, radius, P)

    out, skip = res_block_a_forward(params, features, points, q_points, pools, extent)
    out = jax.block_until_ready(out)

    ref = reference_forward(params, features, points, q_points, pools, extent)
    assert out.shape == (M, out_dim) and skip.shape == (N, in_dim)
    assert bool(jnp.all(jnp.isfinite(out)))
    # bf16 matmul operands + BN folding vs. pure-f32 reference -> bf16-level tolerance.
    assert bool(jnp.allclose(out, ref, rtol=5e-2, atol=1e-1)), \
        f"max abs diff {float(jnp.max(jnp.abs(out - ref)))}"

    print("KERNEL_OK")
</pallas_src>

<mosaic_0001>
module attributes {stable_mosaic.version = 11 : i64} {
  func.func @fused_resblock_kernel(%arg0: i32, %arg1: memref<32x16x8xbf16, #tpu.memory_space<vmem>>, %arg2: memref<3x32x16xf32, #tpu.memory_space<vmem>>, %arg3: memref<8x8xbf16, #tpu.memory_space<vmem>>, %arg4: memref<1x8xf32, #tpu.memory_space<vmem>>, %arg5: memref<3x16x1xf32, #tpu.memory_space<vmem>>, %arg6: memref<15x8x8xbf16, #tpu.memory_space<vmem>>, %arg7: memref<1x8xf32, #tpu.memory_space<vmem>>, %arg8: memref<8x32xbf16, #tpu.memory_space<vmem>>, %arg9: memref<1x32xf32, #tpu.memory_space<vmem>>, %arg10: memref<8x32xbf16, #tpu.memory_space<vmem>>, %arg11: memref<1x32xf32, #tpu.memory_space<vmem>>, %arg12: memref<32x32xf32, #tpu.memory_space<vmem>>) attributes {dimension_semantics = [#tpu.dimension_semantics<parallel>], iteration_bounds = array<i64: 1>, scalar_prefetch = 0 : i64, scratch_operands = 0 : i64, tpu.core_type = #tpu.core_type<tc>, window_params = [{transform_indices = @transform_0, window_bounds = array<i64: 32, 16, 8>}, {transform_indices = @transform_1, window_bounds = array<i64: 3, 32, 16>}, {pipeline_mode = #tpu.pipeline_mode<synchronous>, transform_indices = @transform_2, window_bounds = array<i64: 8, 8>}, {pipeline_mode = #tpu.pipeline_mode<synchronous>, transform_indices = @transform_3, window_bounds = array<i64: 1, 8>}, {pipeline_mode = #tpu.pipeline_mode<synchronous>, transform_indices = @transform_4, window_bounds = array<i64: 3, 16, 1>}, {pipeline_mode = #tpu.pipeline_mode<synchronous>, transform_indices = @transform_5, window_bounds = array<i64: 15, 8, 8>}, {pipeline_mode = #tpu.pipeline_mode<synchronous>, transform_indices = @transform_6, window_bounds = array<i64: 1, 8>}, {pipeline_mode = #tpu.pipeline_mode<synchronous>, transform_indices = @transform_7, window_bounds = array<i64: 8, 32>}, {pipeline_mode = #tpu.pipeline_mode<synchronous>, transform_indices = @transform_8, window_bounds = array<i64: 1, 32>}, {pipeline_mode = #tpu.pipeline_mode<synchronous>, transform_indices = @transform_9, window_bounds = array<i64: 8, 32>}, {pipeline_mode = #tpu.pipeline_mode<synchronous>, transform_indices = @transform_10, window_bounds = array<i64: 1, 32>}, {transform_indices = @transform_11, window_bounds = array<i64: 32, 32>}]} {
    %c0 = arith.constant 0 : index
    %c0_0 = arith.constant 0 : index
    %c0_1 = arith.constant 0 : index
    %0 = vector.load %arg1[%c0, %c0_0, %c0_1] : memref<32x16x8xbf16, #tpu.memory_space<vmem>>, vector<32x16x8xbf16>
    %1 = vector.shape_cast %0 : vector<32x16x8xbf16> to vector<512x8xbf16>
    %c0_2 = arith.constant 0 : index
    %c0_3 = arith.constant 0 : index
    %2 = vector.load %arg3[%c0_2, %c0_3] : memref<8x8xbf16, #tpu.memory_space<vmem>>, vector<8x8xbf16>
    %cst = arith.constant dense<0.000000e+00> : vector<512x8xf32>
    %3 = tpu.matmul %1, %2, %cst {dimension_numbers = #tpu.dot_dimension_numbers<[1], [0], [0], [1], [0, 0, 1, 1], [], []>} : vector<512x8xbf16>, vector<8x8xbf16>, vector<512x8xf32> -> vector<512x8xf32>
    %c0_4 = arith.constant 0 : index
    %c0_5 = arith.constant 0 : index
    %4 = vector.load %arg4[%c0_4, %c0_5] : memref<1x8xf32, #tpu.memory_space<vmem>>, vector<1x8xf32>
    %5 = vector.broadcast %4 : vector<1x8xf32> to vector<512x8xf32>
    %6 = arith.addf %3, %5 : vector<512x8xf32>
    %cst_6 = arith.constant 0.000000e+00 : f32
    %7 = vector.broadcast %cst_6 : f32 to vector<512x8xf32>
    %8 = arith.cmpf oge, %6, %7 : vector<512x8xf32>
    %cst_7 = arith.constant 1.000000e-01 : f32
    %9 = vector.broadcast %cst_7 : f32 to vector<512x8xf32>
    %10 = arith.mulf %9, %6 : vector<512x8xf32>
    %11 = arith.select %8, %6, %10 : vector<512x8xi1>, vector<512x8xf32>
    %12 = arith.truncf %11 : vector<512x8xf32> to vector<512x8xbf16>
    %13 = vector.shape_cast %12 : vector<512x8xbf16> to vector<32x16x8xbf16>
    %c0_8 = arith.constant 0 : index
    %c0_9 = arith.constant 0 : index
    %c0_10 = arith.constant 0 : index
    %14 = vector.load %arg2[%c0_8, %c0_9, %c0_10] : memref<3x32x16xf32, #tpu.memory_space<vmem>>, vector<1x32x16xf32>
    %15 = vector.shape_cast %14 : vector<1x32x16xf32> to vector<32x16xf32>
    %16 = vector.shape_cast %15 : vector<32x16xf32> to vector<32x1x16xf32>
    %c1 = arith.constant 1 : index
    %c0_11 = arith.constant 0 : index
    %c0_12 = arith.constant 0 : index
    %17 = vector.load %arg2[%c1, %c0_11, %c0_12] : memref<3x32x16xf32, #tpu.memory_space<vmem>>, vector<1x32x16xf32>
    %18 = vector.shape_cast %17 : vector<1x32x16xf32> to vector<32x16xf32>
    %19 = vector.shape_cast %18 : vector<32x16xf32> to vector<32x1x16xf32>
    %c2 = arith.constant 2 : index
    %c0_13 = arith.constant 0 : index
    %c0_14 = arith.constant 0 : index
    %20 = vector.load %arg2[%c2, %c0_13, %c0_14] : memref<3x32x16xf32, #tpu.memory_space<vmem>>, vector<1x32x16xf32>
    %21 = vector.shape_cast %20 : vector<1x32x16xf32> to vector<32x16xf32>
    %22 = vector.shape_cast %21 : vector<32x16xf32> to vector<32x1x16xf32>
    %c0_15 = arith.constant 0 : index
    %c0_16 = arith.constant 0 : index
    %c0_17 = arith.constant 0 : index
    %23 = vector.load %arg5[%c0_15, %c0_16, %c0_17] : memref<3x16x1xf32, #tpu.memory_space<vmem>>, vector<1x16x1xf32>
    %24 = vector.shape_cast %23 : vector<1x16x1xf32> to vector<16x1xf32>
    %25 = vector.shape_cast %24 : vector<16x1xf32> to vector<1x16x1xf32>
    %c1_18 = arith.constant 1 : index
    %c0_19 = arith.constant 0 : index
    %c0_20 = arith.constant 0 : index
    %26 = vector.load %arg5[%c1_18, %c0_19, %c0_20] : memref<3x16x1xf32, #tpu.memory_space<vmem>>, vector<1x16x1xf32>
    %27 = vector.shape_cast %26 : vector<1x16x1xf32> to vector<16x1xf32>
    %28 = vector.shape_cast %27 : vector<16x1xf32> to vector<1x16x1xf32>
    %c2_21 = arith.constant 2 : index
    %c0_22 = arith.constant 0 : index
    %c0_23 = arith.constant 0 : index
    %29 = vector.load %arg5[%c2_21, %c0_22, %c0_23] : memref<3x16x1xf32, #tpu.memory_space<vmem>>, vector<1x16x1xf32>
    %30 = vector.shape_cast %29 : vector<1x16x1xf32> to vector<16x1xf32>
    %31 = vector.shape_cast %30 : vector<16x1xf32> to vector<1x16x1xf32>
    %32 = vector.broadcast %16 : vector<32x1x16xf32> to vector<32x16x16xf32>
    %33 = vector.broadcast %25 : vector<1x16x1xf32> to vector<32x16x16xf32>
    %34 = arith.subf %32, %33 : vector<32x16x16xf32>
    %35 = vector.broadcast %19 : vector<32x1x16xf32> to vector<32x16x16xf32>
    %36 = vector.broadcast %28 : vector<1x16x1xf32> to vector<32x16x16xf32>
    %37 = arith.subf %35, %36 : vector<32x16x16xf32>
    %38 = vector.broadcast %22 : vector<32x1x16xf32> to vector<32x16x16xf32>
    %39 = vector.broadcast %31 : vector<1x16x1xf32> to vector<32x16x16xf32>
    %40 = arith.subf %38, %39 : vector<32x16x16xf32>
    %41 = arith.mulf %34, %34 : vector<32x16x16xf32>
    %42 = arith.mulf %37, %37 : vector<32x16x16xf32>
    %43 = arith.addf %41, %42 : vector<32x16x16xf32>
    %44 = arith.mulf %40, %40 : vector<32x16x16xf32>
    %45 = arith.addf %43, %44 : vector<32x16x16xf32>
    %46 = math.sqrt %45 : vector<32x16x16xf32>
    %cst_24 = arith.constant 3.33333325 : f32
    %47 = vector.broadcast %cst_24 : f32 to vector<32x16x16xf32>
    %48 = arith.mulf %46, %47 : vector<32x16x16xf32>
    %cst_25 = arith.constant 1.000000e+00 : f32
    %49 = vector.broadcast %cst_25 : f32 to vector<32x16x16xf32>
    %50 = arith.subf %49, %48 : vector<32x16x16xf32>
    %cst_26 = arith.constant 0.000000e+00 : f32
    %51 = vector.broadcast %cst_26 : f32 to vector<32x16x16xf32>
    %52 = arith.maximumf %50, %51 : vector<32x16x16xf32>
    %53 = arith.truncf %52 : vector<32x16x16xf32> to vector<32x16x16xbf16>
    "tpu.trace_start"() <{level = 10 : i32, message = "mpk,mkc->mpc"}> : () -> ()
    %cst_27 = arith.constant dense<0.000000e+00> : vector<32x16x8xf32>
    %54 = tpu.matmul %53, %13, %cst_27 {dimension_numbers = #tpu.dot_dimension_numbers<[2], [1], [1], [2], [0, 0, 0, 1, 1, 2], [0], [0]>} : vector<32x16x16xbf16>, vector<32x16x8xbf16>, vector<32x16x8xf32> -> vector<32x16x8xf32>
    "tpu.trace_stop"() : () -> ()
    %55 = arith.truncf %54 : vector<32x16x8xf32> to vector<32x16x8xbf16>
    %56 = vector.extract_strided_slice %55 {offsets = [0, 0, 0], sizes = [32, 1, 8], strides = [1, 1, 1]} : vector<32x16x8xbf16> to vector<32x1x8xbf16>
    %57 = vector.shape_cast %56 : vector<32x1x8xbf16> to vector<32x8xbf16>
    %c0_28 = arith.constant 0 : index
    %c0_29 = arith.constant 0 : index
    %c0_30 = arith.constant 0 : index
    %58 = vector.load %arg6[%c0_28, %c0_29, %c0_30] : memref<15x8x8xbf16, #tpu.memory_space<vmem>>, vector<1x8x8xbf16>
    %59 = vector.shape_cast %58 : vector<1x8x8xbf16> to vector<8x8xbf16>
    %cst_31 = arith.constant dense<0.000000e+00> : vector<32x8xf32>
    %60 = tpu.matmul %57, %59, %cst_31 {dimension_numbers = #tpu.dot_dimension_numbers<[1], [0], [0], [1], [0, 0, 1, 1], [], []>} : vector<32x8xbf16>, vector<8x8xbf16>, vector<32x8xf32> -> vector<32x8xf32>
    %61 = vector.extract_strided_slice %55 {offsets = [0, 1, 0], sizes = [32, 1, 8], strides = [1, 1, 1]} : vector<32x16x8xbf16> to vector<32x1x8xbf16>
    %62 = vector.shape_cast %61 : vector<32x1x8xbf16> to vector<32x8xbf16>
    %c1_32 = arith.constant 1 : index
    %c0_33 = arith.constant 0 : index
    %c0_34 = arith.constant 0 : index
    %63 = vector.load %arg6[%c1_32, %c0_33, %c0_34] : memref<15x8x8xbf16, #tpu.memory_space<vmem>>, vector<1x8x8xbf16>
    %64 = vector.shape_cast %63 : vector<1x8x8xbf16> to vector<8x8xbf16>
    %cst_35 = arith.constant dense<0.000000e+00> : vector<32x8xf32>
    %65 = tpu.matmul %62, %64, %cst_35 {dimension_numbers = #tpu.dot_dimension_numbers<[1], [0], [0], [1], [0, 0, 1, 1], [], []>} : vector<32x8xbf16>, vector<8x8xbf16>, vector<32x8xf32> -> vector<32x8xf32>
    %66 = arith.addf %60, %65 : vector<32x8xf32>
    %67 = vector.extract_strided_slice %55 {offsets = [0, 2, 0], sizes = [32, 1, 8], strides = [1, 1, 1]} : vector<32x16x8xbf16> to vector<32x1x8xbf16>
    %68 = vector.shape_cast %67 : vector<32x1x8xbf16> to vector<32x8xbf16>
    %c2_36 = arith.constant 2 : index
    %c0_37 = arith.constant 0 : index
    %c0_38 = arith.constant 0 : index
    %69 = vector.load %arg6[%c2_36, %c0_37, %c0_38] : memref<15x8x8xbf16, #tpu.memory_space<vmem>>, vector<1x8x8xbf16>
    %70 = vector.shape_cast %69 : vector<1x8x8xbf16> to vector<8x8xbf16>
    %cst_39 = arith.constant dense<0.000000e+00> : vector<32x8xf32>
    %71 = tpu.matmul %68, %70, %cst_39 {dimension_numbers = #tpu.dot_dimension_numbers<[1], [0], [0], [1], [0, 0, 1, 1], [], []>} : vector<32x8xbf16>, vector<8x8xbf16>, vector<32x8xf32> -> vector<32x8xf32>
    %72 = arith.addf %66, %71 : vector<32x8xf32>
    %73 = vector.extract_strided_slice %55 {offsets = [0, 3, 0], sizes = [32, 1, 8], strides = [1, 1, 1]} : vector<32x16x8xbf16> to vector<32x1x8xbf16>
    %74 = vector.shape_cast %73 : vector<32x1x8xbf16> to vector<32x8xbf16>
    %c3 = arith.constant 3 : index
    %c0_40 = arith.constant 0 : index
    %c0_41 = arith.constant 0 : index
    %75 = vector.load %arg6[%c3, %c0_40, %c0_41] : memref<15x8x8xbf16, #tpu.memory_space<vmem>>, vector<1x8x8xbf16>
    %76 = vector.shape_cast %75 : vector<1x8x8xbf16> to vector<8x8xbf16>
    %cst_42 = arith.constant dense<0.000000e+00> : vector<32x8xf32>
    %77 = tpu.matmul %74, %76, %cst_42 {dimension_numbers = #tpu.dot_dimension_numbers<[1], [0], [0], [1], [0, 0, 1, 1], [], []>} : vector<32x8xbf16>, vector<8x8xbf16>, vector<32x8xf32> -> vector<32x8xf32>
    %78 = arith.addf %72, %77 : vector<32x8xf32>
    %79 = vector.extract_strided_slice %55 {offsets = [0, 4, 0], sizes = [32, 1, 8], strides = [1, 1, 1]} : vector<32x16x8xbf16> to vector<32x1x8xbf16>
    %80 = vector.shape_cast %79 : vector<32x1x8xbf16> to vector<32x8xbf16>
    %c4 = arith.constant 4 : index
    %c0_43 = arith.constant 0 : index
    %c0_44 = arith.constant 0 : index
    %81 = vector.load %arg6[%c4, %c0_43, %c0_44] : memref<15x8x8xbf16, #tpu.memory_space<vmem>>, vector<1x8x8xbf16>
    %82 = vector.shape_cast %81 : vector<1x8x8xbf16> to vector<8x8xbf16>
    %cst_45 = arith.constant dense<0.000000e+00> : vector<32x8xf32>
    %83 = tpu.matmul %80, %82, %cst_45 {dimension_numbers = #tpu.dot_dimension_numbers<[1], [0], [0], [1], [0, 0, 1, 1], [], []>} : vector<32x8xbf16>, vector<8x8xbf16>, vector<32x8xf32> -> vector<32x8xf32>
    %84 = arith.addf %78, %83 : vector<32x8xf32>
    %85 = vector.extract_strided_slice %55 {offsets = [0, 5, 0], sizes = [32, 1, 8], strides = [1, 1, 1]} : vector<32x16x8xbf16> to vector<32x1x8xbf16>
    %86 = vector.shape_cast %85 : vector<32x1x8xbf16> to vector<32x8xbf16>
    %c5 = arith.constant 5 : index
    %c0_46 = arith.constant 0 : index
    %c0_47 = arith.constant 0 : index
    %87 = vector.load %arg6[%c5, %c0_46, %c0_47] : memref<15x8x8xbf16, #tpu.memory_space<vmem>>, vector<1x8x8xbf16>
    %88 = vector.shape_cast %87 : vector<1x8x8xbf16> to vector<8x8xbf16>
    %cst_48 = arith.constant dense<0.000000e+00> : vector<32x8xf32>
    %89 = tpu.matmul %86, %88, %cst_48 {dimension_numbers = #tpu.dot_dimension_numbers<[1], [0], [0], [1], [0, 0, 1, 1], [], []>} : vector<32x8xbf16>, vector<8x8xbf16>, vector<32x8xf32> -> vector<32x8xf32>
    %90 = arith.addf %84, %89 : vector<32x8xf32>
    %91 = vector.extract_strided_slice %55 {offsets = [0, 6, 0], sizes = [32, 1, 8], strides = [1, 1, 1]} : vector<32x16x8xbf16> to vector<32x1x8xbf16>
    %92 = vector.shape_cast %91 : vector<32x1x8xbf16> to vector<32x8xbf16>
    %c6 = arith.constant 6 : index
    %c0_49 = arith.constant 0 : index
    %c0_50 = arith.constant 0 : index
    %93 = vector.load %arg6[%c6, %c0_49, %c0_50] : memref<15x8x8xbf16, #tpu.memory_space<vmem>>, vector<1x8x8xbf16>
    %94 = vector.shape_cast %93 : vector<1x8x8xbf16> to vector<8x8xbf16>
    %cst_51 = arith.constant dense<0.000000e+00> : vector<32x8xf32>
    %95 = tpu.matmul %92, %94, %cst_51 {dimension_numbers = #tpu.dot_dimension_numbers<[1], [0], [0], [1], [0, 0, 1, 1], [], []>} : vector<32x8xbf16>, vector<8x8xbf16>, vector<32x8xf32> -> vector<32x8xf32>
    %96 = arith.addf %90, %95 : vector<32x8xf32>
    %97 = vector.extract_strided_slice %55 {offsets = [0, 7, 0], sizes = [32, 1, 8], strides = [1, 1, 1]} : vector<32x16x8xbf16> to vector<32x1x8xbf16>
    %98 = vector.shape_cast %97 : vector<32x1x8xbf16> to vector<32x8xbf16>
    %c7 = arith.constant 7 : index
    %c0_52 = arith.constant 0 : index
    %c0_53 = arith.constant 0 : index
    %99 = vector.load %arg6[%c7, %c0_52, %c0_53] : memref<15x8x8xbf16, #tpu.memory_space<vmem>>, vector<1x8x8xbf16>
    %100 = vector.shape_cast %99 : vector<1x8x8xbf16> to vector<8x8xbf16>
    %cst_54 = arith.constant dense<0.000000e+00> : vector<32x8xf32>
    %101 = tpu.matmul %98, %100, %cst_54 {dimension_numbers = #tpu.dot_dimension_numbers<[1], [0], [0], [1], [0, 0, 1, 1], [], []>} : vector<32x8xbf16>, vector<8x8xbf16>, vector<32x8xf32> -> vector<32x8xf32>
    %102 = arith.addf %96, %101 : vector<32x8xf32>
    %103 = vector.extract_strided_slice %55 {offsets = [0, 8, 0], sizes = [32, 1, 8], strides = [1, 1, 1]} : vector<32x16x8xbf16> to vector<32x1x8xbf16>
    %104 = vector.shape_cast %103 : vector<32x1x8xbf16> to vector<32x8xbf16>
    %c8 = arith.constant 8 : index
    %c0_55 = arith.constant 0 : index
    %c0_56 = arith.constant 0 : index
    %105 = vector.load %arg6[%c8, %c0_55, %c0_56] : memref<15x8x8xbf16, #tpu.memory_space<vmem>>, vector<1x8x8xbf16>
    %106 = vector.shape_cast %105 : vector<1x8x8xbf16> to vector<8x8xbf16>
    %cst_57 = arith.constant dense<0.000000e+00> : vector<32x8xf32>
    %107 = tpu.matmul %104, %106, %cst_57 {dimension_numbers = #tpu.dot_dimension_numbers<[1], [0], [0], [1], [0, 0, 1, 1], [], []>} : vector<32x8xbf16>, vector<8x8xbf16>, vector<32x8xf32> -> vector<32x8xf32>
    %108 = arith.addf %102, %107 : vector<32x8xf32>
    %109 = vector.extract_strided_slice %55 {offsets = [0, 9, 0], sizes = [32, 1, 8], strides = [1, 1, 1]} : vector<32x16x8xbf16> to vector<32x1x8xbf16>
    %110 = vector.shape_cast %109 : vector<32x1x8xbf16> to vector<32x8xbf16>
    %c9 = arith.constant 9 : index
    %c0_58 = arith.constant 0 : index
    %c0_59 = arith.constant 0 : index
    %111 = vector.load %arg6[%c9, %c0_58, %c0_59] : memref<15x8x8xbf16, #tpu.memory_space<vmem>>, vector<1x8x8xbf16>
    %112 = vector.shape_cast %111 : vector<1x8x8xbf16> to vector<8x8xbf16>
    %cst_60 = arith.constant dense<0.000000e+00> : vector<32x8xf32>
    %113 = tpu.matmul %110, %112, %cst_60 {dimension_numbers = #tpu.dot_dimension_numbers<[1], [0], [0], [1], [0, 0, 1, 1], [], []>} : vector<32x8xbf16>, vector<8x8xbf16>, vector<32x8xf32> -> vector<32x8xf32>
    %114 = arith.addf %108, %113 : vector<32x8xf32>
    %115 = vector.extract_strided_slice %55 {offsets = [0, 10, 0], sizes = [32, 1, 8], strides = [1, 1, 1]} : vector<32x16x8xbf16> to vector<32x1x8xbf16>
    %116 = vector.shape_cast %115 : vector<32x1x8xbf16> to vector<32x8xbf16>
    %c10 = arith.constant 10 : index
    %c0_61 = arith.constant 0 : index
    %c0_62 = arith.constant 0 : index
    %117 = vector.load %arg6[%c10, %c0_61, %c0_62] : memref<15x8x8xbf16, #tpu.memory_space<vmem>>, vector<1x8x8xbf16>
    %118 = vector.shape_cast %117 : vector<1x8x8xbf16> to vector<8x8xbf16>
    %cst_63 = arith.constant dense<0.000000e+00> : vector<32x8xf32>
    %119 = tpu.matmul %116, %118, %cst_63 {dimension_numbers = #tpu.dot_dimension_numbers<[1], [0], [0], [1], [0, 0, 1, 1], [], []>} : vector<32x8xbf16>, vector<8x8xbf16>, vector<32x8xf32> -> vector<32x8xf32>
    %120 = arith.addf %114, %119 : vector<32x8xf32>
    %121 = vector.extract_strided_slice %55 {offsets = [0, 11, 0], sizes = [32, 1, 8], strides = [1, 1, 1]} : vector<32x16x8xbf16> to vector<32x1x8xbf16>
    %122 = vector.shape_cast %121 : vector<32x1x8xbf16> to vector<32x8xbf16>
    %c11 = arith.constant 11 : index
    %c0_64 = arith.constant 0 : index
    %c0_65 = arith.constant 0 : index
    %123 = vector.load %arg6[%c11, %c0_64, %c0_65] : memref<15x8x8xbf16, #tpu.memory_space<vmem>>, vector<1x8x8xbf16>
    %124 = vector.shape_cast %123 : vector<1x8x8xbf16> to vector<8x8xbf16>
    %cst_66 = arith.constant dense<0.000000e+00> : vector<32x8xf32>
    %125 = tpu.matmul %122, %124, %cst_66 {dimension_numbers = #tpu.dot_dimension_numbers<[1], [0], [0], [1], [0, 0, 1, 1], [], []>} : vector<32x8xbf16>, vector<8x8xbf16>, vector<32x8xf32> -> vector<32x8xf32>
    %126 = arith.addf %120, %125 : vector<32x8xf32>
    %127 = vector.extract_strided_slice %55 {offsets = [0, 12, 0], sizes = [32, 1, 8], strides = [1, 1, 1]} : vector<32x16x8xbf16> to vector<32x1x8xbf16>
    %128 = vector.shape_cast %127 : vector<32x1x8xbf16> to vector<32x8xbf16>
    %c12 = arith.constant 12 : index
    %c0_67 = arith.constant 0 : index
    %c0_68 = arith.constant 0 : index
    %129 = vector.load %arg6[%c12, %c0_67, %c0_68] : memref<15x8x8xbf16, #tpu.memory_space<vmem>>, vector<1x8x8xbf16>
    %130 = vector.shape_cast %129 : vector<1x8x8xbf16> to vector<8x8xbf16>
    %cst_69 = arith.constant dense<0.000000e+00> : vector<32x8xf32>
    %131 = tpu.matmul %128, %130, %cst_69 {dimension_numbers = #tpu.dot_dimension_numbers<[1], [0], [0], [1], [0, 0, 1, 1], [], []>} : vector<32x8xbf16>, vector<8x8xbf16>, vector<32x8xf32> -> vector<32x8xf32>
    %132 = arith.addf %126, %131 : vector<32x8xf32>
    %133 = vector.extract_strided_slice %55 {offsets = [0, 13, 0], sizes = [32, 1, 8], strides = [1, 1, 1]} : vector<32x16x8xbf16> to vector<32x1x8xbf16>
    %134 = vector.shape_cast %133 : vector<32x1x8xbf16> to vector<32x8xbf16>
    %c13 = arith.constant 13 : index
    %c0_70 = arith.constant 0 : index
    %c0_71 = arith.constant 0 : index
    %135 = vector.load %arg6[%c13, %c0_70, %c0_71] : memref<15x8x8xbf16, #tpu.memory_space<vmem>>, vector<1x8x8xbf16>
    %136 = vector.shape_cast %135 : vector<1x8x8xbf16> to vector<8x8xbf16>
    %cst_72 = arith.constant dense<0.000000e+00> : vector<32x8xf32>
    %137 = tpu.matmul %134, %136, %cst_72 {dimension_numbers = #tpu.dot_dimension_numbers<[1], [0], [0], [1], [0, 0, 1, 1], [], []>} : vector<32x8xbf16>, vector<8x8xbf16>, vector<32x8xf32> -> vector<32x8xf32>
    %138 = arith.addf %132, %137 : vector<32x8xf32>
    %139 = vector.extract_strided_slice %55 {offsets = [0, 14, 0], sizes = [32, 1, 8], strides = [1, 1, 1]} : vector<32x16x8xbf16> to vector<32x1x8xbf16>
    %140 = vector.shape_cast %139 : vector<32x1x8xbf16> to vector<32x8xbf16>
    %c14 = arith.constant 14 : index
    %c0_73 = arith.constant 0 : index
    %c0_74 = arith.constant 0 : index
    %141 = vector.load %arg6[%c14, %c0_73, %c0_74] : memref<15x8x8xbf16, #tpu.memory_space<vmem>>, vector<1x8x8xbf16>
    %142 = vector.shape_cast %141 : vector<1x8x8xbf16> to vector<8x8xbf16>
    %cst_75 = arith.constant dense<0.000000e+00> : vector<32x8xf32>
    %143 = tpu.matmul %140, %142, %cst_75 {dimension_numbers = #tpu.dot_dimension_numbers<[1], [0], [0], [1], [0, 0, 1, 1], [], []>} : vector<32x8xbf16>, vector<8x8xbf16>, vector<32x8xf32> -> vector<32x8xf32>
    %144 = arith.addf %138, %143 : vector<32x8xf32>
    %c0_76 = arith.constant 0 : index
    %c0_77 = arith.constant 0 : index
    %145 = vector.load %arg7[%c0_76, %c0_77] : memref<1x8xf32, #tpu.memory_space<vmem>>, vector<1x8xf32>
    %146 = vector.broadcast %145 : vector<1x8xf32> to vector<32x8xf32>
    %147 = arith.addf %144, %146 : vector<32x8xf32>
    %cst_78 = arith.constant 0.000000e+00 : f32
    %148 = vector.broadcast %cst_78 : f32 to vector<32x8xf32>
    %149 = arith.cmpf oge, %147, %148 : vector<32x8xf32>
    %cst_79 = arith.constant 1.000000e-01 : f32
    %150 = vector.broadcast %cst_79 : f32 to vector<32x8xf32>
    %151 = arith.mulf %150, %147 : vector<32x8xf32>
    %152 = arith.select %149, %147, %151 : vector<32x8xi1>, vector<32x8xf32>
    %153 = arith.truncf %152 : vector<32x8xf32> to vector<32x8xbf16>
    %c0_80 = arith.constant 0 : index
    %c0_81 = arith.constant 0 : index
    %154 = vector.load %arg8[%c0_80, %c0_81] : memref<8x32xbf16, #tpu.memory_space<vmem>>, vector<8x32xbf16>
    %cst_82 = arith.constant dense<0.000000e+00> : vector<32x32xf32>
    %155 = tpu.matmul %153, %154, %cst_82 {dimension_numbers = #tpu.dot_dimension_numbers<[1], [0], [0], [1], [0, 0, 1, 1], [], []>} : vector<32x8xbf16>, vector<8x32xbf16>, vector<32x32xf32> -> vector<32x32xf32>
    %c0_83 = arith.constant 0 : index
    %c0_84 = arith.constant 0 : index
    %156 = vector.load %arg9[%c0_83, %c0_84] : memref<1x32xf32, #tpu.memory_space<vmem>>, vector<1x32xf32>
    %157 = vector.broadcast %156 : vector<1x32xf32> to vector<32x32xf32>
    %158 = arith.addf %155, %157 : vector<32x32xf32>
    %cst_85 = arith.constant dense<0xFF80> : vector<32x8xbf16>
    %159 = vector.multi_reduction <maximumf>, %0, %cst_85 [1] : vector<32x16x8xbf16> to vector<32x8xbf16>
    %c0_86 = arith.constant 0 : index
    %c0_87 = arith.constant 0 : index
    %160 = vector.load %arg10[%c0_86, %c0_87] : memref<8x32xbf16, #tpu.memory_space<vmem>>, vector<8x32xbf16>
    %cst_88 = arith.constant dense<0.000000e+00> : vector<32x32xf32>
    %161 = tpu.matmul %159, %160, %cst_88 {dimension_numbers = #tpu.dot_dimension_numbers<[1], [0], [0], [1], [0, 0, 1, 1], [], []>} : vector<32x8xbf16>, vector<8x32xbf16>, vector<32x32xf32> -> vector<32x32xf32>
    %c0_89 = arith.constant 0 : index
    %c0_90 = arith.constant 0 : index
    %162 = vector.load %arg11[%c0_89, %c0_90] : memref<1x32xf32, #tpu.memory_space<vmem>>, vector<1x32xf32>
    %163 = vector.broadcast %162 : vector<1x32xf32> to vector<32x32xf32>
    %164 = arith.addf %161, %163 : vector<32x32xf32>
    %165 = arith.addf %164, %158 : vector<32x32xf32>
    %cst_91 = arith.constant 0.000000e+00 : f32
    %166 = vector.broadcast %cst_91 : f32 to vector<32x32xf32>
    %167 = arith.cmpf oge, %165, %166 : vector<32x32xf32>
    %cst_92 = arith.constant 1.000000e-01 : f32
    %168 = vector.broadcast %cst_92 : f32 to vector<32x32xf32>
    %169 = arith.mulf %168, %165 : vector<32x32xf32>
    %170 = arith.select %167, %165, %169 : vector<32x32xi1>, vector<32x32xf32>
    %c0_93 = arith.constant 0 : index
    %c0_94 = arith.constant 0 : index
    %171 = vector.load %arg12[%c0_93, %c0_94] : memref<32x32xf32, #tpu.memory_space<vmem>>, vector<32x32xf32>
    tpu.vector_store %arg12[%c0_93, %c0_94], %170 {strides = array<i32>} : memref<32x32xf32, #tpu.memory_space<vmem>>, vector<32x32xf32>,
    return
  }
  func.func @transform_0(%arg0: i32) -> (i32, i32, i32) {
    %c0_i32 = arith.constant 0 : i32
    %c0_i32_0 = arith.constant 0 : i32
    %c0_i32_1 = arith.constant 0 : i32
    return %arg0, %c0_i32, %c0_i32_0 : i32, i32, i32
  }
  func.func @transform_1(%arg0: i32) -> (i32, i32, i32) {
    %c0_i32 = arith.constant 0 : i32
    %c0_i32_0 = arith.constant 0 : i32
    %c0_i32_1 = arith.constant 0 : i32
    return %c0_i32, %arg0, %c0_i32_0 : i32, i32, i32
  }
  func.func @transform_2(%arg0: i32) -> (i32, i32) {
    %c0_i32 = arith.constant 0 : i32
    %c0_i32_0 = arith.constant 0 : i32
    %c0_i32_1 = arith.constant 0 : i32
    return %c0_i32, %c0_i32_0 : i32, i32
  }
  func.func @transform_3(%arg0: i32) -> (i32, i32) {
    %c0_i32 = arith.constant 0 : i32
    %c0_i32_0 = arith.constant 0 : i32
    %c0_i32_1 = arith.constant 0 : i32
    return %c0_i32, %c0_i32_0 : i32, i32
  }
  func.func @transform_4(%arg0: i32) -> (i32, i32, i32) {
    %c0_i32 = arith.constant 0 : i32
    %c0_i32_0 = arith.constant 0 : i32
    %c0_i32_1 = arith.constant 0 : i32
    %c0_i32_2 = arith.constant 0 : i32
    return %c0_i32, %c0_i32_0, %c0_i32_1 : i32, i32, i32
  }
  func.func @transform_5(%arg0: i32) -> (i32, i32, i32) {
    %c0_i32 = arith.constant 0 : i32
    %c0_i32_0 = arith.constant 0 : i32
    %c0_i32_1 = arith.constant 0 : i32
    %c0_i32_2 = arith.constant 0 : i32
    return %c0_i32, %c0_i32_0, %c0_i32_1 : i32, i32, i32
  }
  func.func @transform_6(%arg0: i32) -> (i32, i32) {
    %c0_i32 = arith.constant 0 : i32
    %c0_i32_0 = arith.constant 0 : i32
    %c0_i32_1 = arith.constant 0 : i32
    return %c0_i32, %c0_i32_0 : i32, i32
  }
  func.func @transform_7(%arg0: i32) -> (i32, i32) {
    %c0_i32 = arith.constant 0 : i32
    %c0_i32_0 = arith.constant 0 : i32
    %c0_i32_1 = arith.constant 0 : i32
    return %c0_i32, %c0_i32_0 : i32, i32
  }
  func.func @transform_8(%arg0: i32) -> (i32, i32) {
    %c0_i32 = arith.constant 0 : i32
    %c0_i32_0 = arith.constant 0 : i32
    %c0_i32_1 = arith.constant 0 : i32
    return %c0_i32, %c0_i32_0 : i32, i32
  }
  func.func @transform_9(%arg0: i32) -> (i32, i32) {
    %c0_i32 = arith.constant 0 : i32
    %c0_i32_0 = arith.constant 0 : i32
    %c0_i32_1 = arith.constant 0 : i32
    return %c0_i32, %c0_i32_0 : i32, i32
  }
  func.func @transform_10(%arg0: i32) -> (i32, i32) {
    %c0_i32 = arith.constant 0 : i32
    %c0_i32_0 = arith.constant 0 : i32
    %c0_i32_1 = arith.constant 0 : i32
    return %c0_i32, %c0_i32_0 : i32, i32
  }
  func.func @transform_11(%arg0: i32) -> (i32, i32) {
    %c0_i32 = arith.constant 0 : i32
    %c0_i32_0 = arith.constant 0 : i32
    return %arg0, %c0_i32 : i32, i32
  }
}

</mosaic_0001>

<bundles_post_ra>
// kernel: tpu_custom_call.1
= control target key start
LH: loop header
LB: loop body
LE: loop exit
PB: predicated region body
PF: predicated region fallthrough
CT: control target
= control target key end

     0   :  { %vm370_vm0 = vcmask 1043456   ;;  %vm12363_vm1 = vcmask 64512   ;;  %v8240_v5 = vmov 0   ;;  %s12342_s0 = inlined_call_operand.vmem [shape: bf16[32,16,8], index: 0, kind: input, shape index: {}]   ;;  %s12343_s1 = inlined_call_operand.vmem [shape: f32[3,32,16], index: 1, kind: input, shape index: {}]   ;;  %s12344_s2 = inlined_call_operand.vmem [shape: bf16[8,8], index: 2, kind: input, shape index: {}]   ;;  %s12345_s3 = inlined_call_operand.vmem [shape: f32[1,8], index: 3, kind: input, shape index: {}]   ;;  %s12346_s4 = inlined_call_operand.vmem [shape: f32[3,16,1], index: 4, kind: input, shape index: {}]   ;;  %s12347_s5 = inlined_call_operand.vmem [shape: bf16[15,8,8], index: 5, kind: input, shape index: {}]   ;;  %s12348_s6 = inlined_call_operand.vmem [shape: f32[1,8], index: 6, kind: input, shape index: {}]   ;;  %s12349_s7 = inlined_call_operand.vmem [shape: bf16[8,32], index: 7, kind: input, shape index: {}]   ;;  %s12350_s8 = inlined_call_operand.vmem [shape: f32[1,32], index: 8, kind: input, shape index: {}]   ;;  %s12351_s9 = inlined_call_operand.vmem [shape: bf16[8,32], index: 9, kind: input, shape index: {}]   ;;  %s12352_s10 = inlined_call_operand.vmem [shape: f32[1,32], index: 10, kind: input, shape index: {}]   ;;  %s12353_s11 = inlined_call_operand.hbm [shape: f32[32,32], index: 11, kind: output, shape index: {}]  }
   0x1   :  { %v105_v0 = vld [vmem:[%s12344_s2] sm:$0xf]  ;;  %v8008_v3 = vld [vmem:[%s12342_s0 + $0x8] sm:$0xff]   ;;  %v8009_v4 = vld [vmem:[%s12342_s0 + $0x10] sm:$0xff]   ;;  %8006 = vset.pattern.permute.xlu1 %v8240_v5  ;;  %8005 = vset.pattern.permute.xlu0 %v8240_v5 }
   0x2   :  { %v8007_v1 = vld [vmem:[%s12342_s0] sm:$0xff]   ;;  %7979 = vmatprep.subr.msk.bf16.mxu0 %vm370_vm0, %v105_v0  ;;  %v372_v2 = vsel %vm370_vm0, %v105_v0, 0  ;;  %7980 = vmatprep.subr.msk.bf16.mxu1 %vm370_vm0, %v105_v0  ;;  %v8010_v6 = vld [vmem:[%s12342_s0 + $0x18] sm:$0xff]   ;;  %v8012_v8 = vld [vmem:[%s12342_s0 + $0x28] sm:$0xff]  }
   0x3   :  { %7550 = vmatpush3.bf16.msra.mxu0 %v372_v2  ;;  %7551 = vmatprep.mubr.msk.bf16.mxu0 %vm12363_vm1, %v8007_v1  ;;  %v8011_v7 = vld [vmem:[%s12342_s0 + $0x20] sm:$0xff]   ;;  %v8013_v9 = vld [vmem:[%s12342_s0 + $0x30] sm:$0xff]   ;;  %v7315_v12 = vld [vmem:[%s12346_s4 + $0x18] sm:$0xff] }
   0x4   :  { %7910 = vmatpush3.bf16.msra.mxu1 %v372_v2  ;;  %v7314_v10 = vld [vmem:[%s12346_s4 + $0x10] sm:$0xff]  ;;  %v1501_v11 = vld [vmem:[%s12346_s4] sm:$0xff]  ;;  %v1502_v13 = vld [vmem:[%s12346_s4 + $0x8] sm:$0xff] }
   0x5   :  { %1905 = vperm.xlu1 %8006, %v7314_v10   ;;  %1671 = vperm.xlu0 %8005, %v1501_v11   ;;  %v8014_v14 = vld [vmem:[%s12342_s0 + $0x38] sm:$0xff]   ;;  %v8015_v15 = vld [vmem:[%s12342_s0 + $0x40] sm:$0xff]   ;;  %v7317_v16 = vld [vmem:[%s12346_s4 + $0x28] sm:$0xff] }
   0x6   :  { %7552 = vmatmul.mubr.msk.bf16.vlgmr.msra.gmra.mrb[0].mxu0 %vm12363_vm1, %v8008_v3  ;;  %v7316_v17 = vld [vmem:[%s12346_s4 + $0x20] sm:$0xff]  ;;  %v8028_v19 = vld [vmem:[%s12342_s0 + $0xa8] sm:$0xff]   ;;  %v8029_v20 = vld [vmem:[%s12342_s0 + $0xb0] sm:$0xff]  }
   0x7   :  { %7555 = vmatprep.mubr.msk.bf16.mxu0 %vm12363_vm1, %v8009_v4  ;;  %v8027_v18 = vld [vmem:[%s12342_s0 + $0xa0] sm:$0xff]   ;;  %v8016_v21 = vld [vmem:[%s12342_s0 + $0x48] sm:$0xff]   ;;  %v8030_v22 = vld [vmem:[%s12342_s0 + $0xb8] sm:$0xff]  }
   0x8   :  { %7591 = vmatprep.mubr.msk.bf16.mxu1 %vm12363_vm1, %v8027_v18  ;;  %v8388_v23 = vld [vmem:[%s12342_s0 + $0xc0] sm:$0xff]   ;;  %v8017_v24 = vld [vmem:[%s12342_s0 + $0x50] sm:$0xff]   ;;  %v8401_v25 = vld [vmem:[%s12342_s0 + $0xc8] sm:$0xff]  }
   0x9   :  { %1910 = vperm.xlu1 %8006, %v7315_v12   ;;  %1676 = vperm.xlu0 %8005, %v1502_v13   ;;  %v8018_v26 = vld [vmem:[%s12342_s0 + $0x58] sm:$0xff]   ;;  %v8409_v27 = vld [vmem:[%s12342_s0 + $0xd0] sm:$0xff]  }
   0xa   :  { %7592 = vmatmul.mubr.msk.bf16.vlgmr.msra.gmra.mrb[0].mxu1 %vm12363_vm1, %v8028_v19 }
   0xb   :  { %7595 = vmatprep.mubr.msk.bf16.mxu1 %vm12363_vm1, %v8029_v20 }
   0xd   :  { %2144 = vperm.xlu1 %8006, %v7317_v16   ;;  %2139 = vperm.xlu0 %8005, %v7316_v17  }
   0xe   :  { %7556 = vmatmul.mubr.msk.bf16.gmra.mrb[4].mxu0 %vm12363_vm1, %v8010_v6 }
   0xf   :  { %7559 = vmatprep.mubr.msk.bf16.mxu0 %vm12363_vm1, %v8011_v7 }
  0x12   :  { %7596 = vmatmul.mubr.msk.bf16.gmra.mrb[4].mxu1 %vm12363_vm1, %v8030_v22 }
  0x13   :  { %7599 = vmatprep.mubr.msk.bf16.mxu1 %vm12363_vm1, %v8388_v23 }
  0x16   :  { %7560 = vmatmul.mubr.msk.bf16.gmra.mrb[8].mxu0 %vm12363_vm1, %v8012_v8 }
  0x17   :  { %7563 = vmatprep.mubr.msk.bf16.mxu0 %vm12363_vm1, %v8013_v9 }
  0x1e   :  { %7564 = vmatmul.mubr.msk.bf16.gmra.mrb[12].mxu0 %vm12363_vm1, %v8014_v14 }
  0x1f   :  { %7567 = vmatprep.mubr.msk.bf16.mxu0 %vm12363_vm1, %v8015_v15 }
  0x26   :  { %7568 = vmatmul.mubr.msk.bf16.gmra.mrb[16].mxu0 %vm12363_vm1, %v8016_v21 }
  0x27   :  { %7571 = vmatprep.mubr.msk.bf16.mxu0 %vm12363_vm1, %v8017_v24 }
  0x28   :  { %16 = vsyncpa [#allocation3], 0  ;;  %v8019_v28 = vld [vmem:[%s12342_s0 + $0x60] sm:$0xff]   ;;  %7600 = vmatmul.mubr.msk.bf16.gmra.mrb[8].mxu1 %vm12363_vm1, %v8401_v25  ;;  %v8427_v31 = vld [vmem:[%s12342_s0 + $0x88] sm:$0xff]   ;;  %v6900_v53 = vsel %vm12363_vm1, %v8027_v18, 4286644096 }
  0x29   :  { %v8417_v29 = vld [vmem:[%s12342_s0 + $0x80] sm:$0xff]   ;;  %v8432_v32 = vld [vmem:[%s12342_s0 + $0x90] sm:$0xff]   ;;  %7603 = vmatprep.mubr.msk.bf16.mxu1 %vm12363_vm1, %v8409_v27  ;;  %v6864_v35 = vsel %vm12363_vm1, %v8427_v31, 4286644096  ;;  %v8444_v37 = vld [vmem:[%s12342_s0 + $0x98] sm:$0xff]   ;;  %v6902_v57 = vunpack.i.l.bf16 %v6900_v53  ;;  %v6903_v59 = vunpack.i.h.bf16 %v6900_v53  ;;  %vm12367_vm2 = vcmask 1041409  }
  0x2a   :  { %v6852_v30 = vsel %vm12363_vm1, %v8417_v29, 4286644096  ;;  %v6876_v36 = vsel %vm12363_vm1, %v8432_v32, 4286644096  ;;  %v6866_v39 = vunpack.i.l.bf16 %v6864_v35  ;;  %v6867_v40 = vunpack.i.h.bf16 %v6864_v35  ;;  %v8034_v41 = vld [vmem:[%s12342_s0 + $0xd8] sm:$0xff]   ;;  %v8020_v42 = vld [vmem:[%s12342_s0 + $0x68] sm:$0xff]  }
  0x2b   :  { %v6854_v33 = vunpack.i.l.bf16 %v6852_v30  ;;  %v6855_v34 = vunpack.i.h.bf16 %v6852_v30  ;;  %v6878_v43 = vunpack.i.l.bf16 %v6876_v36  ;;  %v6879_v44 = vunpack.i.h.bf16 %v6876_v36  ;;  %v8035_v46 = vld [vmem:[%s12342_s0 + $0xe0] sm:$0xff]   ;;  %v8021_v47 = vld [vmem:[%s12342_s0 + $0x70] sm:$0xff]   ;;  %v8036_v4 = vld [vmem:[%s12342_s0 + $0xe8] sm:$0xff]   ;;  %s8244_s19 = smov [#allocation2]  }
  0x2c   :  { %v6888_v45 = vsel %vm12363_vm1, %v8444_v37, 4286644096  ;;  %v6868_v49 = vmax.f32 %v6866_v39, %v6867_v40  ;;  %v6904_v0 = vmax.f32 %v6902_v57, %v6903_v59  ;;  %v8022_v5 = vld [vmem:[%s12342_s0 + $0x78] sm:$0xff]   ;;  %v8037_v8 = vld [vmem:[%s12342_s0 + $0xf0] sm:$0xff]   ;;  %v6948_v39 = vsel %vm12363_vm1, %v8388_v23, 4286644096 }
  0x2d   :  { %v6856_v38 = vmax.f32 %v6854_v33, %v6855_v34  ;;  %v6890_v50 = vunpack.i.l.bf16 %v6888_v45  ;;  %v6891_v51 = vunpack.i.h.bf16 %v6888_v45  ;;  %v6880_v52 = vmax.f32 %v6878_v43, %v6879_v44  ;;  %v8038_v33 = vld [vmem:[%s12342_s0 + $0xf8] sm:$0xff]   ;;  %s7230_s20 = sshll.u32 %s8244_s19, 4  ;;  %s7231_s20 = int_to_ptr.vmem [resolvable:$true] %s7230_s20 }
  0x2e   :  { %7572 = vmatmul.mubr.msk.bf16.gmra.mrb[20].mxu0 %vm12363_vm1, %v8018_v26  ;;  %v6869_v55 = vrot.slane %v6868_v49, 4  ;;  %v6905_v7 = vrot.slane %v6904_v0, 4  ;;  %vm12366_vm3 = vcmask 1042434   ;;  %v6950_v43 = vunpack.i.l.bf16 %v6948_v39  ;;  %p8221_p1 = scmp.lt.s32.totalorder %s7231_s20, %s7231_s20 }
  0x2f   :  { %7575 = vmatprep.mubr.msk.bf16.mxu0 %vm12363_vm1, %v8019_v28  ;;  %v6857_v48 = vrot.slane %v6856_v38, 4  ;;  %v6892_v56 = vmax.f32 %v6890_v50, %v6891_v51  ;;  %v6881_v58 = vrot.slane %v6880_v52, 4  ;;  %vm12365_vm4 = vcmask 1043459  }
  0x30   :  { %7604 = vmatmul.mubr.msk.bf16.gmra.mrb[12].mxu1 %vm12363_vm1, %v8034_v41  ;;  %v6870_v61 = vmax.f32 %v6868_v49, %v6869_v55  ;;  %v6906_v13 = vmax.f32 %v6904_v0, %v6905_v7  ;;  %vm12364_vm5 = vcmask 1044484   ;;  %vm8242_vm6 = vmmov 0  }
  0x31   :  { %v6858_v54 = vmax.f32 %v6856_v38, %v6857_v48  ;;  %7607 = vmatprep.mubr.msk.bf16.mxu1 %vm12363_vm1, %v8035_v46  ;;  %v6893_v62 = vrot.slane %v6892_v56, 4  ;;  %v6882_v63 = vmax.f32 %v6880_v52, %v6881_v58  ;;  %v6951_v46 = vunpack.i.h.bf16 %v6948_v39 }
  0x32   :  { %v6871_v2 = vrot.slane %v6870_v61, 2  ;;  %v6907_v18 = vrot.slane %v6906_v13, 2 }
  0x33   :  { %v6859_v60 = vrot.slane %v6858_v54, 2  ;;  %v6894_v3 = vmax.f32 %v6892_v56, %v6893_v62  ;;  %v6883_v6 = vrot.slane %v6882_v63, 2  ;;  %v6952_v50 = vmax.f32 %v6950_v43, %v6951_v46 }
  0x34   :  { %v6872_v10 = vmax.f32 %v6870_v61, %v6871_v2  ;;  %v6908_v24 = vmax.f32 %v6906_v13, %v6907_v18  ;;  %v899_v18 = vlaneseq }
  0x35   :  { %v6860_v1 = vmax.f32 %v6858_v54, %v6859_v60  ;;  %v6895_v11 = vrot.slane %v6894_v3, 2  ;;  %v6884_v12 = vmax.f32 %v6882_v63, %v6883_v6  ;;  %v6953_v54 = vrot.slane %v6952_v50, 4 }
  0x36   :  { %7576 = vmatmul.mubr.msk.bf16.gmra.mrb[24].mxu0 %vm12363_vm1, %v8020_v42  ;;  %v6873_v15 = vrot.slane %v6872_v10, 1  ;;  %v6909_v35 = vrot.slane %v6908_v24, 1 }
  0x37   :  { %7579 = vmatprep.mubr.msk.bf16.mxu0 %vm12363_vm1, %v8021_v47  ;;  %v6861_v9 = vrot.slane %v6860_v1, 1  ;;  %v6896_v16 = vmax.f32 %v6894_v3, %v6895_v11  ;;  %v6885_v17 = vrot.slane %v6884_v12, 1  ;;  %v6960_v47 = vsel %vm12363_vm1, %v8401_v25, 4286644096 }
  0x38   :  { %7608 = vmatmul.mubr.msk.bf16.gmra.mrb[16].mxu1 %vm12363_vm1, %v8036_v4  ;;  %v6874_v20 = vmax.f32 %v6872_v10, %v6873_v15  ;;  %v6910_v40 = vmax.f32 %v6908_v24, %v6909_v35  ;;  %v6962_v49 = vunpack.i.l.bf16 %v6960_v47  ;;  %v6963_v51 = vunpack.i.h.bf16 %v6960_v47 }
  0x39   :  { %v6862_v14 = vmax.f32 %v6860_v1, %v6861_v9  ;;  %7611 = vmatprep.mubr.msk.bf16.mxu1 %vm12363_vm1, %v8037_v8  ;;  %v6897_v21 = vrot.slane %v6896_v16, 1  ;;  %v6886_v22 = vmax.f32 %v6884_v12, %v6885_v17  ;;  %v6954_v56 = vmax.f32 %v6952_v50, %v6953_v54 }
  0x3a   :  { %v6875_v28 = vpack.i.bf16 %v6874_v20, %v6874_v20  ;;  %v6911_v44 = vpack.i.bf16 %v6910_v40, %v6910_v40  ;;  %v12354_v15 = vmov 0.0   ;;  %v900_v20 = vshrl.u32 %v899_v18, 7  ;;  %v8593_v18 = vld.sshfl [vmem:[%s12343_s1 + $0x28] sm:$0xff pattern:$0x75316420] }
  0x3b   :  { %v6863_v19 = vpack.i.bf16 %v6862_v14, %v6862_v14  ;;  %v6898_v30 = vmax.f32 %v6896_v16, %v6897_v21  ;;  %v6887_v34 = vpack.i.bf16 %v6886_v22, %v6886_v22  ;;  %v6955_v25 = vrot.slane %v6954_v56, 2  ;;  %7615 = vmatprep.subr.bf16.mxu1 %v12354_v15  ;;  %7711 = vmatprep.subr.bf16.mxu0 %v12354_v15  ;;  %v887_v22 = vld [vmem:[%s12343_s1] sm:$0xff] }
  0x3c   :  { %v7101_v36 = vunpack.c.l.b16 %v6875_v28  ;;  %v7104_v48 = vunpack.c.l.b16 %v6911_v44  ;;  %v8243_v16 = vmov 1966171168   ;;  %v7310_v28 = vld [vmem:[%s12343_s1 + $0x40] sm:$0xff] }
  0x3d   :  { %v7100_v26 = vunpack.c.l.b16 %v6863_v19  ;;  %v6899_v38 = vpack.i.bf16 %v6898_v30, %v6898_v30  ;;  %v6956_v61 = vmax.f32 %v6954_v56, %v6955_v25  ;;  %v897_v17 = vunpack.c.l.s4 %v8243_v16 }
  0x3e   :  { %7580 = vmatmul.mubr.msk.bf16.gmra.mrb[28].mxu0 %vm12363_vm1, %v8022_v5 }
  0x3f   :  { %7583 = vmatprep.mubr.msk.bf16.mxu0 %vm12363_vm1, %v8417_v29  ;;  %v7102_v29 = vunpack.c.l.b16 %v6887_v34  ;;  %v7130_v41 = vsel %vm12367_vm2, %v7101_v36, %v7100_v26  ;;  %v7103_v42 = vunpack.c.l.b16 %v6899_v38  ;;  %v898_v19 = vunpack.c.0.s8 %v897_v17  ;;  %v7306_v26 = vld [vmem:[%s12343_s1 + $0x20] sm:$0xff] }
  0x40   :  { %7612 = vmatmul.mubr.msk.bf16.gmra.mrb[20].mxu1 %vm12363_vm1, %v8038_v33  ;;  %v895_v34 = vcombine.high %v887_v22, %v887_v22  ;;  %v1100_v35 = vcombine.high %v7306_v26, %v7306_v26  ;;  %v1305_v36 = vcombine.high %v7310_v28, %v7310_v28 }
  0x41   :  { %v7131_v45 = vsel %vm12366_vm3, %v7102_v29, %v7130_v41  ;;  %7617 = vmatprep.mubr.msk.bf16.mxu1 %vm8242_vm6, %v12354_v15  ;;  %v8511_v21 = vsub.s32 %v898_v19, %v900_v20 }
  0x42   :  { %v7132_v23 = vsel %vm12365_vm4, %v7103_v42, %v7131_v45  ;;  %v8527_v42 = vsub.s32 0, %v900_v20 }
  0x43   :  { %v8497_v52 = vsel %vm12364_vm5, %v7104_v48, %v7132_v23  ;;  %12439 = vst [vmem:[#allocation7_spill] sm:$0xff] %v8511_v21  ;;  %v902_v24 = vrot.slane %v887_v22, %v8511_v21  ;;  %v1107_v30 = vrot.slane %v7306_v26, %v8511_v21  ;;  %v1312_v33 = vrot.slane %v7310_v28, %v8511_v21 }
  0x44   :  { %12437 = vst [vmem:[#allocation5_spill] sm:$0xff] %v8497_v52  ;;  %v909_v40 = vrot.slane %v895_v34, %v8511_v21  ;;  %v1114_v43 = vrot.slane %v1100_v35, %v8511_v21  ;;  %v1319_v44 = vrot.slane %v1305_v36, %v8511_v21 }
  0x45   :  { %v910_v38 = vcombine.high %v902_v24, %v902_v24  ;;  %v1115_v39 = vcombine.high %v1107_v30, %v1107_v30  ;;  %v1320_v29 = vcombine.high %v1312_v33, %v1312_v33  ;;  %v918_v41 = vrot.slane %v902_v24, %v8511_v21  ;;  %v8601_v24 = vld.sshfl [vmem:[%s12343_s1 + $0x48] sm:$0xff pattern:$0x75316420] }
  0x46   :  { %7584 = vmatmul.mubr.msk.bf16.gmra.mrb[32].mxu0 %vm12363_vm1, %v8427_v31  ;;  %v6972_v31 = vsel %vm12363_vm1, %v8409_v27, 4286644096  ;;  %v6957_v27 = vrot.slane %v6956_v61, 1  ;;  %v1123_v45 = vrot.slane %v1107_v30, %v8511_v21  ;;  %v1328_v23 = vrot.slane %v1312_v33, %v8511_v21  ;;  %v8615_v33 = vld.sshfl [vmem:[%s12343_s1 + $0x10] sm:$0xff pattern:$0x75316420] }
  0x47   :  { %7587 = vmatprep.mubr.msk.bf16.mxu0 %vm12363_vm1, %v8432_v32  ;;  %v6974_v53 = vunpack.i.l.bf16 %v6972_v31  ;;  %v6964_v32 = vmax.f32 %v6962_v49, %v6963_v51  ;;  %v6975_v55 = vunpack.i.h.bf16 %v6972_v31  ;;  %v932_v46 = vrot.slane %v910_v38, %v8511_v21  ;;  %12440 = vst [vmem:[#allocation8_spill] sm:$0xff] %v8615_v33  ;;  %v8630_v38 = vld.sshfl [vmem:[%s12343_s1 + $0x30] sm:$0xff pattern:$0x75316420] }
  0x48   :  { %v6958_v2 = vmax.f32 %v6956_v61, %v6957_v27  ;;  %v1137_v47 = vrot.slane %v1115_v39, %v8511_v21  ;;  %v1342_v48 = vrot.slane %v1320_v29, %v8511_v21  ;;  %v925_v49 = vrot.slane %v909_v40, %v8511_v21  ;;  %12442 = vst [vmem:[#allocation10_spill] sm:$0xff] %v8630_v38 }
  0x49   :  { %v6965_v57 = vrot.slane %v6964_v32, 4  ;;  %v6976_v58 = vmax.f32 %v6974_v53, %v6975_v55  ;;  %v1130_v50 = vrot.slane %v1114_v43, %v8511_v21  ;;  %v911_v51 = vcombine.high %v909_v40, %v909_v40 }
  0x4a   :  { %v6959_v5 = vpack.i.bf16 %v6958_v2, %v6958_v2  ;;  %v8539_v31 = vrot.slane %v918_v41, %v8527_v42  ;;  %v940_v53 = vcombine.high %v918_v41, %v918_v41  ;;  %v1116_v54 = vcombine.high %v1114_v43, %v1114_v43  ;;  %v8646_v41 = vld.sshfl [vmem:[%s12343_s1 + $0x50] sm:$0xff pattern:$0x75316420] }
  0x4b   :  { %v6966_v59 = vmax.f32 %v6964_v32, %v6965_v57  ;;  %v6977_v60 = vrot.slane %v6976_v58, 4  ;;  %v1321_v32 = vcombine.high %v1319_v44, %v1319_v44  ;;  %v8542_v55 = vrot.slane %v1123_v45, %v8527_v42  ;;  %12445 = vst [vmem:[#allocation13_spill] sm:$0xff] %v8646_v41 }
  0x4c   :  { %v7108_v8 = vunpack.c.l.b16 %v6959_v5  ;;  %v1145_v56 = vcombine.high %v1123_v45, %v1123_v45  ;;  %v1350_v57 = vcombine.high %v1328_v23, %v1328_v23  ;;  %v8545_v25 = vrot.slane %v1328_v23, %v8527_v42 }
  0x4d   :  { %v6967_v62 = vrot.slane %v6966_v59, 2  ;;  %v6978_v63 = vmax.f32 %v6976_v58, %v6977_v60  ;;  %v942_v58 = vcombine.high %v932_v46, %v932_v46  ;;  %v1147_v60 = vcombine.high %v1137_v47, %v1137_v47 }
  0x4e   :  { %7588 = vmatmul.mubr.msk.bf16.gmra.mrb[36].mxu0 %vm12363_vm1, %v8444_v37  ;;  %v1335_v61 = vrot.slane %v1319_v44, %v8511_v21  ;;  %v939_v27 = vrot.slane %v911_v51, %v8511_v21  ;;  %v8559_v2 = vrot.slane %v940_v53, %v8527_v42  ;;  %v1754_v5 = vrot.slane %v1145_v56, %v8527_v42 }
  0x4f   :  { %v6968_v0 = vmax.f32 %v6966_v59, %v6967_v62  ;;  %v6979_v1 = vrot.slane %v6978_v63, 2  ;;  %7713 = vmatprep.mubr.msk.bf16.mxu0 %vm8242_vm6, %v12354_v15  ;;  %v8548_v59 = vrot.slane %v932_v46, %v8527_v42  ;;  %v8552_v62 = vrot.slane %v1137_v47, %v8527_v42 }
  0x50   :  { %v943_v17 = vcombine.high %v939_v27, %v939_v27  ;;  %v8596_v19 = vrot.slane %v1335_v61, %v8527_v42  ;;  %v8604_v26 = vrot.slane %v939_v27, %v8527_v42  ;;  %v8637_v29 = vrot.slane %v8593_v18, %v8511_v21 }
  0x51   :  { %v6969_v3 = vrot.slane %v6968_v0, 1  ;;  %v6980_v4 = vmax.f32 %v6978_v63, %v6979_v1  ;;  %v1352_v63 = vcombine.high %v1342_v48, %v1342_v48  ;;  %v8556_v1 = vrot.slane %v1342_v48, %v8527_v42 }
  0x52   :  { %v8633_v39 = vrot.slane %v943_v17, %v8527_v42  ;;  %12443 = vst [vmem:[#allocation11_spill] sm:$0xff] %v8637_v29  ;;  %v8641_v40 = vrot.slane %v8601_v24, %v8511_v21  ;;  %v8656_v45 = vrot.slane %v8615_v33, %v8511_v21  ;;  %v8666_v47 = vrot.slane %v8637_v29, %v8527_v42 }
  0x53   :  { %v6970_v6 = vmax.f32 %v6968_v0, %v6969_v3  ;;  %v6981_v7 = vrot.slane %v6980_v4, 1  ;;  %v941_v0 = vcombine.high %v925_v49, %v925_v49  ;;  %v1144_v3 = vrot.slane %v1116_v54, %v8511_v21 }
  0x54   :  { %12444 = vst [vmem:[#allocation12_spill] sm:$0xff] %v8641_v40  ;;  %v8670_v48 = vrot.slane %v8641_v40, %v8527_v42  ;;  %v8684_v54 = vrot.slane %v8646_v41, %v8511_v21 }
  0x55   :  { %v6971_v9 = vpack.i.bf16 %v6970_v6, %v6970_v6  ;;  %v6982_v10 = vmax.f32 %v6980_v4, %v6981_v7  ;;  %v1349_v4 = vrot.slane %v1321_v32, %v8511_v21  ;;  %v8565_v6 = vrot.slane %v1350_v57, %v8527_v42 }
  0x56   :  { %v8568_v7 = vrot.slane %v942_v58, %v8527_v42  ;;  %v8588_v16 = vrot.slane %v941_v0, %v8527_v42  ;;  %v1148_v20 = vcombine.high %v1144_v3, %v1144_v3  ;;  %v8607_v28 = vrot.slane %v1144_v3, %v8527_v42  ;;  %12446 = vst [vmem:[#allocation14_spill] sm:$0xff] %v8684_v54 }
  0x57   :  { %v7109_v11 = vunpack.c.l.b16 %v6971_v9  ;;  %v6983_v37 = vpack.i.bf16 %v6982_v10, %v6982_v10  ;;  %v8571_v9 = vrot.slane %v1147_v60, %v8527_v42  ;;  %v8574_v10 = vrot.slane %v925_v49, %v8527_v42 }
  0x58   :  { %v1353_v22 = vcombine.high %v1349_v4, %v1349_v4  ;;  %v8618_v34 = vrot.slane %v1349_v4, %v8527_v42  ;;  %v8649_v43 = vrot.slane %v1148_v20, %v8527_v42  ;;  %v8674_v49 = vrot.slane %v8630_v38, %v8511_v21 }
  0x59   :  { %v7137_v12 = vsel %vm12367_vm2, %v7109_v11, %v7108_v8  ;;  %v7110_v13 = vunpack.c.l.b16 %v6983_v37  ;;  %v1146_v8 = vcombine.high %v1130_v50, %v1130_v50  ;;  %v8577_v11 = vrot.slane %v1130_v50, %v8527_v42 }
  0x5a   :  { %v1351_v37 = vcombine.high %v1335_v61, %v1335_v61  ;;  %v8652_v44 = vrot.slane %v1353_v22, %v8527_v42  ;;  %v8688_v32 = vrot.slane %v8656_v45, %v8527_v42  ;;  %v8699_v61 = vrot.slane %v8674_v49, %v8527_v42 }
  0x5b   :  { %v8503_v14 = vsel %vm12366_vm3, %v7110_v13, %v7137_v12  ;;  %v8582_v12 = vld.sshfl [vmem:[%s12343_s1 + $0x8] sm:$0xff pattern:$0x75316420]  ;;  %v8585_v13 = vrot.slane %v1352_v63, %v8527_v42  ;;  %v8610_v30 = vrot.slane %v1146_v8, %v8527_v42  ;;  %v8703_v63 = vrot.slane %v8684_v54, %v8527_v42 }
  0x5c   :  { %12438 = vst [vmem:[#allocation6_spill] sm:$0xff] %v8503_v14  ;;  %v8621_v35 = vrot.slane %v1351_v37, %v8527_v42  ;;  %v8625_v36 = vrot.slane %v8582_v12, %v8511_v21  ;;  %v959_v27 = vcombine.high %v8582_v12, %v8582_v12 }
  0x5e   :  { %12441 = vst [vmem:[#allocation9_spill] sm:$0xff] %v8625_v36  ;;  %v8662_v46 = vrot.slane %v8625_v36, %v8527_v42 }
  0x84   :  { %v8658_v23 = vpop.permute.xlu1 %1905  ;;  %v8676_v50 = vpop.permute.xlu0 %1671 }
  0x85   :  { %v1913_v51 = vsub.f32 %v8542_v55, %v8658_v23  ;;  %v1915_v53 = vsub.f32 %v8552_v62, %v8658_v23  ;;  %v1679_v56 = vsub.f32 %v8539_v31, %v8676_v50  ;;  %v1681_v57 = vsub.f32 %v8548_v59, %v8676_v50 }
  0x86   :  { %v1683_v58 = vsub.f32 %v8559_v2, %v8676_v50  ;;  %v1917_v60 = vsub.f32 %v1754_v5, %v8658_v23  ;;  %v1919_v12 = vsub.f32 %v8571_v9, %v8658_v23 }
  0x87   :  { %v2211_v4 = vmul.f32 %v1679_v56, %v1679_v56  ;;  %v2275_v8 = vmul.f32 %v1913_v51, %v1913_v51  ;;  %v2213_v37 = vmul.f32 %v1681_v57, %v1681_v57  ;;  %v2277_v17 = vmul.f32 %v1915_v53, %v1915_v53 }
  0x88   :  { %v8709_v3 = vpop.permute.xlu1 %1910  ;;  %v8711_v20 = vpop.permute.xlu0 %1676  ;;  %v2215_v53 = vmul.f32 %v1683_v58, %v1683_v58  ;;  %v2279_v56 = vmul.f32 %v1917_v60, %v1917_v60 }
  0x89   :  { %v1914_v22 = vsub.f32 %v8542_v55, %v8709_v3  ;;  %v1916_v15 = vsub.f32 %v8552_v62, %v8709_v3  ;;  %v1918_v14 = vsub.f32 %v1754_v5, %v8709_v3  ;;  %v1680_v0 = vsub.f32 %v8539_v31, %v8711_v20 }
  0x8a   :  { %v1682_v51 = vsub.f32 %v8548_v59, %v8711_v20  ;;  %v1684_v55 = vsub.f32 %v8559_v2, %v8711_v20  ;;  %v2339_v38 = vadd.f32 %v2275_v8, %v2211_v4  ;;  %v2341_v40 = vadd.f32 %v2277_v17, %v2213_v37 }
  0x8b   :  { %v2276_v57 = vmul.f32 %v1914_v22, %v1914_v22  ;;  %v2278_v52 = vmul.f32 %v1916_v15, %v1916_v15  ;;  %v2280_v41 = vmul.f32 %v1918_v14, %v1918_v14  ;;  %v2212_v5 = vmul.f32 %v1680_v0, %v1680_v0 }
  0x8c   :  { %v8726_v62 = vpop.permute.xlu1 %2144  ;;  %v2214_v33 = vmul.f32 %v1682_v51, %v1682_v51  ;;  %v8728_v29 = vpop.permute.xlu0 %2139  ;;  %v2216_v58 = vmul.f32 %v1684_v55, %v1684_v55  ;;  %v1685_v55 = vsub.f32 %v8568_v7, %v8676_v50 }
  0x8d   :  { %v2148_v31 = vsub.f32 %v8545_v25, %v8726_v62  ;;  %v2150_v59 = vsub.f32 %v8556_v1, %v8726_v62  ;;  %v2152_v15 = vsub.f32 %v8565_v6, %v8726_v62  ;;  %v2147_v14 = vsub.f32 %v8545_v25, %v8728_v29 }
  0x8e   :  { %v2340_v2 = vadd.f32 %v2276_v57, %v2212_v5  ;;  %v2149_v60 = vsub.f32 %v8556_v1, %v8728_v29  ;;  %v2342_v0 = vadd.f32 %v2278_v52, %v2214_v33  ;;  %v2151_v37 = vsub.f32 %v8565_v6, %v8728_v29 }
  0x8f   :  { %v2404_v4 = vmul.f32 %v2148_v31, %v2148_v31  ;;  %v2406_v8 = vmul.f32 %v2150_v59, %v2150_v59  ;;  %v2344_v17 = vadd.f32 %v2280_v41, %v2216_v58  ;;  %v2403_v22 = vmul.f32 %v2147_v14, %v2147_v14 }
  0x90   :  { %v2405_v51 = vmul.f32 %v2149_v60, %v2149_v60  ;;  %v2408_v36 = vmul.f32 %v2152_v15, %v2152_v15  ;;  %v1686_v25 = vsub.f32 %v8568_v7, %v8711_v20  ;;  %v8749_v1 = vrot.slane %v959_v27, %v8511_v21 }
  0x91   :  { %v8744_v54 = vadd.f32 %v2404_v4, %v2340_v2  ;;  %v1369_v52 = vcombine.high %v8601_v24, %v8601_v24  ;;  %v8753_v33 = vadd.f32 %v2403_v22, %v2339_v38  ;;  %v8757_v41 = vadd.f32 %v2406_v8, %v2342_v0 }
  0x92   :  { %12447 = vst [vmem:[#allocation15_spill] sm:$0xff] %v8749_v1  ;;  %v8755_v6 = vadd.f32 %v2405_v51, %v2341_v40  ;;  %v2281_v57 = vmul.f32 %v1919_v12, %v1919_v12  ;;  %v2343_v5 = vadd.f32 %v2279_v56, %v2215_v53  ;;  %v2407_v31 = vmul.f32 %v2151_v37, %v2151_v37 }
  0x93   :  { %8051 = vrsqrt.f32 %v8744_v54  ;;  %v8760_v59 = vadd.f32 %v2408_v36, %v2344_v17  ;;  %v1920_v7 = vsub.f32 %v8571_v9, %v8709_v3  ;;  %v2153_v38 = vsub.f32 %v8585_v13, %v8728_v29 }
  0x94   :  { %8053 = vrsqrt.f32 %v8753_v33  ;;  %v2217_v27 = vmul.f32 %v1685_v55, %v1685_v55  ;;  %vm2540_vm7 = vcmp.eq.f32.partialorder %v8744_v54, inf  ;;  %v2154_v40 = vsub.f32 %v8585_v13, %v8726_v62 }
  0x95   :  { %8055 = vrsqrt.f32 %v8755_v6  ;;  %v2218_v12 = vmul.f32 %v1686_v25, %v1686_v25  ;;  %vm2533_vm8 = vcmp.eq.f32.partialorder %v8753_v33, inf  ;;  %vm2542_vm9 = vcmp.eq.f32.partialorder %v8744_v54, 0.0 }
  0x96   :  { %v2543_v36 = vand.u32 2147483648, %v8744_v54  ;;  %8057 = vrsqrt.f32 %v8757_v41  ;;  %vm2535_vm10 = vcmp.eq.f32.partialorder %v8753_v33, 0.0  ;;  %v2536_v9 = vand.u32 2147483648, %v8753_v33 }
  0x97   :  { %vm2547_vm11 = vcmp.eq.f32.partialorder %v8755_v6, inf  ;;  %v8778_v53 = vadd.f32 %v2407_v31, %v2343_v5  ;;  %8059 = vrsqrt.f32 %v8760_v59  ;;  %vm2549_vm12 = vcmp.eq.f32.partialorder %v8755_v6, 0.0 }
  0x98   :  { %v2282_v13 = vmul.f32 %v1920_v7, %v1920_v7  ;;  %v2345_v56 = vadd.f32 %v2281_v57, %v2217_v27  ;;  %v2409_v15 = vmul.f32 %v2153_v38, %v2153_v38  ;;  %v2550_v58 = vand.u32 2147483648, %v8755_v6 }
  0x99   :  { %vm2554_vm13 = vcmp.eq.f32.partialorder %v8757_v41, inf  ;;  %vm2556_vm14 = vcmp.eq.f32.partialorder %v8757_v41, 0.0  ;;  %8061 = vrsqrt.f32 %v8778_v53  ;;  %v2410_v2 = vmul.f32 %v2154_v40, %v2154_v40 }
  0x9a   :  { %v2346_v14 = vadd.f32 %v2282_v13, %v2218_v12  ;;  %v8786_v60 = vadd.f32 %v2409_v15, %v2345_v56  ;;  %v1687_v0 = vsub.f32 %v8574_v10, %v8676_v50  ;;  %v2557_v4 = vand.u32 2147483648, %v8757_v41 }
  0x9b   :  { %vm2568_vm15 = vcmp.eq.f32.partialorder %v8760_v59, inf  ;;  %vm2570_vm1 = vcmp.eq.f32.partialorder %v8760_v59, 0.0  ;;  %v1921_v8 = vsub.f32 %v8577_v11, %v8658_v23  ;;  %v1688_v17 = vsub.f32 %v8574_v10, %v8711_v20 }
  0x9c   :  { %v8795_v37 = vadd.f32 %v2410_v2, %v2346_v14  ;;  %8063 = vrsqrt.f32 %v8786_v60  ;;  %v1922_v22 = vsub.f32 %v8577_v11, %v8709_v3  ;;  %vm2561_vm5 = vcmp.eq.f32.partialorder %v8778_v53, inf }
  0x9d   :  { %v8052_v51 = vpop.eup %8051  ;;  %vm2563_vm4 = vcmp.eq.f32.partialorder %v8778_v53, 0.0  ;;  %v2571_v55 = vand.u32 2147483648, %v8760_v59  ;;  %v2155_v25 = vsub.f32 %v8596_v19, %v8728_v29  ;;  %v2564_v31 = vand.u32 2147483648, %v8778_v53 }
  0x9e   :  { %v8054_v57 = vpop.eup %8053  ;;  %v2539_v5 = vmul.f32 %v8052_v51, %v8744_v54  ;;  %8065 = vrsqrt.f32 %v8795_v37  ;;  %v2219_v10 = vmul.f32 %v1687_v0, %v1687_v0  ;;  %vm2575_vm3 = vcmp.eq.f32.partialorder %v8786_v60, inf }
  0x9f   :  { %v8056_v7 = vpop.eup %8055  ;;  %v2532_v11 = vmul.f32 %v8054_v57, %v8753_v33  ;;  %v2156_v38 = vsub.f32 %v8596_v19, %v8726_v62  ;;  %v2283_v27 = vmul.f32 %v1921_v8, %v1921_v8  ;;  %vm2577_vm2 = vcmp.eq.f32.partialorder %v8786_v60, 0.0 }
  0xa0   :  { %v8058_v40 = vpop.eup %8057  ;;  %v2541_v12 = vsel %vm2540_vm7, %v8744_v54, %v2539_v5  ;;  %v2546_v13 = vmul.f32 %v8056_v7, %v8755_v6  ;;  %v2220_v56 = vmul.f32 %v1688_v17, %v1688_v17  ;;  %v2284_v15 = vmul.f32 %v1922_v22, %v1922_v22 }
  0xa1   :  { %v8060_v14 = vpop.eup %8059  ;;  %v2534_v2 = vsel %vm2533_vm8, %v8753_v33, %v2532_v11  ;;  %v2544_v19 = vsel %vm2542_vm9, %v2543_v36, %v2541_v12  ;;  %v2553_v0 = vmul.f32 %v8058_v40, %v8757_v41  ;;  %v2411_v8 = vmul.f32 %v2155_v25, %v2155_v25 }
  0xa2   :  { %v2537_v51 = vsel %vm2535_vm10, %v2536_v9, %v2534_v2  ;;  %v2548_v57 = vsel %vm2547_vm11, %v8755_v6, %v2546_v13  ;;  %v2567_v17 = vmul.f32 %v8060_v14, %v8760_v59  ;;  %v2347_v22 = vadd.f32 %v2283_v27, %v2219_v10 }
  0xa3   :  { %v8062_v5 = vpop.eup %8061  ;;  %v2551_v7 = vsel %vm2549_vm12, %v2550_v58, %v2548_v57  ;;  %v2555_v54 = vsel %vm2554_vm13, %v8757_v41, %v2553_v0  ;;  %v2578_v36 = vand.u32 2147483648, %v8786_v60  ;;  %v2412_v25 = vmul.f32 %v2156_v38, %v2156_v38 }
  0xa4   :  { %v2979_v33 = vmul.f32 3.3333333, %v2537_v51  ;;  %v2980_v9 = vmul.f32 3.3333333, %v2544_v19  ;;  %v2558_v11 = vsel %vm2556_vm14, %v2557_v4, %v2555_v54  ;;  %v2560_v40 = vmul.f32 %v8062_v5, %v8778_v53 }
  0xa5   :  { %v2981_v12 = vmul.f32 3.3333333, %v2551_v7  ;;  %v2982_v10 = vmul.f32 3.3333333, %v2558_v11  ;;  %v2569_v6 = vsel %vm2568_vm15, %v8760_v59, %v2567_v17  ;;  %v2348_v58 = vadd.f32 %v2284_v15, %v2220_v56 }
  0xa6   :  { %v8064_v27 = vpop.eup %8063  ;;  %v2562_v13 = vsel %vm2561_vm5, %v8778_v53, %v2560_v40  ;;  %v2572_v38 = vsel %vm2570_vm1, %v2571_v55, %v2569_v6  ;;  %vm2582_vm7 = vcmp.eq.f32.partialorder %v8795_v37, inf  ;;  %v8849_v41 = vadd.f32 %v2411_v8, %v2347_v22 }
  0xa7   :  { %v2565_v4 = vsel %vm2563_vm4, %v2564_v31, %v2562_v13  ;;  %v2984_v14 = vmul.f32 3.3333333, %v2572_v38  ;;  %vm2584_vm8 = vcmp.eq.f32.partialorder %v8795_v37, 0.0  ;;  %v2585_v56 = vand.u32 2147483648, %v8795_v37 }
  0xa8   :  { %v8066_v15 = vpop.eup %8065  ;;  %v3043_v2 = vsub.f32 1.0, %v2979_v33  ;;  %v3044_v19 = vsub.f32 1.0, %v2980_v9  ;;  %v2983_v0 = vmul.f32 3.3333333, %v2565_v4  ;;  %v2574_v51 = vmul.f32 %v8064_v27, %v8786_v60 }
  0xa9   :  { %v3045_v59 = vsub.f32 1.0, %v2981_v12  ;;  %v3046_v55 = vsub.f32 1.0, %v2982_v10  ;;  %v2581_v57 = vmul.f32 %v8066_v15, %v8795_v37  ;;  %v8857_v8 = vadd.f32 %v2412_v25, %v2348_v58 }
  0xaa   :  { %v3047_v17 = vsub.f32 1.0, %v2983_v0  ;;  %v3048_v53 = vsub.f32 1.0, %v2984_v14  ;;  %v2576_v31 = vsel %vm2575_vm3, %v8786_v60, %v2574_v51  ;;  %8067 = vrsqrt.f32 %v8849_v41 }
  0xab   :  { %v2579_v22 = vsel %vm2577_vm2, %v2578_v36, %v2576_v31  ;;  %v2583_v5 = vsel %vm2582_vm7, %v8795_v37, %v2581_v57  ;;  %v12448_v7 = vcombine.high %v8593_v18, %v8593_v18  ;;  %v8878_v25 = vrot.slane %v1369_v52, %v8511_v21 }
  0xac   :  { %v8880_v33 = vmax.f32 %v3043_v2, 0.0  ;;  %v8882_v60 = vmax.f32 %v3044_v19, 0.0  ;;  %v2586_v36 = vsel %vm2584_vm8, %v2585_v56, %v2583_v5  ;;  %v8888_v9 = vrot.slane %v8749_v1, %v8527_v42 }
  0xad   :  { %v8872_v54 = vrot.slane %v12448_v7, %v8511_v21  ;;  %v8890_v18 = vmax.f32 %v3045_v59, 0.0  ;;  %v8892_v11 = vmax.f32 %v3046_v55, 0.0  ;;  %vm2589_vm1 = vcmp.eq.f32.partialorder %v8849_v41, inf }
  0xae   :  { %8069 = vrsqrt.f32 %v8857_v8  ;;  %v8896_v24 = vmax.f32 %v3047_v17, 0.0  ;;  %v8898_v52 = vmax.f32 %v3048_v53, 0.0  ;;  %v2985_v40 = vmul.f32 3.3333333, %v2579_v22 }
  0xaf   :  { %vm2591_vm2 = vcmp.eq.f32.partialorder %v8849_v41, 0.0  ;;  %v2986_v37 = vmul.f32 3.3333333, %v2586_v36  ;;  %v1689_v12 = vsub.f32 %v8604_v26, %v8676_v50  ;;  %v1690_v10 = vsub.f32 %v8604_v26, %v8711_v20 }
  0xb0   :  { %v1923_v6 = vsub.f32 %v8607_v28, %v8658_v23  ;;  %v2592_v58 = vand.u32 2147483648, %v8849_v41  ;;  %v1924_v27 = vsub.f32 %v8607_v28, %v8709_v3  ;;  %v2157_v13 = vsub.f32 %v8618_v34, %v8728_v29 }
  0xb1   :  { %v2158_v38 = vsub.f32 %v8618_v34, %v8726_v62  ;;  %vm2596_vm3 = vcmp.eq.f32.partialorder %v8857_v8, inf  ;;  %v2221_v4 = vmul.f32 %v1689_v12, %v1689_v12  ;;  %v2222_v14 = vmul.f32 %v1690_v10, %v1690_v10 }
  0xb2   :  { %v2285_v56 = vmul.f32 %v1923_v6, %v1923_v6  ;;  %v2286_v26 = vmul.f32 %v1924_v27, %v1924_v27  ;;  %v2413_v15 = vmul.f32 %v2157_v13, %v2157_v13  ;;  %v1691_v19 = vsub.f32 %v8588_v16, %v8676_v50 }
  0xb3   :  { %v2414_v2 = vmul.f32 %v2158_v38, %v2158_v38  ;;  %v3049_v0 = vsub.f32 1.0, %v2985_v40  ;;  %v1692_v28 = vsub.f32 %v8588_v16, %v8711_v20  ;;  %v1925_v59 = vsub.f32 %v8610_v30, %v8658_v23 }
  0xb4   :  { %v2349_v51 = vadd.f32 %v2285_v56, %v2221_v4  ;;  %v8068_v34 = vpop.eup %8067  ;;  %v3050_v55 = vsub.f32 1.0, %v2986_v37  ;;  %v2350_v57 = vadd.f32 %v2286_v26, %v2222_v14  ;;  %v1926_v17 = vsub.f32 %v8610_v30, %v8709_v3 }
  0xb5   :  { %v2159_v53 = vsub.f32 %v8621_v35, %v8728_v29  ;;  %v2588_v31 = vmul.f32 %v8068_v34, %v8849_v41  ;;  %v2160_v5 = vsub.f32 %v8621_v35, %v8726_v62  ;;  %v2223_v16 = vmul.f32 %v1691_v19, %v1691_v19 }
  0xb6   :  { %v8926_v22 = vadd.f32 %v2413_v15, %v2349_v51  ;;  %v8930_v7 = vadd.f32 %v2414_v2, %v2350_v57  ;;  %v2224_v36 = vmul.f32 %v1692_v28, %v1692_v28  ;;  %v2287_v40 = vmul.f32 %v1925_v59, %v1925_v59 }
  0xb7   :  { %v2288_v37 = vmul.f32 %v1926_v17, %v1926_v17  ;;  %v2590_v30 = vsel %vm2589_vm1, %v8849_v41, %v2588_v31  ;;  %vm2598_vm4 = vcmp.eq.f32.partialorder %v8857_v8, 0.0  ;;  %v2599_v10 = vand.u32 2147483648, %v8857_v8 }
  0xb8   :  { %v8070_v12 = vpop.eup %8069  ;;  %8071 = vrsqrt.f32 %v8926_v22  ;;  %v2593_v35 = vsel %vm2591_vm2, %v2592_v58, %v2590_v30  ;;  %v2415_v27 = vmul.f32 %v2159_v53, %v2159_v53  ;;  %v8944_v38 = vmax.f32 %v3049_v0, 0.0 }
  0xb9   :  { %v2595_v6 = vmul.f32 %v8070_v12, %v8857_v8  ;;  %8073 = vrsqrt.f32 %v8930_v7  ;;  %v8946_v4 = vmax.f32 %v3050_v55, 0.0  ;;  %v2987_v14 = vmul.f32 3.3333333, %v2593_v35 }
  0xba   :  { %v2351_v26 = vadd.f32 %v2287_v40, %v2223_v16  ;;  %v2352_v41 = vadd.f32 %v2288_v37, %v2224_v36  ;;  %v2416_v58 = vmul.f32 %v2160_v5, %v2160_v5  ;;  %v1693_v0 = vsub.f32 %v8633_v39, %v8676_v50 }
  0xbb   :  { %v2597_v56 = vsel %vm2596_vm3, %v8857_v8, %v2595_v6  ;;  %v1694_v34 = vsub.f32 %v8633_v39, %v8711_v20  ;;  %v1927_v55 = vsub.f32 %v8649_v43, %v8658_v23  ;;  %v1928_v57 = vsub.f32 %v8649_v43, %v8709_v3 }
  0xbc   :  { %v2600_v19 = vsel %vm2598_vm4, %v2599_v10, %v2597_v56  ;;  %v8959_v28 = vadd.f32 %v2415_v27, %v2351_v26  ;;  %v8961_v59 = vadd.f32 %v2416_v58, %v2352_v41  ;;  %v2161_v8 = vsub.f32 %v8652_v44, %v8728_v29 }
  0xbd   :  { %v2988_v51 = vmul.f32 3.3333333, %v2600_v19  ;;  %v2162_v17 = vsub.f32 %v8652_v44, %v8726_v62  ;;  %v3051_v31 = vsub.f32 1.0, %v2987_v14  ;;  %vm2603_vm5 = vcmp.eq.f32.partialorder %v8926_v22, inf }
  0xbe   :  { %8075 = vrsqrt.f32 %v8959_v28  ;;  %vm2605_vm9 = vcmp.eq.f32.partialorder %v8926_v22, 0.0  ;;  %v2606_v39 = vand.u32 2147483648, %v8926_v22  ;;  %vm2610_vm10 = vcmp.eq.f32.partialorder %v8930_v7, inf }
  0xbf   :  { %8077 = vrsqrt.f32 %v8961_v59  ;;  %v3052_v43 = vsub.f32 1.0, %v2988_v51  ;;  %vm2612_vm11 = vcmp.eq.f32.partialorder %v8930_v7, 0.0  ;;  %v2225_v44 = vmul.f32 %v1693_v0, %v1693_v0 }
  0xc0   :  { %v2226_v5 = vmul.f32 %v1694_v34, %v1694_v34  ;;  %v2289_v36 = vmul.f32 %v1927_v55, %v1927_v55  ;;  %v2290_v40 = vmul.f32 %v1928_v57, %v1928_v57  ;;  %v2417_v37 = vmul.f32 %v2161_v8, %v2161_v8 }
  0xc1   :  { %v2418_v12 = vmul.f32 %v2162_v17, %v2162_v17  ;;  %v8982_v10 = vmax.f32 %v3051_v31, 0.0  ;;  %v2613_v6 = vand.u32 2147483648, %v8930_v7  ;;  %vm2617_vm12 = vcmp.eq.f32.partialorder %v8959_v28, inf }
  0xc2   :  { %v8072_v16 = vpop.eup %8071  ;;  %vm2619_vm13 = vcmp.eq.f32.partialorder %v8959_v28, 0.0  ;;  %v2353_v14 = vadd.f32 %v2289_v36, %v2225_v44  ;;  %v2354_v56 = vadd.f32 %v2290_v40, %v2226_v5  ;;  %v8989_v26 = vmax.f32 %v3052_v43, 0.0 }
  0xc3   :  { %v8074_v30 = vpop.eup %8073  ;;  %v2602_v35 = vmul.f32 %v8072_v16, %v8926_v22  ;;  %v2620_v58 = vand.u32 2147483648, %v8959_v28  ;;  %v1695_v19 = vsub.f32 %v8662_v46, %v8676_v50  ;;  %vm2624_vm14 = vcmp.eq.f32.partialorder %v8961_v59, inf }
  0xc4   :  { %v2609_v27 = vmul.f32 %v8074_v30, %v8930_v7  ;;  %v9002_v34 = vadd.f32 %v2417_v37, %v2353_v14  ;;  %v9004_v55 = vadd.f32 %v2418_v12, %v2354_v56  ;;  %v1696_v17 = vsub.f32 %v8662_v46, %v8711_v20 }
  0xc5   :  { %v2604_v41 = vsel %vm2603_vm5, %v8926_v22, %v2602_v35  ;;  %v9014_v22 = vld [vmem:[%s12345_s3] ss:$0 sm:$0xff]  ;;  %vm2626_vm15 = vcmp.eq.f32.partialorder %v8961_v59, 0.0  ;;  %v1929_v46 = vsub.f32 %v8666_v47, %v8658_v23  ;;  %v1930_v44 = vsub.f32 %v8666_v47, %v8709_v3 }
  0xc6   :  { %v2607_v0 = vsel %vm2605_vm9, %v2606_v39, %v2604_v41  ;;  %v2611_v51 = vsel %vm2610_vm10, %v8930_v7, %v2609_v27  ;;  %v2627_v39 = vand.u32 2147483648, %v8961_v59  ;;  %8079 = vrsqrt.f32 %v9002_v34 }
  0xc7   :  { %v2614_v57 = vsel %vm2612_vm11, %v2613_v6, %v2611_v51  ;;  %v2989_v8 = vmul.f32 3.3333333, %v2607_v0  ;;  %8081 = vrsqrt.f32 %v9004_v55  ;;  %v2163_v40 = vsub.f32 %v8670_v48, %v8728_v29 }
  0xc8   :  { %v9016_v31 = vmul.f32 3.3333333, %v2614_v57  ;;  %v8076_v7 = vpop.eup %8075  ;;  %v9033_v37 = vsub.f32 %v8670_v48, %v8726_v62  ;;  %v2227_v12 = vmul.f32 %v1695_v19, %v1695_v19  ;;  %v2228_v14 = vmul.f32 %v1696_v17, %v1696_v17 }
  0xc9   :  { %v8078_v5 = vpop.eup %8077  ;;  %v2616_v36 = vmul.f32 %v8076_v7, %v8959_v28  ;;  %v3053_v6 = vsub.f32 1.0, %v2989_v8  ;;  %vm2631_vm7 = vcmp.eq.f32.partialorder %v9002_v34, inf  ;;  %vm3203_vm8 = vcmask 130048  }
  0xca   :  { %v2623_v27 = vmul.f32 %v8078_v5, %v8961_v59  ;;  %v2291_v8 = vmul.f32 %v1929_v46, %v1929_v46  ;;  %v2292_v17 = vmul.f32 %v1930_v44, %v1930_v44  ;;  %vm2633_vm2 = vcmp.eq.f32.partialorder %v9002_v34, 0.0 }
  0xcb   :  { %v2618_v0 = vsel %vm2617_vm12, %v8959_v28, %v2616_v36  ;;  %vm2638_vm3 = vcmp.eq.f32.partialorder %v9004_v55, inf  ;;  %vm2640_vm9 = vcmp.eq.f32.partialorder %v9004_v55, 0.0  ;;  %v2641_v28 = vand.u32 2147483648, %v9004_v55 }
  0xd0   :  { %v8080_v43 = vpop.eup %8079 }
  0xd1   :  { %v8082_v41 = vpop.eup %8081 }
  0xd9   :  { %v7553_v16 = vpop.f32.mrb[0].mxu0 }
  0xda   :  { %v417_v30 = vadd.f32 %v7553_v16, %v9014_v22  ;;  %v408_v35 = vpop.f32.mrb[1].mxu0  ;;  %v2621_v16 = vsel %vm2619_vm13, %v2620_v58, %v2618_v0  ;;  %v9057_v0 = vmax.f32 %v3053_v6, 0.0  ;;  %v2630_v6 = vmul.f32 %v8080_v43, %v9002_v34 }
  0xdb   :  { %v409_v47 = vadd.f32 %v9014_v22, %v408_v35  ;;  %v7554_v56 = vpop.f32.mrb[2].mxu0  ;;  %v2625_v35 = vsel %vm2624_vm14, %v8961_v59, %v2623_v27  ;;  %v2355_v59 = vadd.f32 %v2291_v8, %v2227_v12 }
  0xdc   :  { %v729_v19 = vmul.f32 0.1, %v417_v30  ;;  %v420_v51 = vadd.f32 %v7554_v56, %v9014_v22  ;;  %v411_v57 = vpop.f32.mrb[3].mxu0  ;;  %vm665_vm1 = vcmp.ge.f32.partialorder %v417_v30, 0.0  ;;  %v2628_v44 = vsel %vm2626_vm15, %v2627_v39, %v2625_v35 }
  0xdd   :  { %v727_v7 = vmul.f32 0.1, %v409_v47  ;;  %v412_v5 = vadd.f32 %v9014_v22, %v411_v57  ;;  %vm663_vm4 = vcmp.ge.f32.partialorder %v409_v47, 0.0  ;;  %v2991_v57 = vmul.f32 3.3333333, %v2621_v16 }
  0xde   :  { %vm666_vm5 = vcmp.ge.f32.partialorder %v420_v51, 0.0  ;;  %v730_v36 = vmul.f32 0.1, %v420_v51  ;;  %v793_v58 = vsel %vm665_vm1, %v417_v30, %v729_v19  ;;  %v2992_v27 = vmul.f32 3.3333333, %v2628_v44 }
  0xdf   :  { %vm664_vm10 = vcmp.ge.f32.partialorder %v412_v5, 0.0  ;;  %v728_v46 = vmul.f32 0.1, %v412_v5  ;;  %v791_v53 = vsel %vm663_vm4, %v409_v47, %v727_v7  ;;  %v2356_v39 = vadd.f32 %v2292_v17, %v2228_v14 }
  0xe0   :  { %v794_v56 = vsel %vm666_vm5, %v420_v51, %v730_v36  ;;  %v3055_v19 = vsub.f32 1.0, %v2991_v57  ;;  %v2419_v51 = vmul.f32 %v2163_v40, %v2163_v40  ;;  %v12450_v40 = vpack.c.bf16 %v8882_v60, %v8880_v33 }
  0xe1   :  { %v856_v2 = vpack.c.bf16 %v794_v56, %v793_v58  ;;  %v792_v15 = vsel %vm664_vm10, %v412_v5, %v728_v46  ;;  %v7557_v48 = vpop.f32.mrb[4].mxu0  ;;  %v2420_v17 = vmul.f32 %v9033_v37, %v9033_v37  ;;  %v12451_v16 = vsub.f32 1.0, %v9016_v31 }
  0xe2   :  { %v855_v13 = vpack.c.bf16 %v792_v15, %v791_v53  ;;  %v433_v1 = vadd.f32 %v7557_v48, %v9014_v22  ;;  %v424_v21 = vpop.f32.mrb[5].mxu0  ;;  %v2637_v15 = vmul.f32 %v8082_v41, %v9004_v55  ;;  %v12449_v53 = vmov 0.0  }
  0xe3   :  { %v425_v35 = vadd.f32 %v9014_v22, %v424_v21  ;;  %v7558_v30 = vpop.f32.mrb[6].mxu0  ;;  %v3056_v21 = vsub.f32 1.0, %v2992_v27  ;;  %v9083_v36 = vmax.f32 %v12451_v16, 0.0  ;;  %v12452_v33 = vand.u32 2147483648, %v9002_v34 }
  0xe4   :  { %7616 = vmatpush3.bf16.msra.mxu1 %v855_v13  ;;  %vm669_vm11 = vcmp.ge.f32.partialorder %v433_v1, 0.0  ;;  %v733_v47 = vmul.f32 0.1, %v433_v1  ;;  %v436_v7 = vadd.f32 %v7558_v30, %v9014_v22  ;;  %v427_v5 = vpop.f32.mrb[7].mxu0  ;;  %v2632_v13 = vsel %vm2631_vm7, %v9002_v34, %v2630_v6 }
  0xe5   :  { %7621 = vmatprep.subr.bf16.mxu1 %v12449_v53  ;;  %vm667_vm12 = vcmp.ge.f32.partialorder %v425_v35, 0.0  ;;  %v731_v12 = vmul.f32 0.1, %v425_v35  ;;  %v428_v14 = vadd.f32 %v9014_v22, %v427_v5  ;;  %v2635_v60 = vsel %vm2633_vm2, %v12452_v33, %v2632_v13 }
  0xe6   :  { %v9066_v48 = vsel %vm669_vm11, %v433_v1, %v733_v47  ;;  %vm670_vm13 = vcmp.ge.f32.partialorder %v436_v7, 0.0  ;;  %v734_v43 = vmul.f32 0.1, %v436_v7  ;;  %v2639_v46 = vsel %vm2638_vm3, %v9004_v55, %v2637_v15 }
  0xe7   :  { %7618 = vmatmul.mubr.msk.bf16.vlgmr.msra.gmra.mrb[24].mxu1 %vm3203_vm8, %v12450_v40  ;;  %v795_v41 = vsel %vm667_vm12, %v425_v35, %v731_v12  ;;  %vm668_vm14 = vcmp.ge.f32.partialorder %v428_v14, 0.0  ;;  %v732_v8 = vmul.f32 0.1, %v428_v14  ;;  %v2642_v31 = vsel %vm2640_vm9, %v2641_v28, %v2639_v46 }
  0xe8   :  { %7622 = vmatpush3.bf16.msra.mxu1 %v856_v2  ;;  %v9077_v1 = vsel %vm670_vm13, %v436_v7, %v734_v43  ;;  %7623 = vmatprep.mubr.msk.bf16.mxu1 %vm8242_vm6, %v12449_v53  ;;  %v2993_v58 = vmul.f32 3.3333333, %v2635_v60  ;;  %v9098_v27 = vmax.f32 %v3055_v19, 0.0  ;;  %v2994_v35 = vmul.f32 3.3333333, %v2642_v31 }
  0xe9   :  { %v858_v2 = vpack.c.bf16 %v9077_v1, %v9066_v48  ;;  %v796_v37 = vsel %vm668_vm14, %v428_v14, %v732_v8  ;;  %7627 = vmatprep.subr.bf16.mxu1 %v12449_v53  ;;  %v7561_v44 = vpop.f32.mrb[8].mxu0  ;;  %v9101_v47 = vmax.f32 %v3056_v21, 0.0  ;;  %v9103_v5 = vadd.f32 %v2419_v51, %v2355_v59 }
  0xea   :  { %v857_v56 = vpack.c.bf16 %v796_v37, %v795_v41  ;;  %v449_v57 = vadd.f32 %v7561_v44, %v9014_v22  ;;  %v440_v34 = vpop.f32.mrb[9].mxu0  ;;  %v3057_v7 = vsub.f32 1.0, %v2993_v58  ;;  %v9106_v12 = vadd.f32 %v2420_v17, %v2356_v39 }
  0xeb   :  { %v441_v30 = vadd.f32 %v9014_v22, %v440_v34  ;;  %v7562_v6 = vpop.f32.mrb[10].mxu0  ;;  %v3058_v43 = vsub.f32 1.0, %v2994_v35  ;;  %v12453_v51 = vpack.c.bf16 %v8892_v11, %v8890_v18  ;;  %8083 = vrsqrt.f32 %v9103_v5  ;;  %v9130_v11 = vpop.f32.mrb[0].mxu1 }
  0xec   :  { %vm673_vm15 = vcmp.ge.f32.partialorder %v449_v57, 0.0  ;;  %v737_v15 = vmul.f32 0.1, %v449_v57  ;;  %v452_v55 = vadd.f32 %v7562_v6, %v9014_v22  ;;  %v443_v28 = vpop.f32.mrb[11].mxu0  ;;  %v9126_v17 = vmax.f32 %v3057_v7, 0.0  ;;  %v9140_v37 = vpop.f32.mrb[1].mxu1 }
  0xed   :  { %vm671_vm7 = vcmp.ge.f32.partialorder %v441_v30, 0.0  ;;  %v735_v14 = vmul.f32 0.1, %v441_v30  ;;  %v444_v19 = vadd.f32 %v9014_v22, %v443_v28  ;;  %v1711_v18 = vsub.f32 %v8688_v32, %v8676_v50 }
  0xee   :  { %v9109_v13 = vsel %vm673_vm15, %v449_v57, %v737_v15  ;;  %vm674_vm1 = vcmp.ge.f32.partialorder %v452_v55, 0.0  ;;  %v738_v21 = vmul.f32 0.1, %v452_v55  ;;  %v9137_v46 = vmax.f32 %v3058_v43, 0.0 }
  0xef   :  { %7624 = vmatmul.mubr.msk.bf16.vlgmr.msra.gmra.mrb[28].mxu1 %vm3203_vm8, %v12453_v51  ;;  %v9117_v40 = vsel %vm671_vm7, %v441_v30, %v735_v14  ;;  %vm672_vm2 = vcmp.ge.f32.partialorder %v444_v19, 0.0  ;;  %v736_v39 = vmul.f32 0.1, %v444_v19  ;;  %8085 = vrsqrt.f32 %v9106_v12 }
  0xf0   :  { %7628 = vmatpush3.bf16.msra.mxu1 %v857_v56  ;;  %7629 = vmatprep.mubr.msk.bf16.mxu1 %vm8242_vm6, %v12449_v53  ;;  %v9122_v41 = vsel %vm674_vm1, %v452_v55, %v738_v21  ;;  %vm2645_vm3 = vcmp.eq.f32.partialorder %v9103_v5, inf  ;;  %vm2647_vm4 = vcmp.eq.f32.partialorder %v9103_v5, 0.0  ;;  %v9147_v56 = vpop.f32.mrb[2].mxu1  ;;  %v2648_v35 = vand.u32 2147483648, %v9103_v5 }
  0xf1   :  { %7633 = vmatprep.subr.bf16.mxu1 %v12449_v53  ;;  %v9135_v33 = vsel %vm672_vm2, %v444_v19, %v736_v39  ;;  %v7565_v60 = vpop.f32.mrb[12].mxu0  ;;  %v1712_v30 = vsub.f32 %v8688_v32, %v8711_v20  ;;  %v1945_v6 = vsub.f32 %v8699_v61, %v8658_v23  ;;  %v9155_v7 = vpop.f32.mrb[3].mxu1  ;;  %v1946_v14 = vsub.f32 %v8699_v61, %v8709_v3 }
  0xf2   :  { %v465_v31 = vadd.f32 %v7565_v60, %v9014_v22  ;;  %v456_v58 = vpop.f32.mrb[13].mxu0  ;;  %vm2652_vm10 = vcmp.eq.f32.partialorder %v9106_v12, inf  ;;  %v2179_v32 = vsub.f32 %v8703_v63, %v8728_v29  ;;  %vm2654_vm12 = vcmp.eq.f32.partialorder %v9106_v12, 0.0 }
  0xf3   :  { %v457_v57 = vadd.f32 %v9014_v22, %v456_v58  ;;  %v7566_v34 = vpop.f32.mrb[14].mxu0  ;;  %v2180_v39 = vsub.f32 %v8703_v63, %v8726_v62  ;;  %v12454_v61 = vpack.c.bf16 %v8898_v52, %v8896_v24  ;;  %v2655_v63 = vand.u32 2147483648, %v9106_v12  ;;  %v9183_v52 = vpop.f32.mrb[4].mxu1 }
  0xf4   :  { %vm677_vm5 = vcmp.ge.f32.partialorder %v465_v31, 0.0  ;;  %v741_v15 = vmul.f32 0.1, %v465_v31  ;;  %v468_v55 = vadd.f32 %v7566_v34, %v9014_v22  ;;  %v459_v28 = vpop.f32.mrb[15].mxu0  ;;  %v2243_v34 = vmul.f32 %v1711_v18, %v1711_v18 }
  0xf5   :  { %vm675_vm9 = vcmp.ge.f32.partialorder %v457_v57, 0.0  ;;  %v739_v19 = vmul.f32 0.1, %v457_v57  ;;  %v460_v43 = vadd.f32 %v9014_v22, %v459_v28  ;;  %v2307_v24 = vmul.f32 %v1945_v6, %v1945_v6 }
  0xf6   :  { %v9164_v21 = vsel %vm677_vm5, %v465_v31, %v741_v15  ;;  %vm678_vm11 = vcmp.ge.f32.partialorder %v468_v55, 0.0  ;;  %v742_v51 = vmul.f32 0.1, %v468_v55  ;;  %v2244_v15 = vmul.f32 %v1712_v30, %v1712_v30 }
  0xf7   :  { %7630 = vmatmul.mubr.msk.bf16.vlgmr.msra.gmra.mrb[32].mxu1 %vm3203_vm8, %v12454_v61  ;;  %v9173_v60 = vsel %vm675_vm9, %v457_v57, %v739_v19  ;;  %vm676_vm13 = vcmp.ge.f32.partialorder %v460_v43, 0.0  ;;  %v740_v58 = vmul.f32 0.1, %v460_v43  ;;  %v8084_v57 = vpop.eup %8083  ;;  %v2308_v1 = vmul.f32 %v1946_v14, %v1946_v14  ;;  %v9190_v19 = vpop.f32.mrb[5].mxu1 }
  0xf8   :  { %7634 = vmatpush3.bf16.msra.mxu1 %v858_v2  ;;  %7635 = vmatprep.mubr.msk.bf16.mxu1 %vm8242_vm6, %v12449_v53  ;;  %v9180_v31 = vsel %vm678_vm11, %v468_v55, %v742_v51  ;;  %v2435_v2 = vmul.f32 %v2179_v32, %v2179_v32  ;;  %v2644_v51 = vmul.f32 %v8084_v57, %v9103_v5  ;;  %v9196_v8 = vpop.f32.mrb[6].mxu1 }
  0xf9   :  { %7639 = vmatprep.subr.bf16.mxu1 %v12449_v53  ;;  %v9188_v28 = vsel %vm676_vm13, %v460_v43, %v740_v58  ;;  %v7569_v48 = vpop.f32.mrb[16].mxu0  ;;  %v2371_v61 = vadd.f32 %v2307_v24, %v2243_v34  ;;  %v8086_v59 = vpop.eup %8085  ;;  %v2372_v18 = vadd.f32 %v2308_v1, %v2244_v15  ;;  %v2436_v14 = vmul.f32 %v2180_v39, %v2180_v39 }
  0xfa   :  { %v481_v30 = vadd.f32 %v7569_v48, %v9014_v22  ;;  %v472_v6 = vpop.f32.mrb[17].mxu0  ;;  %v9201_v32 = vadd.f32 %v9130_v11, %v9014_v22  ;;  %v9203_v16 = vpop.f32.mrb[7].mxu1  ;;  %v2646_v34 = vsel %vm2645_vm3, %v9103_v5, %v2644_v51  ;;  %v12457_v5 = vpack.c.bf16 %v9135_v33, %v9117_v40 }
  0xfb   :  { %v473_v43 = vadd.f32 %v9014_v22, %v472_v6  ;;  %v7570_v58 = vpop.f32.mrb[18].mxu0  ;;  %12455 = vst [vmem:[#allocation16_spill] sm:$0xff] %v9203_v16  ;;  %v2649_v39 = vsel %vm2647_vm4, %v2648_v35, %v2646_v34  ;;  %v2651_v6 = vmul.f32 %v8086_v59, %v9106_v12  ;;  %v9233_v59 = vpop.f32.mrb[8].mxu1 }
  0xfc   :  { %vm681_vm14 = vcmp.ge.f32.partialorder %v481_v30, 0.0  ;;  %v745_v48 = vmul.f32 0.1, %v481_v30  ;;  %v484_v55 = vadd.f32 %v7570_v58, %v9014_v22  ;;  %v475_v57 = vpop.f32.mrb[19].mxu0  ;;  %v12456_v58 = vpack.c.bf16 %v8946_v4, %v8944_v38 }
  0xfd   :  { %vm679_vm15 = vcmp.ge.f32.partialorder %v473_v43, 0.0  ;;  %v743_v24 = vmul.f32 0.1, %v473_v43  ;;  %v476_v15 = vadd.f32 %v9014_v22, %v475_v57  ;;  %v2995_v16 = vmul.f32 3.3333333, %v2649_v39 }
  0xfe   :  { %v9212_v11 = vsel %vm681_vm14, %v481_v30, %v745_v48  ;;  %vm682_vm7 = vcmp.ge.f32.partialorder %v484_v55, 0.0  ;;  %v746_v1 = vmul.f32 0.1, %v484_v55  ;;  %v2653_v38 = vsel %vm2652_vm10, %v9106_v12, %v2651_v6  ;;  %v9242_v48 = vpop.f32.mrb[9].mxu1 }
  0xff   :  { %7636 = vmatmul.mubr.msk.bf16.vlgmr.msra.gmra.mrb[36].mxu1 %vm3203_vm8, %v12456_v58  ;;  %v9219_v44 = vsel %vm679_vm15, %v473_v43, %v743_v24  ;;  %vm680_vm1 = vcmp.ge.f32.partialorder %v476_v15, 0.0  ;;  %v744_v51 = vmul.f32 0.1, %v476_v15  ;;  %v9231_v4 = vadd.f32 %v2435_v2, %v2371_v61  ;;  %v9249_v39 = vpop.f32.mrb[10].mxu1 }
 0x100   :  { %7640 = vmatpush3.bf16.msra.mxu1 %v12457_v5  ;;  %7641 = vmatprep.mubr.msk.bf16.mxu1 %vm8242_vm6, %v12449_v53  ;;  %v9226_v35 = vsel %vm682_vm7, %v484_v55, %v746_v1  ;;  %v2656_v55 = vsel %vm2654_vm12, %v2655_v63, %v2653_v38  ;;  %v3059_v43 = vsub.f32 1.0, %v2995_v16  ;;  %v9252_v12 = vadd.f32 %v2436_v14, %v2372_v18  ;;  %v9256_v16 = vpop.f32.mrb[11].mxu1 }
 0x101   :  { %7645 = vmatprep.subr.bf16.mxu1 %v12449_v53  ;;  %v9238_v40 = vsel %vm680_vm1, %v476_v15, %v744_v51  ;;  %v7573_v33 = vpop.f32.mrb[20].mxu0  ;;  %v2996_v24 = vmul.f32 3.3333333, %v2656_v55  ;;  %8087 = vrsqrt.f32 %v9231_v4  ;;  %vm705_vm2 = vcmp.ge.f32.partialorder %v9201_v32, 0.0 }
 0x102   :  { %v497_v61 = vadd.f32 %v7573_v33, %v9014_v22  ;;  %v488_v57 = vpop.f32.mrb[21].mxu0  ;;  %v9260_v33 = vmax.f32 %v3059_v43, 0.0  ;;  %vm2757_vm10 = vcmp.eq.f32.partialorder %v9231_v4, inf  ;;  %v12460_v43 = vpack.c.bf16 %v9122_v41, %v9109_v13 }
 0x103   :  { %v489_v15 = vadd.f32 %v9014_v22, %v488_v57  ;;  %v7574_v1 = vpop.f32.mrb[22].mxu0  ;;  %v3060_v51 = vsub.f32 1.0, %v2996_v24  ;;  %v12459_v57 = vpack.c.bf16 %v8989_v26, %v8982_v10  ;;  %vm2759_vm11 = vcmp.eq.f32.partialorder %v9231_v4, 0.0  ;;  %v9283_v26 = vpop.f32.mrb[12].mxu1 }
 0x104   :  { %vm685_vm3 = vcmp.ge.f32.partialorder %v497_v61, 0.0  ;;  %v749_v63 = vmul.f32 0.1, %v497_v61  ;;  %v500_v6 = vadd.f32 %v7574_v1, %v9014_v22  ;;  %v491_v58 = vpop.f32.mrb[23].mxu0  ;;  %v2760_v10 = vand.u32 2147483648, %v9231_v4  ;;  %12461 = vst [vmem:[#allocation18_spill] sm:$0xff] %v9283_v26 }
 0x105   :  { %vm683_vm4 = vcmp.ge.f32.partialorder %v489_v15, 0.0  ;;  %v747_v5 = vmul.f32 0.1, %v489_v15  ;;  %v492_v38 = vadd.f32 %v9014_v22, %v491_v58  ;;  %v9264_v55 = vmax.f32 %v3060_v51, 0.0  ;;  %v9293_v58 = vpop.f32.mrb[13].mxu1 }
 0x106   :  { %v9262_v18 = vsel %vm685_vm3, %v497_v61, %v749_v63  ;;  %vm686_vm5 = vcmp.ge.f32.partialorder %v500_v6, 0.0  ;;  %v750_v14 = vmul.f32 0.1, %v500_v6  ;;  %8089 = vrsqrt.f32 %v9252_v12  ;;  %12462 = vst [vmem:[#allocation19_spill] sm:$0xff] %v9293_v58 }
 0x107   :  { %12458 = vst [vmem:[#allocation17_spill] sm:$0xff] %v9262_v18  ;;  %7642 = vmatmul.mubr.msk.bf16.vlgmr.msra.gmra.mrb[40].mxu1 %vm3203_vm8, %v12459_v57  ;;  %v9270_v1 = vsel %vm683_vm4, %v489_v15, %v747_v5  ;;  %vm684_vm9 = vcmp.ge.f32.partialorder %v492_v38, 0.0  ;;  %v748_v24 = vmul.f32 0.1, %v492_v38  ;;  %vm2764_vm12 = vcmp.eq.f32.partialorder %v9252_v12, inf }
 0x108   :  { %7646 = vmatpush3.bf16.msra.mxu1 %v12460_v43  ;;  %7647 = vmatprep.mubr.msk.bf16.mxu1 %vm8242_vm6, %v12449_v53  ;;  %v9278_v61 = vsel %vm686_vm5, %v500_v6, %v750_v14  ;;  %v569_v57 = vadd.f32 %v9014_v22, %v9140_v37  ;;  %vm2766_vm13 = vcmp.eq.f32.partialorder %v9252_v12, 0.0  ;;  %v580_v51 = vadd.f32 %v9147_v56, %v9014_v22 }
 0x109   :  { %v9287_v63 = vsel %vm684_vm9, %v492_v38, %v748_v24  ;;  %v7577_v13 = vpop.f32.mrb[24].mxu0  ;;  %7651 = vmatprep.subr.bf16.mxu1 %v12449_v53  ;;  %v769_v38 = vmul.f32 0.1, %v9201_v32  ;;  %v9302_v24 = vpop.f32.mrb[14].mxu1  ;;  %v9314_v30 = vsub.f32 %v8888_v9, %v8676_v50 }
 0x10a   :  { %v513_v5 = vadd.f32 %v7577_v13, %v9014_v22  ;;  %v504_v14 = vpop.f32.mrb[25].mxu0  ;;  %12463 = vst [vmem:[#allocation20_spill] sm:$0xff] %v9302_v24  ;;  %v9310_v13 = vadd.f32 %v9014_v22, %v9155_v7  ;;  %v9316_v41 = vpop.f32.mrb[15].mxu1  ;;  %vm703_vm7 = vcmp.ge.f32.partialorder %v569_v57, 0.0  ;;  %vm706_vm3 = vcmp.ge.f32.partialorder %v580_v51, 0.0 }
 0x10b   :  { %v505_v43 = vadd.f32 %v9014_v22, %v504_v14  ;;  %v7578_v15 = vpop.f32.mrb[26].mxu0  ;;  %12464 = vst [vmem:[#allocation21_spill] sm:$0xff] %v9316_v41  ;;  %v9322_v34 = vsel %vm705_vm2, %v9201_v32, %v769_v38  ;;  %v8088_v56 = vpop.eup %8087  ;;  %v767_v38 = vmul.f32 0.1, %v569_v57 }
 0x10c   :  { %vm689_vm14 = vcmp.ge.f32.partialorder %v513_v5, 0.0  ;;  %v753_v37 = vmul.f32 0.1, %v513_v5  ;;  %v516_v14 = vadd.f32 %v7578_v15, %v9014_v22  ;;  %v507_v2 = vpop.f32.mrb[27].mxu0  ;;  %12465 = vst [vmem:[#allocation22_spill] sm:$0xff] %v9322_v34  ;;  %v2756_v58 = vmul.f32 %v8088_v56, %v9231_v4 }
 0x10d   :  { %vm687_vm15 = vcmp.ge.f32.partialorder %v505_v43, 0.0  ;;  %v751_v7 = vmul.f32 0.1, %v505_v43  ;;  %v508_v6 = vadd.f32 %v9014_v22, %v507_v2  ;;  %v12466_v15 = vpack.c.bf16 %v9083_v36, %v9057_v0 }
 0x10e   :  { %v9325_v24 = vsel %vm689_vm14, %v513_v5, %v753_v37  ;;  %vm690_vm1 = vcmp.ge.f32.partialorder %v516_v14, 0.0  ;;  %v754_v41 = vmul.f32 0.1, %v516_v14  ;;  %v12467_v2 = vpack.c.bf16 %v9188_v28, %v9173_v60 }
 0x10f   :  { %7648 = vmatmul.mubr.msk.bf16.vlgmr.msra.gmra.mrb[44].mxu1 %vm3203_vm8, %v12466_v15  ;;  %v9332_v26 = vsel %vm687_vm15, %v505_v43, %v751_v7  ;;  %vm688_vm2 = vcmp.ge.f32.partialorder %v508_v6, 0.0  ;;  %v752_v32 = vmul.f32 0.1, %v508_v6  ;;  %v2758_v0 = vsel %vm2757_vm10, %v9231_v4, %v2756_v58 }
 0x110   :  { %v9334_v18 = vsel %vm690_vm1, %v516_v14, %v754_v41  ;;  %7652 = vmatpush3.bf16.msra.mxu1 %v12467_v2  ;;  %7653 = vmatprep.mubr.msk.bf16.mxu1 %vm8242_vm6, %v12449_v53  ;;  %v770_v36 = vmul.f32 0.1, %v580_v51  ;;  %v2761_v60 = vsel %vm2759_vm11, %v2760_v10, %v2758_v0  ;;  %v9352_v28 = vsel %vm703_vm7, %v569_v57, %v767_v38  ;;  %v8090_v37 = vpop.eup %8089 }
 0x111   :  { %v9346_v43 = vsel %vm688_vm2, %v508_v6, %v752_v32  ;;  %v7581_v41 = vpop.f32.mrb[28].mxu0  ;;  %7657 = vmatprep.subr.bf16.mxu1 %v12449_v53  ;;  %v3011_v7 = vmul.f32 3.3333333, %v2761_v60  ;;  %v2763_v2 = vmul.f32 %v8090_v37, %v9252_v12  ;;  %vm704_vm4 = vcmp.ge.f32.partialorder %v9310_v13, 0.0 }
 0x112   :  { %v529_v14 = vadd.f32 %v7581_v41, %v9014_v22  ;;  %v520_v56 = vpop.f32.mrb[29].mxu0  ;;  %v9357_v15 = vsel %vm706_vm3, %v580_v51, %v770_v36 }
 0x113   :  { %12468 = vst [vmem:[#allocation23_spill] sm:$0xff] %v9357_v15  ;;  %v521_v6 = vadd.f32 %v9014_v22, %v520_v56  ;;  %v7582_v32 = vpop.f32.mrb[30].mxu0  ;;  %v3075_v0 = vsub.f32 1.0, %v3011_v7  ;;  %v2765_v36 = vsel %vm2764_vm12, %v9252_v12, %v2763_v2  ;;  %v12470_v56 = vand.u32 2147483648, %v9252_v12 }
 0x114   :  { %vm693_vm5 = vcmp.ge.f32.partialorder %v529_v14, 0.0  ;;  %v757_v10 = vmul.f32 0.1, %v529_v14  ;;  %v532_v57 = vadd.f32 %v7582_v32, %v9014_v22  ;;  %v523_v38 = vpop.f32.mrb[31].mxu0  ;;  %v12472_v7 = vpack.c.bf16 %v9101_v47, %v9098_v27 }
 0x115   :  { %vm691_vm9 = vcmp.ge.f32.partialorder %v521_v6, 0.0  ;;  %v755_v41 = vmul.f32 0.1, %v521_v6  ;;  %v524_v51 = vadd.f32 %v9014_v22, %v523_v38  ;;  %v2768_v4 = vsel %vm2766_vm13, %v12470_v56, %v2765_v36  ;;  %v9424_v56 = vpop.f32.mrb[16].mxu1 }
 0x116   :  { %v9369_v60 = vsel %vm693_vm5, %v529_v14, %v757_v10  ;;  %vm694_vm10 = vcmp.ge.f32.partialorder %v532_v57, 0.0  ;;  %v758_v37 = vmul.f32 0.1, %v532_v57  ;;  %v3012_v5 = vmul.f32 3.3333333, %v2768_v4  ;;  %v9431_v15 = vpop.f32.mrb[17].mxu1 }
 0x117   :  { %12469 = vst [vmem:[#allocation24_spill] sm:$0xff] %v9369_v60  ;;  %v9375_v32 = vsel %vm691_vm9, %v521_v6, %v755_v41  ;;  %7654 = vmatmul.mubr.msk.bf16.vlgmr.msra.gmra.mrb[48].mxu1 %vm3203_vm8, %v12472_v7  ;;  %vm692_vm11 = vcmp.ge.f32.partialorder %v524_v51, 0.0  ;;  %v756_v38 = vmul.f32 0.1, %v524_v51  ;;  %v12474_v14 = vpack.c.bf16 %v9180_v31, %v9164_v21 }
 0x118   :  { %12471 = vst [vmem:[#allocation25_spill] sm:$0xff] %v9375_v32  ;;  %v9381_v2 = vsel %vm694_vm10, %v532_v57, %v758_v37  ;;  %7659 = vmatprep.mubr.msk.bf16.mxu1 %vm8242_vm6, %v12449_v53  ;;  %v9388_v12 = vmax.f32 %v3075_v0, 0.0  ;;  %v768_v6 = vmul.f32 0.1, %v9310_v13  ;;  %v1698_v27 = vsub.f32 %v8888_v9, %v8711_v20 }
 0x119   :  { %12473 = vst [vmem:[#allocation26_spill] sm:$0xff] %v9381_v2  ;;  %7658 = vmatpush3.bf16.msra.mxu1 %v12474_v14  ;;  %v9395_v4 = vsel %vm692_vm11, %v524_v51, %v756_v38  ;;  %v7585_v10 = vpop.f32.mrb[32].mxu0  ;;  %v3076_v21 = vsub.f32 1.0, %v3012_v5  ;;  %v1782_v31 = vrot.slane %v8872_v54, %v8527_v42  ;;  %v2016_v51 = vrot.slane %v8878_v25, %v8527_v42 }
 0x11a   :  { %7663 = vmatprep.subr.bf16.mxu1 %v12449_v53  ;;  %v545_v0 = vadd.f32 %v7585_v10, %v9014_v22  ;;  %v536_v41 = vpop.f32.mrb[33].mxu0  ;;  %v9406_v9 = vsel %vm704_vm4, %v9310_v13, %v768_v6 }
 0x11b   :  { %v537_v36 = vadd.f32 %v9014_v22, %v536_v41  ;;  %v7586_v5 = vpop.f32.mrb[34].mxu0  ;;  %v9411_v37 = vmax.f32 %v3076_v21, 0.0  ;;  %v1931_v7 = vsub.f32 %v1782_v31, %v8658_v23  ;;  %v1932_v13 = vsub.f32 %v1782_v31, %v8709_v3 }
 0x11c   :  { %vm697_vm12 = vcmp.ge.f32.partialorder %v545_v0, 0.0  ;;  %v761_v38 = vmul.f32 0.1, %v545_v0  ;;  %v548_v14 = vadd.f32 %v7586_v5, %v9014_v22  ;;  %v539_v10 = vpop.f32.mrb[35].mxu0  ;;  %v2165_v58 = vsub.f32 %v2016_v51, %v8728_v29 }
 0x11d   :  { %vm695_vm13 = vcmp.ge.f32.partialorder %v537_v36, 0.0  ;;  %v759_v6 = vmul.f32 0.1, %v537_v36  ;;  %v540_v47 = vadd.f32 %v9014_v22, %v539_v10  ;;  %v3187_v21 = vpack.c.bf16 %v9411_v37, %v9388_v12 }
 0x11e   :  { %v9421_v41 = vsel %vm697_vm12, %v545_v0, %v761_v38  ;;  %vm698_vm14 = vcmp.ge.f32.partialorder %v548_v14, 0.0  ;;  %v762_v57 = vmul.f32 0.1, %v548_v14  ;;  %v12475_v31 = vpack.c.bf16 %v9137_v46, %v9126_v17  ;;  %v9442_v17 = vpop.f32.mrb[18].mxu1 }
 0x11f   :  { %v823_v34 = vsel %vm695_vm13, %v537_v36, %v759_v6  ;;  %vm696_vm15 = vcmp.ge.f32.partialorder %v540_v47, 0.0  ;;  %v760_v5 = vmul.f32 0.1, %v540_v47  ;;  %v2166_v10 = vsub.f32 %v2016_v51, %v8726_v62 }
 0x120   :  { %7660 = vmatmul.mubr.msk.bf16.vlgmr.msra.gmra.mrb[52].mxu1 %vm3203_vm8, %v12475_v31  ;;  %v9433_v12 = vsel %vm698_vm14, %v548_v14, %v762_v57  ;;  %v12476_v0 = vpack.c.bf16 %v9238_v40, %v9219_v44  ;;  %v2229_v36 = vmul.f32 %v9314_v30, %v9314_v30  ;;  %v2230_v37 = vmul.f32 %v1698_v27, %v1698_v27  ;;  %v9447_v44 = vpop.f32.mrb[19].mxu1 }
 0x121   :  { %7665 = vmatprep.mubr.msk.bf16.mxu1 %vm8242_vm6, %v12449_v53  ;;  %v824_v51 = vsel %vm696_vm15, %v540_v47, %v760_v5  ;;  %v7589_v38 = vpop.f32.mrb[36].mxu0  ;;  %v2293_v57 = vmul.f32 %v1931_v7, %v1931_v7  ;;  %v2294_v14 = vmul.f32 %v1932_v13, %v1932_v13  ;;  %v2422_v30 = vmul.f32 %v2166_v10, %v2166_v10 }
 0x122   :  { %7664 = vmatpush3.bf16.msra.mxu1 %v12476_v0  ;;  %v871_v40 = vpack.c.bf16 %v824_v51, %v823_v34  ;;  %v561_v6 = vadd.f32 %v7589_v38, %v9014_v22  ;;  %v552_v31 = vpop.f32.mrb[37].mxu0  ;;  %v2421_v0 = vmul.f32 %v2165_v58, %v2165_v58  ;;  %v1038_v47 = vcombine.high %v8656_v45, %v8656_v45 }
 0x123   :  { %7669 = vmatprep.subr.bf16.mxu1 %v12449_v53  ;;  %v553_v27 = vadd.f32 %v9014_v22, %v552_v31  ;;  %v7590_v60 = vpop.f32.mrb[38].mxu0  ;;  %v2357_v2 = vadd.f32 %v2293_v57, %v2229_v36  ;;  %v2358_v32 = vadd.f32 %v2294_v14, %v2230_v37  ;;  %v1243_v34 = vcombine.high %v8674_v49, %v8674_v49 }
 0x124   :  { %vm701_vm7 = vcmp.ge.f32.partialorder %v561_v6, 0.0  ;;  %v765_v5 = vmul.f32 0.1, %v561_v6  ;;  %v564_v7 = vadd.f32 %v7590_v60, %v9014_v22  ;;  %v555_v13 = vpop.f32.mrb[39].mxu0  ;;  %7712 = vmatpush3.bf16.msra.mxu0 %v871_v40  ;;  %v12478_v49 = vpack.c.bf16 %v9264_v55, %v9260_v33 }
 0x125   :  { %vm699_vm1 = vcmp.ge.f32.partialorder %v553_v27, 0.0  ;;  %v763_v58 = vmul.f32 0.1, %v553_v27  ;;  %v556_v10 = vadd.f32 %v9014_v22, %v555_v13  ;;  %7723 = vmatprep.subr.bf16.mxu0 %v12449_v53  ;;  %v9458_v36 = vadd.f32 %v2421_v0, %v2357_v2 }
 0x126   :  { %v9460_v37 = vsel %vm701_vm7, %v561_v6, %v765_v5  ;;  %vm702_vm2 = vcmp.ge.f32.partialorder %v564_v7, 0.0  ;;  %v766_v45 = vmul.f32 0.1, %v564_v7  ;;  %v9462_v51 = vadd.f32 %v2422_v30, %v2358_v32 }
 0x127   :  { %12477 = vst [vmem:[#allocation27_spill] sm:$0xff] %v9460_v37  ;;  %v827_v60 = vsel %vm699_vm1, %v553_v27, %v763_v58  ;;  %vm700_vm3 = vcmp.ge.f32.partialorder %v556_v10, 0.0  ;;  %v764_v38 = vmul.f32 0.1, %v556_v10  ;;  %7714 = vmatmul.mubr.msk.bf16.vlgmr.msra.gmra.mrb[40].mxu0 %vm3203_vm8, %v3187_v21  ;;  %8091 = vrsqrt.f32 %v9458_v36 }
 0x128   :  { %7666 = vmatmul.mubr.msk.bf16.vlgmr.msra.gmra.mrb[56].mxu1 %vm3203_vm8, %v12478_v49  ;;  %v9470_v2 = vsel %vm702_vm2, %v564_v7, %v766_v45  ;;  %v12480_v57 = vpack.c.bf16 %v9226_v35, %v9212_v11  ;;  %7725 = vmatprep.mubr.msk.bf16.mxu0 %vm8242_vm6, %v12449_v53  ;;  %vm2659_vm4 = vcmp.eq.f32.partialorder %v9458_v36, inf  ;;  %8093 = vrsqrt.f32 %v9462_v51  ;;  %v12481_v35 = vld [vmem:[#allocation14_spill] sm:$0xff] }
 0x129   :  { %12479 = vst [vmem:[#allocation28_spill] sm:$0xff] %v9470_v2  ;;  %7671 = vmatprep.mubr.msk.bf16.mxu1 %vm8242_vm6, %v12449_v53  ;;  %v828_v14 = vsel %vm700_vm3, %v556_v10, %v764_v38  ;;  %vm2661_vm5 = vcmp.eq.f32.partialorder %v9458_v36, 0.0  ;;  %v2662_v11 = vand.u32 2147483648, %v9458_v36  ;;  %v1448_v55 = vcombine.high %v12481_v35, %v12481_v35  ;;  %v12482_v10 = vld [vmem:[#allocation16_spill] sm:$0xff] }
 0x12a   :  { %7670 = vmatpush3.bf16.msra.mxu1 %v12480_v57  ;;  %v873_v33 = vpack.c.bf16 %v828_v14, %v827_v60  ;;  %vm2666_vm9 = vcmp.eq.f32.partialorder %v9462_v51, inf  ;;  %v1584_v21 = vrot.slane %v1038_v47, %v8527_v42  ;;  %v1818_v40 = vrot.slane %v1243_v34, %v8527_v42 }
 0x12b   :  { %7675 = vmatprep.subr.bf16.mxu1 %v12449_v53  ;;  %v593_v6 = vadd.f32 %v9183_v52, %v9014_v22  ;;  %vm2668_vm10 = vcmp.eq.f32.partialorder %v9462_v51, 0.0  ;;  %v2669_v31 = vand.u32 2147483648, %v9462_v51  ;;  %v2052_v0 = vrot.slane %v1448_v55, %v8527_v42 }
 0x12c   :  { %7724 = vmatpush3.bf16.msra.mxu0 %v873_v33  ;;  %v585_v30 = vadd.f32 %v9014_v22, %v9190_v19  ;;  %v596_v27 = vadd.f32 %v9196_v8, %v9014_v22  ;;  %v1715_v47 = vsub.f32 %v1584_v21, %v8676_v50  ;;  %v1716_v5 = vsub.f32 %v1584_v21, %v8711_v20 }
 0x12d   :  { %v1949_v7 = vsub.f32 %v1818_v40, %v8658_v23  ;;  %v1950_v52 = vsub.f32 %v1818_v40, %v8709_v3  ;;  %7735 = vmatprep.subr.bf16.mxu0 %v12449_v53  ;;  %v2183_v13 = vsub.f32 %v2052_v0, %v8728_v29  ;;  %v2184_v34 = vsub.f32 %v2052_v0, %v8726_v62 }
 0x12e   :  { %v773_v58 = vmul.f32 0.1, %v593_v6  ;;  %v588_v19 = vadd.f32 %v9014_v22, %v12482_v10  ;;  %v2247_v45 = vmul.f32 %v1715_v47, %v1715_v47  ;;  %v2248_v8 = vmul.f32 %v1716_v5, %v1716_v5 }
 0x12f   :  { %v2311_v60 = vmul.f32 %v1949_v7, %v1949_v7  ;;  %v2312_v38 = vmul.f32 %v1950_v52, %v1950_v52  ;;  %v2439_v49 = vmul.f32 %v2183_v13, %v2183_v13  ;;  %v2440_v57 = vmul.f32 %v2184_v34, %v2184_v34  ;;  %v12484_v7 = vld [vmem:[#allocation9_spill] sm:$0xff] }
 0x130   :  { %vm709_vm11 = vcmp.ge.f32.partialorder %v593_v6, 0.0  ;;  %vm707_vm12 = vcmp.ge.f32.partialorder %v585_v30, 0.0  ;;  %v771_v55 = vmul.f32 0.1, %v585_v30  ;;  %vm710_vm13 = vcmp.ge.f32.partialorder %v596_v27, 0.0 }
 0x131   :  { %v8092_v14 = vpop.eup %8091  ;;  %v2375_v33 = vadd.f32 %v2311_v60, %v2247_v45  ;;  %v2376_v35 = vadd.f32 %v2312_v38, %v2248_v8  ;;  %v774_v40 = vmul.f32 0.1, %v596_v27  ;;  %vm708_vm14 = vcmp.ge.f32.partialorder %v588_v19, 0.0  ;;  %v12485_v45 = vld [vmem:[#allocation11_spill] sm:$0xff] }
 0x132   :  { %v2658_v21 = vmul.f32 %v8092_v14, %v9458_v36  ;;  %v772_v0 = vmul.f32 0.1, %v588_v19  ;;  %v8094_v32 = vpop.eup %8093  ;;  %v9514_v5 = vsel %vm709_vm11, %v593_v6, %v773_v58  ;;  %v989_v52 = vcombine.high %v12484_v7, %v12484_v7  ;;  %v8180_v7 = vld [vmem:[%s12343_s1 + $0x30] sm:$0xff] }
 0x133   :  { %v9510_v22 = vadd.f32 %v2439_v49, %v2375_v33  ;;  %v9512_v47 = vadd.f32 %v2440_v57, %v2376_v35  ;;  %12483 = vst [vmem:[#allocation14_spill] sm:$0xff] %v9514_v5  ;;  %v2665_v34 = vmul.f32 %v8094_v32, %v9462_v51  ;;  %v9523_v10 = vsel %vm707_vm12, %v585_v30, %v771_v55  ;;  %v9549_v57 = vpop.f32.mrb[20].mxu1  ;;  %v8179_v35 = vld [vmem:[%s12343_s1 + $0x10] sm:$0xff] }
 0x134   :  { %v2660_v13 = vsel %vm2659_vm4, %v9458_v36, %v2658_v21  ;;  %v1194_v8 = vcombine.high %v12485_v45, %v12485_v45  ;;  %v9531_v6 = vsel %vm710_vm13, %v596_v27, %v774_v40  ;;  %v9533_v58 = vsel %vm708_vm14, %v588_v19, %v772_v0  ;;  %v9558_v21 = vpop.f32.mrb[21].mxu1 }
 0x135   :  { %v2663_v60 = vsel %vm2661_vm5, %v2662_v11, %v2660_v13  ;;  %8095 = vrsqrt.f32 %v9510_v22  ;;  %12486 = vst [vmem:[#allocation16_spill] sm:$0xff] %v9531_v6  ;;  %v2667_v32 = vsel %vm2666_vm9, %v9462_v51, %v2665_v34  ;;  %vm2785_vm15 = vcmp.eq.f32.partialorder %v9510_v22, inf  ;;  %v12487_v51 = vld [vmem:[#allocation12_spill] sm:$0xff]  ;;  %v9566_v45 = vpop.f32.mrb[22].mxu1 }
 0x136   :  { %v2997_v38 = vmul.f32 3.3333333, %v2663_v60  ;;  %8097 = vrsqrt.f32 %v9512_v47  ;;  %v2670_v30 = vsel %vm2668_vm10, %v2669_v31, %v2667_v32  ;;  %v2788_v36 = vand.u32 2147483648, %v9510_v22 }
 0x137   :  { %v2998_v11 = vmul.f32 3.3333333, %v2670_v30  ;;  %vm2787_vm7 = vcmp.eq.f32.partialorder %v9510_v22, 0.0  ;;  %vm2792_vm1 = vcmp.eq.f32.partialorder %v9512_v47, inf  ;;  %v1399_v31 = vcombine.high %v12487_v51, %v12487_v51  ;;  %v9572_v30 = vpop.f32.mrb[23].mxu1  ;;  %v12488_v51 = vld [vmem:[#allocation7_spill] sm:$0xff] }
 0x138   :  { %v3061_v49 = vsub.f32 1.0, %v2997_v38  ;;  %v1552_v14 = vrot.slane %v989_v52, %v8527_v42  ;;  %v1786_v33 = vrot.slane %v1194_v8, %v8527_v42  ;;  %v993_v55 = vcombine.high %v8179_v35, %v8179_v35  ;;  %v8181_v52 = vld [vmem:[%s12343_s1 + $0x50] sm:$0xff] }
 0x139   :  { %v3062_v40 = vsub.f32 1.0, %v2998_v11  ;;  %v1198_v13 = vcombine.high %v8180_v7, %v8180_v7  ;;  %v1403_v34 = vcombine.high %v8181_v52, %v8181_v52  ;;  %vm2794_vm2 = vcmp.eq.f32.partialorder %v9512_v47, 0.0 }
 0x13a   :  { %v3125_v0 = vmax.f32 %v3061_v49, 0.0  ;;  %v1699_v8 = vsub.f32 %v1552_v14, %v8676_v50  ;;  %v1700_v60 = vsub.f32 %v1552_v14, %v8711_v20  ;;  %v1933_v32 = vsub.f32 %v1786_v33, %v8658_v23 }
 0x13b   :  { %v1934_v38 = vsub.f32 %v1786_v33, %v8709_v3  ;;  %v3126_v11 = vmax.f32 %v3062_v40, 0.0  ;;  %v2020_v49 = vrot.slane %v1399_v31, %v8527_v42  ;;  %v9576_v35 = vrot.slane %v993_v55, %v12488_v51 }
 0x13c   :  { %v9579_v7 = vrot.slane %v1198_v13, %v12488_v51  ;;  %v2231_v52 = vmul.f32 %v1699_v8, %v1699_v8  ;;  %v2232_v27 = vmul.f32 %v1700_v60, %v1700_v60  ;;  %v2295_v46 = vmul.f32 %v1933_v32, %v1933_v32 }
 0x13d   :  { %v2296_v19 = vmul.f32 %v1934_v38, %v1934_v38  ;;  %v3180_v14 = vpack.c.bf16 %v3126_v11, %v3125_v0  ;;  %v2167_v5 = vsub.f32 %v2020_v49, %v8728_v29  ;;  %v2168_v33 = vsub.f32 %v2020_v49, %v8726_v62 }
 0x13e   :  { %12489 = vst [vmem:[#allocation9_spill] sm:$0xff] %v9579_v7  ;;  %v9585_v40 = vrot.slane %v9576_v35, %v12488_v51  ;;  %v2795_v55 = vand.u32 2147483648, %v9512_v47  ;;  %v2359_v6 = vadd.f32 %v2295_v46, %v2231_v52  ;;  %v9590_v13 = vrot.slane %v9579_v7, %v12488_v51 }
 0x13f   :  { %v8096_v31 = vpop.eup %8095  ;;  %v2360_v37 = vadd.f32 %v2296_v19, %v2232_v27  ;;  %7672 = vmatmul.mubr.msk.bf16.vlgmr.msra.gmra.mrb[60].mxu1 %vm3203_vm8, %v3180_v14  ;;  %v2423_v60 = vmul.f32 %v2167_v5, %v2167_v5  ;;  %v2424_v32 = vmul.f32 %v2168_v33, %v2168_v33  ;;  %v12490_v11 = vpack.c.bf16 %v9287_v63, %v9270_v1 }
 0x140   :  { %v8098_v8 = vpop.eup %8097  ;;  %v2784_v0 = vmul.f32 %v8096_v31, %v9510_v22  ;;  %v1592_v38 = vrot.slane %v9585_v40, %v8527_v42  ;;  %7677 = vmatprep.mubr.msk.bf16.mxu1 %vm8242_vm6, %v12449_v53  ;;  %v1826_v27 = vrot.slane %v9590_v13, %v8527_v42  ;;  %v9614_v63 = vrot.slane %v1403_v34, %v12488_v51 }
 0x141   :  { %7676 = vmatpush3.bf16.msra.mxu1 %v12490_v11  ;;  %v2791_v46 = vmul.f32 %v8098_v8, %v9512_v47  ;;  %v9609_v19 = vadd.f32 %v2423_v60, %v2359_v6  ;;  %v9611_v1 = vadd.f32 %v2424_v32, %v2360_v37  ;;  %v9638_v11 = vld [vmem:[%s12345_s3] ss:$0 sm:$0xff] }
 0x142   :  { %v2786_v5 = vsel %vm2785_vm15, %v9510_v22, %v2784_v0  ;;  %7681 = vmatprep.subr.bf16.mxu1 %v12449_v53  ;;  %12491 = vst [vmem:[#allocation11_spill] sm:$0xff] %v9614_v63  ;;  %v1719_v14 = vsub.f32 %v1592_v38, %v8676_v50  ;;  %v1720_v33 = vsub.f32 %v1592_v38, %v8711_v20 }
 0x143   :  { %v2789_v49 = vsel %vm2787_vm7, %v2788_v36, %v2786_v5  ;;  %v2793_v52 = vsel %vm2792_vm1, %v9512_v47, %v2791_v46  ;;  %8099 = vrsqrt.f32 %v9609_v19  ;;  %v1953_v37 = vsub.f32 %v1826_v27, %v8658_v23 }
 0x144   :  { %v2796_v31 = vsel %vm2794_vm2, %v2795_v55, %v2793_v52  ;;  %v3015_v8 = vmul.f32 3.3333333, %v2789_v49  ;;  %8101 = vrsqrt.f32 %v9611_v1  ;;  %v9628_v22 = vrot.slane %v9614_v63, %v12488_v51 }
 0x145   :  { %v3016_v6 = vmul.f32 3.3333333, %v2796_v31  ;;  %vm2673_vm3 = vcmp.eq.f32.partialorder %v9609_v19, inf  ;;  %vm2675_vm4 = vcmp.eq.f32.partialorder %v9609_v19, 0.0  ;;  %v1954_v34 = vsub.f32 %v1826_v27, %v8709_v3 }
 0x146   :  { %v3079_v36 = vsub.f32 1.0, %v3015_v8  ;;  %v2060_v55 = vrot.slane %v9628_v22, %v8527_v42  ;;  %v2251_v0 = vmul.f32 %v1719_v14, %v1719_v14  ;;  %v2252_v32 = vmul.f32 %v1720_v33, %v1720_v33 }
 0x147   :  { %v3080_v47 = vsub.f32 1.0, %v3016_v6  ;;  %v2315_v38 = vmul.f32 %v1953_v37, %v1953_v37  ;;  %v609_v46 = vadd.f32 %v9638_v11, %v9233_v59  ;;  %v2316_v52 = vmul.f32 %v1954_v34, %v1954_v34 }
 0x148   :  { %v3143_v60 = vmax.f32 %v3079_v36, 0.0  ;;  %v2187_v49 = vsub.f32 %v2060_v55, %v8728_v29  ;;  %v2188_v27 = vsub.f32 %v2060_v55, %v8726_v62  ;;  %v2676_v31 = vand.u32 2147483648, %v9609_v19 }
 0x149   :  { %v3144_v5 = vmax.f32 %v3080_v47, 0.0  ;;  %v2379_v14 = vadd.f32 %v2315_v38, %v2251_v0  ;;  %v777_v8 = vmul.f32 0.1, %v609_v46  ;;  %v601_v33 = vadd.f32 %v9638_v11, %v9242_v48 }
 0x14a   :  { %v2380_v6 = vadd.f32 %v2316_v52, %v2252_v32  ;;  %v2443_v36 = vmul.f32 %v2187_v49, %v2187_v49  ;;  %v2444_v2 = vmul.f32 %v2188_v27, %v2188_v27  ;;  %vm2680_vm5 = vcmp.eq.f32.partialorder %v9611_v1, inf }
 0x14b   :  { %v3189_v37 = vpack.c.bf16 %v3144_v5, %v3143_v60  ;;  %vm713_vm9 = vcmp.ge.f32.partialorder %v609_v46, 0.0  ;;  %v775_v59 = vmul.f32 0.1, %v601_v33  ;;  %v612_v47 = vadd.f32 %v9638_v11, %v9249_v39 }
 0x14c   :  { %vm2682_vm10 = vcmp.eq.f32.partialorder %v9611_v1, 0.0  ;;  %v9652_v34 = vadd.f32 %v2443_v36, %v2379_v14  ;;  %v9654_v55 = vadd.f32 %v2444_v2, %v2380_v6  ;;  %vm711_vm11 = vcmp.ge.f32.partialorder %v601_v33, 0.0 }
 0x14d   :  { %7726 = vmatmul.mubr.msk.bf16.vlgmr.msra.gmra.mrb[44].mxu0 %vm3203_vm8, %v3189_v37  ;;  %v8100_v48 = vpop.eup %8099  ;;  %v12492_v0 = vpack.c.bf16 %v9406_v9, %v9352_v28  ;;  %v2683_v60 = vand.u32 2147483648, %v9611_v1  ;;  %vm714_vm12 = vcmp.ge.f32.partialorder %v612_v47, 0.0  ;;  %v778_v39 = vmul.f32 0.1, %v612_v47  ;;  %v12494_v28 = vld [vmem:[#allocation15_spill] sm:$0xff] }
 0x14e   :  { %7737 = vmatprep.mubr.msk.bf16.mxu0 %vm8242_vm6, %v12449_v53  ;;  %v604_v32 = vadd.f32 %v9638_v11, %v9256_v16  ;;  %v8102_v38 = vpop.eup %8101  ;;  %v2672_v2 = vmul.f32 %v8100_v48, %v9609_v19  ;;  %8103 = vrsqrt.f32 %v9652_v34  ;;  %v9667_v5 = vsel %vm713_vm9, %v609_v46, %v777_v8 }
 0x14f   :  { %7736 = vmatpush3.bf16.msra.mxu0 %v12492_v0  ;;  %12493 = vst [vmem:[#allocation12_spill] sm:$0xff] %v9667_v5  ;;  %v991_v9 = vcombine.high %v12494_v28, %v12494_v28  ;;  %v2679_v49 = vmul.f32 %v8102_v38, %v9611_v1  ;;  %8105 = vrsqrt.f32 %v9654_v55  ;;  %v9675_v27 = vsel %vm711_vm11, %v601_v33, %v775_v59 }
 0x150   :  { %7747 = vmatprep.subr.bf16.mxu0 %v12449_v53  ;;  %v1196_v16 = vcombine.high %v8872_v54, %v8872_v54  ;;  %v2674_v46 = vsel %vm2673_vm3, %v9609_v19, %v2672_v2  ;;  %vm2813_vm13 = vcmp.eq.f32.partialorder %v9652_v34, inf  ;;  %v2816_v52 = vand.u32 2147483648, %v9652_v34 }
 0x151   :  { %v2823_v14 = vand.u32 2147483648, %v9654_v55  ;;  %v9686_v8 = vsel %vm714_vm12, %v612_v47, %v778_v39  ;;  %v2677_v33 = vsel %vm2675_vm4, %v2676_v31, %v2674_v46  ;;  %v2681_v54 = vsel %vm2680_vm5, %v9611_v1, %v2679_v49 }
 0x152   :  { %12495 = vst [vmem:[#allocation7_spill] sm:$0xff] %v9686_v8  ;;  %vm2815_vm14 = vcmp.eq.f32.partialorder %v9652_v34, 0.0  ;;  %vm2820_vm15 = vcmp.eq.f32.partialorder %v9654_v55, inf  ;;  %vm712_vm7 = vcmp.ge.f32.partialorder %v604_v32, 0.0  ;;  %v2684_v6 = vsel %vm2682_vm10, %v2683_v60, %v2681_v54 }
 0x153   :  { %v2999_v36 = vmul.f32 3.3333333, %v2677_v33  ;;  %vm2822_vm1 = vcmp.eq.f32.partialorder %v9654_v55, 0.0  ;;  %v776_v19 = vmul.f32 0.1, %v604_v32  ;;  %v1401_v31 = vcombine.high %v8878_v25, %v8878_v25 }
 0x154   :  { %v3000_v59 = vmul.f32 3.3333333, %v2684_v6  ;;  %v1556_v47 = vrot.slane %v991_v9, %v8527_v42  ;;  %v1790_v48 = vrot.slane %v1196_v16, %v8527_v42  ;;  %v1039_v0 = vcombine.high %v9585_v40, %v9585_v40 }
 0x155   :  { %v3063_v39 = vsub.f32 1.0, %v2999_v36  ;;  %v9706_v38 = vsel %vm712_vm7, %v604_v32, %v776_v19  ;;  %v2024_v1 = vrot.slane %v1401_v31, %v8527_v42  ;;  %v1244_v60 = vcombine.high %v9590_v13, %v9590_v13 }
 0x156   :  { %v3064_v2 = vsub.f32 1.0, %v3000_v59  ;;  %v1701_v28 = vsub.f32 %v1556_v47, %v8676_v50  ;;  %v1702_v9 = vsub.f32 %v1556_v47, %v8711_v20  ;;  %v1935_v16 = vsub.f32 %v1790_v48, %v8658_v23 }
 0x157   :  { %v3127_v49 = vmax.f32 %v3063_v39, 0.0  ;;  %v1936_v40 = vsub.f32 %v1790_v48, %v8709_v3  ;;  %v2169_v32 = vsub.f32 %v2024_v1, %v8728_v29  ;;  %v2170_v33 = vsub.f32 %v2024_v1, %v8726_v62 }
 0x158   :  { %v3128_v46 = vmax.f32 %v3064_v2, 0.0  ;;  %v2233_v54 = vmul.f32 %v1701_v28, %v1701_v28  ;;  %v2234_v13 = vmul.f32 %v1702_v9, %v1702_v9  ;;  %v8104_v6 = vpop.eup %8103  ;;  %v2297_v36 = vmul.f32 %v1935_v16, %v1935_v16 }
 0x159   :  { %v2298_v19 = vmul.f32 %v1936_v40, %v1936_v40  ;;  %v2425_v31 = vmul.f32 %v2169_v32, %v2169_v32  ;;  %v1449_v59 = vcombine.high %v9628_v22, %v9628_v22  ;;  %v8106_v47 = vpop.eup %8105  ;;  %v2812_v37 = vmul.f32 %v8104_v6, %v9652_v34 }
 0x15a   :  { %v3181_v39 = vpack.c.bf16 %v3128_v46, %v3127_v49  ;;  %v2426_v25 = vmul.f32 %v2170_v33, %v2170_v33  ;;  %v1600_v48 = vrot.slane %v1039_v0, %v8527_v42  ;;  %v2819_v2 = vmul.f32 %v8106_v47, %v9654_v55  ;;  %v12496_v49 = vld [vmem:[#allocation17_spill] sm:$0xff] }
 0x15b   :  { %v2361_v5 = vadd.f32 %v2297_v36, %v2233_v54  ;;  %v2362_v1 = vadd.f32 %v2298_v19, %v2234_v13  ;;  %v1834_v28 = vrot.slane %v1244_v60, %v8527_v42  ;;  %v2814_v9 = vsel %vm2813_vm13, %v9652_v34, %v2812_v37 }
 0x15c   :  { %7678 = vmatmul.mubr.msk.bf16.vlgmr.msra.gmra.mrb[64].mxu1 %vm3203_vm8, %v3181_v39  ;;  %v1723_v22 = vsub.f32 %v1600_v48, %v8676_v50  ;;  %v12497_v16 = vpack.c.bf16 %v9278_v61, %v12496_v49  ;;  %v2817_v0 = vsel %vm2815_vm14, %v2816_v52, %v2814_v9  ;;  %v2821_v40 = vsel %vm2820_vm15, %v9654_v55, %v2819_v2 }
 0x15d   :  { %7683 = vmatprep.mubr.msk.bf16.mxu1 %vm8242_vm6, %v12449_v53  ;;  %v9740_v60 = vadd.f32 %v2425_v31, %v2361_v5  ;;  %v2824_v37 = vsel %vm2822_vm1, %v2823_v14, %v2821_v40  ;;  %v3019_v32 = vmul.f32 3.3333333, %v2817_v0  ;;  %v9745_v61 = vadd.f32 %v2426_v25, %v2362_v1  ;;  %v12499_v1 = vld [vmem:[#allocation19_spill] sm:$0xff]  ;;  %v12500_v0 = vld [vmem:[#allocation20_spill] sm:$0xff] }
 0x15e   :  { %7682 = vmatpush3.bf16.msra.mxu1 %v12497_v16  ;;  %v2068_v34 = vrot.slane %v1449_v59, %v8527_v42  ;;  %v3020_v52 = vmul.f32 3.3333333, %v2824_v37  ;;  %v1724_v46 = vsub.f32 %v1600_v48, %v8711_v20  ;;  %v1957_v33 = vsub.f32 %v1834_v28, %v8658_v23  ;;  %v12498_v48 = vld [vmem:[#allocation18_spill] sm:$0xff] }
 0x15f   :  { %7687 = vmatprep.subr.bf16.mxu1 %v12449_v53  ;;  %8107 = vrsqrt.f32 %v9740_v60  ;;  %v3083_v54 = vsub.f32 1.0, %v3019_v32  ;;  %v1958_v55 = vsub.f32 %v1834_v28, %v8709_v3  ;;  %v2255_v6 = vmul.f32 %v1723_v22, %v1723_v22 }
 0x160   :  { %8109 = vrsqrt.f32 %v9745_v61  ;;  %v3084_v5 = vsub.f32 1.0, %v3020_v52  ;;  %v2191_v13 = vsub.f32 %v2068_v34, %v8728_v29  ;;  %v2192_v25 = vsub.f32 %v2068_v34, %v8726_v62 }
 0x161   :  { %v3147_v14 = vmax.f32 %v3083_v54, 0.0  ;;  %v2256_v19 = vmul.f32 %v1724_v46, %v1724_v46  ;;  %v2319_v31 = vmul.f32 %v1957_v33, %v1957_v33  ;;  %v2320_v59 = vmul.f32 %v1958_v55, %v1958_v55  ;;  %v12502_v54 = vld [vmem:[#allocation21_spill] sm:$0xff] }
 0x162   :  { %v3148_v36 = vmax.f32 %v3084_v5, 0.0  ;;  %v2447_v47 = vmul.f32 %v2191_v13, %v2191_v13  ;;  %v2448_v39 = vmul.f32 %v2192_v25, %v2192_v25  ;;  %v625_v2 = vadd.f32 %v9638_v11, %v12498_v48 }
 0x163   :  { %v617_v9 = vadd.f32 %v9638_v11, %v12499_v1  ;;  %v2383_v28 = vadd.f32 %v2319_v31, %v2255_v6  ;;  %v2384_v16 = vadd.f32 %v2320_v59, %v2256_v19  ;;  %v628_v40 = vadd.f32 %v9638_v11, %v12500_v0 }
 0x164   :  { %v3191_v49 = vpack.c.bf16 %v3148_v36, %v3147_v14  ;;  %vm2687_vm2 = vcmp.eq.f32.partialorder %v9740_v60, inf  ;;  %vm717_vm3 = vcmp.ge.f32.partialorder %v625_v2, 0.0  ;;  %v781_v22 = vmul.f32 0.1, %v625_v2 }
 0x165   :  { %v779_v37 = vmul.f32 0.1, %v617_v9  ;;  %v9763_v32 = vadd.f32 %v2447_v47, %v2383_v28  ;;  %v9765_v34 = vadd.f32 %v2448_v39, %v2384_v16  ;;  %vm715_vm4 = vcmp.ge.f32.partialorder %v617_v9, 0.0  ;;  %v8183_v39 = vld [vmem:[%s12343_s1 + $0x8] sm:$0xff] }
 0x166   :  { %7738 = vmatmul.mubr.msk.bf16.vlgmr.msra.gmra.mrb[48].mxu0 %vm3203_vm8, %v3191_v49  ;;  %v782_v52 = vmul.f32 0.1, %v628_v40  ;;  %v12501_v46 = vpack.c.bf16 %v9533_v58, %v9523_v10  ;;  %vm2689_vm5 = vcmp.eq.f32.partialorder %v9740_v60, 0.0  ;;  %v2690_v33 = vand.u32 2147483648, %v9740_v60  ;;  %v8185_v28 = vld [vmem:[%s12343_s1 + $0x48] sm:$0xff] }
 0x167   :  { %7749 = vmatprep.mubr.msk.bf16.mxu0 %vm8242_vm6, %v12449_v53  ;;  %vm718_vm9 = vcmp.ge.f32.partialorder %v628_v40, 0.0  ;;  %v620_v5 = vadd.f32 %v9638_v11, %v12502_v54  ;;  %vm2694_vm10 = vcmp.eq.f32.partialorder %v9745_v61, inf  ;;  %vm2696_vm11 = vcmp.eq.f32.partialorder %v9745_v61, 0.0 }
 0x168   :  { %7748 = vmatpush3.bf16.msra.mxu0 %v12501_v46  ;;  %8111 = vrsqrt.f32 %v9763_v32  ;;  %v9780_v10 = vsel %vm717_vm3, %v625_v2, %v781_v22  ;;  %v2697_v13 = vand.u32 2147483648, %v9745_v61  ;;  %v9787_v25 = vsel %vm715_vm4, %v617_v9, %v779_v37  ;;  %v8184_v9 = vld [vmem:[%s12343_s1 + $0x28] sm:$0xff] }
 0x169   :  { %v8108_v55 = vpop.eup %8107  ;;  %12503 = vst [vmem:[#allocation15_spill] sm:$0xff] %v9780_v10  ;;  %7759 = vmatprep.subr.bf16.mxu0 %v12449_v53  ;;  %8113 = vrsqrt.f32 %v9765_v34  ;;  %vm2841_vm12 = vcmp.eq.f32.partialorder %v9763_v32, inf  ;;  %v2844_v36 = vand.u32 2147483648, %v9763_v32  ;;  %v9793_v19 = vsel %vm718_vm9, %v628_v40, %v782_v52 }
 0x16a   :  { %v8110_v58 = vpop.eup %8109  ;;  %v2686_v14 = vmul.f32 %v8108_v55, %v9740_v60  ;;  %12504 = vst [vmem:[#allocation17_spill] sm:$0xff] %v9793_v19  ;;  %vm716_vm13 = vcmp.ge.f32.partialorder %v620_v5, 0.0  ;;  %vm2843_vm14 = vcmp.eq.f32.partialorder %v9763_v32, 0.0  ;;  %vm2848_vm15 = vcmp.eq.f32.partialorder %v9765_v34, inf }
 0x16b   :  { %v2693_v6 = vmul.f32 %v8110_v58, %v9745_v61  ;;  %v780_v47 = vmul.f32 0.1, %v620_v5  ;;  %v944_v48 = vcombine.high %v8183_v39, %v8183_v39  ;;  %vm2850_vm7 = vcmp.eq.f32.partialorder %v9765_v34, 0.0  ;;  %v9867_v39 = vld [vmem:[%s12343_s1 + $0x58] sm:$0xff] }
 0x16c   :  { %v2688_v31 = vsel %vm2687_vm2, %v9740_v60, %v2686_v14  ;;  %v1149_v49 = vcombine.high %v8184_v9, %v8184_v9  ;;  %v1354_v16 = vcombine.high %v8185_v28, %v8185_v28  ;;  %v9850_v14 = vld [vmem:[%s12343_s1 + $0x38] sm:$0xff]  ;;  %v9877_v9 = vrot.slane %v9867_v39, %v12488_v51 }
 0x16d   :  { %v2691_v2 = vsel %vm2689_vm5, %v2690_v33, %v2688_v31  ;;  %v2695_v1 = vsel %vm2694_vm10, %v9745_v61, %v2693_v6  ;;  %v9820_v40 = vsel %vm716_vm13, %v620_v5, %v780_v47  ;;  %v9823_v22 = vrot.slane %v944_v48, %v12488_v51  ;;  %v9836_v61 = vld [vmem:[%s12343_s1 + $0x18] sm:$0xff] }
 0x16e   :  { %v2698_v60 = vsel %vm2696_vm11, %v2697_v13, %v2695_v1  ;;  %v3001_v0 = vmul.f32 3.3333333, %v2691_v2  ;;  %v9828_v46 = vrot.slane %v1149_v49, %v12488_v51  ;;  %v9831_v33 = vrot.slane %v1354_v16, %v12488_v51  ;;  %12507 = vst [vmem:[#allocation20_spill] sm:$0xff] %v9877_v9 }
 0x16f   :  { %v3002_v37 = vmul.f32 3.3333333, %v2698_v60  ;;  %v2851_v5 = vand.u32 2147483648, %v9765_v34  ;;  %v9841_v55 = vrot.slane %v9823_v22, %v12488_v51  ;;  %v9845_v58 = vrot.slane %v9836_v61, %v12488_v51 }
 0x170   :  { %v3065_v54 = vsub.f32 1.0, %v3001_v0  ;;  %v9854_v6 = vrot.slane %v9828_v46, %v12488_v51  ;;  %v9858_v31 = vrot.slane %v9831_v33, %v12488_v51  ;;  %v9862_v47 = vrot.slane %v9850_v14, %v12488_v51 }
 0x171   :  { %12505 = vst [vmem:[#allocation18_spill] sm:$0xff] %v9845_v58  ;;  %v3066_v13 = vsub.f32 1.0, %v3002_v37  ;;  %v1560_v2 = vrot.slane %v9841_v55, %v8527_v42  ;;  %v9873_v1 = vrot.slane %v9845_v58, %v12488_v51 }
 0x172   :  { %12506 = vst [vmem:[#allocation19_spill] sm:$0xff] %v9862_v47  ;;  %v3129_v48 = vmax.f32 %v3065_v54, 0.0  ;;  %v8112_v49 = vpop.eup %8111  ;;  %v1794_v16 = vrot.slane %v9854_v6, %v8527_v42  ;;  %v2028_v60 = vrot.slane %v9858_v31, %v8527_v42  ;;  %v9885_v0 = vrot.slane %v9862_v47, %v12488_v51 }
 0x173   :  { %v3130_v28 = vmax.f32 %v3066_v13, 0.0  ;;  %v8114_v37 = vpop.eup %8113  ;;  %v2840_v54 = vmul.f32 %v8112_v49, %v9763_v32  ;;  %v1703_v59 = vsub.f32 %v1560_v2, %v8676_v50  ;;  %v1704_v52 = vsub.f32 %v1560_v2, %v8711_v20 }
 0x174   :  { %v1608_v13 = vrot.slane %v9873_v1, %v8527_v42  ;;  %v2847_v19 = vmul.f32 %v8114_v37, %v9765_v34  ;;  %v1937_v8 = vsub.f32 %v1794_v16, %v8658_v23  ;;  %v1938_v58 = vsub.f32 %v1794_v16, %v8709_v3 }
 0x175   :  { %v3182_v10 = vpack.c.bf16 %v3130_v28, %v3129_v48  ;;  %v2842_v47 = vsel %vm2841_vm12, %v9763_v32, %v2840_v54  ;;  %v2171_v49 = vsub.f32 %v2028_v60, %v8728_v29  ;;  %v2172_v63 = vsub.f32 %v2028_v60, %v8726_v62 }
 0x176   :  { %v2235_v7 = vmul.f32 %v1703_v59, %v1703_v59  ;;  %v2845_v48 = vsel %vm2843_vm14, %v2844_v36, %v2842_v47  ;;  %v2849_v2 = vsel %vm2848_vm15, %v9765_v34, %v2847_v19  ;;  %v2236_v28 = vmul.f32 %v1704_v52, %v1704_v52 }
 0x177   :  { %7684 = vmatmul.mubr.msk.bf16.vlgmr.msra.gmra.mrb[68].mxu1 %vm3203_vm8, %v3182_v10  ;;  %v2299_v16 = vmul.f32 %v1937_v8, %v1937_v8  ;;  %v12508_v37 = vpack.c.bf16 %v9346_v43, %v9332_v26  ;;  %v2852_v54 = vsel %vm2850_vm7, %v2851_v5, %v2849_v2  ;;  %v3023_v60 = vmul.f32 3.3333333, %v2845_v48 }
 0x178   :  { %7689 = vmatprep.mubr.msk.bf16.mxu1 %vm8242_vm6, %v12449_v53  ;;  %v2300_v10 = vmul.f32 %v1938_v58, %v1938_v58  ;;  %v2427_v32 = vmul.f32 %v2171_v49, %v2171_v49  ;;  %v3024_v36 = vmul.f32 3.3333333, %v2852_v54  ;;  %v2428_v19 = vmul.f32 %v2172_v63, %v2172_v63 }
 0x179   :  { %7688 = vmatpush3.bf16.msra.mxu1 %v12508_v37  ;;  %v2363_v59 = vadd.f32 %v2299_v16, %v2235_v7  ;;  %v9916_v8 = vrot.slane %v9877_v9, %v12488_v51  ;;  %v3087_v26 = vsub.f32 1.0, %v3023_v60  ;;  %v1727_v34 = vsub.f32 %v1608_v13, %v8676_v50 }
 0x17a   :  { %7693 = vmatprep.subr.bf16.mxu1 %v12449_v53  ;;  %v2364_v43 = vadd.f32 %v2300_v10, %v2236_v28  ;;  %v1842_v52 = vrot.slane %v9885_v0, %v8527_v42  ;;  %v3088_v5 = vsub.f32 1.0, %v3024_v36  ;;  %v1728_v58 = vsub.f32 %v1608_v13, %v8711_v20 }
 0x17b   :  { %v9921_v47 = vadd.f32 %v2427_v32, %v2363_v59  ;;  %v2076_v7 = vrot.slane %v9916_v8, %v8527_v42  ;;  %v3151_v63 = vmax.f32 %v3087_v26, 0.0  ;;  %v2259_v16 = vmul.f32 %v1727_v34, %v1727_v34 }
 0x17c   :  { %v9926_v49 = vadd.f32 %v2428_v19, %v2364_v43  ;;  %v1961_v48 = vsub.f32 %v1842_v52, %v8658_v23  ;;  %v1962_v2 = vsub.f32 %v1842_v52, %v8709_v3  ;;  %v3152_v28 = vmax.f32 %v3088_v5, 0.0 }
 0x17d   :  { %8115 = vrsqrt.f32 %v9921_v47  ;;  %vm2701_vm1 = vcmp.eq.f32.partialorder %v9921_v47, inf  ;;  %v2195_v13 = vsub.f32 %v2076_v7, %v8728_v29  ;;  %v2196_v54 = vsub.f32 %v2076_v7, %v8726_v62 }
 0x17e   :  { %8117 = vrsqrt.f32 %v9926_v49  ;;  %v3193_v37 = vpack.c.bf16 %v3152_v28, %v3151_v63  ;;  %v2260_v60 = vmul.f32 %v1728_v58, %v1728_v58  ;;  %v2323_v10 = vmul.f32 %v1961_v48, %v1961_v48 }
 0x17f   :  { %v2324_v32 = vmul.f32 %v1962_v2, %v1962_v2  ;;  %v641_v36 = vadd.f32 %v9638_v11, %v9424_v56  ;;  %v2451_v59 = vmul.f32 %v2195_v13, %v2195_v13  ;;  %v2452_v19 = vmul.f32 %v2196_v54, %v2196_v54 }
 0x180   :  { %7750 = vmatmul.mubr.msk.bf16.vlgmr.msra.gmra.mrb[52].mxu0 %vm3203_vm8, %v3193_v37  ;;  %v633_v26 = vadd.f32 %v9638_v11, %v9431_v15  ;;  %v644_v43 = vadd.f32 %v9638_v11, %v9442_v17  ;;  %v12509_v34 = vpack.c.bf16 %v9706_v38, %v9675_v27  ;;  %v2387_v52 = vadd.f32 %v2323_v10, %v2259_v16 }
 0x181   :  { %7761 = vmatprep.mubr.msk.bf16.mxu0 %vm8242_vm6, %v12449_v53  ;;  %v2388_v5 = vadd.f32 %v2324_v32, %v2260_v60  ;;  %vm721_vm2 = vcmp.ge.f32.partialorder %v641_v36, 0.0  ;;  %v785_v56 = vmul.f32 0.1, %v641_v36  ;;  %vm2703_vm3 = vcmp.eq.f32.partialorder %v9921_v47, 0.0 }
 0x182   :  { %7760 = vmatpush3.bf16.msra.mxu0 %v12509_v34  ;;  %v783_v58 = vmul.f32 0.1, %v633_v26  ;;  %vm722_vm4 = vcmp.ge.f32.partialorder %v644_v43, 0.0  ;;  %v786_v7 = vmul.f32 0.1, %v644_v43  ;;  %v9949_v15 = vadd.f32 %v2451_v59, %v2387_v52 }
 0x183   :  { %7771 = vmatprep.subr.bf16.mxu0 %v12449_v53  ;;  %v9951_v17 = vadd.f32 %v2452_v19, %v2388_v5  ;;  %vm719_vm5 = vcmp.ge.f32.partialorder %v633_v26, 0.0  ;;  %v636_v27 = vadd.f32 %v9638_v11, %v9447_v44  ;;  %v2704_v38 = vand.u32 2147483648, %v9921_v47 }
 0x184   :  { %v9956_v63 = vsel %vm721_vm2, %v641_v36, %v785_v56  ;;  %v9958_v48 = vsel %vm722_vm4, %v644_v43, %v786_v7  ;;  %v960_v2 = vcombine.high %v9823_v22, %v9823_v22  ;;  %vm2708_vm9 = vcmp.eq.f32.partialorder %v9926_v49, inf }
 0x185   :  { %12510 = vst [vmem:[#allocation21_spill] sm:$0xff] %v9956_v63  ;;  %12511 = vst [vmem:[#allocation29_spill] sm:$0xff] %v9958_v48  ;;  %vm2710_vm10 = vcmp.eq.f32.partialorder %v9926_v49, 0.0  ;;  %8119 = vrsqrt.f32 %v9949_v15  ;;  %v1165_v28 = vcombine.high %v9828_v46, %v9828_v46  ;;  %v2711_v44 = vand.u32 2147483648, %v9926_v49 }
 0x186   :  { %v2872_v37 = vand.u32 2147483648, %v9949_v15  ;;  %8121 = vrsqrt.f32 %v9951_v17  ;;  %v9970_v13 = vsel %vm719_vm5, %v633_v26, %v783_v58  ;;  %vm2869_vm11 = vcmp.eq.f32.partialorder %v9949_v15, inf }
 0x187   :  { %v8116_v16 = vpop.eup %8115  ;;  %vm720_vm12 = vcmp.ge.f32.partialorder %v636_v27, 0.0  ;;  %v784_v10 = vmul.f32 0.1, %v636_v27  ;;  %vm2871_vm13 = vcmp.eq.f32.partialorder %v9949_v15, 0.0  ;;  %vm2876_vm14 = vcmp.eq.f32.partialorder %v9951_v17, inf }
 0x188   :  { %v8118_v54 = vpop.eup %8117  ;;  %v2700_v22 = vmul.f32 %v8116_v16, %v9921_v47  ;;  %v2879_v32 = vand.u32 2147483648, %v9951_v17  ;;  %v9981_v36 = vrot.slane %v960_v2, %v12488_v51  ;;  %v1370_v59 = vcombine.high %v9831_v33, %v9831_v33 }
 0x189   :  { %v2707_v46 = vmul.f32 %v8118_v54, %v9926_v49  ;;  %vm2878_vm15 = vcmp.eq.f32.partialorder %v9951_v17, 0.0  ;;  %v9989_v26 = vsel %vm720_vm12, %v636_v27, %v784_v10  ;;  %v9992_v43 = vrot.slane %v1165_v28, %v12488_v51 }
 0x18a   :  { %v2702_v19 = vsel %vm2701_vm1, %v9921_v47, %v2700_v22  ;;  %v1087_v34 = vcombine.high %v9873_v1, %v9873_v1  ;;  %v10004_v56 = vrot.slane %v1370_v59, %v12488_v51  ;;  %v1564_v1 = vrot.slane %v9981_v36, %v8527_v42 }
 0x18b   :  { %v2705_v52 = vsel %vm2703_vm3, %v2704_v38, %v2702_v19  ;;  %v2709_v33 = vsel %vm2708_vm9, %v9926_v49, %v2707_v46  ;;  %v1798_v47 = vrot.slane %v9992_v43, %v8527_v42  ;;  %v1292_v2 = vcombine.high %v9885_v0, %v9885_v0 }
 0x18c   :  { %v2712_v58 = vsel %vm2710_vm10, %v2711_v44, %v2709_v33  ;;  %v3003_v7 = vmul.f32 3.3333333, %v2705_v52  ;;  %v2032_v38 = vrot.slane %v10004_v56, %v8527_v42  ;;  %v1497_v28 = vcombine.high %v9916_v8, %v9916_v8 }
 0x18d   :  { %v3004_v27 = vmul.f32 3.3333333, %v2712_v58  ;;  %v1705_v49 = vsub.f32 %v1564_v1, %v8676_v50  ;;  %v1706_v44 = vsub.f32 %v1564_v1, %v8711_v20  ;;  %v1939_v54 = vsub.f32 %v1798_v47, %v8658_v23 }
 0x18e   :  { %v3067_v16 = vsub.f32 1.0, %v3003_v7  ;;  %v1940_v10 = vsub.f32 %v1798_v47, %v8709_v3  ;;  %v2173_v46 = vsub.f32 %v2032_v38, %v8728_v29  ;;  %v2174_v59 = vsub.f32 %v2032_v38, %v8726_v62 }
 0x18f   :  { %v3068_v22 = vsub.f32 1.0, %v3004_v27  ;;  %v8120_v19 = vpop.eup %8119  ;;  %v2237_v0 = vmul.f32 %v1705_v49, %v1705_v49  ;;  %v2238_v33 = vmul.f32 %v1706_v44, %v1706_v44  ;;  %v2301_v58 = vmul.f32 %v1939_v54, %v1939_v54 }
 0x190   :  { %v3131_v52 = vmax.f32 %v3067_v16, 0.0  ;;  %v8122_v8 = vpop.eup %8121  ;;  %v2868_v60 = vmul.f32 %v8120_v19, %v9949_v15  ;;  %v2302_v5 = vmul.f32 %v1940_v10, %v1940_v10  ;;  %v2429_v1 = vmul.f32 %v2173_v46, %v2173_v46 }
 0x191   :  { %v3132_v7 = vmax.f32 %v3068_v22, 0.0  ;;  %v2875_v63 = vmul.f32 %v8122_v8, %v9951_v17  ;;  %v2365_v27 = vadd.f32 %v2301_v58, %v2237_v0  ;;  %v2430_v48 = vmul.f32 %v2174_v59, %v2174_v59 }
 0x192   :  { %v1616_v47 = vrot.slane %v1087_v34, %v8527_v42  ;;  %v2870_v38 = vsel %vm2869_vm11, %v9949_v15, %v2868_v60  ;;  %v2366_v16 = vadd.f32 %v2302_v5, %v2238_v33  ;;  %v1850_v22 = vrot.slane %v1292_v2, %v8527_v42 }
 0x193   :  { %v3183_v9 = vpack.c.bf16 %v3132_v7, %v3131_v52  ;;  %v2873_v49 = vsel %vm2871_vm13, %v2872_v37, %v2870_v38  ;;  %v2877_v44 = vsel %vm2876_vm14, %v9951_v17, %v2875_v63  ;;  %v10035_v54 = vadd.f32 %v2429_v1, %v2365_v27 }
 0x194   :  { %v2880_v34 = vsel %vm2878_vm15, %v2879_v32, %v2877_v44  ;;  %v3027_v10 = vmul.f32 3.3333333, %v2873_v49  ;;  %v10041_v46 = vadd.f32 %v2430_v48, %v2366_v16  ;;  %v2084_v60 = vrot.slane %v1497_v28, %v8527_v42 }
 0x195   :  { %7690 = vmatmul.mubr.msk.bf16.vlgmr.msra.gmra.mrb[72].mxu1 %vm3203_vm8, %v3183_v9  ;;  %v12512_v15 = vpack.c.bf16 %v9334_v18, %v9325_v24  ;;  %v3028_v37 = vmul.f32 3.3333333, %v2880_v34  ;;  %8123 = vrsqrt.f32 %v10035_v54  ;;  %v1731_v9 = vsub.f32 %v1616_v47, %v8676_v50 }
 0x196   :  { %7695 = vmatprep.mubr.msk.bf16.mxu1 %vm8242_vm6, %v12449_v53  ;;  %v1732_v17 = vsub.f32 %v1616_v47, %v8711_v20  ;;  %v3091_v63 = vsub.f32 1.0, %v3027_v10  ;;  %8125 = vrsqrt.f32 %v10041_v46  ;;  %vm2715_vm7 = vcmp.eq.f32.partialorder %v10035_v54, inf }
 0x197   :  { %7694 = vmatpush3.bf16.msra.mxu1 %v12512_v15  ;;  %v3092_v48 = vsub.f32 1.0, %v3028_v37  ;;  %v1965_v18 = vsub.f32 %v1850_v22, %v8658_v23  ;;  %v1966_v32 = vsub.f32 %v1850_v22, %v8709_v3  ;;  %v2199_v5 = vsub.f32 %v2084_v60, %v8728_v29 }
 0x198   :  { %7699 = vmatprep.subr.bf16.mxu1 %v12449_v53  ;;  %v3155_v24 = vmax.f32 %v3091_v63, 0.0  ;;  %v2200_v2 = vsub.f32 %v2084_v60, %v8726_v62  ;;  %v2263_v59 = vmul.f32 %v1731_v9, %v1731_v9  ;;  %v2264_v19 = vmul.f32 %v1732_v17, %v1732_v17 }
 0x199   :  { %v3156_v28 = vmax.f32 %v3092_v48, 0.0  ;;  %v2327_v52 = vmul.f32 %v1965_v18, %v1965_v18  ;;  %v2328_v0 = vmul.f32 %v1966_v32, %v1966_v32  ;;  %v2455_v33 = vmul.f32 %v2199_v5, %v2199_v5 }
 0x19a   :  { %v2456_v58 = vmul.f32 %v2200_v2, %v2200_v2  ;;  %v657_v8 = vadd.f32 %v9638_v11, %v9549_v57  ;;  %v649_v27 = vadd.f32 %v9638_v11, %v9558_v21  ;;  %v660_v47 = vadd.f32 %v9638_v11, %v9566_v45 }
 0x19b   :  { %v3195_v7 = vpack.c.bf16 %v3156_v28, %v3155_v24  ;;  %v2391_v1 = vadd.f32 %v2327_v52, %v2263_v59  ;;  %v2392_v38 = vadd.f32 %v2328_v0, %v2264_v19  ;;  %v652_v49 = vadd.f32 %v9638_v11, %v9572_v30 }
 0x19c   :  { %vm725_vm1 = vcmp.ge.f32.partialorder %v657_v8, 0.0  ;;  %v789_v16 = vmul.f32 0.1, %v657_v8  ;;  %vm2717_vm2 = vcmp.eq.f32.partialorder %v10035_v54, 0.0  ;;  %v2718_v57 = vand.u32 2147483648, %v10035_v54 }
 0x19d   :  { %7762 = vmatmul.mubr.msk.bf16.vlgmr.msra.gmra.mrb[56].mxu0 %vm3203_vm8, %v3195_v7  ;;  %v10070_v44 = vadd.f32 %v2455_v33, %v2391_v1  ;;  %v787_v22 = vmul.f32 0.1, %v649_v27  ;;  %v12513_v21 = vpack.c.bf16 %v9820_v40, %v9787_v25  ;;  %v10077_v45 = vadd.f32 %v2456_v58, %v2392_v38 }
 0x19e   :  { %7773 = vmatprep.mubr.msk.bf16.mxu0 %vm8242_vm6, %v12449_v53  ;;  %vm723_vm3 = vcmp.ge.f32.partialorder %v649_v27, 0.0  ;;  %vm726_vm4 = vcmp.ge.f32.partialorder %v660_v47, 0.0  ;;  %v790_v30 = vmul.f32 0.1, %v660_v47  ;;  %vm2722_vm5 = vcmp.eq.f32.partialorder %v10041_v46, inf }
 0x19f   :  { %7772 = vmatpush3.bf16.msra.mxu0 %v12513_v21  ;;  %v8124_v11 = vpop.eup %8123  ;;  %vm2724_vm9 = vcmp.eq.f32.partialorder %v10041_v46, 0.0  ;;  %8127 = vrsqrt.f32 %v10070_v44  ;;  %v10083_v34 = vsel %vm725_vm1, %v657_v8, %v789_v16  ;;  %v2725_v10 = vand.u32 2147483648, %v10041_v46 }
 0x1a0   :  { %7783 = vmatprep.subr.bf16.mxu0 %v12449_v53  ;;  %v8126_v25 = vpop.eup %8125  ;;  %v2714_v40 = vmul.f32 %v8124_v11, %v10035_v54  ;;  %8129 = vrsqrt.f32 %v10077_v45  ;;  %vm724_vm10 = vcmp.ge.f32.partialorder %v652_v49, 0.0  ;;  %vm2897_vm11 = vcmp.eq.f32.partialorder %v10070_v44, inf }
 0x1a1   :  { %v2721_v60 = vmul.f32 %v8126_v25, %v10041_v46  ;;  %v2900_v15 = vand.u32 2147483648, %v10070_v44  ;;  %v10093_v37 = vsel %vm723_vm3, %v649_v27, %v787_v22  ;;  %v10096_v9 = vsel %vm726_vm4, %v660_v47, %v790_v30 }
 0x1a2   :  { %v2716_v17 = vsel %vm2715_vm7, %v10035_v54, %v2714_v40  ;;  %vm2899_vm12 = vcmp.eq.f32.partialorder %v10070_v44, 0.0  ;;  %vm2904_vm13 = vcmp.eq.f32.partialorder %v10077_v45, inf  ;;  %v886_v63 = vpack.c.bf16 %v10096_v9, %v10083_v34 }
 0x1a3   :  { %v788_v48 = vmul.f32 0.1, %v652_v49  ;;  %v990_v18 = vcombine.high %v9841_v55, %v9841_v55  ;;  %v2719_v24 = vsel %vm2717_vm2, %v2718_v57, %v2716_v17  ;;  %v2723_v32 = vsel %vm2722_vm5, %v10041_v46, %v2721_v60 }
 0x1a4   :  { %vm2906_vm14 = vcmp.eq.f32.partialorder %v10077_v45, 0.0  ;;  %v1195_v5 = vcombine.high %v9854_v6, %v9854_v6  ;;  %v1400_v2 = vcombine.high %v9858_v31, %v9858_v31  ;;  %v2726_v28 = vsel %vm2724_vm9, %v2725_v10, %v2723_v32 }
 0x1a5   :  { %v3005_v59 = vmul.f32 3.3333333, %v2719_v24  ;;  %v10120_v55 = vsel %vm724_vm10, %v652_v49, %v788_v48  ;;  %v1568_v54 = vrot.slane %v990_v18, %v8527_v42  ;;  %v3006_v19 = vmul.f32 3.3333333, %v2726_v28 }
 0x1a6   :  { %v885_v52 = vpack.c.bf16 %v10120_v55, %v10093_v37  ;;  %v1802_v0 = vrot.slane %v1195_v5, %v8527_v42  ;;  %v2036_v6 = vrot.slane %v1400_v2, %v8527_v42  ;;  %v2907_v31 = vand.u32 2147483648, %v10077_v45 }
 0x1a7   :  { %v3069_v33 = vsub.f32 1.0, %v3005_v59  ;;  %v1707_v46 = vsub.f32 %v1568_v54, %v8676_v50  ;;  %v1708_v58 = vsub.f32 %v1568_v54, %v8711_v20  ;;  %v3070_v8 = vsub.f32 1.0, %v3006_v19  ;;  %v12514_v54 = vld [vmem:[#allocation25_spill] sm:$0xff] }
 0x1a8   :  { %v1941_v7 = vsub.f32 %v1802_v0, %v8658_v23  ;;  %v1942_v1 = vsub.f32 %v1802_v0, %v8709_v3  ;;  %v2175_v27 = vsub.f32 %v2036_v6, %v8728_v29  ;;  %v2176_v38 = vsub.f32 %v2036_v6, %v8726_v62 }
 0x1a9   :  { %v3133_v47 = vmax.f32 %v3069_v33, 0.0  ;;  %v2239_v16 = vmul.f32 %v1707_v46, %v1707_v46  ;;  %v2240_v49 = vmul.f32 %v1708_v58, %v1708_v58  ;;  %v8128_v57 = vpop.eup %8127  ;;  %v3134_v22 = vmax.f32 %v3070_v8, 0.0 }
 0x1aa   :  { %v2303_v21 = vmul.f32 %v1941_v7, %v1941_v7  ;;  %v2304_v30 = vmul.f32 %v1942_v1, %v1942_v1  ;;  %v2431_v11 = vmul.f32 %v2175_v27, %v2175_v27  ;;  %v8130_v25 = vpop.eup %8129  ;;  %v2896_v40 = vmul.f32 %v8128_v57, %v10070_v44 }
 0x1ab   :  { %v2432_v10 = vmul.f32 %v2176_v38, %v2176_v38  ;;  %v1042_v60 = vcombine.high %v9836_v61, %v9836_v61  ;;  %v1247_v17 = vcombine.high %v9850_v14, %v9850_v14  ;;  %v3184_v48 = vpack.c.bf16 %v3134_v22, %v3133_v47 }
 0x1ac   :  { %v2903_v18 = vmul.f32 %v8130_v25, %v10077_v45  ;;  %v2367_v24 = vadd.f32 %v2303_v21, %v2239_v16  ;;  %v2368_v32 = vadd.f32 %v2304_v30, %v2240_v49  ;;  %v2898_v5 = vsel %vm2897_vm11, %v10070_v44, %v2896_v40 }
 0x1ad   :  { %v1452_v2 = vcombine.high %v9867_v39, %v9867_v39  ;;  %7696 = vmatmul.mubr.msk.bf16.vlgmr.msra.gmra.mrb[76].mxu1 %vm3203_vm8, %v3184_v48  ;;  %v2901_v61 = vsel %vm2899_vm12, %v2900_v15, %v2898_v5  ;;  %v12515_v19 = vpack.c.bf16 %v9395_v4, %v12514_v54  ;;  %v10163_v44 = vrot.slane %v1042_v60, %v12488_v51 }
 0x1ae   :  { %v2905_v14 = vsel %vm2904_vm13, %v10077_v45, %v2903_v18  ;;  %v10151_v28 = vadd.f32 %v2431_v11, %v2367_v24  ;;  %v10153_v59 = vadd.f32 %v2432_v10, %v2368_v32  ;;  %v3031_v0 = vmul.f32 3.3333333, %v2901_v61  ;;  %7701 = vmatprep.mubr.msk.bf16.mxu1 %vm8242_vm6, %v12449_v53 }
 0x1af   :  { %7700 = vmatpush3.bf16.msra.mxu1 %v12515_v19  ;;  %v2908_v39 = vsel %vm2906_vm14, %v2907_v31, %v2905_v14  ;;  %v10166_v15 = vrot.slane %v1247_v17, %v12488_v51  ;;  %v10171_v4 = vrot.slane %v1452_v2, %v12488_v51  ;;  %v10176_v33 = vrot.slane %v10163_v44, %v12488_v51 }
 0x1b0   :  { %v3032_v6 = vmul.f32 3.3333333, %v2908_v39  ;;  %7705 = vmatprep.subr.bf16.mxu1 %v12449_v53  ;;  %8131 = vrsqrt.f32 %v10151_v28  ;;  %v3095_v45 = vsub.f32 1.0, %v3031_v0  ;;  %vm2729_vm15 = vcmp.eq.f32.partialorder %v10151_v28, inf }
 0x1b1   :  { %8133 = vrsqrt.f32 %v10153_v59  ;;  %v10180_v31 = vrot.slane %v10166_v15, %v12488_v51  ;;  %v10185_v58 = vrot.slane %v10171_v4, %v12488_v51  ;;  %v1624_v7 = vrot.slane %v10176_v33, %v8527_v42 }
 0x1b2   :  { %v3096_v46 = vsub.f32 1.0, %v3032_v6  ;;  %v3159_v8 = vmax.f32 %v3095_v45, 0.0  ;;  %v992_v27 = vcombine.high %v9981_v36, %v9981_v36  ;;  %v1197_v16 = vcombine.high %v9992_v43, %v9992_v43 }
 0x1b3   :  { %v1858_v1 = vrot.slane %v10180_v31, %v8527_v42  ;;  %v2092_v38 = vrot.slane %v10185_v58, %v8527_v42  ;;  %v1402_v49 = vcombine.high %v10004_v56, %v10004_v56  ;;  %v1735_v57 = vsub.f32 %v1624_v7, %v8676_v50 }
 0x1b4   :  { %v3160_v47 = vmax.f32 %v3096_v46, 0.0  ;;  %v1736_v22 = vsub.f32 %v1624_v7, %v8711_v20  ;;  %v1572_v40 = vrot.slane %v992_v27, %v8527_v42  ;;  %vm2731_vm7 = vcmp.eq.f32.partialorder %v10151_v28, 0.0 }
 0x1b5   :  { %v1969_v21 = vsub.f32 %v1858_v1, %v8658_v23  ;;  %v1970_v30 = vsub.f32 %v1858_v1, %v8709_v3  ;;  %v2203_v36 = vsub.f32 %v2092_v38, %v8728_v29  ;;  %v2204_v25 = vsub.f32 %v2092_v38, %v8726_v62 }
 0x1b6   :  { %v3197_v11 = vpack.c.bf16 %v3160_v47, %v3159_v8  ;;  %v2267_v10 = vmul.f32 %v1735_v57, %v1735_v57  ;;  %v2268_v43 = vmul.f32 %v1736_v22, %v1736_v22  ;;  %v1709_v18 = vsub.f32 %v1572_v40, %v8676_v50 }
 0x1b7   :  { %v2331_v60 = vmul.f32 %v1969_v21, %v1969_v21  ;;  %v2332_v17 = vmul.f32 %v1970_v30, %v1970_v30  ;;  %v2459_v56 = vmul.f32 %v2203_v36, %v2203_v36  ;;  %v2460_v48 = vmul.f32 %v2204_v25, %v2204_v25 }
 0x1b8   :  { %7774 = vmatmul.mubr.msk.bf16.vlgmr.msra.gmra.mrb[60].mxu0 %vm3203_vm8, %v3197_v11  ;;  %v12516_v24 = vpack.c.bf16 %v9989_v26, %v9970_v13  ;;  %v2732_v32 = vand.u32 2147483648, %v10151_v28  ;;  %v1806_v61 = vrot.slane %v1197_v16, %v8527_v42  ;;  %vm2736_vm1 = vcmp.eq.f32.partialorder %v10153_v59, inf }
 0x1b9   :  { %7785 = vmatprep.mubr.msk.bf16.mxu0 %vm8242_vm6, %v12449_v53  ;;  %v2395_v5 = vadd.f32 %v2331_v60, %v2267_v10  ;;  %v2396_v2 = vadd.f32 %v2332_v17, %v2268_v43  ;;  %vm2738_vm2 = vcmp.eq.f32.partialorder %v10153_v59, 0.0  ;;  %v1710_v54 = vsub.f32 %v1572_v40, %v8711_v20 }
 0x1ba   :  { %7784 = vmatpush3.bf16.msra.mxu0 %v12516_v24  ;;  %v8132_v14 = vpop.eup %8131  ;;  %v2040_v13 = vrot.slane %v1402_v49, %v8527_v42  ;;  %v2739_v39 = vand.u32 2147483648, %v10153_v59  ;;  %v1943_v46 = vsub.f32 %v1806_v61, %v8658_v23  ;;  %v1944_v8 = vsub.f32 %v1806_v61, %v8709_v3 }
 0x1bb   :  { %7795 = vmatprep.subr.bf16.mxu0 %v12449_v53  ;;  %v8134_v26 = vpop.eup %8133  ;;  %v2728_v19 = vmul.f32 %v8132_v14, %v10151_v28  ;;  %v10223_v0 = vadd.f32 %v2459_v56, %v2395_v5  ;;  %v10225_v6 = vadd.f32 %v2460_v48, %v2396_v2  ;;  %v2241_v7 = vmul.f32 %v1709_v18, %v1709_v18  ;;  %v10258_v5 = vpop.f32.mrb[24].mxu1 }
 0x1bc   :  { %v2735_v45 = vmul.f32 %v8134_v26, %v10153_v59  ;;  %v2177_v27 = vsub.f32 %v2040_v13, %v8728_v29  ;;  %v2178_v47 = vsub.f32 %v2040_v13, %v8726_v62  ;;  %v2242_v49 = vmul.f32 %v1710_v54, %v1710_v54  ;;  %v7619_v14 = vpop.f32.mrb[25].mxu1 }
 0x1bd   :  { %v2730_v1 = vsel %vm2729_vm15, %v10151_v28, %v2728_v19  ;;  %8135 = vrsqrt.f32 %v10223_v0  ;;  %v1088_v21 = vcombine.high %v10176_v33, %v10176_v33  ;;  %v2305_v11 = vmul.f32 %v1943_v46, %v1943_v46  ;;  %v10267_v19 = vpop.f32.mrb[26].mxu1 }
 0x1be   :  { %v2733_v38 = vsel %vm2731_vm7, %v2732_v32, %v2730_v1  ;;  %v2737_v16 = vsel %vm2736_vm1, %v10153_v59, %v2735_v45  ;;  %8137 = vrsqrt.f32 %v10225_v6  ;;  %v2306_v36 = vmul.f32 %v1944_v8, %v1944_v8  ;;  %v12517_v45 = vld [vmem:[#allocation8_spill] sm:$0xff]  ;;  %v7620_v8 = vpop.f32.mrb[27].mxu1 }
 0x1bf   :  { %v2740_v57 = vsel %vm2738_vm2, %v2739_v39, %v2737_v16  ;;  %v3007_v22 = vmul.f32 3.3333333, %v2733_v38  ;;  %v2433_v28 = vmul.f32 %v2177_v27, %v2177_v27  ;;  %v2434_v40 = vmul.f32 %v2178_v47, %v2178_v47 }
 0x1c0   :  { %v3008_v30 = vmul.f32 3.3333333, %v2740_v57  ;;  %v1293_v10 = vcombine.high %v10180_v31, %v10180_v31  ;;  %v2369_v60 = vadd.f32 %v2305_v11, %v2241_v7  ;;  %v2370_v17 = vadd.f32 %v2306_v36, %v2242_v49  ;;  %v12518_v49 = vld [vmem:[#allocation26_spill] sm:$0xff]  ;;  %v12519_v57 = vld [vmem:[#allocation24_spill] sm:$0xff] }
 0x1c1   :  { %v3071_v25 = vsub.f32 1.0, %v3007_v22  ;;  %v1498_v59 = vcombine.high %v10185_v58, %v10185_v58  ;;  %vm2925_vm3 = vcmp.eq.f32.partialorder %v10223_v0, inf  ;;  %v1632_v33 = vrot.slane %v1088_v21, %v8527_v42 }
 0x1c2   :  { %v3072_v43 = vsub.f32 1.0, %v3008_v30  ;;  %v1866_v48 = vrot.slane %v1293_v10, %v8527_v42  ;;  %v10253_v24 = vadd.f32 %v2433_v28, %v2369_v60  ;;  %v10255_v32 = vadd.f32 %v2434_v40, %v2370_v17  ;;  %v10279_v16 = vpop.f32.mrb[28].mxu1 }
 0x1c3   :  { %v3135_v56 = vmax.f32 %v3071_v25, 0.0  ;;  %v2100_v31 = vrot.slane %v1498_v59, %v8527_v42  ;;  %vm2927_vm4 = vcmp.eq.f32.partialorder %v10223_v0, 0.0  ;;  %v2928_v58 = vand.u32 2147483648, %v10223_v0  ;;  %v7625_v36 = vpop.f32.mrb[29].mxu1 }
 0x1c4   :  { %v3136_v18 = vmax.f32 %v3072_v43, 0.0  ;;  %v1739_v2 = vsub.f32 %v1632_v33, %v8676_v50  ;;  %v1740_v61 = vsub.f32 %v1632_v33, %v8711_v20  ;;  %8139 = vrsqrt.f32 %v10253_v24  ;;  %v10292_v43 = vpop.f32.mrb[30].mxu1 }
 0x1c5   :  { %v1973_v13 = vsub.f32 %v1866_v48, %v8658_v23  ;;  %v1974_v26 = vsub.f32 %v1866_v48, %v8709_v3  ;;  %vm2932_vm5 = vcmp.eq.f32.partialorder %v10225_v6, inf  ;;  %vm2934_vm9 = vcmp.eq.f32.partialorder %v10225_v6, 0.0  ;;  %v7626_v33 = vpop.f32.mrb[31].mxu1 }
 0x1c6   :  { %v3185_v54 = vpack.c.bf16 %v3136_v18, %v3135_v56  ;;  %8141 = vrsqrt.f32 %v10255_v32  ;;  %v1008_v46 = vcombine.high %v12517_v45, %v12517_v45  ;;  %v2935_v27 = vand.u32 2147483648, %v10225_v6  ;;  %v12522_v45 = vld [vmem:[#allocation13_spill] sm:$0xff] }
 0x1c7   :  { %v8136_v39 = vpop.eup %8135  ;;  %v2207_v47 = vsub.f32 %v2100_v31, %v8728_v29  ;;  %v2208_v38 = vsub.f32 %v2100_v31, %v8726_v62  ;;  %v12520_v22 = vpack.c.bf16 %v12518_v49, %v12519_v57  ;;  %vm2743_vm10 = vcmp.eq.f32.partialorder %v10253_v24, inf }
 0x1c8   :  { %v8138_v7 = vpop.eup %8137  ;;  %7702 = vmatmul.mubr.msk.bf16.vlgmr.msra.gmra.mrb[80].mxu1 %vm3203_vm8, %v3185_v54  ;;  %v2924_v1 = vmul.f32 %v8136_v39, %v10223_v0  ;;  %v2271_v30 = vmul.f32 %v1739_v2, %v1739_v2  ;;  %v2272_v11 = vmul.f32 %v1740_v61, %v1740_v61  ;;  %v2335_v28 = vmul.f32 %v1973_v13, %v1973_v13 }
 0x1c9   :  { %7706 = vmatpush3.bf16.msra.mxu1 %v12520_v22  ;;  %v2931_v21 = vmul.f32 %v8138_v7, %v10225_v6  ;;  %7707 = vmatprep.mubr.msk.bf16.mxu1 %vm8242_vm6, %v12449_v53  ;;  %v2336_v40 = vmul.f32 %v1974_v26, %v1974_v26  ;;  %v2463_v10 = vmul.f32 %v2207_v47, %v2207_v47  ;;  %vm2745_vm11 = vcmp.eq.f32.partialorder %v10253_v24, 0.0 }
 0x1ca   :  { %v2926_v25 = vsel %vm2925_vm3, %v10223_v0, %v2924_v1  ;;  %7717 = vmatprep.subr.bf16.mxu1 %v12449_v53  ;;  %v2464_v59 = vmul.f32 %v2208_v38, %v2208_v38  ;;  %v10300_v56 = vrot.slane %v1008_v46, %v12488_v51  ;;  %v2399_v31 = vadd.f32 %v2335_v28, %v2271_v30  ;;  %v10304_v61 = vpop.f32.mrb[32].mxu1  ;;  %v12521_v0 = vld [vmem:[#allocation10_spill] sm:$0xff] }
 0x1cb   :  { %v2929_v60 = vsel %vm2927_vm4, %v2928_v58, %v2926_v25  ;;  %v2933_v17 = vsel %vm2932_vm5, %v10225_v6, %v2931_v21  ;;  %v2400_v2 = vadd.f32 %v2336_v40, %v2272_v11  ;;  %v1213_v58 = vcombine.high %v12521_v0, %v12521_v0  ;;  %v7631_v13 = vpop.f32.mrb[33].mxu1 }
 0x1cc   :  { %v2936_v48 = vsel %vm2934_vm9, %v2935_v27, %v2933_v17  ;;  %v3035_v18 = vmul.f32 3.3333333, %v2929_v60  ;;  %v1580_v54 = vrot.slane %v10300_v56, %v8527_v42  ;;  %v10311_v39 = vadd.f32 %v2463_v10, %v2399_v31  ;;  %v10317_v8 = vpop.f32.mrb[34].mxu1 }
 0x1cd   :  { %v3036_v14 = vmul.f32 3.3333333, %v2936_v48  ;;  %v10313_v6 = vadd.f32 %v2464_v59, %v2400_v2  ;;  %v1418_v46 = vcombine.high %v12522_v45, %v12522_v45  ;;  %v2746_v1 = vand.u32 2147483648, %v10253_v24  ;;  %v7632_v27 = vpop.f32.mrb[35].mxu1 }
 0x1ce   :  { %v3099_v26 = vsub.f32 1.0, %v3035_v18  ;;  %vm2750_vm12 = vcmp.eq.f32.partialorder %v10255_v32, inf  ;;  %vm2752_vm13 = vcmp.eq.f32.partialorder %v10255_v32, 0.0  ;;  %v8140_v47 = vpop.eup %8139  ;;  %v2753_v49 = vand.u32 2147483648, %v10255_v32 }
 0x1cf   :  { %v3100_v7 = vsub.f32 1.0, %v3036_v14  ;;  %8143 = vrsqrt.f32 %v10311_v39  ;;  %v1713_v57 = vsub.f32 %v1580_v54, %v8676_v50  ;;  %v2742_v30 = vmul.f32 %v8140_v47, %v10253_v24 }
 0x1d0   :  { %v3163_v38 = vmax.f32 %v3099_v26, 0.0  ;;  %v8142_v22 = vpop.eup %8141  ;;  %8145 = vrsqrt.f32 %v10313_v6  ;;  %v1235_v11 = vrot.slane %v1213_v58, %v12488_v51  ;;  %vm2953_vm14 = vcmp.eq.f32.partialorder %v10311_v39, inf }
 0x1d1   :  { %v3164_v21 = vmax.f32 %v3100_v7, 0.0  ;;  %v2749_v36 = vmul.f32 %v8142_v22, %v10255_v32  ;;  %v1440_v25 = vrot.slane %v1418_v46, %v12488_v51  ;;  %v1040_v28 = vcombine.high %v10300_v56, %v10300_v56 }
 0x1d2   :  { %v10333_v40 = vpop.f32.mrb[36].mxu1  ;;  %v2744_v60 = vsel %vm2743_vm10, %v10253_v24, %v2742_v30  ;;  %vm2955_vm15 = vcmp.eq.f32.partialorder %v10311_v39, 0.0  ;;  %v1714_v17 = vsub.f32 %v1580_v54, %v8711_v20  ;;  %v1814_v59 = vrot.slane %v1235_v11, %v8527_v42 }
 0x1d3   :  { %v3199_v10 = vpack.c.bf16 %v3164_v21, %v3163_v38  ;;  %v7637_v33 = vpop.f32.mrb[37].mxu1  ;;  %v2747_v48 = vsel %vm2745_vm11, %v2746_v1, %v2744_v60  ;;  %v2751_v56 = vsel %vm2750_vm12, %v10255_v32, %v2749_v36  ;;  %v2048_v18 = vrot.slane %v1440_v25, %v8527_v42 }
 0x1d4   :  { %v2245_v31 = vmul.f32 %v1713_v57, %v1713_v57  ;;  %v10347_v2 = vpop.f32.mrb[38].mxu1  ;;  %v2754_v14 = vsel %vm2752_vm13, %v2753_v49, %v2751_v56  ;;  %v3009_v0 = vmul.f32 3.3333333, %v2747_v48  ;;  %v1947_v58 = vsub.f32 %v1814_v59, %v8658_v23 }
 0x1d5   :  { %7786 = vmatmul.mubr.msk.bf16.vlgmr.msra.gmra.mrb[64].mxu0 %vm3203_vm8, %v3199_v10  ;;  %v1948_v24 = vsub.f32 %v1814_v59, %v8709_v3  ;;  %v7638_v54 = vpop.f32.mrb[39].mxu1  ;;  %v3010_v13 = vmul.f32 3.3333333, %v2754_v14  ;;  %v2181_v26 = vsub.f32 %v2048_v18, %v8728_v29  ;;  %v2182_v45 = vsub.f32 %v2048_v18, %v8726_v62 }
 0x1d6   :  { %7796 = vmatpush3.bf16.msra.mxu0 %v885_v52  ;;  %7797 = vmatprep.mubr.msk.bf16.mxu0 %vm8242_vm6, %v12449_v53  ;;  %v2246_v32 = vmul.f32 %v1714_v17, %v1714_v17  ;;  %v3073_v46 = vsub.f32 1.0, %v3009_v0  ;;  %v2309_v7 = vmul.f32 %v1947_v58, %v1947_v58  ;;  %v1245_v27 = vcombine.high %v1235_v11, %v1235_v11 }
 0x1d7   :  { %v2310_v1 = vmul.f32 %v1948_v24, %v1948_v24  ;;  %v3074_v47 = vsub.f32 1.0, %v3010_v13  ;;  %v2437_v38 = vmul.f32 %v2181_v26, %v2181_v26  ;;  %v2438_v49 = vmul.f32 %v2182_v45, %v2182_v45 }
 0x1d8   :  { %v1450_v57 = vcombine.high %v1440_v25, %v1440_v25  ;;  %v3137_v22 = vmax.f32 %v3073_v46, 0.0  ;;  %v2373_v37 = vadd.f32 %v2309_v7, %v2245_v31  ;;  %v1588_v52 = vrot.slane %v1040_v28, %v8527_v42 }
 0x1d9   :  { %v2374_v55 = vadd.f32 %v2310_v1, %v2246_v32  ;;  %v8144_v21 = vpop.eup %8143  ;;  %v3138_v30 = vmax.f32 %v3074_v47, 0.0  ;;  %v2956_v36 = vand.u32 2147483648, %v10311_v39  ;;  %vm2960_vm7 = vcmp.eq.f32.partialorder %v10313_v6, inf }
 0x1da   :  { %v1822_v10 = vrot.slane %v1245_v27, %v8527_v42  ;;  %v10365_v60 = vpop.f32.mrb[40].mxu1  ;;  %v8146_v11 = vpop.eup %8145  ;;  %v2952_v17 = vmul.f32 %v8144_v21, %v10311_v39  ;;  %v2963_v25 = vand.u32 2147483648, %v10313_v6  ;;  %v10369_v59 = vadd.f32 %v2437_v38, %v2373_v37  ;;  %v12524_v21 = vld [vmem:[#allocation9_spill] sm:$0xff] }
 0x1db   :  { %v10371_v33 = vadd.f32 %v2438_v49, %v2374_v55  ;;  %v7643_v28 = vpop.f32.mrb[41].mxu1  ;;  %v3186_v48 = vpack.c.bf16 %v3138_v30, %v3137_v22  ;;  %v2959_v56 = vmul.f32 %v8146_v11, %v10313_v6  ;;  %vm2962_vm1 = vcmp.eq.f32.partialorder %v10313_v6, 0.0 }
 0x1dc   :  { %v2056_v18 = vrot.slane %v1450_v57, %v8527_v42  ;;  %v10376_v31 = vpop.f32.mrb[42].mxu1  ;;  %v2954_v14 = vsel %vm2953_vm14, %v10311_v39, %v2952_v17  ;;  %8147 = vrsqrt.f32 %v10369_v59  ;;  %v1717_v0 = vsub.f32 %v1588_v52, %v8676_v50 }
 0x1dd   :  { %v1718_v58 = vsub.f32 %v1588_v52, %v8711_v20  ;;  %v7644_v24 = vpop.f32.mrb[43].mxu1  ;;  %7708 = vmatmul.mubr.msk.bf16.vlgmr.msra.gmra.mrb[84].mxu1 %vm3203_vm8, %v3186_v48  ;;  %v2957_v54 = vsel %vm2955_vm15, %v2956_v36, %v2954_v14  ;;  %v2961_v13 = vsel %vm2960_vm7, %v10313_v6, %v2959_v56  ;;  %8149 = vrsqrt.f32 %v10371_v33  ;;  %v12525_v56 = vld [vmem:[#allocation11_spill] sm:$0xff] }
 0x1de   :  { %v1951_v26 = vsub.f32 %v1822_v10, %v8658_v23  ;;  %v12523_v45 = vpack.c.bf16 %v9433_v12, %v9421_v41  ;;  %v2964_v32 = vsel %vm2962_vm1, %v2963_v25, %v2961_v13  ;;  %v3039_v46 = vmul.f32 3.3333333, %v2957_v54  ;;  %7719 = vmatprep.mubr.msk.bf16.mxu1 %vm8242_vm6, %v12449_v53 }
 0x1df   :  { %v1009_v39 = vcombine.high %v9576_v35, %v9576_v35  ;;  %v3040_v7 = vmul.f32 3.3333333, %v2964_v32  ;;  %vm2771_vm2 = vcmp.eq.f32.partialorder %v10369_v59, inf  ;;  %v1952_v6 = vsub.f32 %v1822_v10, %v8709_v3 }
 0x1e0   :  { %7718 = vmatpush3.bf16.msra.mxu1 %v12523_v45  ;;  %v2185_v1 = vsub.f32 %v2056_v18, %v8728_v29  ;;  %v3103_v27 = vsub.f32 1.0, %v3039_v46  ;;  %v2186_v41 = vsub.f32 %v2056_v18, %v8726_v62  ;;  %v2249_v12 = vmul.f32 %v1717_v0, %v1717_v0 }
 0x1e1   :  { %7729 = vmatprep.subr.bf16.mxu1 %v12449_v53  ;;  %v2250_v47 = vmul.f32 %v1718_v58, %v1718_v58  ;;  %v3104_v38 = vsub.f32 1.0, %v3040_v7  ;;  %v2313_v49 = vmul.f32 %v1951_v26, %v1951_v26  ;;  %v2314_v57 = vmul.f32 %v1952_v6, %v1952_v6 }
 0x1e2   :  { %v2441_v22 = vmul.f32 %v2185_v1, %v2185_v1  ;;  %v10404_v37 = vpop.f32.mrb[44].mxu1  ;;  %v3167_v35 = vmax.f32 %v3103_v27, 0.0  ;;  %v2442_v55 = vmul.f32 %v2186_v41, %v2186_v41  ;;  %v1037_v52 = vrot.slane %v1009_v39, %v12488_v51  ;;  %v12526_v41 = vld [vmem:[#allocation18_spill] sm:$0xff] }
 0x1e3   :  { %v1214_v30 = vcombine.high %v12524_v21, %v12524_v21  ;;  %v7649_v36 = vpop.f32.mrb[45].mxu1  ;;  %v3168_v10 = vmax.f32 %v3104_v38, 0.0  ;;  %vm2773_vm3 = vcmp.eq.f32.partialorder %v10369_v59, 0.0  ;;  %v2377_v11 = vadd.f32 %v2313_v49, %v2249_v12 }
 0x1e4   :  { %v2378_v17 = vadd.f32 %v2314_v57, %v2250_v47  ;;  %v10410_v25 = vpop.f32.mrb[46].mxu1  ;;  %v2774_v28 = vand.u32 2147483648, %v10369_v59  ;;  %v1419_v18 = vcombine.high %v12525_v56, %v12525_v56  ;;  %v1596_v14 = vrot.slane %v1037_v52, %v8527_v42 }
 0x1e5   :  { %v10414_v48 = vrot.slane %v1214_v30, %v12488_v51  ;;  %v7650_v0 = vpop.f32.mrb[47].mxu1  ;;  %v3201_v58 = vpack.c.bf16 %v3168_v10, %v3167_v35  ;;  %vm2778_vm4 = vcmp.eq.f32.partialorder %v10371_v33, inf  ;;  %v10420_v24 = vadd.f32 %v2441_v22, %v2377_v11 }
 0x1e6   :  { %v10422_v54 = vadd.f32 %v2442_v55, %v2378_v17  ;;  %v8148_v13 = vpop.eup %8147  ;;  %vm2780_vm5 = vcmp.eq.f32.partialorder %v10371_v33, 0.0  ;;  %v2781_v26 = vand.u32 2147483648, %v10371_v33  ;;  %v1041_v32 = vcombine.high %v1037_v52, %v1037_v52 }
 0x1e7   :  { %v1830_v45 = vrot.slane %v10414_v48, %v8527_v42  ;;  %v8150_v46 = vpop.eup %8149  ;;  %7798 = vmatmul.mubr.msk.bf16.vlgmr.msra.gmra.mrb[68].mxu0 %vm3203_vm8, %v3201_v58  ;;  %v2770_v39 = vmul.f32 %v8148_v13, %v10369_v59  ;;  %8151 = vrsqrt.f32 %v10420_v24  ;;  %v1721_v7 = vsub.f32 %v1596_v14, %v8676_v50 }
 0x1e8   :  { %v1722_v6 = vsub.f32 %v1596_v14, %v8711_v20  ;;  %v2777_v1 = vmul.f32 %v8150_v46, %v10371_v33  ;;  %8153 = vrsqrt.f32 %v10422_v54  ;;  %v1447_v27 = vrot.slane %v1419_v18, %v12488_v51 }
 0x1e9   :  { %v1057_v12 = vcombine.high %v12526_v41, %v12526_v41  ;;  %v2772_v47 = vsel %vm2771_vm2, %v10369_v59, %v2770_v39  ;;  %vm2799_vm9 = vcmp.eq.f32.partialorder %v10420_v24, inf  ;;  %v1955_v38 = vsub.f32 %v1830_v45, %v8658_v23 }
 0x1ea   :  { %v1246_v49 = vcombine.high %v10414_v48, %v10414_v48  ;;  %v10445_v57 = vpop.f32.mrb[48].mxu1  ;;  %v2775_v22 = vsel %vm2773_vm3, %v2774_v28, %v2772_v47  ;;  %v2779_v35 = vsel %vm2778_vm4, %v10371_v33, %v2777_v1  ;;  %v1956_v55 = vsub.f32 %v1830_v45, %v8709_v3 }
 0x1eb   :  { %v2064_v52 = vrot.slane %v1447_v27, %v8527_v42  ;;  %v7655_v21 = vpop.f32.mrb[49].mxu1  ;;  %v2782_v30 = vsel %vm2780_vm5, %v2781_v26, %v2779_v35  ;;  %v3013_v36 = vmul.f32 3.3333333, %v2775_v22  ;;  %v2253_v10 = vmul.f32 %v1721_v7, %v1721_v7 }
 0x1ec   :  { %v2254_v11 = vmul.f32 %v1722_v6, %v1722_v6  ;;  %v10456_v17 = vpop.f32.mrb[50].mxu1  ;;  %v3014_v48 = vmul.f32 3.3333333, %v2782_v30  ;;  %v2317_v56 = vmul.f32 %v1955_v38, %v1955_v38  ;;  %v2318_v0 = vmul.f32 %v1956_v55, %v1956_v55 }
 0x1ed   :  { %v2189_v59 = vsub.f32 %v2064_v52, %v8728_v29  ;;  %v2190_v28 = vsub.f32 %v2064_v52, %v8726_v62  ;;  %v7656_v18 = vpop.f32.mrb[51].mxu1  ;;  %v3077_v14 = vsub.f32 1.0, %v3013_v36  ;;  %v1451_v58 = vcombine.high %v1447_v27, %v1447_v27 }
 0x1ee   :  { %v1604_v13 = vrot.slane %v1041_v32, %v8527_v42  ;;  %v3078_v45 = vsub.f32 1.0, %v3014_v48  ;;  %v2381_v33 = vadd.f32 %v2317_v56, %v2253_v10  ;;  %vm2801_vm10 = vcmp.eq.f32.partialorder %v10420_v24, 0.0 }
 0x1ef   :  { %v2445_v26 = vmul.f32 %v2189_v59, %v2189_v59  ;;  %v2446_v46 = vmul.f32 %v2190_v28, %v2190_v28  ;;  %v3141_v39 = vmax.f32 %v3077_v14, 0.0  ;;  %v2382_v7 = vadd.f32 %v2318_v0, %v2254_v11  ;;  %v12527_v14 = vld [vmem:[#allocation28_spill] sm:$0xff]  ;;  %v12528_v0 = vld [vmem:[#allocation27_spill] sm:$0xff] }
 0x1f0   :  { %v1725_v6 = vsub.f32 %v1604_v13, %v8676_v50  ;;  %v3142_v1 = vmax.f32 %v3078_v45, 0.0  ;;  %v2802_v41 = vand.u32 2147483648, %v10420_v24  ;;  %v1726_v38 = vsub.f32 %v1604_v13, %v8711_v20 }
 0x1f1   :  { %v10464_v47 = vadd.f32 %v2445_v26, %v2381_v33  ;;  %v8152_v27 = vpop.eup %8151  ;;  %vm2806_vm11 = vcmp.eq.f32.partialorder %v10422_v54, inf  ;;  %v2809_v32 = vand.u32 2147483648, %v10422_v54  ;;  %v10469_v22 = vadd.f32 %v2446_v46, %v2382_v7 }
 0x1f2   :  { %v1838_v35 = vrot.slane %v1246_v49, %v8527_v42  ;;  %v8154_v52 = vpop.eup %8153  ;;  %v3188_v21 = vpack.c.bf16 %v3142_v1, %v3141_v39  ;;  %v2798_v30 = vmul.f32 %v8152_v27, %v10420_v24  ;;  %v2072_v36 = vrot.slane %v1451_v58, %v8527_v42  ;;  %v12530_v1 = vld [vmem:[#allocation19_spill] sm:$0xff] }
 0x1f3   :  { %v10472_v55 = vpop.f32.mrb[52].mxu1  ;;  %8155 = vrsqrt.f32 %v10464_v47  ;;  %v2805_v11 = vmul.f32 %v8154_v52, %v10422_v54  ;;  %vm2808_vm12 = vcmp.eq.f32.partialorder %v10422_v54, 0.0  ;;  %v2257_v48 = vmul.f32 %v1725_v6, %v1725_v6 }
 0x1f4   :  { %v7661_v10 = vpop.f32.mrb[53].mxu1  ;;  %8157 = vrsqrt.f32 %v10469_v22  ;;  %7720 = vmatmul.mubr.msk.bf16.vlgmr.msra.gmra.mrb[88].mxu1 %vm3203_vm8, %v3188_v21  ;;  %v2800_v49 = vsel %vm2799_vm9, %v10420_v24, %v2798_v30  ;;  %vm2827_vm13 = vcmp.eq.f32.partialorder %v10464_v47, inf  ;;  %v2258_v28 = vmul.f32 %v1726_v38, %v1726_v38  ;;  %v12531_v21 = vld [vmem:[#allocation20_spill] sm:$0xff] }
 0x1f5   :  { %v10480_v59 = vpop.f32.mrb[54].mxu1  ;;  %v10488_v56 = vrot.slane %v1057_v12, %v12488_v51  ;;  %v12529_v58 = vpack.c.bf16 %v12527_v14, %v12528_v0  ;;  %7731 = vmatprep.mubr.msk.bf16.mxu1 %vm8242_vm6, %v12449_v53  ;;  %v2803_v13 = vsel %vm2801_vm10, %v2802_v41, %v2800_v49  ;;  %v2807_v45 = vsel %vm2806_vm11, %v10422_v54, %v2805_v11 }
 0x1f6   :  { %v7662_v18 = vpop.f32.mrb[55].mxu1  ;;  %vm2829_vm14 = vcmp.eq.f32.partialorder %v10464_v47, 0.0  ;;  %v1959_v12 = vsub.f32 %v1838_v35, %v8658_v23  ;;  %v2810_v33 = vsel %vm2808_vm12, %v2809_v32, %v2807_v45  ;;  %v3017_v26 = vmul.f32 3.3333333, %v2803_v13 }
 0x1f7   :  { %7730 = vmatpush3.bf16.msra.mxu1 %v12529_v58  ;;  %v1960_v46 = vsub.f32 %v1838_v35, %v8709_v3  ;;  %v2193_v39 = vsub.f32 %v2072_v36, %v8728_v29  ;;  %v3018_v24 = vmul.f32 3.3333333, %v2810_v33  ;;  %v2194_v7 = vsub.f32 %v2072_v36, %v8726_v62 }
 0x1f8   :  { %7741 = vmatprep.subr.bf16.mxu1 %v12449_v53  ;;  %v2321_v6 = vmul.f32 %v1959_v12, %v1959_v12  ;;  %v1262_v41 = vcombine.high %v12530_v1, %v12530_v1  ;;  %v3081_v38 = vsub.f32 1.0, %v3017_v26  ;;  %v1467_v54 = vcombine.high %v12531_v21, %v12531_v21 }
 0x1f9   :  { %v2322_v27 = vmul.f32 %v1960_v46, %v1960_v46  ;;  %v2449_v52 = vmul.f32 %v2193_v39, %v2193_v39  ;;  %v3082_v32 = vsub.f32 1.0, %v3018_v24  ;;  %v2830_v30 = vand.u32 2147483648, %v10464_v47 }
 0x1fa   :  { %v2385_v10 = vadd.f32 %v2321_v6, %v2257_v48  ;;  %v2450_v35 = vmul.f32 %v2194_v7, %v2194_v7  ;;  %v10515_v49 = vpop.f32.mrb[40].mxu0  ;;  %v3145_v36 = vmax.f32 %v3081_v38, 0.0  ;;  %v1284_v14 = vrot.slane %v1262_v41, %v12488_v51 }
 0x1fb   :  { %v10513_v11 = vpop.f32.mrb[56].mxu1  ;;  %v2386_v18 = vadd.f32 %v2322_v27, %v2258_v28  ;;  %v1612_v0 = vrot.slane %v10488_v56, %v8527_v42  ;;  %v7715_v13 = vpop.f32.mrb[41].mxu0  ;;  %v3146_v45 = vmax.f32 %v3082_v32, 0.0  ;;  %vm2834_vm15 = vcmp.eq.f32.partialorder %v10469_v22, inf }
 0x1fc   :  { %v7667_v58 = vpop.f32.mrb[57].mxu1  ;;  %v10521_v12 = vadd.f32 %v2449_v52, %v2385_v10  ;;  %v10524_v48 = vrot.slane %v1467_v54, %v12488_v51  ;;  %v10528_v26 = vpop.f32.mrb[42].mxu0  ;;  %vm2836_vm7 = vcmp.eq.f32.partialorder %v10469_v22, 0.0  ;;  %v2837_v46 = vand.u32 2147483648, %v10469_v22 }
 0x1fd   :  { %v10526_v33 = vpop.f32.mrb[58].mxu1  ;;  %v8156_v28 = vpop.eup %8155  ;;  %v10532_v39 = vadd.f32 %v2450_v35, %v2386_v18  ;;  %v1846_v24 = vrot.slane %v1284_v14, %v8527_v42  ;;  %v3190_v41 = vpack.c.bf16 %v3146_v45, %v3145_v36  ;;  %v1729_v21 = vsub.f32 %v1612_v0, %v8676_v50  ;;  %v12532_v35 = vld [vmem:[#allocation23_spill] sm:$0xff]  ;;  %v12533_v36 = vld [vmem:[#allocation22_spill] sm:$0xff] }
 0x1fe   :  { %v7668_v7 = vpop.f32.mrb[59].mxu1  ;;  %v7716_v6 = vpop.f32.mrb[43].mxu0  ;;  %v2826_v38 = vmul.f32 %v8156_v28, %v10464_v47  ;;  %8159 = vrsqrt.f32 %v10521_v12  ;;  %v2080_v27 = vrot.slane %v10524_v48, %v8527_v42  ;;  %v1730_v54 = vsub.f32 %v1612_v0, %v8711_v20 }
 0x1ff   :  { %v8158_v1 = vpop.eup %8157  ;;  %8161 = vrsqrt.f32 %v10532_v39  ;;  %7732 = vmatmul.mubr.msk.bf16.vlgmr.msra.gmra.mrb[92].mxu1 %vm3203_vm8, %v3190_v41  ;;  %vm2855_vm1 = vcmp.eq.f32.partialorder %v10521_v12, inf  ;;  %v1089_v10 = vcombine.high %v10488_v56, %v10488_v56  ;;  %v12534_v18 = vpack.c.bf16 %v12532_v35, %v12533_v36 }
 0x200   :  { %v2833_v52 = vmul.f32 %v8158_v1, %v10469_v22  ;;  %v2828_v32 = vsel %vm2827_vm13, %v10464_v47, %v2826_v38  ;;  %7743 = vmatprep.mubr.msk.bf16.mxu1 %vm8242_vm6, %v12449_v53  ;;  %vm2857_vm2 = vcmp.eq.f32.partialorder %v10521_v12, 0.0  ;;  %v1963_v13 = vsub.f32 %v1846_v24, %v8658_v23 }
 0x201   :  { %7742 = vmatpush3.bf16.msra.mxu1 %v12534_v18  ;;  %v2831_v0 = vsel %vm2829_vm14, %v2830_v30, %v2828_v32  ;;  %v1964_v28 = vsub.f32 %v1846_v24, %v8709_v3  ;;  %v2197_v7 = vsub.f32 %v2080_v27, %v8728_v29  ;;  %v2198_v30 = vsub.f32 %v2080_v27, %v8726_v62 }
 0x202   :  { %v2835_v58 = vsel %vm2834_vm15, %v10469_v22, %v2833_v52  ;;  %v3021_v45 = vmul.f32 3.3333333, %v2831_v0  ;;  %7753 = vmatprep.subr.bf16.mxu1 %v12449_v53  ;;  %v2261_v6 = vmul.f32 %v1729_v21, %v1729_v21  ;;  %v2262_v1 = vmul.f32 %v1730_v54, %v1730_v54 }
 0x203   :  { %v2838_v56 = vsel %vm2836_vm7, %v2837_v46, %v2835_v58  ;;  %v2325_v38 = vmul.f32 %v1963_v13, %v1963_v13  ;;  %v2326_v52 = vmul.f32 %v1964_v28, %v1964_v28  ;;  %v2453_v32 = vmul.f32 %v2197_v7, %v2197_v7 }
 0x204   :  { %v3022_v47 = vmul.f32 3.3333333, %v2838_v56  ;;  %v3085_v41 = vsub.f32 1.0, %v3021_v45  ;;  %v2454_v36 = vmul.f32 %v2198_v30, %v2198_v30  ;;  %v1294_v22 = vcombine.high %v1284_v14, %v1284_v14 }
 0x205   :  { %v1499_v46 = vcombine.high %v10524_v48, %v10524_v48  ;;  %v2389_v0 = vadd.f32 %v2325_v38, %v2261_v6  ;;  %v2390_v24 = vadd.f32 %v2326_v52, %v2262_v1  ;;  %v1620_v58 = vrot.slane %v1089_v10, %v8527_v42  ;;  %v12535_v52 = vld [vmem:[#allocation16_spill] sm:$0xff] }
 0x206   :  { %v3086_v35 = vsub.f32 1.0, %v3022_v47  ;;  %v3149_v18 = vmax.f32 %v3085_v41, 0.0  ;;  %v2858_v27 = vand.u32 2147483648, %v10521_v12  ;;  %vm2862_vm3 = vcmp.eq.f32.partialorder %v10532_v39, inf }
 0x207   :  { %v1854_v21 = vrot.slane %v1294_v22, %v8527_v42  ;;  %vm2864_vm4 = vcmp.eq.f32.partialorder %v10532_v39, 0.0  ;;  %v2865_v14 = vand.u32 2147483648, %v10532_v39  ;;  %v10576_v13 = vadd.f32 %v2453_v32, %v2389_v0  ;;  %v12536_v32 = vld [vmem:[#allocation14_spill] sm:$0xff] }
 0x208   :  { %v3150_v56 = vmax.f32 %v3086_v35, 0.0  ;;  %v8160_v54 = vpop.eup %8159  ;;  %v10578_v48 = vadd.f32 %v2454_v36, %v2390_v24  ;;  %v1733_v7 = vsub.f32 %v1620_v58, %v8676_v50  ;;  %v2088_v47 = vrot.slane %v1499_v46, %v8527_v42 }
 0x209   :  { %v8162_v45 = vpop.eup %8161  ;;  %v2854_v10 = vmul.f32 %v8160_v54, %v10521_v12  ;;  %8163 = vrsqrt.f32 %v10576_v13  ;;  %v1734_v6 = vsub.f32 %v1620_v58, %v8711_v20  ;;  %v1967_v1 = vsub.f32 %v1854_v21, %v8658_v23 }
 0x20a   :  { %v3192_v28 = vpack.c.bf16 %v3150_v56, %v3149_v18  ;;  %v2861_v30 = vmul.f32 %v8162_v45, %v10532_v39  ;;  %8165 = vrsqrt.f32 %v10578_v48  ;;  %v1968_v38 = vsub.f32 %v1854_v21, %v8709_v3 }
 0x20b   :  { %v2856_v41 = vsel %vm2855_vm1, %v10521_v12, %v2854_v10  ;;  %v12537_v35 = vpack.c.bf16 %v12535_v52, %v12536_v32  ;;  %v1058_v46 = vcombine.high %v10163_v44, %v10163_v44  ;;  %v2201_v24 = vsub.f32 %v2088_v47, %v8728_v29 }
 0x20c   :  { %7744 = vmatmul.mubr.msk.bf16.vlgmr.msra.gmra.mrb[96].mxu1 %vm3203_vm8, %v3192_v28  ;;  %v2859_v36 = vsel %vm2857_vm2, %v2858_v27, %v2856_v41  ;;  %v2863_v22 = vsel %vm2862_vm3, %v10532_v39, %v2861_v30  ;;  %v2202_v58 = vsub.f32 %v2088_v47, %v8726_v62  ;;  %v2265_v12 = vmul.f32 %v1733_v7, %v1733_v7 }
 0x20d   :  { %7754 = vmatpush3.bf16.msra.mxu1 %v12537_v35  ;;  %7755 = vmatprep.mubr.msk.bf16.mxu1 %vm8242_vm6, %v12449_v53  ;;  %v2866_v18 = vsel %vm2864_vm4, %v2865_v14, %v2863_v22  ;;  %v3025_v0 = vmul.f32 3.3333333, %v2859_v36  ;;  %v2266_v27 = vmul.f32 %v1734_v6, %v1734_v6  ;;  %v2329_v21 = vmul.f32 %v1967_v1, %v1967_v1 }
 0x20e   :  { %7765 = vmatprep.subr.bf16.mxu1 %v12449_v53  ;;  %v3026_v56 = vmul.f32 3.3333333, %v2866_v18  ;;  %v2330_v45 = vmul.f32 %v1968_v38, %v1968_v38  ;;  %v2457_v28 = vmul.f32 %v2201_v24, %v2201_v24  ;;  %v2458_v10 = vmul.f32 %v2202_v58, %v2202_v58 }
 0x20f   :  { %v3089_v54 = vsub.f32 1.0, %v3025_v0  ;;  %v2393_v44 = vadd.f32 %v2329_v21, %v2265_v12  ;;  %v10611_v39 = vrot.slane %v1058_v46, %v12488_v51  ;;  %v1263_v14 = vcombine.high %v10166_v15, %v10166_v15  ;;  %v12539_v21 = vld [vmem:[#allocation7_spill] sm:$0xff] }
 0x210   :  { %v3090_v30 = vsub.f32 1.0, %v3026_v56  ;;  %v2394_v52 = vadd.f32 %v2330_v45, %v2266_v27  ;;  %v1468_v47 = vcombine.high %v10171_v4, %v10171_v4  ;;  %v10619_v7 = vpack.c.bf16 %v10267_v19, %v10258_v5 }
 0x211   :  { %v3153_v41 = vmax.f32 %v3089_v54, 0.0  ;;  %vm2883_vm5 = vcmp.eq.f32.partialorder %v10576_v13, inf  ;;  %v10622_v1 = vadd.f32 %v2457_v28, %v2393_v44  ;;  %v1628_v38 = vrot.slane %v10611_v39, %v8527_v42  ;;  %v12540_v54 = vld [vmem:[#allocation12_spill] sm:$0xff] }
 0x212   :  { %12538 = vst [vmem:[#allocation25_spill] sm:$0xff] %v10619_v7  ;;  %v3154_v6 = vmax.f32 %v3090_v30, 0.0  ;;  %vm2885_vm9 = vcmp.eq.f32.partialorder %v10576_v13, 0.0  ;;  %v2886_v15 = vand.u32 2147483648, %v10576_v13  ;;  %vm2890_vm10 = vcmp.eq.f32.partialorder %v10578_v48, inf  ;;  %v10631_v4 = vpop.f32.mrb[60].mxu1 }
 0x213   :  { %v10629_v32 = vadd.f32 %v2458_v10, %v2394_v52  ;;  %v8164_v5 = vpop.eup %8163  ;;  %vm2892_vm11 = vcmp.eq.f32.partialorder %v10578_v48, 0.0  ;;  %v2893_v35 = vand.u32 2147483648, %v10578_v48  ;;  %8167 = vrsqrt.f32 %v10622_v1  ;;  %v7673_v36 = vpop.f32.mrb[61].mxu1 }
 0x214   :  { %v3194_v19 = vpack.c.bf16 %v3154_v6, %v3153_v41  ;;  %v8166_v22 = vpop.eup %8165  ;;  %v2882_v46 = vmul.f32 %v8164_v5, %v10576_v13  ;;  %v1291_v18 = vrot.slane %v1263_v14, %v12488_v51  ;;  %v1496_v0 = vrot.slane %v1468_v47, %v12488_v51  ;;  %v10640_v24 = vpop.f32.mrb[62].mxu1 }
 0x215   :  { %8169 = vrsqrt.f32 %v10629_v32  ;;  %v2889_v58 = vmul.f32 %v8166_v22, %v10578_v48  ;;  %vm2911_vm12 = vcmp.eq.f32.partialorder %v10622_v1, inf  ;;  %v1737_v56 = vsub.f32 %v1628_v38, %v8676_v50  ;;  %v7674_v27 = vpop.f32.mrb[63].mxu1 }
 0x216   :  { %7756 = vmatmul.mubr.msk.bf16.vlgmr.msra.gmra.mrb[100].mxu1 %vm3203_vm8, %v3194_v19  ;;  %v1090_v12 = vcombine.high %v10611_v39, %v10611_v39  ;;  %v12541_v45 = vpack.c.bf16 %v12539_v21, %v12540_v54  ;;  %v2884_v51 = vsel %vm2883_vm5, %v10576_v13, %v2882_v46  ;;  %vm2913_vm13 = vcmp.eq.f32.partialorder %v10622_v1, 0.0 }
 0x217   :  { %7767 = vmatprep.mubr.msk.bf16.mxu1 %vm8242_vm6, %v12449_v53  ;;  %v2914_v28 = vand.u32 2147483648, %v10622_v1  ;;  %v1738_v10 = vsub.f32 %v1628_v38, %v8711_v20  ;;  %v1862_v30 = vrot.slane %v1291_v18, %v8527_v42  ;;  %v2887_v44 = vsel %vm2885_vm9, %v2886_v15, %v2884_v51 }
 0x218   :  { %7766 = vmatpush3.bf16.msra.mxu1 %v12541_v45  ;;  %v2891_v39 = vsel %vm2890_vm10, %v10578_v48, %v2889_v58  ;;  %v2096_v14 = vrot.slane %v1496_v0, %v8527_v42  ;;  %v2269_v41 = vmul.f32 %v1737_v56, %v1737_v56  ;;  %v3029_v47 = vmul.f32 3.3333333, %v2887_v44 }
 0x219   :  { %7777 = vmatprep.subr.bf16.mxu1 %v12449_v53  ;;  %v2894_v52 = vsel %vm2892_vm11, %v2893_v35, %v2891_v39  ;;  %v1971_v6 = vsub.f32 %v1862_v30, %v8658_v23  ;;  %v1972_v38 = vsub.f32 %v1862_v30, %v8709_v3  ;;  %v2270_v19 = vmul.f32 %v1738_v10, %v1738_v10 }
 0x21a   :  { %v3030_v5 = vmul.f32 3.3333333, %v2894_v52  ;;  %v2205_v13 = vsub.f32 %v2096_v14, %v8728_v29  ;;  %v2206_v15 = vsub.f32 %v2096_v14, %v8726_v62  ;;  %v3093_v36 = vsub.f32 1.0, %v3029_v47 }
 0x21b   :  { %v2333_v22 = vmul.f32 %v1971_v6, %v1971_v6  ;;  %v2334_v46 = vmul.f32 %v1972_v38, %v1972_v38  ;;  %v1295_v58 = vcombine.high %v1291_v18, %v1291_v18  ;;  %v1500_v48 = vcombine.high %v1496_v0, %v1496_v0 }
 0x21c   :  { %v3094_v27 = vsub.f32 1.0, %v3030_v5  ;;  %v2461_v56 = vmul.f32 %v2205_v13, %v2205_v13  ;;  %v2462_v21 = vmul.f32 %v2206_v15, %v2206_v15  ;;  %v3157_v35 = vmax.f32 %v3093_v36, 0.0 }
 0x21d   :  { %v2397_v54 = vadd.f32 %v2333_v22, %v2269_v41  ;;  %v2398_v45 = vadd.f32 %v2334_v46, %v2270_v19  ;;  %v1636_v51 = vrot.slane %v1090_v12, %v8527_v42  ;;  %v8168_v30 = vpop.eup %8167  ;;  %vm2918_vm14 = vcmp.eq.f32.partialorder %v10629_v32, inf  ;;  %v12543_v22 = vld [vmem:[#allocation17_spill] sm:$0xff]  ;;  %v12544_v46 = vld [vmem:[#allocation15_spill] sm:$0xff] }
 0x21e   :  { %v3158_v44 = vmax.f32 %v3094_v27, 0.0  ;;  %v1870_v39 = vrot.slane %v1295_v58, %v8527_v42  ;;  %v10678_v10 = vpack.c.bf16 %v10292_v43, %v10279_v16  ;;  %v2910_v14 = vmul.f32 %v8168_v30, %v10622_v1 }
 0x21f   :  { %v8170_v18 = vpop.eup %8169  ;;  %v2921_v0 = vand.u32 2147483648, %v10629_v32  ;;  %v10682_v52 = vadd.f32 %v2461_v56, %v2397_v54  ;;  %v10684_v41 = vadd.f32 %v2462_v21, %v2398_v45  ;;  %vm2920_vm15 = vcmp.eq.f32.partialorder %v10629_v32, 0.0 }
 0x220   :  { %12542 = vst [vmem:[#allocation8_spill] sm:$0xff] %v10678_v10  ;;  %v3196_v12 = vpack.c.bf16 %v3158_v44, %v3157_v35  ;;  %v2917_v47 = vmul.f32 %v8170_v18, %v10629_v32  ;;  %v2104_v6 = vrot.slane %v1500_v48, %v8527_v42  ;;  %v10689_v38 = vpop.f32.mrb[44].mxu0  ;;  %v2912_v16 = vsel %vm2911_vm12, %v10622_v1, %v2910_v14 }
 0x221   :  { %8171 = vrsqrt.f32 %v10682_v52  ;;  %v1741_v43 = vsub.f32 %v1636_v51, %v8676_v50  ;;  %v1742_v5 = vsub.f32 %v1636_v51, %v8711_v20  ;;  %v7727_v13 = vpop.f32.mrb[45].mxu0  ;;  %v2915_v15 = vsel %vm2913_vm13, %v2914_v28, %v2912_v16 }
 0x222   :  { %7768 = vmatmul.mubr.msk.bf16.vlgmr.msra.gmra.mrb[104].mxu1 %vm3203_vm8, %v3196_v12  ;;  %v2919_v42 = vsel %vm2918_vm14, %v10629_v32, %v2917_v47  ;;  %8173 = vrsqrt.f32 %v10684_v41  ;;  %v1975_v19 = vsub.f32 %v1870_v39, %v8658_v23  ;;  %v4036_v36 = vpop.f32.mrb[46].mxu0  ;;  %v12545_v50 = vpack.c.bf16 %v12543_v22, %v12544_v46 }
 0x223   :  { %7779 = vmatprep.mubr.msk.bf16.mxu1 %vm8242_vm6, %v12449_v53  ;;  %v2922_v20 = vsel %vm2920_vm15, %v2921_v0, %v2919_v42  ;;  %v3033_v1 = vmul.f32 3.3333333, %v2915_v15  ;;  %v7728_v28 = vpop.f32.mrb[47].mxu0  ;;  %v1976_v27 = vsub.f32 %v1870_v39, %v8709_v3  ;;  %v2209_v23 = vsub.f32 %v2104_v6, %v8728_v29 }
 0x224   :  { %7778 = vmatpush3.bf16.msra.mxu1 %v12545_v50  ;;  %v3034_v58 = vmul.f32 3.3333333, %v2922_v20  ;;  %v2210_v21 = vsub.f32 %v2104_v6, %v8726_v62  ;;  %v2273_v48 = vmul.f32 %v1741_v43, %v1741_v43  ;;  %v2274_v35 = vmul.f32 %v1742_v5, %v1742_v5 }
 0x225   :  { %7789 = vmatprep.subr.bf16.mxu1 %v12449_v53  ;;  %v3097_v56 = vsub.f32 1.0, %v3033_v1  ;;  %v2337_v45 = vmul.f32 %v1975_v19, %v1975_v19  ;;  %v2338_v51 = vmul.f32 %v1976_v27, %v1976_v27  ;;  %v2465_v30 = vmul.f32 %v2209_v23, %v2209_v23 }
 0x226   :  { %v3098_v54 = vsub.f32 1.0, %v3034_v58  ;;  %v2466_v44 = vmul.f32 %v2210_v21, %v2210_v21  ;;  %v10718_v12 = vpack.c.bf16 %v10317_v8, %v10304_v61  ;;  %v10722_v29 = vpack.c.bf16 %v10347_v2, %v10333_v40 }
 0x227   :  { %v3161_v32 = vmax.f32 %v3097_v56, 0.0  ;;  %v2401_v14 = vadd.f32 %v2337_v45, %v2273_v48  ;;  %v2402_v0 = vadd.f32 %v2338_v51, %v2274_v35  ;;  %v10726_v3 = vpack.c.bf16 %v10376_v31, %v10365_v60 }
 0x228   :  { %v3162_v18 = vmax.f32 %v3098_v54, 0.0  ;;  %12546 = vst [vmem:[#allocation26_spill] sm:$0xff] %v10718_v12  ;;  %12547 = vst [vmem:[#allocation24_spill] sm:$0xff] %v10722_v29  ;;  %v10730_v62 = vpack.c.bf16 %v10410_v25, %v10404_v37  ;;  %v10734_v39 = vpack.c.bf16 %v10456_v17, %v10445_v57  ;;  %vm2939_vm7 = vcmp.eq.f32.partialorder %v10682_v52, inf  ;;  %v12551_v37 = vld [vmem:[#allocation29_spill] sm:$0xff] }
 0x229   :  { %12548 = vst [vmem:[#allocation10_spill] sm:$0xff] %v10726_v3  ;;  %v2529_v6 = vadd.f32 %v2465_v30, %v2401_v14  ;;  %v2530_v61 = vadd.f32 %v2466_v44, %v2402_v0  ;;  %vm2941_vm1 = vcmp.eq.f32.partialorder %v10682_v52, 0.0  ;;  %v2942_v40 = vand.u32 2147483648, %v10682_v52  ;;  %v12552_v25 = vld [vmem:[#allocation21_spill] sm:$0xff] }
 0x22a   :  { %12549 = vst [vmem:[#allocation13_spill] sm:$0xff] %v10730_v62  ;;  %12550 = vst [vmem:[#allocation9_spill] sm:$0xff] %v10734_v39  ;;  %v3198_v47 = vpack.c.bf16 %v3162_v18, %v3161_v32  ;;  %vm2946_vm2 = vcmp.eq.f32.partialorder %v10684_v41, inf  ;;  %v2949_v31 = vand.u32 2147483648, %v10684_v41  ;;  %v12553_v57 = vpack.c.bf16 %v12551_v37, %v12552_v25 }
 0x22b   :  { %v8172_v8 = vpop.eup %8171  ;;  %8175 = vrsqrt.f32 %v2529_v6  ;;  %vm2948_vm3 = vcmp.eq.f32.partialorder %v10684_v41, 0.0  ;;  %v10755_v46 = vpack.c.bf16 %v10480_v59, %v10472_v55  ;;  %v10759_v50 = vpack.c.bf16 %v10526_v33, %v10513_v11 }
 0x22c   :  { %v8174_v2 = vpop.eup %8173  ;;  %7780 = vmatmul.mubr.msk.bf16.vlgmr.msra.gmra.mrb[108].mxu1 %vm3203_vm8, %v3198_v47  ;;  %v2938_v60 = vmul.f32 %v8172_v8, %v10682_v52  ;;  %8177 = vrsqrt.f32 %v2530_v61  ;;  %v10770_v28 = vpack.c.bf16 %v4036_v36, %v10689_v38  ;;  %vm2967_vm4 = vcmp.eq.f32.partialorder %v2529_v6, inf }
 0x22d   :  { %7790 = vmatpush3.bf16.msra.mxu1 %v12553_v57  ;;  %7791 = vmatprep.mubr.msk.bf16.mxu1 %vm8242_vm6, %v12449_v53  ;;  %v2945_v17 = vmul.f32 %v8174_v2, %v10684_v41  ;;  %12554 = vst [vmem:[#allocation11_spill] sm:$0xff] %v10755_v46  ;;  %12555 = vst [vmem:[#allocation18_spill] sm:$0xff] %v10759_v50  ;;  %vm2969_vm5 = vcmp.eq.f32.partialorder %v2529_v6, 0.0  ;;  %vm2974_vm9 = vcmp.eq.f32.partialorder %v2530_v61, inf  ;;  %v2977_v21 = vand.u32 2147483648, %v2530_v61 }
 0x22e   :  { %v2940_v16 = vsel %vm2939_vm7, %v10682_v52, %v2938_v60  ;;  %7801 = vmatprep.subr.bf16.mxu1 %v12449_v53  ;;  %v10763_v52 = vpack.c.bf16 %v10528_v26, %v10515_v49  ;;  %12558 = vst [vmem:[#allocation19_spill] sm:$0xff] %v10770_v28  ;;  %v2970_v49 = vand.u32 2147483648, %v2529_v6  ;;  %vm2976_vm10 = vcmp.eq.f32.partialorder %v2530_v61, 0.0 }
 0x22f   :  { %v2943_v43 = vsel %vm2941_vm1, %v2942_v40, %v2940_v16  ;;  %v2947_v5 = vsel %vm2946_vm2, %v10684_v41, %v2945_v17  ;;  %v3681_v13 = vpop.f32.mrb[64].mxu1  ;;  %v10767_v41 = vpack.c.bf16 %v10640_v24, %v10631_v4  ;;  %vm12577_vm11 = vcmask 1042434  }
 0x230   :  { %v2950_v15 = vsel %vm2948_vm3, %v2949_v31, %v2947_v5  ;;  %v3037_v42 = vmul.f32 3.3333333, %v2943_v43  ;;  %v7679_v19 = vpop.f32.mrb[65].mxu1  ;;  %12556 = vst [vmem:[#allocation28_spill] sm:$0xff] %v10763_v52  ;;  %vm12578_vm12 = vmmov %vm12577_vm11  ;;  %vm12579_vm13 = vcmask 1043459   ;;  %vm12581_vm15 = vcmask 1044484  }
 0x231   :  { %v3038_v22 = vmul.f32 3.3333333, %v2950_v15  ;;  %v3684_v20 = vpop.f32.mrb[66].mxu1  ;;  %12557 = vst [vmem:[#allocation27_spill] sm:$0xff] %v10767_v41  ;;  %vm12580_vm14 = vmmov %vm12579_vm13  ;;  %vm4724_vm7 = vcmask 1045509   ;;  %vm4727_vm2 = vcmask 1046534  }
 0x232   :  { %v3101_v1 = vsub.f32 1.0, %v3037_v42  ;;  %v10772_v58 = vpack.c.bf16 %v3684_v20, %v3681_v13  ;;  %v7680_v55 = vpop.f32.mrb[67].mxu1  ;;  %vm12582_vm1 = vmmov %vm12581_vm15  ;;  %vm4730_vm3 = vcmask 1047559  }
 0x233   :  { %v3102_v59 = vsub.f32 1.0, %v3038_v22 }
 0x234   :  { %12559 = vst [vmem:[#allocation20_spill] sm:$0xff] %v10772_v58  ;;  %v3165_v27 = vmax.f32 %v3101_v1, 0.0 }
 0x235   :  { %v3166_v11 = vmax.f32 %v3102_v59, 0.0  ;;  %v8176_v33 = vpop.eup %8175 }
 0x236   :  { %v8178_v26 = vpop.eup %8177  ;;  %v2966_v56 = vmul.f32 %v8176_v33, %v2529_v6 }
 0x237   :  { %v3200_v23 = vpack.c.bf16 %v3166_v11, %v3165_v27  ;;  %v2973_v4 = vmul.f32 %v8178_v26, %v2530_v61 }
 0x238   :  { %v2968_v24 = vsel %vm2967_vm4, %v2529_v6, %v2966_v56  ;;  %v7350_v56 = vld [vmem:[%s12347_s5 + $0x4] sm:$0xf]  ;;  %vm12583_vm4 = vcmask 64512  }
 0x239   :  { %7792 = vmatmul.mubr.msk.bf16.vlgmr.msra.gmra.mrb[112].mxu1 %vm3203_vm8, %v3200_v23  ;;  %v2971_v38 = vsel %vm2969_vm5, %v2970_v49, %v2968_v24  ;;  %v2975_v36 = vsel %vm2974_vm9, %v2530_v61, %v2973_v4  ;;  %v4121_v48 = vpop.f32.mrb[48].mxu0  ;;  %7981 = vmatprep.subr.msk.bf16.mxu0 %vm370_vm0, %v7350_v56  ;;  %v4783_v4 = vsel %vm370_vm0, %v7350_v56, 0 }
 0x23a   :  { %7802 = vmatpush3.bf16.msra.mxu1 %v886_v63  ;;  %7803 = vmatprep.mubr.msk.bf16.mxu1 %vm8242_vm6, %v12449_v53  ;;  %v2978_v35 = vsel %vm2976_vm10, %v2977_v21, %v2975_v36  ;;  %v3041_v54 = vmul.f32 3.3333333, %v2971_v38  ;;  %v7739_v45 = vpop.f32.mrb[49].mxu0  ;;  %v10805_v36 = vld [vmem:[%s12347_s5] sm:$0xf]  ;;  %vm12575_vm6 = vcmask 1041409  }
 0x23b   :  { %v3042_v51 = vmul.f32 3.3333333, %v2978_v35  ;;  %v4124_v30 = vpop.f32.mrb[50].mxu0  ;;  %7808 = vmatpush3.bf16.msra.mxu0 %v4783_v4  ;;  %vm12586_vm5 = vmmov %vm12575_vm6 }
 0x23c   :  { %v3105_v32 = vsub.f32 1.0, %v3041_v54  ;;  %v10780_v44 = vpack.c.bf16 %v4124_v30, %v4121_v48  ;;  %v7740_v18 = vpop.f32.mrb[51].mxu0  ;;  %7982 = vmatprep.subr.msk.bf16.mxu0 %vm370_vm0, %v10805_v36  ;;  %v10812_v30 = vunpack.c.l.b16 %v10718_v12  ;;  %vm12587_vm9 = vmmov %vm12586_vm5 }
 0x23d   :  { %v3106_v14 = vsub.f32 1.0, %v3042_v51  ;;  %v10818_v18 = vunpack.c.l.b16 %v10619_v7  ;;  %vm12588_vm10 = vmmov %vm12586_vm5 }
 0x23e   :  { %12560 = vst [vmem:[#allocation23_spill] sm:$0xff] %v10780_v44  ;;  %v3169_v0 = vmax.f32 %v3105_v32, 0.0  ;;  %12569 = vst [vmem:[#allocation21_spill] sm:$0xff] %v10812_v30  ;;  %v10815_v32 = vunpack.c.l.b16 %v10772_v58 }
 0x23f   :  { %v3170_v47 = vmax.f32 %v3106_v14, 0.0  ;;  %v10821_v14 = vunpack.c.l.b16 %v10722_v29 }
 0x241   :  { %v3202_v34 = vpack.c.bf16 %v3170_v47, %v3169_v0  ;;  %v10824_v0 = vunpack.c.l.b16 %v10759_v50 }
 0x243   :  { %7804 = vmatmul.mubr.msk.bf16.vlgmr.msra.gmra.mrb[116].mxu1 %vm3203_vm8, %v3202_v34  ;;  %v10830_v34 = vunpack.c.l.b16 %v10726_v3  ;;  %vm12576_vm8 = vmmov %vm12575_vm6 }
 0x24a   :  { %v3725_v9 = vpop.f32.mrb[68].mxu1 }
 0x24b   :  { %v7685_v53 = vpop.f32.mrb[69].mxu1 }
 0x24c   :  { %v3728_v63 = vpop.f32.mrb[70].mxu1 }
 0x24d   :  { %v10783_v6 = vpack.c.bf16 %v3728_v63, %v3725_v9  ;;  %v7686_v61 = vpop.f32.mrb[71].mxu1  ;;  %v10833_v9 = vunpack.c.l.b16 %v10730_v62  ;;  %v10839_v63 = vunpack.c.l.b16 %v10678_v10 }
 0x24e   :  { %v10842_v61 = vunpack.c.l.b16 %v10734_v39 }
 0x24f   :  { %12561 = vst [vmem:[#allocation22_spill] sm:$0xff] %v10783_v6  ;;  %v10827_v47 = vunpack.c.l.b16 %v10783_v6  ;;  %12570 = vst [vmem:[#allocation30_spill] sm:$0xff] %v10833_v9 }
 0x250   :  { %12571 = vst [vmem:[#allocation31_spill] sm:$0xff] %v10842_v61  ;;  %v4726_v56 = vrot.slane %v10842_v61, 3  ;;  %v4844_v50 = vrot.slane %v10842_v61, 2 }
 0x253   :  { %v4209_v8 = vpop.f32.mrb[52].mxu0 }
 0x254   :  { %v7751_v40 = vpop.f32.mrb[53].mxu0 }
 0x255   :  { %v4212_v2 = vpop.f32.mrb[54].mxu0 }
 0x256   :  { %v10785_v60 = vpack.c.bf16 %v4212_v2, %v4209_v8  ;;  %v7752_v31 = vpop.f32.mrb[55].mxu0  ;;  %v10845_v8 = vunpack.c.l.b16 %v10767_v41  ;;  %v10851_v2 = vunpack.c.l.b16 %v10755_v46  ;;  %v4850_v46 = vrot.slane %v10815_v32, 6 }
 0x258   :  { %12562 = vst [vmem:[#allocation16_spill] sm:$0xff] %v10785_v60  ;;  %12572 = vst [vmem:[#allocation32_spill] sm:$0xff] %v10851_v2  ;;  %v4848_v41 = vrot.slane %v10845_v8, 7 }
 0x268   :  { %v3769_v37 = vpop.f32.mrb[72].mxu1 }
 0x269   :  { %v7691_v25 = vpop.f32.mrb[73].mxu1 }
 0x26a   :  { %v3772_v57 = vpop.f32.mrb[74].mxu1  ;;  %v4714_v25 = vrot.slane %v10812_v30, 7 }
 0x26b   :  { %v10787_v17 = vpack.c.bf16 %v3772_v57, %v3769_v37  ;;  %v7692_v16 = vpop.f32.mrb[75].mxu1  ;;  %v4734_v57 = vrot.slane %v10815_v32, 7 }
 0x26d   :  { %12563 = vst [vmem:[#allocation14_spill] sm:$0xff] %v10787_v17  ;;  %v10836_v53 = vunpack.c.l.b16 %v10787_v17 }
 0x270   :  { %v4297_v43 = vpop.f32.mrb[56].mxu0 }
 0x271   :  { %v7763_v5 = vpop.f32.mrb[57].mxu0 }
 0x272   :  { %v4300_v13 = vpop.f32.mrb[58].mxu0  ;;  %v4717_v5 = vrot.slane %v10821_v14, 6 }
 0x273   :  { %v10789_v15 = vpack.c.bf16 %v4300_v13, %v4297_v43  ;;  %v7764_v42 = vpop.f32.mrb[59].mxu0  ;;  %v4711_v43 = vrot.slane %v10818_v18, 1  ;;  %v4732_v13 = vrot.slane %v10824_v0, 1 }
 0x274   :  { %v4736_v42 = vrot.slane %v10827_v47, 6 }
 0x275   :  { %12564 = vst [vmem:[#allocation7_spill] sm:$0xff] %v10789_v15 }
 0x280   :  { %v3813_v19 = vpop.f32.mrb[76].mxu1 }
 0x281   :  { %v7697_v22 = vpop.f32.mrb[77].mxu1 }
 0x282   :  { %v3816_v20 = vpop.f32.mrb[78].mxu1  ;;  %v4720_v22 = vrot.slane %v10830_v34, 5 }
 0x283   :  { %v10791_v1 = vpack.c.bf16 %v3816_v20, %v3813_v19  ;;  %v7698_v55 = vpop.f32.mrb[79].mxu1  ;;  %v4723_v20 = vrot.slane %v10833_v9, 4 }
 0x284   :  { %v4738_v55 = vrot.slane %v10836_v53, 5 }
 0x285   :  { %12565 = vst [vmem:[#allocation12_spill] sm:$0xff] %v10791_v1  ;;  %v10848_v40 = vunpack.c.l.b16 %v10791_v1 }
 0x28b   :  { %v4385_v59 = vpop.f32.mrb[60].mxu0 }
 0x28c   :  { %v7775_v27 = vpop.f32.mrb[61].mxu0 }
 0x28d   :  { %v4388_v11 = vpop.f32.mrb[62].mxu0 }
 0x28e   :  { %v10793_v33 = vpack.c.bf16 %v4388_v11, %v4385_v59  ;;  %v7776_v49 = vpop.f32.mrb[63].mxu0  ;;  %v4713_v11 = vsel %vm12575_vm6, %v10839_v63, %v4711_v43  ;;  %vm12589_vm6 = vmmov %vm12586_vm5 }
 0x28f   :  { %v4733_v49 = vsel %vm12576_vm8, %v10845_v8, %v4732_v13  ;;  %vm12590_vm8 = vmmov %vm12577_vm11 }
 0x290   :  { %12566 = vst [vmem:[#allocation17_spill] sm:$0xff] %v10793_v33 }
 0x29b   :  { %v3857_v26 = vpop.f32.mrb[80].mxu1 }
 0x29c   :  { %v7703_v23 = vpop.f32.mrb[81].mxu1 }
 0x29d   :  { %v3860_v21 = vpop.f32.mrb[82].mxu1  ;;  %v4716_v23 = vsel %vm12577_vm11, %v4714_v25, %v4713_v11  ;;  %vm12591_vm11 = vmmov %vm12586_vm5 }
 0x29e   :  { %v10800_v24 = vpack.c.bf16 %v3860_v21, %v3857_v26  ;;  %v7704_v38 = vpop.f32.mrb[83].mxu1  ;;  %v4740_v26 = vrot.slane %v10848_v40, 4  ;;  %v4735_v21 = vsel %vm12578_vm12, %v4734_v57, %v4733_v49  ;;  %vm12592_vm12 = vmmov %vm12579_vm13 }
 0x2a0   :  { %12567 = vst [vmem:[#allocation15_spill] sm:$0xff] %v10800_v24  ;;  %v10854_v31 = vunpack.c.l.b16 %v10800_v24 }
 0x2a2   :  { %12573 = vst [vmem:[#allocation33_spill] sm:$0xff] %v10854_v31  ;;  %v4742_v4 = vrot.slane %v10854_v31, 3 }
 0x2a8   :  { %v4473_v48 = vpop.f32.mrb[64].mxu0 }
 0x2a9   :  { %v7787_v35 = vpop.f32.mrb[65].mxu0 }
 0x2aa   :  { %v4476_v54 = vpop.f32.mrb[66].mxu0  ;;  %v4729_v35 = vrot.slane %v10851_v2, 2 }
 0x2ab   :  { %v10809_v45 = vpack.c.bf16 %v4476_v54, %v4473_v48  ;;  %v7788_v51 = vpop.f32.mrb[67].mxu0  ;;  %v4719_v48 = vsel %vm12579_vm13, %v4717_v5, %v4716_v23  ;;  %v4737_v54 = vsel %vm12580_vm14, %v4736_v42, %v4735_v21  ;;  %vm12593_vm13 = vmmov %vm12590_vm8 }
 0x2ac   :  { %v4722_v51 = vsel %vm12581_vm15, %v4720_v22, %v4719_v48  ;;  %v10900_v48 = vunpack.c.l.b16 %v10763_v52  ;;  %vm12594_vm14 = vmmov %vm12590_vm8 }
 0x2ad   :  { %12568 = vst [vmem:[#allocation29_spill] sm:$0xff] %v10809_v45  ;;  %v4725_v25 = vsel %vm4724_vm7, %v4723_v20, %v4722_v51  ;;  %vm12595_vm15 = vmmov %vm12590_vm8 }
 0x2ae   :  { %v4728_v43 = vsel %vm4727_vm2, %v4726_v56, %v4725_v25 }
 0x2af   :  { %v4731_v13 = vsel %vm4730_vm3, %v4729_v35, %v4728_v43 }
 0x2b0   :  { %v3901_v37 = vpop.f32.mrb[84].mxu1 }
 0x2b1   :  { %v7709_v16 = vpop.f32.mrb[85].mxu1 }
 0x2b2   :  { %v3904_v19 = vpop.f32.mrb[86].mxu1 }
 0x2b3   :  { %v10865_v59 = vpack.c.bf16 %v3904_v19, %v3901_v37  ;;  %v7710_v27 = vpop.f32.mrb[87].mxu1  ;;  %v4739_v37 = vsel %vm12582_vm1, %v4738_v55, %v4737_v54  ;;  %v10904_v54 = vunpack.c.l.b16 %v10770_v28  ;;  %vm12596_vm1 = vmmov %vm12592_vm12 }
 0x2b4   :  { %v4741_v57 = vsel %vm4724_vm7, %v4740_v26, %v4739_v37 }
 0x2b5   :  { %12574 = vst [vmem:[#allocation34_spill] sm:$0xff] %v10865_v59  ;;  %v10877_v38 = vunpack.c.l.b16 %v10865_v59  ;;  %v4743_v5 = vsel %vm4727_vm2, %v4742_v4, %v4741_v57 }
 0x2b7   :  { %v4744_v16 = vrot.slane %v10877_v38, 2 }
 0x2b9   :  { %v4745_v42 = vsel %vm4730_vm3, %v4744_v16, %v4743_v5  ;;  %v5102_v16 = vrot.slane %v10900_v48, 3 }
 0x2ba   :  { %v4561_v19 = vpop.f32.mrb[68].mxu0  ;;  %v4774_v22 = vpack.c.b16 %v4745_v42, %v4731_v13 }
 0x2bb   :  { %v7799_v27 = vpop.f32.mrb[69].mxu0 }
 0x2bc   :  { %v4564_v55 = vpop.f32.mrb[70].mxu0  ;;  %7809 = vmatprep.mubr.msk.bf16.mxu0 %vm12583_vm4, %v4774_v22  ;;  %v4980_v22 = vrot.slane %v10900_v48, 2  ;;  %vm12597_vm4 = vmmov %vm12596_vm1 }
 0x2bd   :  { %v10892_v20 = vpack.c.bf16 %v4564_v55, %v4561_v19  ;;  %v7800_v11 = vpop.f32.mrb[71].mxu0  ;;  %v4746_v19 = vrot.slane %v10900_v48, 1  ;;  %v4748_v55 = vrot.slane %v10904_v54, 7 }
 0x2be   :  { %v5105_v11 = vrot.slane %v10904_v54, 1 }
 0x2c7   :  { %v3989_v49 = vpop.f32.mrb[88].mxu1 }
 0x2c8   :  { %v7721_v26 = vpop.f32.mrb[89].mxu1 }
 0x2c9   :  { %v3992_v23 = vpop.f32.mrb[90].mxu1 }
 0x2ca   :  { %v10894_v56 = vpack.c.bf16 %v3992_v23, %v3989_v49  ;;  %v7722_v21 = vpop.f32.mrb[91].mxu1  ;;  %v5224_v49 = vrot.slane %v10900_v48, 4 }
 0x2cc   :  { %12584 = vst [vmem:[#allocation35_spill] sm:$0xff] %v10894_v56  ;;  %v10897_v4 = vunpack.c.l.b16 %v10894_v56 }
 0x2ce   :  { %v5103_v35 = vrot.slane %v10897_v4, 2  ;;  %v4862_v25 = vrot.slane %v10897_v4, 7  ;;  %v4981_v57 = vrot.slane %v10897_v4, 1  ;;  %v5225_v5 = vrot.slane %v10897_v4, 3 }
 0x2cf   :  { %v4747_v23 = vsel %vm12587_vm9, %v10897_v4, %v4746_v19  ;;  %vm12599_vm9 = vmmov %vm12590_vm8 }
 0x2d0   :  { %v5104_v27 = vsel %vm12586_vm5, %v5103_v35, %v5102_v16  ;;  %v4863_v21 = vsel %vm12588_vm10, %v4862_v25, %v10900_v48  ;;  %v5226_v16 = vsel %vm12591_vm11, %v5225_v5, %v5224_v49  ;;  %v4749_v25 = vsel %vm12593_vm13, %v4748_v55, %v4747_v23  ;;  %vm12598_vm5 = vmmov %vm12596_vm1 }
 0x2d1   :  { %v5106_v35 = vsel %vm12590_vm8, %v5105_v11, %v5104_v27  ;;  %vm12600_vm10 = vmmov %vm12596_vm1 }
 0x2d2   :  { %v4077_v51 = vpop.f32.mrb[92].mxu1  ;;  %vm12602_vm11 = vmmov %vm12596_vm1 }
 0x2d3   :  { %v7733_v37 = vpop.f32.mrb[93].mxu1 }
 0x2d4   :  { %v4080_v43 = vpop.f32.mrb[94].mxu1  ;;  %v4864_v37 = vrot.slane %v10904_v54, 6 }
 0x2d5   :  { %v10910_v13 = vpack.c.bf16 %v4080_v43, %v4077_v51  ;;  %v7734_v42 = vpop.f32.mrb[95].mxu1  ;;  %v4982_v51 = vsel %vm12589_vm6, %v4981_v57, %v4980_v22  ;;  %v5227_v43 = vrot.slane %v10904_v54, 2 }
 0x2d6   :  { %v4865_v57 = vsel %vm12594_vm14, %v4864_v37, %v4863_v21  ;;  %v4983_v22 = vsel %vm12595_vm15, %v10904_v54, %v4982_v51  ;;  %v5346_v21 = vrot.slane %v10900_v48, 5  ;;  %v5347_v51 = vrot.slane %v10897_v4, 4 }
 0x2d7   :  { %12585 = vst [vmem:[#allocation36_spill] sm:$0xff] %v10910_v13  ;;  %v10919_v26 = vunpack.c.l.b16 %v10910_v13  ;;  %v5228_v59 = vsel %vm12599_vm9, %v5227_v43, %v5226_v16  ;;  %vm12611_vm9 = vmmov %vm12590_vm8 }
 0x2d8   :  { %v5348_v16 = vsel %vm12589_vm6, %v5347_v51, %v5346_v21 }
 0x2d9   :  { %v4750_v42 = vrot.slane %v10919_v26, 6  ;;  %v4866_v13 = vrot.slane %v10919_v26, 5  ;;  %v4984_v56 = vrot.slane %v10919_v26, 7  ;;  %v5107_v19 = vsel %vm12592_vm12, %v10919_v26, %v5106_v35 }
 0x2da   :  { %v5229_v5 = vrot.slane %v10919_v26, 1  ;;  %v10946_v35 = vunpack.c.l.b16 %v10780_v44  ;;  %vm12603_vm12 = vcmask 1044484  }
 0x2db   :  { %v4751_v27 = vsel %vm12596_vm1, %v4750_v42, %v4749_v25  ;;  %v4867_v11 = vsel %vm12597_vm4, %v4866_v13, %v4865_v57  ;;  %v4985_v49 = vsel %vm12598_vm5, %v4984_v56, %v4983_v22  ;;  %v5349_v42 = vrot.slane %v10904_v54, 3  ;;  %vm12604_vm13 = vmmov %vm12603_vm12 }
 0x2dc   :  { %v5230_v24 = vsel %vm12600_vm10, %v5229_v5, %v5228_v59  ;;  %v5351_v13 = vrot.slane %v10919_v26, 2  ;;  %v4752_v59 = vrot.slane %v10946_v35, 5  ;;  %v5108_v43 = vrot.slane %v10946_v35, 7  ;;  %vm12605_vm14 = vmmov %vm12603_vm12 }
 0x2dd   :  { %v5350_v57 = vsel %vm12590_vm8, %v5349_v42, %v5348_v16  ;;  %v5353_v22 = vrot.slane %v10946_v35, 1  ;;  %vm12606_vm15 = vmmov %vm12603_vm12 }
 0x2de   :  { %v5352_v1 = vsel %vm12602_vm11, %v5351_v13, %v5350_v57  ;;  %v5109_v21 = vsel %vm12604_vm13, %v5108_v43, %v5107_v19  ;;  %vm12607_vm1 = vmmov %vm12603_vm12 }
 0x2df   :  { %v4165_v55 = vpop.f32.mrb[96].mxu1  ;;  %v5354_v51 = vsel %vm12605_vm14, %v5353_v22, %v5352_v1  ;;  %v10982_v22 = vunpack.c.l.b16 %v10785_v60  ;;  %vm12608_vm4 = vmmov %vm12607_vm1 }
 0x2e0   :  { %v7745_v23 = vpop.f32.mrb[97].mxu1  ;;  %vm12610_vm5 = vmmov %vm12589_vm6 }
 0x2e1   :  { %v4168_v37 = vpop.f32.mrb[98].mxu1  ;;  %v4868_v23 = vrot.slane %v10946_v35, 4  ;;  %vm12613_vm6 = vmmov %vm12607_vm1 }
 0x2e2   :  { %v10952_v25 = vpack.c.bf16 %v4168_v37, %v4165_v55  ;;  %v7746_v56 = vpop.f32.mrb[99].mxu1  ;;  %v4753_v55 = vsel %vm12603_vm12, %v4752_v59, %v4751_v27  ;;  %v4986_v37 = vrot.slane %v10946_v35, 6  ;;  %vm12614_vm8 = vmmov %vm12610_vm5 }
 0x2e3   :  { %v4869_v17 = vsel %vm12606_vm15, %v4868_v23, %v4867_v11  ;;  %v5231_v11 = vsel %vm12608_vm4, %v10946_v35, %v5230_v24  ;;  %v5234_v24 = vrot.slane %v10982_v22, 6  ;;  %vm12615_vm11 = vmmov %vm12611_vm9 }
 0x2e4   :  { %12601 = vst [vmem:[#allocation37_spill] sm:$0xff] %v10952_v25  ;;  %v10960_v5 = vunpack.c.l.b16 %v10952_v25  ;;  %v4987_v13 = vsel %vm12607_vm1, %v4986_v37, %v4985_v49  ;;  %vm12616_vm12 = vmmov %vm12600_vm10 }
 0x2e5   :  { %vm12618_vm13 = vmmov %vm12607_vm1 }
 0x2e6   :  { %v4754_v56 = vrot.slane %v10960_v5, 4  ;;  %v4870_v42 = vrot.slane %v10960_v5, 3  ;;  %v4988_v16 = vrot.slane %v10960_v5, 5  ;;  %v5110_v25 = vrot.slane %v10960_v5, 6  ;;  %vm12619_vm14 = vmmov %vm12610_vm5 }
 0x2e7   :  { %v5232_v27 = vrot.slane %v10960_v5, 7  ;;  %v5355_v59 = vsel %vm4724_vm7, %v10960_v5, %v5354_v51  ;;  %v10988_v51 = vunpack.c.l.b16 %v10789_v15  ;;  %vm12620_vm15 = vmmov %vm12611_vm9 }
 0x2e8   :  { %v4755_v19 = vsel %vm4724_vm7, %v4754_v56, %v4753_v55  ;;  %v4871_v1 = vsel %vm4724_vm7, %v4870_v42, %v4869_v17  ;;  %v4989_v43 = vsel %vm4724_vm7, %v4988_v16, %v4987_v13  ;;  %v5111_v57 = vsel %vm4724_vm7, %v5110_v25, %v5109_v21  ;;  %vm12621_vm1 = vmmov %vm12600_vm10 }
 0x2e9   :  { %v4253_v49 = vpop.f32.mrb[100].mxu1  ;;  %v5233_v23 = vsel %vm4724_vm7, %v5232_v27, %v5231_v11  ;;  %v4756_v56 = vrot.slane %v10982_v22, 3  ;;  %v4872_v25 = vrot.slane %v10982_v22, 2  ;;  %v4990_v21 = vrot.slane %v10982_v22, 4 }
 0x2ea   :  { %v7757_v37 = vpop.f32.mrb[101].mxu1  ;;  %v5112_v42 = vrot.slane %v10982_v22, 5  ;;  %v5356_v16 = vrot.slane %v10982_v22, 7  ;;  %v10999_v13 = vunpack.c.l.b16 %v10793_v33  ;;  %v5238_v62 = vrot.slane %v10988_v51, 4 }
 0x2eb   :  { %v4256_v6 = vpop.f32.mrb[102].mxu1  ;;  %v4873_v11 = vsel %vm4727_vm2, %v4872_v25, %v4871_v1  ;;  %v5360_v29 = vrot.slane %v10988_v51, 5 }
 0x2ec   :  { %v10990_v55 = vpack.c.bf16 %v4256_v6, %v4253_v49  ;;  %v7758_v17 = vpop.f32.mrb[103].mxu1  ;;  %v4757_v6 = vsel %vm4727_vm2, %v4756_v56, %v4755_v19  ;;  %v4991_v49 = vsel %vm4727_vm2, %v4990_v21, %v4989_v43  ;;  %v5113_v37 = vsel %vm4727_vm2, %v5112_v42, %v5111_v57 }
 0x2ed   :  { %v5235_v17 = vsel %vm4727_vm2, %v5234_v24, %v5233_v23  ;;  %v5357_v60 = vsel %vm4727_vm2, %v5356_v16, %v5355_v59  ;;  %v5468_v43 = vrot.slane %v10900_v48, 6  ;;  %v5469_v57 = vrot.slane %v10897_v4, 5 }
 0x2ee   :  { %12609 = vst [vmem:[#allocation38_spill] sm:$0xff] %v10990_v55  ;;  %v11002_v27 = vunpack.c.l.b16 %v10990_v55  ;;  %v5473_v16 = vrot.slane %v10919_v26, 3  ;;  %v5241_v3 = vrot.slane %v10999_v13, 2  ;;  %v5363_v12 = vrot.slane %v10999_v13, 3 }
 0x2ef   :  { %v5470_v24 = vsel %vm12610_vm5, %v5469_v57, %v5468_v43  ;;  %v4840_v43 = vrot.slane %v10830_v34, 4  ;;  %v5485_v10 = vrot.slane %v10999_v13, 4 }
 0x2f0   :  { %v4758_v44 = vrot.slane %v11002_v27, 2  ;;  %v4874_v33 = vrot.slane %v11002_v27, 1  ;;  %v4992_v15 = vrot.slane %v11002_v27, 3  ;;  %v5114_v55 = vrot.slane %v11002_v27, 4 }
 0x2f1   :  { %v5236_v19 = vrot.slane %v11002_v27, 5  ;;  %v5358_v1 = vrot.slane %v11002_v27, 6  ;;  %v5480_v58 = vrot.slane %v11002_v27, 7 }
 0x2f2   :  { %v11019_v23 = vsel %vm4730_vm3, %v4758_v44, %v4757_v6  ;;  %v11022_v59 = vsel %vm4730_vm3, %v4874_v33, %v4873_v11  ;;  %v11025_v56 = vsel %vm4730_vm3, %v4992_v15, %v4991_v49  ;;  %v11028_v25 = vsel %vm4730_vm3, %v5114_v55, %v5113_v37 }
 0x2f3   :  { %v11031_v21 = vsel %vm4730_vm3, %v5236_v19, %v5235_v17  ;;  %v11034_v42 = vsel %vm4730_vm3, %v5358_v1, %v5357_v60  ;;  %v5471_v44 = vrot.slane %v10904_v54, 4  ;;  %v4760_v6 = vrot.slane %v10988_v51, 1 }
 0x2f4   :  { %v4834_v15 = vrot.slane %v10839_v63, 7  ;;  %v5477_v55 = vrot.slane %v10960_v5, 1  ;;  %v4836_v37 = vrot.slane %v10812_v30, 6  ;;  %v5475_v17 = vrot.slane %v10946_v35, 2 }
 0x2f5   :  { %v4341_v33 = vpop.f32.mrb[104].mxu1  ;;  %v5472_v60 = vsel %vm12611_vm9, %v5471_v44, %v5470_v24  ;;  %v4838_v1 = vrot.slane %v10821_v14, 5  ;;  %v4842_v49 = vrot.slane %v10833_v9, 3  ;;  %vm12622_vm9 = vmmov %vm12610_vm5 }
 0x2f6   :  { %v7769_v11 = vpop.f32.mrb[105].mxu1  ;;  %v5474_v57 = vsel %vm12600_vm10, %v5473_v16, %v5472_v60  ;;  %v4835_v44 = vsel %vm12614_vm8, %v4834_v15, %v10818_v18  ;;  %v4846_v15 = vrot.slane %v10851_v2, 1  ;;  %vm12624_vm10 = vmmov %vm12610_vm5 }
 0x2f7   :  { %v4344_v19 = vpop.f32.mrb[106].mxu1  ;;  %v5476_v24 = vsel %vm12613_vm6, %v5475_v17, %v5474_v57  ;;  %v4854_v57 = vrot.slane %v10836_v53, 4  ;;  %vm12626_vm6 = vmmov %vm12615_vm11 }
 0x2f8   :  { %v11050_v28 = vpack.c.bf16 %v4344_v19, %v4341_v33  ;;  %v7770_v11 = vpop.f32.mrb[107].mxu1  ;;  %v5478_v16 = vsel %vm4724_vm7, %v5477_v55, %v5476_v24  ;;  %v4837_v33 = vsel %vm12615_vm11, %v4836_v37, %v4835_v44  ;;  %v4852_v19 = vrot.slane %v10827_v47, 5  ;;  %vm12627_vm8 = vmmov %vm12626_vm6 }
 0x2f9   :  { %v5479_v11 = vsel %vm4727_vm2, %v10982_v22, %v5478_v16  ;;  %v4839_v17 = vsel %vm12616_vm12, %v4838_v1, %v4837_v33  ;;  %v4849_v24 = vsel %vm12619_vm14, %v4848_v41, %v10824_v0  ;;  %v4856_v37 = vrot.slane %v10848_v40, 3  ;;  %vm12628_vm11 = vmmov %vm12610_vm5 }
 0x2fa   :  { %12612 = vst [vmem:[#allocation39_spill] sm:$0xff] %v11050_v28  ;;  %v11061_v60 = vunpack.c.l.b16 %v11050_v28  ;;  %v11071_v52 = vsel %vm4730_vm3, %v5480_v58, %v5479_v11  ;;  %v4841_v55 = vsel %vm12618_vm13, %v4840_v43, %v4839_v17  ;;  %v4858_v44 = vrot.slane %v10854_v31, 2  ;;  %vm12629_vm12 = vmmov %vm12626_vm6 }
 0x2fb   :  { %12617 = vst [vmem:[#allocation40_spill] sm:$0xff] %v11071_v52  ;;  %v4843_v16 = vsel %vm4724_vm7, %v4842_v49, %v4841_v55  ;;  %v4851_v1 = vsel %vm12620_vm15, %v4850_v46, %v4849_v24  ;;  %v11082_v33 = vsel %vm370_vm0, %v10805_v36, 0  ;;  %v4878_v41 = vrot.slane %v10999_v13, 6  ;;  %vm12630_vm13 = vmmov %vm12610_vm5 }
 0x2fc   :  { %v4876_v58 = vrot.slane %v11061_v60, 7  ;;  %v4845_v11 = vsel %vm4727_vm2, %v4844_v50, %v4843_v16  ;;  %v4853_v43 = vsel %vm12621_vm1, %v4852_v19, %v4851_v1  ;;  %v5117_v17 = vrot.slane %v11061_v60, 2  ;;  %vm12631_vm14 = vmmov %vm12610_vm5 }
 0x2fd   :  { %v11090_v28 = vunpack.c.l.b16 %v10809_v45  ;;  %v11093_v46 = vsel %vm4730_vm3, %v4846_v15, %v4845_v11  ;;  %v4855_v36 = vsel %vm12608_vm4, %v4854_v57, %v4853_v43  ;;  %v4994_v55 = vrot.slane %v10988_v51, 2  ;;  %vm12632_vm15 = vmmov %vm12610_vm5 }
 0x2fe   :  { %v4761_v50 = vsel %vm12610_vm5, %v11061_v60, %v4760_v6  ;;  %v4995_v19 = vrot.slane %v11061_v60, 1  ;;  %v5116_v16 = vrot.slane %v10988_v51, 3  ;;  %v5119_v1 = vrot.slane %v10999_v13, 1  ;;  %vm12633_vm4 = vmmov %vm12626_vm6 }
 0x2ff   :  { %v4429_v49 = vpop.f32.mrb[108].mxu1  ;;  %v4877_v39 = vsel %vm12622_vm9, %v4876_v58, %v10988_v51  ;;  %v5239_v15 = vrot.slane %v11061_v60, 3  ;;  %v5361_v57 = vrot.slane %v11061_v60, 4  ;;  %v5483_v11 = vrot.slane %v11061_v60, 5  ;;  %vm12634_vm5 = vmmov %vm12621_vm1 }
 0x300   :  { %v7781_v24 = vpop.f32.mrb[109].mxu1  ;;  %v5118_v6 = vsel %vm12624_vm10, %v5117_v17, %v5116_v16  ;;  %v5482_v58 = vrot.slane %v10988_v51, 6  ;;  %v4879_v17 = vsel %vm12627_vm8, %v4878_v41, %v4877_v39  ;;  %v4996_v16 = vsel %vm12628_vm11, %v4995_v19, %v4994_v55  ;;  %vm12635_vm9 = vmmov %vm12621_vm1 }
 0x301   :  { %v4432_v45 = vpop.f32.mrb[110].mxu1  ;;  %v5240_v2 = vsel %vm12630_vm13, %v5239_v15, %v5238_v62  ;;  %v5362_v61 = vsel %vm12631_vm14, %v5361_v57, %v5360_v29  ;;  %v4997_v39 = vsel %vm12633_vm4, %v10999_v13, %v4996_v16  ;;  %vm12636_vm10 = vmmov %vm12621_vm1  ;;  %v4857_v57 = vsel %vm4724_vm7, %v4856_v37, %v4855_v36 }
 0x302   :  { %v11107_v43 = vpack.c.bf16 %v4432_v45, %v4429_v49  ;;  %v7782_v24 = vpop.f32.mrb[111].mxu1  ;;  %v12625_v45 = vrot.slane %v10999_v13, 7  ;;  %v5484_v30 = vsel %vm12632_vm15, %v5483_v11, %v5482_v58  ;;  %vm12638_vm8 = vmmov %vm12621_vm1  ;;  %v4859_v16 = vsel %vm4727_vm2, %v4858_v44, %v4857_v57 }
 0x303   :  { %v5120_v24 = vsel %vm12629_vm12, %v5119_v1, %v5118_v6  ;;  %vm12639_vm11 = vmmov %vm12633_vm4  ;;  %v5000_v37 = vrot.slane %v11090_v28, 6  ;;  %v5591_v44 = vrot.slane %v10897_v4, 6 }
 0x304   :  { %12623 = vst [vmem:[#allocation41_spill] sm:$0xff] %v11107_v43  ;;  %v11117_v7 = vunpack.c.l.b16 %v11107_v43  ;;  %v4763_v49 = vsel %vm12626_vm6, %v12625_v45, %v4761_v50  ;;  %vm12637_vm6 = vmmov %vm12633_vm4  ;;  %v5364_v6 = vsel %vm12639_vm11, %v5363_v12, %v5362_v61  ;;  %v4766_v45 = vrot.slane %v11090_v28, 5 }
 0x305   :  { %v5242_v15 = vsel %vm12637_vm6, %v5241_v3, %v5240_v2  ;;  %vm12640_vm12 = vmmov %vm12633_vm4  ;;  %v4860_v3 = vrot.slane %v10877_v38, 1  ;;  %v4882_v2 = vrot.slane %v11090_v28, 4  ;;  %v5590_v61 = vrot.slane %v10900_v48, 7 }
 0x306   :  { %v4764_v9 = vrot.slane %v11117_v7, 6  ;;  %v4880_v43 = vrot.slane %v11117_v7, 5  ;;  %v4998_v31 = vrot.slane %v11117_v7, 7  ;;  %v5121_v50 = vsel %vm12621_vm1, %v11117_v7, %v5120_v24  ;;  %vm12641_vm13 = vmmov %vm12621_vm1 }
 0x307   :  { %v5243_v41 = vrot.slane %v11117_v7, 1  ;;  %v5365_v62 = vrot.slane %v11117_v7, 2  ;;  %v5487_v29 = vrot.slane %v11117_v7, 3  ;;  %v5486_v58 = vsel %vm12640_vm12, %v5485_v10, %v5484_v30  ;;  %vm12642_vm14 = vmmov %vm12621_vm1 }
 0x308   :  { %v4765_v55 = vsel %vm12634_vm5, %v4764_v9, %v4763_v49  ;;  %v4881_v19 = vsel %vm12635_vm9, %v4880_v43, %v4879_v17  ;;  %v4999_v1 = vsel %vm12636_vm10, %v4998_v31, %v4997_v39  ;;  %v11151_v31 = vunpack.c.l.b16 %v10892_v20  ;;  %vm12643_vm1 = vmmov %vm12633_vm4 }
 0x309   :  { %v5244_v11 = vsel %vm12638_vm8, %v5243_v41, %v5242_v15  ;;  %v5366_v9 = vsel %vm12641_vm13, %v5365_v62, %v5364_v6  ;;  %v5488_v43 = vsel %vm12642_vm14, %v5487_v29, %v5486_v58  ;;  %v5122_v10 = vrot.slane %v11090_v28, 7  ;;  %vm12646_vm9 = vmmov %vm12638_vm8 }
 0x30a   :  { %v5367_v30 = vrot.slane %v11090_v28, 1  ;;  %v5489_v49 = vrot.slane %v11090_v28, 2  ;;  %v5593_v17 = vrot.slane %v10904_v54, 5  ;;  %v5595_v24 = vrot.slane %v10919_v26, 4  ;;  %vm12647_vm10 = vmmov %vm12632_vm15 }
 0x30b   :  { %v5597_v39 = vrot.slane %v10946_v35, 3  ;;  %v5592_v62 = vsel %vm12632_vm15, %v5591_v44, %v5590_v61  ;;  %v5599_v29 = vrot.slane %v10960_v5, 2  ;;  %v5604_v15 = vrot.slane %v10988_v51, 7  ;;  %vm12650_vm11 = vmmov %vm12643_vm1 }
 0x30c   :  { %v4517_v12 = vpop.f32.mrb[112].mxu1  ;;  %v5605_v48 = vrot.slane %v11061_v60, 6  ;;  %v5594_v6 = vsel %vm12643_vm1, %v5593_v17, %v5592_v62  ;;  %v5607_v54 = vrot.slane %v10999_v13, 5  ;;  %v5609_v26 = vrot.slane %v11117_v7, 4  ;;  %vm12653_vm14 = vmmov %vm12646_vm9 }
 0x30d   :  { %v7793_v36 = vpop.f32.mrb[113].mxu1  ;;  %vm12644_vm4 = vcmask 1044484   ;;  %v5596_v61 = vsel %vm12646_vm9, %v5595_v24, %v5594_v6 }
 0x30e   :  { %v4520_v41 = vpop.f32.mrb[114].mxu1  ;;  %v4767_v35 = vsel %vm12644_vm4, %v4766_v45, %v4765_v55  ;;  %vm12645_vm5 = vmmov %vm12644_vm4  ;;  %v5606_v5 = vsel %vm12647_vm10, %v5605_v48, %v5604_v15 }
 0x30f   :  { %v11168_v57 = vpack.c.bf16 %v4520_v41, %v4517_v12  ;;  %v7794_v4 = vpop.f32.mrb[115].mxu1  ;;  %v5123_v58 = vsel %vm12645_vm5, %v5122_v10, %v5121_v50  ;;  %vm12648_vm6 = vmmov %vm12644_vm4  ;;  %v5608_v44 = vsel %vm12650_vm11, %v5607_v54, %v5606_v5  ;;  %v5611_v54 = vrot.slane %v11090_v28, 3 }
 0x310   :  { %v4883_v60 = vsel %vm12648_vm6, %v4882_v2, %v4881_v19  ;;  %vm12649_vm8 = vmmov %vm12644_vm4  ;;  %v5610_v50 = vsel %vm12653_vm14, %v5609_v26, %v5608_v44  ;;  %v5601_v2 = vrot.slane %v10982_v22, 1  ;;  %vm12660_vm5 = vcmask 64512  }
 0x311   :  { %v4708_v51 = vunpack.c.l.b16 %v11168_v57  ;;  %v5598_v12 = vsel %vm12649_vm8, %v5597_v39, %v5596_v61  ;;  %vm12651_vm12 = vmmov %vm12644_vm4  ;;  %v4886_v61 = vrot.slane %v11151_v31, 2 }
 0x312   :  { %v5001_v13 = vsel %vm12651_vm12, %v5000_v37, %v4999_v1  ;;  %vm12652_vm13 = vmmov %vm12644_vm4  ;;  %v5600_v55 = vsel %vm4724_vm7, %v5599_v29, %v5598_v12  ;;  %v5126_v12 = vrot.slane %v11151_v31, 5 }
 0x313   :  { %v5368_v7 = vsel %vm12652_vm13, %v5367_v30, %v5366_v9  ;;  %v4768_v45 = vrot.slane %v4708_v51, 4  ;;  %v4884_v10 = vrot.slane %v4708_v51, 3  ;;  %v5002_v36 = vrot.slane %v4708_v51, 5  ;;  %vm12654_vm15 = vmmov %vm12644_vm4 }
 0x314   :  { %v5124_v17 = vrot.slane %v4708_v51, 6  ;;  %v5246_v24 = vrot.slane %v4708_v51, 7  ;;  %v5369_v41 = vsel %vm4724_vm7, %v4708_v51, %v5368_v7  ;;  %v5491_v19 = vrot.slane %v4708_v51, 1  ;;  %vm12655_vm1 = vmmov %vm12644_vm4 }
 0x315   :  { %v4769_v39 = vsel %vm4724_vm7, %v4768_v45, %v4767_v35  ;;  %v4885_v1 = vsel %vm4724_vm7, %v4884_v10, %v4883_v60  ;;  %v5003_v9 = vsel %vm4724_vm7, %v5002_v36, %v5001_v13  ;;  %v11192_v30 = vsel %vm4730_vm3, %v4860_v3, %v4859_v16  ;;  %vm12657_vm4 = vmmov %vm12655_vm1 }
 0x316   :  { %v5125_v37 = vsel %vm4724_vm7, %v5124_v17, %v5123_v58  ;;  %v5245_v62 = vsel %vm12654_vm15, %v11090_v28, %v5244_v11  ;;  %v5490_v29 = vsel %vm12655_vm1, %v5489_v49, %v5488_v43  ;;  %v5602_v15 = vsel %vm4727_vm2, %v5601_v2, %v5600_v55  ;;  %v4605_v48 = vpop.f32.mrb[116].mxu1  ;;  %vm12661_vm9 = vmmov %vm12660_vm5 }
 0x317   :  { %v5247_v22 = vsel %vm4724_vm7, %v5246_v24, %v5245_v62  ;;  %v5492_v4 = vsel %vm4724_vm7, %v5491_v19, %v5490_v29  ;;  %v11202_v6 = vsel %vm4730_vm3, %v11002_v27, %v5602_v15  ;;  %v7805_v16 = vpop.f32.mrb[117].mxu1  ;;  %v4953_v3 = vrot.slane %v10839_v63, 1  ;;  %vm12662_vm6 = vmmov %vm12650_vm11 }
 0x318   :  { %12656 = vst [vmem:[#allocation42_spill] sm:$0xff] %v11202_v6  ;;  %v4966_v11 = vrot.slane %v10824_v0, 2  ;;  %v4967_v43 = vrot.slane %v10845_v8, 1  ;;  %v5613_v49 = vrot.slane %v4708_v51, 2  ;;  %v4608_v26 = vpop.f32.mrb[118].mxu1  ;;  %v4770_v35 = vrot.slane %v11151_v31, 3  ;;  %vm12664_vm8 = vmmov %vm12647_vm10 }
 0x319   :  { %v4890_v58 = vpack.c.b16 %v11192_v30, %v11093_v46  ;;  %v5612_v27 = vsel %vm12657_vm4, %v5611_v54, %v5610_v50  ;;  %v11213_v5 = vpack.c.bf16 %v4608_v26, %v4605_v48  ;;  %v7806_v28 = vpop.f32.mrb[119].mxu1  ;;  %v5004_v60 = vrot.slane %v11151_v31, 4  ;;  %vm12666_vm11 = vmmov %vm12653_vm14 }
 0x31a   :  { %v5614_v44 = vsel %vm4724_vm7, %v5613_v49, %v5612_v27  ;;  %v4771_v51 = vsel %vm4727_vm2, %v4770_v35, %v4769_v39  ;;  %v5248_v13 = vrot.slane %v11151_v31, 6  ;;  %v5370_v7 = vrot.slane %v11151_v31, 7  ;;  %v7355_v49 = vld [vmem:[%s12347_s5 + $0x8] sm:$0xf]  ;;  %vm12668_vm12 = vmmov %vm12662_vm6 }
 0x31b   :  { %v5615_v46 = vrot.slane %v11151_v31, 1  ;;  %v4710_v55 = vunpack.c.l.b16 %v11213_v5  ;;  %v4887_v50 = vsel %vm4727_vm2, %v4886_v61, %v4885_v1  ;;  %v5005_v45 = vsel %vm4727_vm2, %v5004_v60, %v5003_v9  ;;  %vm12670_vm13 = vmmov %vm12655_vm1  ;;  %v12693_v60 = vld [vmem:[#allocation27_spill] sm:$0xff] }
 0x31c   :  { %v5127_v10 = vsel %vm4727_vm2, %v5126_v12, %v5125_v37  ;;  %v5249_v36 = vsel %vm4727_vm2, %v5248_v13, %v5247_v22  ;;  %v5371_v17 = vsel %vm4727_vm2, %v5370_v7, %v5369_v41  ;;  %v5493_v24 = vsel %vm4727_vm2, %v11151_v31, %v5492_v4  ;;  %vm12671_vm14 = vmmov %vm12666_vm11 }
 0x31d   :  { %v5616_v19 = vsel %vm4727_vm2, %v5615_v46, %v5614_v44  ;;  %v4772_v2 = vrot.slane %v4710_v55, 2  ;;  %v4888_v39 = vrot.slane %v4710_v55, 1  ;;  %v5006_v30 = vrot.slane %v4710_v55, 3  ;;  %vm12673_vm15 = vmmov %vm12655_vm1 }
 0x31e   :  { %v5128_v62 = vrot.slane %v4710_v55, 4  ;;  %v5250_v29 = vrot.slane %v4710_v55, 5  ;;  %v5372_v15 = vrot.slane %v4710_v55, 6  ;;  %v5494_v1 = vrot.slane %v4710_v55, 7  ;;  %vm12678_vm1 = vmmov %vm12660_vm5 }
 0x31f   :  { %v11232_v9 = vsel %vm4730_vm3, %v4710_v55, %v5616_v19  ;;  %v4773_v37 = vsel %vm4730_vm3, %v4772_v2, %v4771_v51  ;;  %v4889_v48 = vsel %vm4730_vm3, %v4888_v39, %v4887_v50  ;;  %v11237_v41 = vsel %vm4730_vm3, %v5006_v30, %v5005_v45  ;;  %v12665_v45 = vld [vmem:[#allocation30_spill] sm:$0xff]  ;;  %v12672_v30 = vld [vmem:[#allocation32_spill] sm:$0xff]  ;;  %vm12681_vm4 = vmmov %vm12678_vm1 }
 0x320   :  { %12658 = vst [vmem:[#allocation43_spill] sm:$0xff] %v11232_v9  ;;  %v11240_v31 = vsel %vm4730_vm3, %v5128_v62, %v5127_v10  ;;  %v4775_v22 = vpack.c.b16 %v4773_v37, %v11019_v23  ;;  %v4891_v4 = vpack.c.b16 %v4889_v48, %v11022_v59  ;;  %v5009_v54 = vpack.c.b16 %v11237_v41, %v11025_v56 }
 0x321   :  { %v11252_v26 = vsel %vm4730_vm3, %v5250_v29, %v5249_v36  ;;  %v11255_v35 = vsel %vm4730_vm3, %v5372_v15, %v5371_v17  ;;  %v11258_v23 = vsel %vm4730_vm3, %v5494_v1, %v5493_v24  ;;  %v4970_v61 = vrot.slane %v10827_v47, 7  ;;  %v12669_v24 = vld [vmem:[#allocation31_spill] sm:$0xff] }
 0x322   :  { %12659 = vst [vmem:[#allocation44_spill] sm:$0xff] %v11258_v23  ;;  %7810 = vmatmul.mubr.msk.bf16.vlgmr.msra.gmra.mrb[72].mxu0 %vm12660_vm5, %v4775_v22  ;;  %v4972_v12 = vrot.slane %v10836_v53, 6  ;;  %v4952_v44 = vrot.slane %v10818_v18, 2  ;;  %v4956_v51 = vrot.slane %v10821_v14, 7  ;;  %v4968_v13 = vsel %vm12647_vm10, %v4967_v43, %v4966_v11  ;;  %v12667_v43 = vld [vmem:[#allocation21_spill] sm:$0xff]  ;;  %vm12683_vm5 = vmmov %vm12664_vm8 }
 0x323   :  { %7815 = vmatprep.mubr.msk.bf16.mxu0 %vm12661_vm9, %v4890_v58  ;;  %7814 = vmatpush3.bf16.msra.mxu0 %v11082_v33  ;;  %v4974_v7 = vrot.slane %v10848_v40, 5  ;;  %v4958_v46 = vrot.slane %v10830_v34, 6  ;;  %v4969_v55 = vsel %vm12662_vm6, %v10815_v32, %v4968_v13  ;;  %v12663_v58 = vld [vmem:[#allocation33_spill] sm:$0xff]  ;;  %v4960_v10 = vrot.slane %v12665_v45, 5  ;;  %v12675_v13 = vld [vmem:[#allocation8_spill] sm:$0xff]  ;;  %vm12685_vm9 = vmmov %vm12662_vm6 }
 0x324   :  { %7983 = vmatprep.subr.msk.bf16.mxu0 %vm370_vm0, %v7355_v49  ;;  %v4976_v50 = vrot.slane %v12663_v58, 4  ;;  %v4954_v33 = vsel %vm12664_vm8, %v4953_v3, %v4952_v44  ;;  %v4971_v36 = vsel %vm12666_vm11, %v4970_v61, %v4969_v55  ;;  %v4978_v11 = vrot.slane %v10877_v38, 3  ;;  %v12674_v44 = vld [vmem:[#allocation25_spill] sm:$0xff]  ;;  %vm12686_vm10 = vmmov %vm12683_vm5 }
 0x325   :  { %v4955_v17 = vsel %vm12668_vm12, %v12667_v43, %v4954_v33  ;;  %v4962_v19 = vrot.slane %v12669_v24, 4  ;;  %v4973_v2 = vsel %vm12670_vm13, %v4972_v12, %v4971_v36  ;;  %v4964_v62 = vrot.slane %v12672_v30, 3  ;;  %v12676_v33 = vld [vmem:[#allocation26_spill] sm:$0xff]  ;;  %v12677_v36 = vld [vmem:[#allocation24_spill] sm:$0xff]  ;;  %vm12687_vm6 = vmmov %vm12666_vm11 }
 0x326   :  { %v4957_v39 = vsel %vm12671_vm14, %v4956_v51, %v4955_v17  ;;  %v4975_v29 = vsel %vm4724_vm7, %v4974_v7, %v4973_v2  ;;  %v5017_v61 = vsel %vm370_vm0, %v7355_v49, 0  ;;  %v5089_v12 = vrot.slane %v10845_v8, 2  ;;  %vm12689_vm8 = vmmov %vm12685_vm9 }
 0x327   :  { %v4959_v3 = vsel %vm12673_vm15, %v4958_v46, %v4957_v39  ;;  %v4977_v15 = vsel %vm4727_vm2, %v4976_v50, %v4975_v29  ;;  %v11304_v51 = vunpack.c.h.b16 %v12674_v44  ;;  %v11307_v7 = vunpack.c.h.b16 %v12675_v13  ;;  %v7358_v50 = vld [vmem:[%s12347_s5 + $0xc] sm:$0xf]  ;;  %v12680_v39 = vld [vmem:[#allocation13_spill] sm:$0xff]  ;;  %vm12690_vm11 = vmmov %vm12670_vm13 }
 0x328   :  { %v4961_v1 = vsel %vm4724_vm7, %v4960_v10, %v4959_v3  ;;  %v4979_v37 = vsel %vm4730_vm3, %v4978_v11, %v4977_v15  ;;  %v5091_v55 = vrot.slane %v10815_v32, 1  ;;  %v11314_v10 = vunpack.c.h.b16 %v12676_v33  ;;  %v12682_v15 = vld [vmem:[#allocation9_spill] sm:$0xff]  ;;  %vm12692_vm12 = vmmov %vm12687_vm6 }
 0x329   :  { %v4963_v48 = vsel %vm4727_vm2, %v4962_v19, %v4961_v1  ;;  %v11317_v49 = vunpack.c.h.b16 %v12677_v36  ;;  %v5075_v11 = vrot.slane %v10839_v63, 2  ;;  %v5088_v17 = vrot.slane %v10824_v0, 3  ;;  %v12679_v19 = vld [vmem:[#allocation10_spill] sm:$0xff]  ;;  %vm12695_vm13 = vmmov %vm12690_vm11 }
 0x32a   :  { %v4965_v22 = vsel %vm4730_vm3, %v4964_v62, %v4963_v48  ;;  %v11323_v2 = vunpack.c.h.b16 %v12679_v19  ;;  %v11326_v62 = vunpack.c.h.b16 %v12680_v39  ;;  %v5077_v29 = vrot.slane %v12667_v43, 1  ;;  %v12688_v19 = vld [vmem:[#allocation11_spill] sm:$0xff]  ;;  %vm12697_vm14 = vmmov %vm12678_vm1 }
 0x32b   :  { %v5008_v46 = vpack.c.b16 %v4979_v37, %v4965_v22  ;;  %v5094_v3 = vrot.slane %v10836_v53, 7  ;;  %v11332_v1 = vunpack.c.h.b16 %v12682_v15  ;;  %v5090_v37 = vsel %vm12683_vm5, %v5089_v12, %v5088_v17  ;;  %v12684_v22 = vld [vmem:[#allocation28_spill] sm:$0xff]  ;;  %vm12698_vm15 = vmmov %vm12678_vm1 }
 0x32c   :  { %v5096_v48 = vrot.slane %v10848_v40, 6  ;;  %v11339_v44 = vunpack.c.h.b16 %v12684_v22  ;;  %v5092_v13 = vsel %vm12685_vm9, %v5091_v55, %v5090_v37  ;;  %v5082_v36 = vrot.slane %v12665_v45, 6  ;;  %v12691_v37 = vld [vmem:[#allocation18_spill] sm:$0xff]  ;;  %vm12703_vm9 = vmmov %vm12687_vm6 }
 0x32d   :  { %v5093_v12 = vsel %vm12687_vm6, %v10827_v47, %v5092_v13  ;;  %v5100_v17 = vrot.slane %v10877_v38, 4  ;;  %v11350_v39 = vunpack.c.h.b16 %v12688_v19  ;;  %v5084_v22 = vrot.slane %v12669_v24, 5  ;;  %v12694_v19 = vld [vmem:[#allocation19_spill] sm:$0xff]  ;;  %vm12706_vm6 = vmmov %vm12690_vm11 }
 0x32e   :  { %7816 = vmatmul.mubr.msk.bf16.vlgmr.msra.gmra.mrb[72].mxu0 %vm12678_vm1, %v4891_v4  ;;  %v5074_v4 = vrot.slane %v10818_v18, 3  ;;  %v5095_v55 = vsel %vm12690_vm11, %v5094_v3, %v5093_v12  ;;  %v11356_v59 = vunpack.c.h.b16 %v12691_v37  ;;  %v11363_v28 = vunpack.c.h.b16 %v12693_v60  ;;  %vm12699_vm1 = vmmov %vm12683_vm5 }
 0x32f   :  { %7821 = vmatprep.mubr.msk.bf16.mxu0 %vm12681_vm4, %v5008_v46  ;;  %7820 = vmatpush3.bf16.msra.mxu0 %v5017_v61  ;;  %v5080_v61 = vrot.slane %v10830_v34, 7  ;;  %v5098_v46 = vrot.slane %v12663_v58, 5  ;;  %v5097_v13 = vsel %vm4724_vm7, %v5096_v48, %v5095_v55  ;;  %v11366_v27 = vunpack.c.h.b16 %v12694_v19  ;;  %vm12701_vm4 = vmmov %vm12689_vm8 }
 0x330   :  { %7984 = vmatprep.subr.msk.bf16.mxu0 %vm370_vm0, %v7358_v50  ;;  %v5076_v33 = vsel %vm12686_vm10, %v5075_v11, %v5074_v4  ;;  %v5086_v4 = vrot.slane %v12672_v30, 4  ;;  %v5213_v60 = vrot.slane %v10815_v32, 2  ;;  %v5196_v56 = vrot.slane %v10818_v18, 4  ;;  %vm12702_vm5 = vmmov %vm12699_vm1 }
 0x331   :  { %v5078_v15 = vsel %vm12689_vm8, %v5077_v29, %v5076_v33  ;;  %v5099_v3 = vsel %vm4727_vm2, %v5098_v46, %v5097_v13  ;;  %v5211_v13 = vrot.slane %v10845_v8, 3  ;;  %v5201_v41 = vrot.slane %v10821_v14, 1  ;;  %vm12705_vm10 = vmmov %vm12701_vm4 }
 0x332   :  { %v5079_v11 = vsel %vm12692_vm12, %v10821_v14, %v5078_v15  ;;  %v5101_v37 = vsel %vm4730_vm3, %v5100_v17, %v5099_v3  ;;  %v5218_v55 = vrot.slane %v10848_v40, 7  ;;  %v5204_v12 = vrot.slane %v12665_v45, 7  ;;  %vm12708_vm8 = vmmov %vm12703_vm9 }
 0x333   :  { %v5081_v29 = vsel %vm12695_vm13, %v5080_v61, %v5079_v11  ;;  %v5139_v11 = vsel %vm370_vm0, %v7358_v50, 0  ;;  %v5197_v50 = vrot.slane %v10839_v63, 3  ;;  %v5199_v61 = vrot.slane %v12667_v43, 2  ;;  %vm12712_vm11 = vmmov %vm12706_vm6 }
 0x334   :  { %v5083_v15 = vsel %vm4724_vm7, %v5082_v36, %v5081_v29  ;;  %v12696_v29 = vld [vmem:[#allocation20_spill] sm:$0xff]  ;;  %vm12716_vm12 = vmmov %vm12697_vm14  ;;  %v5328_v52 = vrot.slane %v12669_v24, 7 }
 0x335   :  { %v5085_v19 = vsel %vm4727_vm2, %v5084_v22, %v5083_v15  ;;  %v11384_v17 = vunpack.c.h.b16 %v12696_v29  ;;  %v7361_v22 = vld [vmem:[%s12347_s5 + $0x10] sm:$0xf]  ;;  %v5198_v29 = vsel %vm12702_vm5, %v5197_v50, %v5196_v56  ;;  %v5208_v56 = vrot.slane %v12672_v30, 5  ;;  %vm12717_vm13 = vmmov %vm12716_vm12 }
 0x336   :  { %v5087_v46 = vsel %vm4730_vm3, %v5086_v4, %v5085_v19  ;;  %v5210_v4 = vrot.slane %v10824_v0, 4  ;;  %v5215_v19 = vrot.slane %v10827_v47, 1  ;;  %vm12723_vm5 = vmmov %vm12705_vm10 }
 0x337   :  { %v5130_v3 = vpack.c.b16 %v5101_v37, %v5087_v46  ;;  %v12700_v46 = vld [vmem:[#allocation7_spill] sm:$0xff]  ;;  %v5200_v37 = vsel %vm12705_vm10, %v5199_v61, %v5198_v29 }
 0x338   :  { %v11410_v48 = vunpack.c.h.b16 %v12700_v46  ;;  %v5206_v46 = vrot.slane %v12669_v24, 6  ;;  %v5202_v50 = vsel %vm12708_vm8, %v5201_v41, %v5200_v37 }
 0x339   :  { %v5203_v61 = vsel %vm12712_vm11, %v10830_v34, %v5202_v50  ;;  %v5339_v50 = vrot.slane %v10836_v53, 1  ;;  %vm12731_vm11 = vmmov %vm12716_vm12 }
 0x33a   :  { %7822 = vmatmul.mubr.msk.bf16.vlgmr.msra.gmra.mrb[72].mxu0 %vm12697_vm14, %v5009_v54  ;;  %v5212_v54 = vsel %vm12699_vm1, %v5211_v13, %v5210_v4  ;;  %v5222_v13 = vrot.slane %v10877_v38, 5  ;;  %v12704_v4 = vld [vmem:[#allocation23_spill] sm:$0xff]  ;;  %v5205_v37 = vsel %vm4724_vm7, %v5204_v12, %v5203_v61  ;;  %v12714_v61 = vld [vmem:[#allocation12_spill] sm:$0xff]  ;;  %v5321_v12 = vrot.slane %v12667_v43, 3  ;;  %vm12718_vm14 = vmmov %vm12699_vm1 }
 0x33b   :  { %7827 = vmatprep.mubr.msk.bf16.mxu0 %vm12698_vm15, %v5130_v3  ;;  %7826 = vmatpush3.bf16.msra.mxu0 %v5139_v11  ;;  %v5214_v3 = vsel %vm12701_vm4, %v5213_v60, %v5212_v54  ;;  %v5220_v11 = vrot.slane %v12663_v58, 6  ;;  %v11419_v33 = vunpack.c.h.b16 %v12704_v4  ;;  %v12707_v54 = vld [vmem:[#allocation22_spill] sm:$0xff]  ;;  %vm12719_vm15 = vmmov %vm12701_vm4 }
 0x33c   :  { %7985 = vmatprep.subr.msk.bf16.mxu0 %vm370_vm0, %v7361_v22  ;;  %v5216_v15 = vsel %vm12703_vm9, %v5215_v19, %v5214_v3  ;;  %v11426_v36 = vunpack.c.h.b16 %v12707_v54  ;;  %v12709_v3 = vld [vmem:[#allocation16_spill] sm:$0xff]  ;;  %v12711_v4 = vld [vmem:[#allocation14_spill] sm:$0xff]  ;;  %v12713_v54 = vld [vmem:[#allocation17_spill] sm:$0xff] }
 0x33d   :  { %v5217_v60 = vsel %vm12706_vm6, %v10836_v53, %v5216_v15  ;;  %v11432_v16 = vunpack.c.h.b16 %v12709_v3  ;;  %v11435_v6 = vunpack.c.h.b16 %v12711_v4  ;;  %v11442_v9 = vunpack.c.h.b16 %v12713_v54  ;;  %vm12721_vm4 = vmmov %vm12708_vm8 }
 0x33e   :  { %v5219_v19 = vsel %vm4724_vm7, %v5218_v55, %v5217_v60  ;;  %v5207_v4 = vsel %vm4727_vm2, %v5206_v46, %v5205_v37  ;;  %v5333_v54 = vrot.slane %v10845_v8, 4  ;;  %v5335_v60 = vrot.slane %v10815_v32, 3  ;;  %v7364_v46 = vld [vmem:[%s12347_s5 + $0x14] sm:$0xf]  ;;  %vm12724_vm9 = vmmov %vm12706_vm6 }
 0x33f   :  { %12710 = vst [vmem:[#allocation33_spill] sm:$0xff] %v11432_v16  ;;  %v5221_v15 = vsel %vm4727_vm2, %v5220_v11, %v5219_v19  ;;  %v5209_v11 = vsel %vm4730_vm3, %v5208_v56, %v5207_v4  ;;  %v5261_v19 = vsel %vm370_vm0, %v7361_v22, 0  ;;  %v12715_v56 = vpack.c.b16 %v11240_v31, %v11028_v25  ;;  %vm12726_vm10 = vmmov %vm12721_vm4 }
 0x340   :  { %v5223_v55 = vsel %vm4730_vm3, %v5222_v13, %v5221_v15  ;;  %v11456_v13 = vunpack.c.h.b16 %v12714_v61  ;;  %v5319_v22 = vrot.slane %v10839_v63, 4  ;;  %v5332_v4 = vrot.slane %v10824_v0, 5  ;;  %vm12729_vm8 = vmmov %vm12699_vm1 }
 0x341   :  { %v5252_v15 = vpack.c.b16 %v5223_v55, %v5209_v11  ;;  %v5337_v61 = vrot.slane %v10827_v47, 2  ;;  %v5318_v31 = vrot.slane %v10818_v18, 5  ;;  %v5325_v11 = vrot.slane %v10830_v34, 1  ;;  %v12720_v55 = vld [vmem:[#allocation15_spill] sm:$0xff] }
 0x342   :  { %v5334_v3 = vsel %vm12718_vm14, %v5333_v54, %v5332_v4  ;;  %v11485_v29 = vunpack.c.h.b16 %v12720_v55  ;;  %v5344_v16 = vrot.slane %v10877_v38, 6  ;;  %v12722_v54 = vld [vmem:[#allocation29_spill] sm:$0xff]  ;;  %vm12734_vm14 = vmmov %vm12721_vm4 }
 0x343   :  { %v5320_v25 = vsel %vm12699_vm1, %v5319_v22, %v5318_v31  ;;  %v11491_v4 = vunpack.c.h.b16 %v12722_v54  ;;  %v5330_v22 = vrot.slane %v12672_v30, 6  ;;  %v12727_v54 = vld [vmem:[#allocation35_spill] sm:$0xff] }
 0x344   :  { %v5322_v41 = vsel %vm12723_vm5, %v5321_v12, %v5320_v25  ;;  %v5440_v12 = vrot.slane %v10818_v18, 6  ;;  %v5441_v25 = vrot.slane %v10839_v63, 5 }
 0x346   :  { %7828 = vmatmul.mubr.msk.bf16.vlgmr.msra.gmra.mrb[72].mxu0 %vm12716_vm12, %v12715_v56  ;;  %v5323_v56 = vrot.slane %v10821_v14, 2  ;;  %vm12732_vm12 = vmmov %vm12723_vm5 }
 0x347   :  { %7833 = vmatprep.mubr.msk.bf16.mxu0 %vm12717_vm13, %v5252_v15  ;;  %7832 = vmatpush3.bf16.msra.mxu0 %v5261_v19  ;;  %v5336_v19 = vsel %vm12719_vm15, %v5335_v60, %v5334_v3  ;;  %v5342_v15 = vrot.slane %v12663_v58, 7  ;;  %v12725_v3 = vld [vmem:[#allocation34_spill] sm:$0xff]  ;;  %vm12733_vm13 = vmmov %vm12731_vm11 }
 0x348   :  { %7986 = vmatprep.subr.msk.bf16.mxu0 %vm370_vm0, %v7364_v46  ;;  %v5338_v37 = vsel %vm12721_vm4, %v5337_v61, %v5336_v19  ;;  %v11497_v23 = vunpack.c.h.b16 %v12725_v3  ;;  %v5324_v55 = vsel %vm12726_vm10, %v5323_v56, %v5322_v41  ;;  %v5443_v56 = vrot.slane %v12667_v43, 4  ;;  %vm12735_vm15 = vmmov %vm12706_vm6 }
 0x349   :  { %v5340_v60 = vsel %vm12724_vm9, %v5339_v50, %v5338_v37  ;;  %v5326_v31 = vsel %vm12706_vm6, %v5325_v11, %v5324_v55  ;;  %v11508_v50 = vunpack.c.h.b16 %v12727_v54  ;;  %v5562_v3 = vrot.slane %v10818_v18, 7  ;;  %vm12736_vm4 = vmmov %vm12723_vm5 }
 0x34a   :  { %v5341_v61 = vsel %vm4724_vm7, %v10848_v40, %v5340_v60  ;;  %v5327_v37 = vsel %vm4724_vm7, %v12665_v45, %v5326_v31  ;;  %v11515_v60 = vunpack.c.h.b16 %v10892_v20  ;;  %v5447_v54 = vrot.slane %v10830_v34, 2  ;;  %vm12737_vm5 = vmmov %vm12726_vm10 }
 0x34b   :  { %v5343_v19 = vsel %vm4727_vm2, %v5342_v15, %v5341_v61  ;;  %v5329_v11 = vsel %vm4727_vm2, %v5328_v52, %v5327_v37  ;;  %v5445_v15 = vrot.slane %v10821_v14, 3  ;;  %v5383_v61 = vsel %vm370_vm0, %v7364_v46, 0  ;;  %v7367_v52 = vld [vmem:[%s12347_s5 + $0x18] sm:$0xf]  ;;  %vm12738_vm9 = vmmov %vm12706_vm6 }
 0x34c   :  { %v5345_v41 = vsel %vm4730_vm3, %v5344_v16, %v5343_v19  ;;  %12728 = vst [vmem:[#allocation30_spill] sm:$0xff] %v11515_v60  ;;  %v5331_v55 = vsel %vm4730_vm3, %v5330_v22, %v5329_v11  ;;  %v5455_v31 = vrot.slane %v10845_v8, 5  ;;  %v5442_v19 = vsel %vm12729_vm8, %v5441_v25, %v5440_v12  ;;  %vm12739_vm10 = vmmov %vm12699_vm1 }
 0x34d   :  { %v5374_v16 = vpack.c.b16 %v5345_v41, %v5331_v55  ;;  %v5449_v20 = vrot.slane %v12665_v45, 1  ;;  %v5457_v60 = vrot.slane %v10815_v32, 4  ;;  %v5744_v18 = vrot.slane %v11508_v50, 7  ;;  %vm12740_vm6 = vmmov %vm12736_vm4 }
 0x34e   :  { %v12730_v46 = vpack.c.b16 %v11252_v26, %v11031_v21  ;;  %v5444_v22 = vsel %vm12732_vm12, %v5443_v56, %v5442_v19  ;;  %v5454_v37 = vrot.slane %v10824_v0, 6  ;;  %v5459_v12 = vrot.slane %v10827_v47, 3  ;;  %vm12741_vm8 = vmmov %vm12699_vm1 }
 0x34f   :  { %v5989_v25 = vrot.slane %v11508_v50, 1  ;;  %v5446_v11 = vsel %vm12734_vm14, %v5445_v15, %v5444_v22  ;;  %v5461_v55 = vrot.slane %v10836_v53, 2  ;;  %v5452_v26 = vrot.slane %v12672_v30, 7  ;;  %vm12744_vm12 = vmmov %vm12736_vm4 }
 0x350   :  { %v5448_v21 = vsel %vm12735_vm15, %v5447_v54, %v5446_v11  ;;  %v5456_v56 = vsel %vm12699_vm1, %v5455_v31, %v5454_v37  ;;  %v5463_v19 = vrot.slane %v10848_v40, 1  ;;  %v5577_v15 = vrot.slane %v10845_v8, 6  ;;  %vm12746_vm14 = vmmov %vm12737_vm5 }
 0x351   :  { %v5450_v41 = vsel %vm4724_vm7, %v5449_v20, %v5448_v21  ;;  %v5466_v22 = vrot.slane %v10877_v38, 7  ;;  %v5579_v31 = vrot.slane %v10815_v32, 5  ;;  %v5563_v11 = vrot.slane %v10839_v63, 6  ;;  %vm12750_vm1 = vmmov %vm12738_vm9 }
 0x352   :  { %7834 = vmatmul.mubr.msk.bf16.vlgmr.msra.gmra.mrb[72].mxu0 %vm12731_vm11, %v12730_v46  ;;  %v5576_v46 = vrot.slane %v10824_v0, 7  ;;  %v5581_v20 = vrot.slane %v10827_v47, 4  ;;  %v5567_v32 = vrot.slane %v10821_v14, 4  ;;  %v5585_v63 = vrot.slane %v10848_v40, 2  ;;  %vm12742_vm11 = vmmov %vm12737_vm5 }
 0x353   :  { %7839 = vmatprep.mubr.msk.bf16.mxu0 %vm12733_vm13, %v5374_v16  ;;  %7838 = vmatpush3.bf16.msra.mxu0 %v5383_v61  ;;  %v5458_v61 = vsel %vm12736_vm4, %v5457_v60, %v5456_v56  ;;  %v5451_v16 = vsel %vm4727_vm2, %v12669_v24, %v5450_v41  ;;  %v5565_v41 = vrot.slane %v12667_v43, 5  ;;  %v5569_v47 = vrot.slane %v10830_v34, 3  ;;  %vm12745_vm13 = vmmov %vm12738_vm9 }
 0x354   :  { %7987 = vmatprep.subr.msk.bf16.mxu0 %vm370_vm0, %v7367_v52  ;;  %v5460_v54 = vsel %vm12737_vm5, %v5459_v12, %v5458_v61  ;;  %v5453_v60 = vsel %vm4730_vm3, %v5452_v26, %v5451_v16  ;;  %v5583_v12 = vrot.slane %v10836_v53, 3  ;;  %v5587_v56 = vrot.slane %v12663_v58, 1  ;;  %v12743_v61 = vld [vmem:[#allocation39_spill] sm:$0xff]  ;;  %vm12755_vm5 = vmmov %vm12741_vm8 }
 0x355   :  { %v5462_v37 = vsel %vm12738_vm9, %v5461_v55, %v5460_v54  ;;  %v5578_v55 = vsel %vm12739_vm10, %v5577_v15, %v5576_v46  ;;  %v5505_v43 = vsel %vm370_vm0, %v7367_v52, 0  ;;  %v5564_v53 = vsel %vm12741_vm8, %v5563_v11, %v5562_v3  ;;  %vm12756_vm9 = vmmov %vm12755_vm5 }
 0x356   :  { %v5464_v8 = vsel %vm4724_vm7, %v5463_v19, %v5462_v37  ;;  %v5580_v26 = vsel %vm12740_vm6, %v5579_v31, %v5578_v55  ;;  %v5571_v19 = vrot.slane %v12665_v45, 2  ;;  %v11579_v46 = vunpack.c.h.b16 %v12743_v61  ;;  %v7370_v45 = vld [vmem:[%s12347_s5 + $0x1c] sm:$0xf]  ;;  %vm12757_vm10 = vmmov %vm12740_vm6 }
 0x357   :  { %v5465_v21 = vsel %vm4727_vm2, %v12663_v58, %v5464_v8  ;;  %v5582_v14 = vsel %vm12742_vm11, %v5581_v20, %v5580_v26  ;;  %v5566_v40 = vsel %vm12744_vm12, %v5565_v41, %v5564_v53  ;;  %v5573_v15 = vrot.slane %v12669_v24, 1  ;;  %v12751_v20 = vld [vmem:[#allocation37_spill] sm:$0xff]  ;;  %vm12758_vm6 = vmmov %vm12755_vm5 }
 0x358   :  { %v5467_v0 = vsel %vm4730_vm3, %v5466_v22, %v5465_v21  ;;  %v5584_v34 = vsel %vm12745_vm13, %v5583_v12, %v5582_v14  ;;  %v5568_v52 = vsel %vm12746_vm14, %v5567_v32, %v5566_v40  ;;  %v12747_v22 = vld [vmem:[#allocation36_spill] sm:$0xff]  ;;  %v12748_v24 = vpack.c.b16 %v11255_v35, %v11034_v42  ;;  %v12753_v42 = vld [vmem:[#allocation38_spill] sm:$0xff]  ;;  %vm12759_vm8 = vmmov %vm12742_vm11 }
 0x359   :  { %v5496_v58 = vpack.c.b16 %v5467_v0, %v5453_v60  ;;  %v5586_v3 = vsel %vm4724_vm7, %v5585_v63, %v5584_v34  ;;  %v11592_v31 = vunpack.c.h.b16 %v12747_v22  ;;  %vm12749_vm15 = vcmask 64512   ;;  %v12754_v0 = vld [vmem:[#allocation41_spill] sm:$0xff]  ;;  %vm12760_vm11 = vmmov %vm12755_vm5 }
 0x35a   :  { %v5570_v37 = vsel %vm12750_vm1, %v5569_v47, %v5568_v52  ;;  %v5588_v11 = vsel %vm4727_vm2, %v5587_v56, %v5586_v3  ;;  %v11601_v60 = vunpack.c.h.b16 %v12751_v20  ;;  %vm12752_vm4 = vmmov %vm12749_vm15  ;;  %v5716_v12 = vrot.slane %v11307_v7, 7 }
 0x35b   :  { %v5572_v8 = vsel %vm4724_vm7, %v5571_v19, %v5570_v37  ;;  %v5589_v41 = vsel %vm4730_vm3, %v10877_v38, %v5588_v11  ;;  %v11609_v35 = vunpack.c.h.b16 %v12753_v42  ;;  %v5758_v21 = vrot.slane %v11579_v46, 7  ;;  %vm12762_vm12 = vmmov %vm12757_vm10 }
 0x35c   :  { %v5574_v32 = vsel %vm4727_vm2, %v5573_v15, %v5572_v8  ;;  %v5718_v55 = vrot.slane %v11314_v10, 6  ;;  %v11617_v47 = vunpack.c.h.b16 %v12754_v0  ;;  %v5627_v26 = vsel %vm370_vm0, %v7370_v45, 0  ;;  %vm12763_vm13 = vmmov %vm12757_vm10 }
 0x35d   :  { %v5575_v38 = vsel %vm4730_vm3, %v12672_v30, %v5574_v32  ;;  %v11623_v56 = vunpack.c.h.b16 %v11168_v57  ;;  %v5720_v53 = vrot.slane %v11317_v49, 5  ;;  %v5730_v19 = vrot.slane %v11363_v28, 7  ;;  %vm12764_vm14 = vmmov %vm12759_vm8 }
 0x35e   :  { %7840 = vmatmul.mubr.msk.bf16.vlgmr.msra.gmra.mrb[72].mxu0 %vm12749_vm15, %v12748_v24  ;;  %v5717_v14 = vsel %vm12755_vm5, %v5716_v12, %v11304_v51  ;;  %v5732_v61 = vrot.slane %v11384_v17, 6  ;;  %v5745_v30 = vsel %vm12756_vm9, %v5744_v18, %v11339_v44  ;;  %v5748_v40 = vrot.slane %v11592_v31, 5  ;;  %vm12765_vm15 = vmmov %vm12759_vm8 }
 0x35f   :  { %7845 = vmatprep.mubr.msk.bf16.mxu0 %vm12752_vm4, %v5496_v58  ;;  %7844 = vmatpush3.bf16.msra.mxu0 %v5505_v43  ;;  %v5618_v43 = vpack.c.b16 %v5589_v41, %v5575_v38  ;;  %v5719_v57 = vsel %vm12757_vm10, %v5718_v55, %v5717_v14  ;;  %v5722_v15 = vrot.slane %v11323_v2, 4  ;;  %v5724_v34 = vrot.slane %v11326_v62, 3  ;;  %vm12767_vm1 = vmmov %vm12757_vm10  ;;  %v7373_v14 = vld [vmem:[%s12347_s5 + $0x20] sm:$0xf] }
 0x360   :  { %7988 = vmatprep.subr.msk.bf16.mxu0 %vm370_vm0, %v7370_v45  ;;  %v5734_v58 = vrot.slane %v11426_v36, 5  ;;  %v5726_v52 = vrot.slane %v11332_v1, 2  ;;  %v5736_v3 = vrot.slane %v11435_v6, 4  ;;  %v5759_v45 = vsel %vm12758_vm6, %v5758_v21, %v11410_v48  ;;  %vm12769_vm5 = vmmov %vm12759_vm8 }
 0x361   :  { %v5762_v22 = vrot.slane %v11617_v47, 5  ;;  %v5721_v18 = vsel %vm12759_vm8, %v5720_v53, %v5719_v57  ;;  %v5731_v24 = vsel %vm12760_vm11, %v5730_v19, %v11356_v59  ;;  %v5738_v37 = vrot.slane %v11456_v13, 3  ;;  %v12770_v57 = vld [vmem:[#allocation44_spill] sm:$0xff] }
 0x362   :  { %v12761_v11 = vrot.slane %v11366_v27, 6  ;;  %v5733_v8 = vsel %vm12763_vm13, %v5732_v61, %v5731_v24  ;;  %v5740_v41 = vrot.slane %v11485_v29, 2  ;;  %v5752_v42 = vrot.slane %v11601_v60, 3 }
 0x363   :  { %v5735_v21 = vsel %vm12765_vm15, %v5734_v58, %v5733_v8  ;;  %v5742_v32 = vrot.slane %v11497_v23, 1  ;;  %v5750_v55 = vrot.slane %v11419_v33, 4  ;;  %v12766_v0 = vrot.slane %v11442_v9, 6  ;;  %v12771_v58 = vld [vmem:[#allocation40_spill] sm:$0xff] }
 0x364   :  { %v5747_v20 = vsel %vm12762_vm12, %v12761_v11, %v5745_v30  ;;  %v5728_v53 = vrot.slane %v11350_v39, 1  ;;  %vm12768_vm4 = vcmask 1044484   ;;  %v5766_v30 = vrot.slane %v11623_v56, 3 }
 0x365   :  { %v5749_v12 = vsel %vm12764_vm14, %v5748_v40, %v5747_v20  ;;  %v5761_v38 = vsel %vm12767_vm1, %v12766_v0, %v5759_v45  ;;  %v5737_v19 = vsel %vm12768_vm4, %v5736_v3, %v5735_v21  ;;  %v11669_v40 = vunpack.c.h.b16 %v11213_v5  ;;  %vm12774_vm10 = vmmov %vm12768_vm4 }
 0x366   :  { %v5763_v61 = vsel %vm12769_vm5, %v5762_v22, %v5761_v38  ;;  %v12772_v24 = vpack.c.b16 %v12770_v57, %v12771_v58  ;;  %vm12773_vm9 = vcmask 64512   ;;  %v5739_v45 = vsel %vm4724_vm7, %v5738_v37, %v5737_v19  ;;  %vm12776_vm8 = vmmov %vm12768_vm4  ;;  %v12777_v37 = vld [vmem:[#allocation33_spill] sm:$0xff] }
 0x367   :  { %v5751_v3 = vsel %vm12774_vm10, %v5750_v55, %v5749_v12  ;;  %v5764_v11 = vrot.slane %v11491_v4, 4  ;;  %vm12775_vm6 = vmmov %vm12773_vm9  ;;  %v5723_v22 = vsel %vm12776_vm8, %v5722_v15, %v5721_v18  ;;  %v5741_v20 = vsel %vm4727_vm2, %v5740_v41, %v5739_v45 }
 0x368   :  { %v5753_v5 = vsel %vm4724_vm7, %v5752_v42, %v5751_v3  ;;  %v5756_v8 = vrot.slane %v11609_v35, 1  ;;  %v5725_v21 = vsel %vm4724_vm7, %v5724_v34, %v5723_v22  ;;  %v5743_v0 = vsel %vm4730_vm3, %v5742_v32, %v5741_v20  ;;  %vm12778_vm11 = vmmov %vm12768_vm4  ;;  %v12779_v42 = vld [vmem:[#allocation30_spill] sm:$0xff] }
 0x369   :  { %v5754_v12 = vrot.slane %v12777_v37, 2  ;;  %v5765_v55 = vsel %vm12778_vm11, %v5764_v11, %v5763_v61  ;;  %v5727_v15 = vsel %vm4727_vm2, %v5726_v52, %v5725_v21  ;;  %v5768_v32 = vrot.slane %v12779_v42, 2  ;;  %vm12787_vm4 = vmmov %vm12767_vm1 }
 0x36a   :  { %7846 = vmatmul.mubr.msk.bf16.vlgmr.msra.gmra.mrb[72].mxu0 %vm12773_vm9, %v12772_v24  ;;  %v5767_v18 = vsel %vm4724_vm7, %v5766_v30, %v5765_v55  ;;  %v5729_v41 = vsel %vm4730_vm3, %v5728_v53, %v5727_v15  ;;  %v5770_v38 = vrot.slane %v11669_v40, 1  ;;  %v5781_v57 = vsel %vm370_vm0, %v7373_v14, 0  ;;  %vm12791_vm9 = vmmov %vm12775_vm6 }
 0x36b   :  { %7851 = vmatprep.mubr.msk.bf16.mxu0 %vm12775_vm6, %v5618_v43  ;;  %7850 = vmatpush3.bf16.msra.mxu0 %v5627_v26  ;;  %v5755_v34 = vsel %vm4727_vm2, %v5754_v12, %v5753_v5  ;;  %v5772_v19 = vpack.c.b16 %v5743_v0, %v5729_v41  ;;  %v5838_v58 = vrot.slane %v11304_v51, 1  ;;  %v5769_v52 = vsel %vm4727_vm2, %v5768_v32, %v5767_v18  ;;  %v12788_v43 = vld [vmem:[#allocation43_spill] sm:$0xff]  ;;  %vm12792_vm10 = vmmov %vm12769_vm5 }
 0x36c   :  { %7989 = vmatprep.subr.msk.bf16.mxu0 %vm370_vm0, %v7373_v14  ;;  %v11698_v61 = vsel %vm4730_vm3, %v5756_v8, %v5755_v34  ;;  %v5840_v30 = vrot.slane %v11314_v10, 7  ;;  %v5842_v53 = vrot.slane %v11317_v49, 6  ;;  %v5844_v24 = vrot.slane %v11323_v2, 5  ;;  %vm12794_vm6 = vmmov %vm12767_vm1 }
 0x36d   :  { %v5846_v45 = vrot.slane %v11326_v62, 4  ;;  %v5854_v3 = vrot.slane %v11384_v17, 7  ;;  %v12780_v11 = vrot.slane %v11339_v44, 1  ;;  %vm12781_vm12 = vcmask 1041409   ;;  %vm12795_vm8 = vmmov %vm12791_vm9 }
 0x36e   :  { %v5870_v22 = vrot.slane %v11592_v31, 6  ;;  %v11713_v20 = vsel %vm4730_vm3, %v5770_v38, %v5769_v52  ;;  %vm12782_vm13 = vmmov %vm12781_vm12  ;;  %v5852_v8 = vrot.slane %v11356_v59, 1  ;;  %v5856_v21 = vrot.slane %v11426_v36, 6 }
 0x36f   :  { %v5867_v14 = vsel %vm12781_vm12, %v11508_v50, %v12780_v11  ;;  %v5839_v5 = vsel %vm12782_vm13, %v11307_v7, %v5838_v58  ;;  %v5848_v0 = vrot.slane %v11332_v1, 3  ;;  %v5858_v12 = vrot.slane %v11435_v6, 5  ;;  %vm12784_vm14 = vmmov %vm12781_vm12 }
 0x370   :  { %v12783_v55 = vrot.slane %v11410_v48, 1  ;;  %v5884_v18 = vrot.slane %v11617_v47, 6  ;;  %v5850_v41 = vrot.slane %v11350_v39, 2  ;;  %vm12785_vm15 = vmmov %vm12781_vm12  ;;  %v5860_v32 = vrot.slane %v11456_v13, 4 }
 0x371   :  { %v5853_v34 = vsel %vm12785_vm15, %v11363_v28, %v5852_v8  ;;  %v12786_v38 = vrot.slane %v11366_v27, 7  ;;  %v5862_v11 = vrot.slane %v11485_v29, 3  ;;  %v5874_v16 = vrot.slane %v11601_v60, 4  ;;  %v12789_v8 = vld [vmem:[#allocation42_spill] sm:$0xff]  ;;  %vm12796_vm11 = vmmov %vm12767_vm1 }
 0x372   :  { %v5881_v15 = vsel %vm12784_vm14, %v11579_v46, %v12783_v55  ;;  %v5855_v52 = vsel %vm12787_vm4, %v5854_v3, %v5853_v34  ;;  %v7376_v55 = vld [vmem:[%s12347_s5 + $0x24] sm:$0xf]  ;;  %v12790_v26 = vpack.c.b16 %v12788_v43, %v12789_v8  ;;  %v5872_v3 = vrot.slane %v11419_v33, 5  ;;  %vm12798_vm13 = vmmov %vm12769_vm5 }
 0x373   :  { %v5869_v58 = vsel %vm12767_vm1, %v12786_v38, %v5867_v14  ;;  %v5857_v63 = vsel %vm12792_vm10, %v5856_v21, %v5855_v52  ;;  %v5864_v14 = vrot.slane %v11497_v23, 2  ;;  %v12793_v34 = vrot.slane %v11442_v9, 7  ;;  %vm12799_vm14 = vmmov %vm12769_vm5 }
 0x374   :  { %v5871_v54 = vsel %vm12769_vm5, %v5870_v22, %v5869_v58  ;;  %v5841_v22 = vsel %vm12796_vm11, %v5840_v30, %v5839_v5  ;;  %vm12797_vm12 = vcmask 1044484   ;;  %v5878_v30 = vrot.slane %v11609_v35, 2  ;;  %vm12806_vm10 = vmmov %vm12794_vm6 }
 0x375   :  { %v5883_v38 = vsel %vm12794_vm6, %v12793_v34, %v5881_v15  ;;  %v5859_v58 = vsel %vm12797_vm12, %v5858_v12, %v5857_v63  ;;  %v5843_v21 = vsel %vm12799_vm14, %v5842_v53, %v5841_v22  ;;  %vm12800_vm15 = vmmov %vm12797_vm12  ;;  %v5886_v15 = vrot.slane %v11491_v4, 5 }
 0x376   :  { %7852 = vmatmul.mubr.msk.bf16.vlgmr.msra.gmra.mrb[72].mxu0 %vm12791_vm9, %v12790_v26  ;;  %v5885_v43 = vsel %vm12798_vm13, %v5884_v18, %v5883_v38  ;;  %v5888_v26 = vrot.slane %v11623_v56, 4  ;;  %v5861_v52 = vsel %vm4724_vm7, %v5860_v32, %v5859_v58  ;;  %v5873_v8 = vsel %vm12800_vm15, %v5872_v3, %v5871_v54  ;;  %vm12801_vm1 = vmmov %vm12797_vm12 }
 0x377   :  { %7857 = vmatprep.mubr.msk.bf16.mxu0 %vm12795_vm8, %v5772_v19  ;;  %7856 = vmatpush3.bf16.msra.mxu0 %v5781_v57  ;;  %v5845_v19 = vsel %vm12801_vm1, %v5844_v24, %v5843_v21  ;;  %v5863_v57 = vsel %vm4727_vm2, %v5862_v11, %v5861_v52  ;;  %v5875_v63 = vsel %vm4724_vm7, %v5874_v16, %v5873_v8  ;;  %v5876_v12 = vrot.slane %v12777_v37, 3  ;;  %vm12802_vm4 = vmmov %vm12801_vm1 }
 0x378   :  { %7990 = vmatprep.subr.msk.bf16.mxu0 %vm370_vm0, %v7376_v55  ;;  %v5847_v5 = vsel %vm4724_vm7, %v5846_v45, %v5845_v19  ;;  %v5865_v53 = vsel %vm4730_vm3, %v5864_v14, %v5863_v57  ;;  %v5887_v18 = vsel %vm12802_vm4, %v5886_v15, %v5885_v43  ;;  %v6369_v54 = vrot.slane %v11579_v46, 4  ;;  %vm12807_vm6 = vmmov %vm12795_vm8 }
 0x379   :  { %v5773_v32 = vpack.c.b16 %v11713_v20, %v11698_v61  ;;  %v5849_v24 = vsel %vm4727_vm2, %v5848_v0, %v5847_v5  ;;  %v5889_v11 = vsel %vm4724_vm7, %v5888_v26, %v5887_v18  ;;  %v5877_v3 = vsel %vm4727_vm2, %v5876_v12, %v5875_v63  ;;  %vm12809_vm11 = vmmov %vm12806_vm10 }
 0x37a   :  { %v5851_v16 = vsel %vm4730_vm3, %v5850_v41, %v5849_v24  ;;  %v5890_v45 = vrot.slane %v12779_v42, 3  ;;  %v5961_v14 = vrot.slane %v11307_v7, 1  ;;  %v5903_v38 = vsel %vm370_vm0, %v7376_v55, 0  ;;  %vm12813_vm13 = vmmov %vm12807_vm6 }
 0x37b   :  { %v5894_v34 = vpack.c.b16 %v5865_v53, %v5851_v16  ;;  %v11779_v22 = vsel %vm4730_vm3, %v5878_v30, %v5877_v3  ;;  %v5892_v61 = vrot.slane %v11669_v40, 2  ;;  %v5960_v0 = vrot.slane %v11304_v51, 2  ;;  %vm12814_vm14 = vmmov %vm12806_vm10 }
 0x37c   :  { %v5891_v20 = vsel %vm4727_vm2, %v5890_v45, %v5889_v11  ;;  %v5964_v41 = vrot.slane %v11317_v49, 7  ;;  %v5975_v58 = vrot.slane %v11363_v28, 1  ;;  %v5966_v43 = vrot.slane %v11323_v2, 6 }
 0x37d   :  { %v5968_v26 = vrot.slane %v11326_v62, 5  ;;  %v12803_v21 = vrot.slane %v11339_v44, 2  ;;  %vm12804_vm5 = vcmask 1041409   ;;  %v5992_v52 = vrot.slane %v11592_v31, 7 }
 0x37e   :  { %vm12805_vm9 = vmmov %vm12804_vm5  ;;  %v5970_v15 = vrot.slane %v11332_v1, 4  ;;  %v5974_v19 = vrot.slane %v11356_v59, 2  ;;  %v5978_v57 = vrot.slane %v11426_v36, 7  ;;  %v5893_v63 = vsel %vm4730_vm3, %v5892_v61, %v5891_v20 }
 0x37f   :  { %v5990_v55 = vsel %vm12804_vm5, %v5989_v25, %v12803_v21  ;;  %v5962_v8 = vsel %vm12805_vm9, %v5961_v14, %v5960_v0  ;;  %v5980_v5 = vrot.slane %v11435_v6, 6  ;;  %v5982_v53 = vrot.slane %v11456_v13, 5  ;;  %v7379_v25 = vld [vmem:[%s12347_s5 + $0x28] sm:$0xf]  ;;  %vm12808_vm8 = vmmov %vm12804_vm5 }
 0x380   :  { %v5963_v30 = vsel %vm12806_vm10, %v11314_v10, %v5962_v8  ;;  %v5976_v12 = vsel %vm12808_vm8, %v5975_v58, %v5974_v19  ;;  %v5991_v18 = vsel %vm12809_vm11, %v11366_v27, %v5990_v55  ;;  %v12810_v24 = vrot.slane %v11410_v48, 2  ;;  %vm12812_vm12 = vmmov %vm12804_vm5 }
 0x381   :  { %v12811_v11 = vrot.slane %v11579_v46, 1  ;;  %v6006_v3 = vrot.slane %v11617_v47, 7  ;;  %v5977_v45 = vsel %vm12814_vm14, %v11384_v17, %v5976_v12  ;;  %vm12815_vm15 = vcmask 1043459  }
 0x382   :  { %7858 = vmatmul.mubr.msk.bf16.vlgmr.msra.gmra.mrb[72].mxu0 %vm12807_vm6, %v5773_v32  ;;  %v5984_v32 = vrot.slane %v11485_v29, 4  ;;  %v5993_v14 = vsel %vm12815_vm15, %v5992_v52, %v5991_v18  ;;  %v5996_v61 = vrot.slane %v11601_v60, 5  ;;  %vm12816_vm1 = vmmov %vm12815_vm15  ;;  %v5986_v58 = vrot.slane %v11497_v23, 3 }
 0x383   :  { %v6004_v16 = vsel %vm12812_vm12, %v12811_v11, %v12810_v24  ;;  %7863 = vmatprep.mubr.msk.bf16.mxu0 %vm12813_vm13, %v5894_v34  ;;  %7862 = vmatpush3.bf16.msra.mxu0 %v5903_v38  ;;  %v5965_v20 = vsel %vm12816_vm1, %v5964_v41, %v5963_v30  ;;  %vm12817_vm4 = vmmov %vm12816_vm1  ;;  %v5994_v34 = vrot.slane %v11419_v33, 6  ;;  %vm12818_vm5 = vcmask 1044484  }
 0x384   :  { %v5979_v0 = vsel %vm12817_vm4, %v5978_v57, %v5977_v45  ;;  %7991 = vmatprep.subr.msk.bf16.mxu0 %vm370_vm0, %v7379_v25  ;;  %v5967_v38 = vsel %vm12818_vm5, %v5966_v43, %v5965_v20  ;;  %v5972_v21 = vrot.slane %v11350_v39, 3  ;;  %vm12819_vm9 = vmmov %vm12818_vm5  ;;  %v6005_v52 = vsel %vm12806_vm10, %v11442_v9, %v6004_v16 }
 0x385   :  { %v5981_v55 = vsel %vm12819_vm9, %v5980_v5, %v5979_v0  ;;  %vm12820_vm6 = vmmov %vm12818_vm5  ;;  %v6010_v57 = vrot.slane %v11623_v56, 5  ;;  %v5969_v30 = vsel %vm4724_vm7, %v5968_v26, %v5967_v38  ;;  %v6008_v18 = vrot.slane %v11491_v4, 6 }
 0x386   :  { %v5983_v8 = vsel %vm4724_vm7, %v5982_v53, %v5981_v55  ;;  %v5995_v41 = vsel %vm12820_vm6, %v5994_v34, %v5993_v14  ;;  %vm12821_vm8 = vmmov %vm12816_vm1  ;;  %v5895_v5 = vpack.c.b16 %v5893_v63, %v11779_v22  ;;  %v5971_v24 = vsel %vm4727_vm2, %v5970_v15, %v5969_v30 }
 0x387   :  { %v6007_v19 = vsel %vm12821_vm8, %v6006_v3, %v6005_v52  ;;  %v5985_v12 = vsel %vm4727_vm2, %v5984_v32, %v5983_v8  ;;  %v5997_v43 = vsel %vm4724_vm7, %v5996_v61, %v5995_v41  ;;  %v5998_v11 = vrot.slane %v12777_v37, 4  ;;  %vm12822_vm11 = vmmov %vm12818_vm5 }
 0x388   :  { %v5987_v53 = vsel %vm4730_vm3, %v5986_v58, %v5985_v12  ;;  %v5973_v16 = vsel %vm4730_vm3, %v5972_v21, %v5971_v24  ;;  %v6025_v3 = vsel %vm370_vm0, %v7379_v25, 0  ;;  %v6009_v26 = vsel %vm12822_vm11, %v6008_v18, %v6007_v19  ;;  %vm12825_vm13 = vmmov %vm12812_vm12 }
 0x389   :  { %v6083_v45 = vrot.slane %v11307_v7, 2  ;;  %v5999_v32 = vsel %vm4727_vm2, %v5998_v11, %v5997_v43  ;;  %v6000_v14 = vrot.slane %v11609_v35, 3  ;;  %v6011_v22 = vsel %vm4724_vm7, %v6010_v57, %v6009_v26  ;;  %v7382_v57 = vld [vmem:[%s12347_s5 + $0x2c] sm:$0xf]  ;;  %vm12827_vm15 = vmmov %vm12806_vm10 }
 0x38a   :  { %v6085_v15 = vrot.slane %v11314_v10, 1  ;;  %v6016_v63 = vpack.c.b16 %v5987_v53, %v5973_v16  ;;  %v6012_v61 = vrot.slane %v12779_v42, 4  ;;  %v6082_v20 = vrot.slane %v11304_v51, 3  ;;  %vm12829_vm4 = vmmov %vm12812_vm12 }
 0x38b   :  { %v6097_v0 = vrot.slane %v11363_v28, 2  ;;  %v6014_v25 = vrot.slane %v11669_v40, 3  ;;  %v6088_v58 = vrot.slane %v11323_v2, 7  ;;  %v6099_v34 = vrot.slane %v11384_v17, 1  ;;  %vm12831_vm5 = vmmov %vm12806_vm10 }
 0x38c   :  { %v12823_v38 = vrot.slane %v11339_v44, 3  ;;  %v12824_v21 = vrot.slane %v11508_v50, 2  ;;  %v6013_v52 = vsel %vm4727_vm2, %v6012_v61, %v6011_v22  ;;  %v6084_v8 = vsel %vm12825_vm13, %v6083_v45, %v6082_v20  ;;  %vm12834_vm9 = vmmov %vm12829_vm4 }
 0x38d   :  { %v6090_v41 = vrot.slane %v11326_v62, 6  ;;  %v6096_v19 = vrot.slane %v11356_v59, 3  ;;  %vm12826_vm14 = vcmask 64512   ;;  %v6086_v30 = vsel %vm12827_vm15, %v6085_v15, %v6084_v8  ;;  %vm12835_vm10 = vmmov %vm12831_vm5 }
 0x38e   :  { %v6112_v55 = vsel %vm12812_vm12, %v12824_v21, %v12823_v38  ;;  %7864 = vmatmul.mubr.msk.bf16.vlgmr.msra.gmra.mrb[72].mxu0 %vm12826_vm14, %v5895_v5  ;;  %v6092_v12 = vrot.slane %v11332_v1, 5  ;;  %v6094_v43 = vrot.slane %v11350_v39, 4  ;;  %v6102_v18 = vrot.slane %v11435_v6, 7  ;;  %vm12828_vm1 = vmmov %vm12826_vm14 }
 0x38f   :  { %7869 = vmatprep.mubr.msk.bf16.mxu0 %vm12828_vm1, %v6016_v63  ;;  %7868 = vmatpush3.bf16.msra.mxu0 %v6025_v3  ;;  %v6098_v24 = vsel %vm12829_vm4, %v6097_v0, %v6096_v19  ;;  %v6104_v53 = vrot.slane %v11456_v13, 6  ;;  %v12830_v11 = vrot.slane %v11366_v27, 1  ;;  %v12832_v5 = vrot.slane %v11410_v48, 3  ;;  %vm12836_vm6 = vmmov %vm12821_vm8 }
 0x390   :  { %v12833_v26 = vrot.slane %v11579_v46, 2  ;;  %v6100_v22 = vsel %vm12835_vm10, %v6099_v34, %v6098_v24  ;;  %v6106_v15 = vrot.slane %v11485_v29, 5  ;;  %7992 = vmatprep.subr.msk.bf16.mxu0 %vm370_vm0, %v7382_v57  ;;  %v6118_v63 = vrot.slane %v11601_v60, 6  ;;  %vm12837_vm8 = vmmov %vm12836_vm6 }
 0x391   :  { %v6114_v16 = vsel %vm12831_vm5, %v12830_v11, %v6112_v55  ;;  %v6087_v61 = vsel %vm12837_vm8, %v11317_v49, %v6086_v30  ;;  %vm12838_vm11 = vmmov %vm12836_vm6  ;;  %v6108_v0 = vrot.slane %v11497_v23, 4  ;;  %v6116_v38 = vrot.slane %v11419_v33, 7 }
 0x392   :  { %v6126_v45 = vsel %vm12834_vm9, %v12833_v26, %v12832_v5  ;;  %v6115_v3 = vsel %vm12836_vm6, %v11592_v31, %v6114_v16  ;;  %v6101_v20 = vsel %vm12838_vm11, %v11426_v36, %v6100_v22  ;;  %v6015_v34 = vsel %vm4730_vm3, %v6014_v25, %v6013_v52  ;;  %vm12842_vm14 = vmmov %vm12831_vm5 }
 0x393   :  { %vm12839_vm12 = vcmask 1044484   ;;  %v12841_v8 = vrot.slane %v11442_v9, 1  ;;  %vm12844_vm1 = vmmov %vm12836_vm6  ;;  %v6132_v16 = vrot.slane %v11623_v56, 6  ;;  %v6130_v52 = vrot.slane %v11491_v4, 7 }
 0x394   :  { %v6089_v21 = vsel %vm12839_vm12, %v6088_v58, %v6087_v61  ;;  %vm12840_vm13 = vmmov %vm12839_vm12  ;;  %v6122_v58 = vrot.slane %v11609_v35, 4  ;;  %v6147_v61 = vsel %vm370_vm0, %v7382_v57, 0  ;;  %v6205_v57 = vrot.slane %v11307_v7, 3 }
 0x395   :  { %v6103_v55 = vsel %vm12840_vm13, %v6102_v18, %v6101_v20  ;;  %v6128_v19 = vsel %vm12842_vm14, %v12841_v8, %v6126_v45  ;;  %vm12843_vm15 = vmmov %vm12839_vm12  ;;  %v6001_v18 = vsel %vm4730_vm3, %v6000_v14, %v5999_v32  ;;  %v6091_v26 = vsel %vm4724_vm7, %v6090_v41, %v6089_v21 }
 0x396   :  { %v6105_v24 = vsel %vm4724_vm7, %v6104_v53, %v6103_v55  ;;  %v6117_v30 = vsel %vm12843_vm15, %v6116_v38, %v6115_v3  ;;  %v6129_v11 = vsel %vm12844_vm1, %v11617_v47, %v6128_v19  ;;  %v6120_v45 = vrot.slane %v12777_v37, 5  ;;  %vm12845_vm4 = vmmov %vm12839_vm12  ;;  %v7385_v55 = vld [vmem:[%s12347_s5 + $0x30] sm:$0xf] }
 0x397   :  { %v6107_v5 = vsel %vm4727_vm2, %v6106_v15, %v6105_v24  ;;  %v6119_v25 = vsel %vm4724_vm7, %v6118_v63, %v6117_v30  ;;  %v6017_v22 = vpack.c.b16 %v6015_v34, %v6001_v18  ;;  %v6093_v3 = vsel %vm4727_vm2, %v6092_v12, %v6091_v26  ;;  %vm12849_vm6 = vmmov %vm12842_vm14 }
 0x398   :  { %v6109_v53 = vsel %vm4730_vm3, %v6108_v0, %v6107_v5  ;;  %v6131_v15 = vsel %vm12845_vm4, %v6130_v52, %v6129_v11  ;;  %v6095_v63 = vsel %vm4730_vm3, %v6094_v43, %v6093_v3  ;;  %v6121_v20 = vsel %vm4727_vm2, %v6120_v45, %v6119_v25  ;;  %vm12854_vm12 = vmmov %vm12844_vm1 }
 0x399   :  { %v6133_v38 = vsel %vm4724_vm7, %v6132_v16, %v6131_v15  ;;  %v6219_v32 = vrot.slane %v11363_v28, 3  ;;  %v6138_v14 = vpack.c.b16 %v6109_v53, %v6095_v63  ;;  %v6123_v41 = vsel %vm4730_vm3, %v6122_v58, %v6121_v20  ;;  %vm12855_vm13 = vmmov %vm12849_vm6 }
 0x39a   :  { %v6134_v0 = vrot.slane %v12779_v42, 5  ;;  %v6221_v34 = vrot.slane %v11384_v17, 2  ;;  %v6136_v12 = vrot.slane %v11669_v40, 4  ;;  %v6218_v21 = vrot.slane %v11356_v59, 4  ;;  %vm12856_vm14 = vmmov %vm12845_vm4 }
 0x39b   :  { %v6223_v43 = vrot.slane %v11426_v36, 1  ;;  %vm12846_vm5 = vcmask 64512   ;;  %v6204_v19 = vrot.slane %v11304_v51, 4  ;;  %v6207_v24 = vrot.slane %v11314_v10, 2  ;;  %vm12861_vm4 = vmmov %vm12849_vm6 }
 0x39c   :  { %7870 = vmatmul.mubr.msk.bf16.vlgmr.msra.gmra.mrb[72].mxu0 %vm12846_vm5, %v6017_v22  ;;  %v6135_v8 = vsel %vm4727_vm2, %v6134_v0, %v6133_v38  ;;  %v6209_v30 = vrot.slane %v11317_v49, 1  ;;  %vm12847_vm9 = vmmov %vm12846_vm5  ;;  %v6212_v11 = vrot.slane %v11326_v62, 7  ;;  %v6214_v16 = vrot.slane %v11332_v1, 6 }
 0x39d   :  { %7875 = vmatprep.mubr.msk.bf16.mxu0 %vm12847_vm9, %v6138_v14  ;;  %7874 = vmatpush3.bf16.msra.mxu0 %v6147_v61  ;;  %vm12848_vm10 = vcmask 1041409   ;;  %v6226_v25 = vrot.slane %v11456_v13, 7  ;;  %v6228_v52 = vrot.slane %v11485_v29, 6  ;;  %v12850_v18 = vrot.slane %v11339_v44, 4  ;;  %vm12862_vm5 = vmmov %vm12856_vm14 }
 0x39e   :  { %v6220_v5 = vsel %vm12848_vm10, %v6219_v32, %v6218_v21  ;;  %7993 = vmatprep.subr.msk.bf16.mxu0 %vm370_vm0, %v7385_v55  ;;  %v12851_v26 = vrot.slane %v11508_v50, 3  ;;  %vm12852_vm8 = vmmov %vm12848_vm10  ;;  %v6237_v45 = vrot.slane %v11592_v31, 1  ;;  %v6137_v22 = vsel %vm4730_vm3, %v6136_v12, %v6135_v8 }
 0x39f   :  { %v6222_v58 = vsel %vm12849_vm6, %v6221_v34, %v6220_v5  ;;  %vm12853_vm11 = vmmov %vm12852_vm8  ;;  %v6230_v15 = vrot.slane %v11497_v23, 5  ;;  %v12857_v38 = vrot.slane %v11410_v48, 4  ;;  %v12858_v32 = vrot.slane %v11579_v46, 3 }
 0x3a0   :  { %v6234_v53 = vsel %vm12852_vm8, %v12851_v26, %v12850_v18  ;;  %v6206_v3 = vsel %vm12853_vm11, %v6205_v57, %v6204_v19  ;;  %v6224_v61 = vsel %vm12854_vm12, %v6223_v43, %v6222_v58  ;;  %vm12859_vm15 = vmmov %vm12852_vm8  ;;  %v6251_v0 = vrot.slane %v11617_v47, 1 }
 0x3a1   :  { %v6208_v63 = vsel %vm12855_vm13, %v6207_v24, %v6206_v3  ;;  %v6225_v20 = vsel %vm12856_vm14, %v11435_v6, %v6224_v61  ;;  %v6248_v14 = vsel %vm12859_vm15, %v12858_v32, %v12857_v38  ;;  %v6216_v12 = vrot.slane %v11350_v39, 5  ;;  %vm12863_vm9 = vmmov %vm12844_vm1 }
 0x3a2   :  { %v6210_v34 = vsel %vm12844_vm1, %v6209_v30, %v6208_v63  ;;  %v6227_v57 = vsel %vm4724_vm7, %v6226_v25, %v6225_v20  ;;  %v12860_v21 = vrot.slane %v11366_v27, 2  ;;  %v6240_v5 = vrot.slane %v11601_v60, 7  ;;  %vm12865_vm10 = vmmov %vm12861_vm4 }
 0x3a3   :  { %v6211_v8 = vsel %vm12862_vm5, %v11323_v2, %v6210_v34  ;;  %v6229_v19 = vsel %vm4727_vm2, %v6228_v52, %v6227_v57  ;;  %v6139_v58 = vpack.c.b16 %v6137_v22, %v6123_v41  ;;  %v12864_v25 = vrot.slane %v11442_v9, 2  ;;  %vm12866_vm6 = vmmov %vm12844_vm1 }
 0x3a4   :  { %v6236_v43 = vsel %vm12861_vm4, %v12860_v21, %v6234_v53  ;;  %v6213_v30 = vsel %vm4724_vm7, %v6212_v11, %v6211_v8  ;;  %v6231_v18 = vsel %vm4730_vm3, %v6230_v15, %v6229_v19  ;;  %v6269_v3 = vsel %vm370_vm0, %v7385_v55, 0  ;;  %vm12867_vm8 = vmmov %vm12862_vm5 }
 0x3a5   :  { %v6238_v24 = vsel %vm12863_vm9, %v6237_v45, %v6236_v43  ;;  %v6250_v26 = vsel %vm12865_vm10, %v12864_v25, %v6248_v14  ;;  %v6215_v53 = vsel %vm4727_vm2, %v6214_v16, %v6213_v30  ;;  %v6254_v52 = vrot.slane %v11623_v56, 7  ;;  %vm12868_vm11 = vmmov %vm12862_vm5 }
 0x3a6   :  { %v6252_v61 = vsel %vm12866_vm6, %v6251_v0, %v6250_v26  ;;  %v6217_v45 = vsel %vm4730_vm3, %v6216_v12, %v6215_v53  ;;  %v6239_v41 = vsel %vm12867_vm8, %v11419_v33, %v6238_v24  ;;  %v6242_v11 = vrot.slane %v12777_v37, 6  ;;  %v7388_v0 = vld [vmem:[%s12347_s5 + $0x34] sm:$0xf]  ;;  %vm12871_vm14 = vmmov %vm12859_vm15 }
 0x3a7   :  { %v6244_v22 = vrot.slane %v11609_v35, 5  ;;  %v6260_v15 = vpack.c.b16 %v6231_v18, %v6217_v45  ;;  %v6241_v63 = vsel %vm4724_vm7, %v6240_v5, %v6239_v41  ;;  %v6327_v16 = vrot.slane %v11307_v7, 4  ;;  %vm12872_vm15 = vmmov %vm12871_vm14 }
 0x3a8   :  { %v6341_v55 = vrot.slane %v11363_v28, 4  ;;  %v6253_v20 = vsel %vm12868_vm11, %v11491_v4, %v6252_v61  ;;  %v6326_v38 = vrot.slane %v11304_v51, 5  ;;  %v6329_v32 = vrot.slane %v11314_v10, 3  ;;  %vm12873_vm1 = vmmov %vm12861_vm4 }
 0x3a9   :  { %v6343_v14 = vrot.slane %v11384_v17, 3  ;;  %vm12869_vm12 = vcmask 64512   ;;  %v6255_v34 = vsel %vm4724_vm7, %v6254_v52, %v6253_v20  ;;  %v6331_v12 = vrot.slane %v11317_v49, 2  ;;  %vm12874_vm4 = vmmov %vm12873_vm1 }
 0x3aa   :  { %7876 = vmatmul.mubr.msk.bf16.vlgmr.msra.gmra.mrb[72].mxu0 %vm12869_vm12, %v6139_v58  ;;  %v6340_v57 = vrot.slane %v11356_v59, 5  ;;  %v6345_v21 = vrot.slane %v11426_v36, 2  ;;  %vm12870_vm13 = vmmov %vm12869_vm12  ;;  %v6256_v43 = vrot.slane %v12779_v42, 6  ;;  %v6258_v8 = vrot.slane %v11669_v40, 5 }
 0x3ab   :  { %7881 = vmatprep.mubr.msk.bf16.mxu0 %vm12870_vm13, %v6260_v15  ;;  %7880 = vmatpush3.bf16.msra.mxu0 %v6269_v3  ;;  %v6333_v19 = vrot.slane %v11323_v2, 1  ;;  %v6347_v24 = vrot.slane %v11435_v6, 1  ;;  %v6243_v5 = vsel %vm4727_vm2, %v6242_v11, %v6241_v63  ;;  %v6328_v58 = vsel %vm12871_vm14, %v6327_v16, %v6326_v38  ;;  %vm12875_vm5 = vmmov %vm12866_vm6 }
 0x3ac   :  { %v6336_v30 = vrot.slane %v11332_v1, 7  ;;  %v6342_v18 = vsel %vm12872_vm15, %v6341_v55, %v6340_v57  ;;  %7994 = vmatprep.subr.msk.bf16.mxu0 %vm370_vm0, %v7388_v0  ;;  %v6257_v25 = vsel %vm4727_vm2, %v6256_v43, %v6255_v34  ;;  %v6330_v26 = vsel %vm12873_vm1, %v6329_v32, %v6328_v58  ;;  %vm12876_vm9 = vmmov %vm12875_vm5 }
 0x3ad   :  { %v6344_v53 = vsel %vm12874_vm4, %v6343_v14, %v6342_v18  ;;  %v6350_v3 = vrot.slane %v11485_v29, 7  ;;  %v6332_v61 = vsel %vm12875_vm5, %v6331_v12, %v6330_v26  ;;  %v6338_v52 = vrot.slane %v11350_v39, 6  ;;  %vm12877_vm10 = vmmov %vm12867_vm8 }
 0x3ae   :  { %v6346_v45 = vsel %vm12876_vm9, %v6345_v21, %v6344_v53  ;;  %v6352_v41 = vrot.slane %v11497_v23, 6  ;;  %v6259_v11 = vsel %vm4730_vm3, %v6258_v8, %v6257_v25  ;;  %v6334_v15 = vsel %vm12877_vm10, %v6333_v19, %v6332_v61  ;;  %vm12878_vm6 = vmmov %vm12867_vm8 }
 0x3af   :  { %v6348_v63 = vsel %vm12878_vm6, %v6347_v24, %v6346_v45  ;;  %v12879_v16 = vrot.slane %v11339_v44, 5  ;;  %v12880_v55 = vrot.slane %v11508_v50, 4  ;;  %vm12881_vm8 = vmmov %vm12871_vm14  ;;  %v6359_v32 = vrot.slane %v11592_v31, 2 }
 0x3b0   :  { %v6349_v38 = vsel %vm4724_vm7, %v11456_v13, %v6348_v63  ;;  %v12882_v14 = vrot.slane %v11410_v48, 5  ;;  %vm12883_vm11 = vmmov %vm12881_vm8  ;;  %v6373_v12 = vrot.slane %v11617_v47, 2  ;;  %v6491_v57 = vrot.slane %v11579_v46, 5 }
 0x3b1   :  { %v6356_v20 = vsel %vm12881_vm8, %v12880_v55, %v12879_v16  ;;  %v6245_v21 = vsel %vm4730_vm3, %v6244_v22, %v6243_v5  ;;  %v6335_v43 = vsel %vm4724_vm7, %v11326_v62, %v6334_v15  ;;  %v6351_v8 = vsel %vm4727_vm2, %v6350_v3, %v6349_v38  ;;  %vm12885_vm12 = vmmov %vm12873_vm1 }
 0x3b2   :  { %v6370_v34 = vsel %vm12883_vm11, %v6369_v54, %v12882_v14  ;;  %v6261_v19 = vpack.c.b16 %v6259_v11, %v6245_v21  ;;  %v6337_v24 = vsel %vm4727_vm2, %v6336_v30, %v6335_v43  ;;  %v6353_v58 = vsel %vm4730_vm3, %v6352_v41, %v6351_v8  ;;  %vm12887_vm13 = vmmov %vm12873_vm1  ;;  %v7391_v11 = vld [vmem:[%s12347_s5 + $0x38] sm:$0xf] }
 0x3b3   :  { %v6391_v18 = vsel %vm370_vm0, %v7388_v0, 0  ;;  %v6339_v54 = vsel %vm4730_vm3, %v6338_v52, %v6337_v24  ;;  %v12884_v25 = vrot.slane %v11366_v27, 3  ;;  %v6361_v22 = vrot.slane %v11419_v33, 1  ;;  %vm12888_vm14 = vmmov %vm12875_vm5 }
 0x3b4   :  { %v12886_v5 = vrot.slane %v11442_v9, 3  ;;  %v6364_v30 = vrot.slane %v12777_v37, 7  ;;  %vm12889_vm15 = vmmov %vm12875_vm5  ;;  %v6463_v0 = vrot.slane %v11363_v28, 5  ;;  %v6382_v61 = vpack.c.b16 %v6353_v58, %v6339_v54 }
 0x3b5   :  { %v6358_v46 = vsel %vm12885_vm12, %v12884_v25, %v6356_v20  ;;  %v6366_v52 = vrot.slane %v11609_v35, 6  ;;  %v6375_v45 = vrot.slane %v11491_v4, 1  ;;  %v6465_v41 = vrot.slane %v11384_v17, 4  ;;  %vm12892_vm5 = vmmov %vm12878_vm6 }
 0x3b6   :  { %v6372_v26 = vsel %vm12887_vm13, %v12886_v5, %v6370_v34  ;;  %v6360_v53 = vsel %vm12888_vm14, %v6359_v32, %v6358_v46  ;;  %vm12890_vm1 = vcmask 64512   ;;  %v6380_v15 = vrot.slane %v11669_v40, 6  ;;  %vm12893_vm9 = vmmov %vm12881_vm8 }
 0x3b7   :  { %v6374_v3 = vsel %vm12889_vm15, %v6373_v12, %v6372_v26  ;;  %7882 = vmatmul.mubr.msk.bf16.vlgmr.msra.gmra.mrb[72].mxu0 %vm12890_vm1, %v6261_v19  ;;  %v6449_v63 = vrot.slane %v11307_v7, 5  ;;  %v6462_v16 = vrot.slane %v11356_v59, 6  ;;  %v6467_v28 = vrot.slane %v11426_v36, 3  ;;  %vm12891_vm4 = vmmov %vm12890_vm1 }
 0x3b8   :  { %7887 = vmatprep.mubr.msk.bf16.mxu0 %vm12891_vm4, %v6382_v61  ;;  %7886 = vmatpush3.bf16.msra.mxu0 %v6391_v18  ;;  %v6376_v55 = vsel %vm12892_vm5, %v6375_v45, %v6374_v3  ;;  %v6448_v17 = vrot.slane %v11304_v51, 6  ;;  %v6451_v20 = vrot.slane %v11314_v10, 4  ;;  %v6469_v38 = vrot.slane %v11435_v6, 2  ;;  %vm12894_vm10 = vmmov %vm12892_vm5 }
 0x3b9   :  { %v6377_v32 = vsel %vm4724_vm7, %v11623_v56, %v6376_v55  ;;  %v6453_v7 = vrot.slane %v11317_v49, 3  ;;  %v6464_v59 = vsel %vm12893_vm9, %v6463_v0, %v6462_v16  ;;  %v6471_v36 = vrot.slane %v11456_v13, 1  ;;  %7995 = vmatprep.subr.msk.bf16.mxu0 %vm370_vm0, %v7391_v11  ;;  %vm12895_vm6 = vmmov %vm12885_vm12 }
 0x3ba   :  { %v6362_v14 = vsel %vm12894_vm10, %v6361_v22, %v6360_v53  ;;  %v6378_v34 = vrot.slane %v12779_v42, 7  ;;  %v6455_v51 = vrot.slane %v11323_v2, 2  ;;  %v6466_v10 = vsel %vm12895_vm6, %v6465_v41, %v6464_v59  ;;  %vm12896_vm11 = vmmov %vm12888_vm14 }
 0x3bb   :  { %v6450_v6 = vsel %vm12881_vm8, %v6449_v63, %v6448_v17  ;;  %v6457_v12 = vrot.slane %v11326_v62, 1  ;;  %v6468_v49 = vsel %vm12896_vm11, %v6467_v28, %v6466_v10  ;;  %v6474_v21 = vrot.slane %v11497_v23, 7  ;;  %vm12897_vm12 = vmmov %vm12895_vm6 }
 0x3bc   :  { %v6363_v13 = vsel %vm4724_vm7, %v11601_v60, %v6362_v14  ;;  %v6379_v43 = vsel %vm4727_vm2, %v6378_v34, %v6377_v32  ;;  %v6452_v8 = vsel %vm12897_vm12, %v6451_v20, %v6450_v6  ;;  %vm12898_vm13 = vmmov %vm12892_vm5  ;;  %v6460_v58 = vrot.slane %v11350_v39, 7  ;;  %v8189_v6 = vld [vmem:[%s12342_s0 + $0x18] sm:$0xff]  }
 0x3bd   :  { %v6470_v19 = vsel %vm12898_vm13, %v6469_v38, %v6468_v49  ;;  %v6381_v2 = vsel %vm4730_vm3, %v6380_v15, %v6379_v43  ;;  %vm12899_vm14 = vmmov %vm12896_vm11  ;;  %v12901_v54 = vrot.slane %v11410_v48, 6  ;;  %v6495_v46 = vrot.slane %v11617_v47, 3 }
 0x3be   :  { %v6454_v24 = vsel %vm12899_vm14, %v6453_v7, %v6452_v8  ;;  %v6472_v62 = vsel %vm4724_vm7, %v6471_v36, %v6470_v19  ;;  %vm12900_vm15 = vmmov %vm12892_vm5  ;;  %v6493_v22 = vrot.slane %v11442_v9, 4  ;;  %v6365_v5 = vsel %vm4727_vm2, %v6364_v30, %v6363_v13  ;;  %v8190_v8 = vld [vmem:[%s12342_s0 + $0x20] sm:$0xff]  }
 0x3bf   :  { %v6456_v18 = vsel %vm12900_vm15, %v6455_v51, %v6454_v24  ;;  %v6473_v23 = vsel %vm4727_vm2, %v11485_v29, %v6472_v62  ;;  %vm12902_vm1 = vmmov %vm12881_vm8  ;;  %v6367_v53 = vsel %vm4730_vm3, %v6366_v52, %v6365_v5  ;;  %v12903_v29 = vrot.slane %v11339_v44, 6 }
 0x3c0   :  { %v6492_v25 = vsel %vm12902_vm1, %v6491_v57, %v12901_v54  ;;  %v6458_v26 = vsel %vm4724_vm7, %v6457_v12, %v6456_v18  ;;  %v6475_v39 = vsel %vm4730_vm3, %v6474_v21, %v6473_v23  ;;  %v12904_v48 = vrot.slane %v11508_v50, 5  ;;  %vm12905_vm4 = vmmov %vm12902_vm1 }
 0x3c1   :  { %v6459_v3 = vsel %vm4727_vm2, %v11332_v1, %v6458_v26  ;;  %v6481_v47 = vrot.slane %v11592_v31, 3  ;;  %v6383_v9 = vpack.c.b16 %v6381_v2, %v6367_v53  ;;  %v6513_v0 = vsel %vm370_vm0, %v7391_v11, 0  ;;  %vm12906_vm5 = vmmov %vm12895_vm6 }
 0x3c2   :  { %v6478_v57 = vsel %vm12905_vm4, %v12904_v48, %v12903_v29  ;;  %v6461_v30 = vsel %vm4730_vm3, %v6460_v58, %v6459_v3  ;;  %v6494_v61 = vsel %vm12906_vm5, %v6493_v22, %v6492_v25  ;;  %vm12907_vm9 = vmmov %vm12896_vm11  ;;  %v6499_v1 = vrot.slane %v11623_v56, 1  ;;  %v8191_v25 = vld [vmem:[%s12342_s0 + $0x28] sm:$0xff]   ;;  %v8192_v29 = vld [vmem:[%s12342_s0 + $0x30] sm:$0xff]  }
 0x3c3   :  { %v6504_v45 = vpack.c.b16 %v6475_v39, %v6461_v30  ;;  %v6496_v52 = vsel %vm12907_vm9, %v6495_v46, %v6494_v61  ;;  %vm12908_vm10 = vcmask 64512   ;;  %v12909_v44 = vrot.slane %v11366_v27, 4  ;;  %vm12910_vm6 = vmmov %vm12906_vm5 }
 0x3c4   :  { %7888 = vmatmul.mubr.msk.bf16.vlgmr.msra.gmra.mrb[72].mxu0 %vm12908_vm10, %v6383_v9  ;;  %v6497_v31 = vrot.slane %v11491_v4, 2  ;;  %vm12911_vm8 = vmmov %vm12908_vm10  ;;  %v6485_v11 = vrot.slane %v11601_v60, 1  ;;  %v6483_v15 = vrot.slane %v11419_v33, 2  ;;  %v6502_v16 = vrot.slane %v11669_v40, 7  ;;  %v8186_v40 = vld [vmem:[%s12342_s0] sm:$0xff]  }
 0x3c5   :  { %v6480_v50 = vsel %vm12910_vm6, %v12909_v44, %v6478_v57  ;;  %7893 = vmatprep.mubr.msk.bf16.mxu0 %vm12911_vm8, %v6504_v45  ;;  %7892 = vmatpush3.bf16.msra.mxu0 %v6513_v0  ;;  %vm12912_vm11 = vmmov %vm12907_vm9  ;;  %v6488_v4 = vrot.slane %v11609_v35, 7  ;;  %v8187_v35 = vld [vmem:[%s12342_s0 + $0x8] sm:$0xff]  }
 0x3c6   :  { %v6482_v41 = vsel %vm12912_vm11, %v6481_v47, %v6480_v50  ;;  %vm12913_vm12 = vmmov %vm12898_vm13 }
 0x3c7   :  { %v6498_v63 = vsel %vm12913_vm12, %v6497_v31, %v6496_v52  ;;  %vm12914_vm13 = vmmov %vm12913_vm12 }
 0x3c8   :  { %v6500_v56 = vsel %vm4724_vm7, %v6499_v1, %v6498_v63  ;;  %v6484_v27 = vsel %vm12914_vm13, %v6483_v15, %v6482_v41  ;;  %vm12915_vm14 = vmmov %vm12911_vm8 }
 0x3c9   :  { %v6486_v28 = vsel %vm4724_vm7, %v6485_v11, %v6484_v27  ;;  %v6501_v55 = vsel %vm4727_vm2, %v12779_v42, %v6500_v56  ;;  %vm12916_vm15 = vmmov %vm12911_vm8  ;;  %v8193_v56 = vld [vmem:[%s12342_s0 + $0x38] sm:$0xff]  }
 0x3ca   :  { %v6503_v17 = vsel %vm4730_vm3, %v6502_v16, %v6501_v55  ;;  %v6487_v33 = vsel %vm4727_vm2, %v12777_v37, %v6486_v28  ;;  %v6660_v38 = vsel %vm12916_vm15, %v8186_v40, 4286644096  ;;  %vm12917_vm1 = vmmov %vm12911_vm8  ;;  %v8188_v37 = vld [vmem:[%s12342_s0 + $0x10] sm:$0xff]  }
 0x3cb   :  { %v6489_v60 = vsel %vm4730_vm3, %v6488_v4, %v6487_v33  ;;  %v6672_v42 = vsel %vm12917_vm1, %v8187_v35, 4286644096  ;;  %vm12918_vm4 = vmmov %vm12917_vm1  ;;  %v6662_v7 = vunpack.i.l.bf16 %v6660_v38  ;;  %v6663_v59 = vunpack.i.h.bf16 %v6660_v38 }
 0x3cc   :  { %v6505_v20 = vpack.c.b16 %v6503_v17, %v6489_v60  ;;  %v6684_v32 = vsel %vm12918_vm4, %v8188_v37, 4286644096  ;;  %v6674_v36 = vunpack.i.l.bf16 %v6672_v42  ;;  %v6675_v14 = vunpack.i.h.bf16 %v6672_v42  ;;  %vm12919_vm5 = vmmov %vm12917_vm1 }
 0x3cd   :  { %v6686_v34 = vunpack.i.l.bf16 %v6684_v32  ;;  %v6687_v51 = vunpack.i.h.bf16 %v6684_v32  ;;  %v6664_v10 = vmax.f32 %v6662_v7, %v6663_v59  ;;  %v6696_v12 = vsel %vm12919_vm5, %v8189_v6, 4286644096  ;;  %vm12920_vm9 = vmmov %vm12917_vm1  ;;  %v8194_v32 = vld [vmem:[%s12342_s0 + $0x40] sm:$0xff]  }
 0x3ce   :  { %v6676_v49 = vmax.f32 %v6674_v36, %v6675_v14  ;;  %v6698_v13 = vunpack.i.l.bf16 %v6696_v12  ;;  %v6699_v43 = vunpack.i.h.bf16 %v6696_v12  ;;  %v6708_v19 = vsel %vm12920_vm9, %v8190_v8, 4286644096  ;;  %vm12921_vm10 = vmmov %vm12917_vm1  ;;  %v8195_v12 = vld [vmem:[%s12342_s0 + $0x48] sm:$0xff]  }
 0x3cf   :  { %v6688_v21 = vmax.f32 %v6686_v34, %v6687_v51  ;;  %v6665_v2 = vrot.slane %v6664_v10, 4  ;;  %v6710_v62 = vunpack.i.l.bf16 %v6708_v19  ;;  %v6711_v18 = vunpack.i.h.bf16 %v6708_v19  ;;  %vm12922_vm6 = vmmov %vm12917_vm1 }
 0x3d0   :  { %7894 = vmatmul.mubr.msk.bf16.vlgmr.msra.gmra.mrb[72].mxu0 %vm12915_vm14, %v6505_v20  ;;  %v6677_v24 = vrot.slane %v6676_v49, 4  ;;  %v6700_v23 = vmax.f32 %v6698_v13, %v6699_v43  ;;  %v6720_v46 = vsel %vm12921_vm10, %v8191_v25, 4286644096  ;;  %v6732_v48 = vsel %vm12922_vm6, %v8192_v29, 4286644096  ;;  %vm12923_vm8 = vmmov %vm12917_vm1 }
 0x3d1   :  { %v6689_v58 = vrot.slane %v6688_v21, 4  ;;  %v6666_v54 = vmax.f32 %v6664_v10, %v6665_v2  ;;  %v6712_v26 = vmax.f32 %v6710_v62, %v6711_v18  ;;  %v6722_v53 = vunpack.i.l.bf16 %v6720_v46  ;;  %vm12924_vm11 = vmmov %vm12917_vm1 }
 0x3d2   :  { %v6678_v22 = vmax.f32 %v6676_v49, %v6677_v24  ;;  %v6701_v39 = vrot.slane %v6700_v23, 4  ;;  %v6723_v3 = vunpack.i.h.bf16 %v6720_v46  ;;  %v6734_v0 = vunpack.i.l.bf16 %v6732_v48  ;;  %vm12925_vm12 = vmmov %vm12917_vm1 }
 0x3d3   :  { %v6690_v5 = vmax.f32 %v6688_v21, %v6689_v58  ;;  %v6667_v57 = vrot.slane %v6666_v54, 2  ;;  %v6713_v30 = vrot.slane %v6712_v26, 4  ;;  %v6735_v61 = vunpack.i.h.bf16 %v6732_v48  ;;  %vm12926_vm13 = vmmov %vm12917_vm1  ;;  %v8198_v48 = vld [vmem:[%s12342_s0 + $0x60] sm:$0xff]  }
 0x3d4   :  { %v6679_v47 = vrot.slane %v6678_v22, 2  ;;  %v6702_v45 = vmax.f32 %v6700_v23, %v6701_v39  ;;  %v6724_v52 = vmax.f32 %v6722_v53, %v6723_v3  ;;  %v6744_v16 = vsel %vm12923_vm8, %v8193_v56, 4286644096  ;;  %vm12927_vm14 = vmmov %vm12917_vm1  ;;  %v8203_v56 = vld [vmem:[%s12342_s0 + $0xe8] sm:$0xff]  }
 0x3d5   :  { %v6691_v9 = vrot.slane %v6690_v5, 2  ;;  %v6668_v1 = vmax.f32 %v6666_v54, %v6667_v57  ;;  %v6714_v31 = vmax.f32 %v6712_v26, %v6713_v30  ;;  %v6736_v41 = vmax.f32 %v6734_v0, %v6735_v61  ;;  %v8196_v54 = vld [vmem:[%s12342_s0 + $0x50] sm:$0xff]   ;;  %v8197_v26 = vld [vmem:[%s12342_s0 + $0x58] sm:$0xff]   ;;  %vm12928_vm15 = vmmov %vm12917_vm1 }
 0x3d6   :  { %v6680_v44 = vmax.f32 %v6678_v22, %v6679_v47  ;;  %v6703_v11 = vrot.slane %v6702_v45, 2  ;;  %v6725_v15 = vrot.slane %v6724_v52, 4  ;;  %v6746_v60 = vunpack.i.l.bf16 %v6744_v16  ;;  %v8199_v0 = vld [vmem:[%s12342_s0 + $0xa8] sm:$0xff]   ;;  %vm12929_vm4 = vmmov %vm12917_vm1 }
 0x3d7   :  { %v6692_v50 = vmax.f32 %v6690_v5, %v6691_v9  ;;  %v6669_v63 = vrot.slane %v6668_v1, 1  ;;  %v6715_v4 = vrot.slane %v6714_v31, 2  ;;  %v6737_v55 = vrot.slane %v6736_v41, 4  ;;  %vm12930_vm5 = vmmov %vm12917_vm1 }
 0x3d8   :  { %v6681_v27 = vrot.slane %v6680_v44, 1  ;;  %v6704_v17 = vmax.f32 %v6702_v45, %v6703_v11  ;;  %v6726_v33 = vmax.f32 %v6724_v52, %v6725_v15  ;;  %v6747_v20 = vunpack.i.h.bf16 %v6744_v16  ;;  %v8202_v15 = vld [vmem:[%s12342_s0 + $0xe0] sm:$0xff]   ;;  %vm12931_vm9 = vmmov %vm12917_vm1 }
 0x3d9   :  { %v6693_v28 = vrot.slane %v6692_v50, 1  ;;  %v6670_v40 = vmax.f32 %v6668_v1, %v6669_v63  ;;  %v6716_v42 = vmax.f32 %v6714_v31, %v6715_v4  ;;  %v6738_v37 = vmax.f32 %v6736_v41, %v6737_v55  ;;  %v8200_v1 = vld [vmem:[%s12342_s0 + $0xb0] sm:$0xff]   ;;  %vm12932_vm10 = vmmov %vm12917_vm1 }
 0x3da   :  { %v6682_v38 = vmax.f32 %v6680_v44, %v6681_v27  ;;  %v6756_v7 = vsel %vm12924_vm11, %v8194_v32, 4286644096  ;;  %v6705_v59 = vrot.slane %v6704_v17, 1  ;;  %v6727_v36 = vrot.slane %v6726_v33, 2  ;;  %v8204_v55 = vld [vmem:[%s12342_s0 + $0xf0] sm:$0xff]   ;;  %vm12933_vm6 = vmmov %vm12917_vm1 }
 0x3db   :  { %v6694_v35 = vmax.f32 %v6692_v50, %v6693_v28  ;;  %v6748_v14 = vmax.f32 %v6746_v60, %v6747_v20  ;;  %v6671_v34 = vpack.i.bf16 %v6670_v40, %v6670_v40  ;;  %v6758_v10 = vunpack.i.l.bf16 %v6756_v7  ;;  %v8201_v50 = vld [vmem:[%s12342_s0 + $0xd8] sm:$0xff]   ;;  %vm12934_vm8 = vmmov %vm12917_vm1 }
 0x3dc   :  { %v6683_v51 = vpack.i.bf16 %v6682_v38, %v6682_v38  ;;  %v6759_v6 = vunpack.i.h.bf16 %v6756_v7  ;;  %v6768_v49 = vsel %vm12925_vm12, %v8195_v12, 4286644096  ;;  %v6717_v13 = vrot.slane %v6716_v42, 1  ;;  %vm12935_vm11 = vmmov %vm12917_vm1 }
 0x3dd   :  { %v6695_v21 = vpack.i.bf16 %v6694_v35, %v6694_v35  ;;  %v6739_v43 = vrot.slane %v6738_v37, 2  ;;  %v6706_v8 = vmax.f32 %v6704_v17, %v6705_v59  ;;  %v12188_v19 = vmax.f32 %v6726_v33, %v6727_v36  ;;  %vm12936_vm12 = vmmov %vm12917_vm1 }
 0x3de   :  { %v6749_v2 = vrot.slane %v6748_v14, 4  ;;  %v6770_v24 = vunpack.i.l.bf16 %v6768_v49  ;;  %v6771_v58 = vunpack.i.h.bf16 %v6768_v49  ;;  %v12190_v62 = vunpack.c.l.b16 %v6671_v34 }
 0x3df   :  { %v12192_v18 = vunpack.c.l.b16 %v6683_v51  ;;  %v6760_v23 = vmax.f32 %v6758_v10, %v6759_v6  ;;  %v6780_v25 = vsel %vm12926_vm13, %v8196_v54, 4286644096  ;;  %v12198_v46 = vunpack.c.l.b16 %v6695_v21  ;;  %v8205_v10 = vld [vmem:[%s12342_s0 + $0x68] sm:$0xff]   ;;  %vm12937_vm13 = vmmov %vm12917_vm1 }
 0x3e0   :  { %v6718_v22 = vmax.f32 %v6716_v42, %v6717_v13  ;;  %v12200_v5 = vmax.f32 %v6738_v37, %v6739_v43  ;;  %v6792_v39 = vsel %vm12927_vm14, %v8197_v26, 4286644096  ;;  %v6707_v53 = vpack.i.bf16 %v6706_v8, %v6706_v8  ;;  %vm12938_vm14 = vmmov %vm12917_vm1 }
 0x3e1   :  { %v6729_v3 = vrot.slane %v12188_v19, 1  ;;  %v12207_v29 = vmax.f32 %v6748_v14, %v6749_v2  ;;  %v6804_v57 = vsel %vm12928_vm15, %v8198_v48, 4286644096  ;;  %v6772_v47 = vmax.f32 %v6770_v24, %v6771_v58  ;;  %v8206_v48 = vld [vmem:[%s12342_s0 + $0x70] sm:$0xff]  }
 0x3e2   :  { %v6782_v9 = vunpack.i.l.bf16 %v6780_v25  ;;  %v6783_v30 = vunpack.i.h.bf16 %v6780_v25  ;;  %v6912_v61 = vsel %vm12917_vm1, %v8199_v0, 4286644096  ;;  %v6761_v45 = vrot.slane %v6760_v23, 4 }
 0x3e3   :  { %v6794_v52 = vunpack.i.l.bf16 %v6792_v39  ;;  %v6924_v44 = vsel %vm12929_vm4, %v8200_v1, 4286644096  ;;  %v6984_v31 = vsel %vm12930_vm5, %v8201_v50, 4286644096  ;;  %v6795_v41 = vunpack.i.h.bf16 %v6792_v39 }
 0x3e4   :  { %v6806_v11 = vunpack.i.l.bf16 %v6804_v57  ;;  %v6996_v63 = vsel %vm12931_vm9, %v8202_v15, 4286644096  ;;  %v7008_v16 = vsel %vm12932_vm10, %v8203_v56, 4286644096  ;;  %v6807_v27 = vunpack.i.h.bf16 %v6804_v57 }
 0x3e5   :  { %v6914_v28 = vunpack.i.l.bf16 %v6912_v61  ;;  %v6915_v4 = vunpack.i.h.bf16 %v6912_v61  ;;  %v7020_v17 = vsel %vm12933_vm6, %v8204_v55, 4286644096  ;;  %v6926_v33 = vunpack.i.l.bf16 %v6924_v44 }
 0x3e6   :  { %v6927_v60 = vunpack.i.h.bf16 %v6924_v44  ;;  %v6986_v20 = vunpack.i.l.bf16 %v6984_v31  ;;  %v6987_v40 = vunpack.i.h.bf16 %v6984_v31  ;;  %v6998_v38 = vunpack.i.l.bf16 %v6996_v63 }
 0x3e7   :  { %v6999_v35 = vunpack.i.h.bf16 %v6996_v63  ;;  %v7010_v42 = vunpack.i.l.bf16 %v7008_v16  ;;  %v7011_v37 = vunpack.i.h.bf16 %v7008_v16  ;;  %v12237_v32 = vunpack.c.l.b16 %v6707_v53 }
 0x3e8   :  { %v6719_v7 = vpack.i.bf16 %v6718_v22, %v6718_v22  ;;  %v7022_v59 = vunpack.i.l.bf16 %v7020_v17  ;;  %v7023_v36 = vunpack.i.h.bf16 %v7020_v17  ;;  %v6784_v14 = vmax.f32 %v6782_v9, %v6783_v30 }
 0x3e9   :  { %v6796_v34 = vmax.f32 %v6794_v52, %v6795_v41  ;;  %v6808_v51 = vmax.f32 %v6806_v11, %v6807_v27  ;;  %v6816_v6 = vsel %vm12934_vm8, %v8205_v10, 4286644096  ;;  %v6751_v12 = vrot.slane %v12207_v29, 2  ;;  %v8208_v11 = vld [vmem:[%s12342_s0 + $0xf8] sm:$0xff]  }
 0x3ea   :  { %v6916_v49 = vmax.f32 %v6914_v28, %v6915_v4  ;;  %v6928_v21 = vmax.f32 %v6926_v33, %v6927_v60  ;;  %v6988_v13 = vmax.f32 %v6986_v20, %v6987_v40  ;;  %v6762_v43 = vmax.f32 %v6760_v23, %v6761_v45  ;;  %v8207_v23 = vld [vmem:[%s12342_s0 + $0xb8] sm:$0xff]  }
 0x3eb   :  { %v6773_v8 = vrot.slane %v6772_v47, 4  ;;  %v7000_v2 = vmax.f32 %v6998_v38, %v6999_v35  ;;  %v7012_v24 = vmax.f32 %v7010_v42, %v7011_v37  ;;  %v12244_v58 = vunpack.c.l.b16 %v6719_v7 }
 0x3ec   :  { %v6818_v54 = vunpack.i.l.bf16 %v6816_v6  ;;  %v6819_v25 = vunpack.i.h.bf16 %v6816_v6  ;;  %v7024_v22 = vmax.f32 %v7022_v59, %v7023_v36  ;;  %v6785_v26 = vrot.slane %v6784_v14, 4  ;;  %v8209_v36 = vld [vmem:[%s12342_s0 + $0x78] sm:$0xff]  }
 0x3ed   :  { %v6797_v39 = vrot.slane %v6796_v34, 4  ;;  %v6809_v53 = vrot.slane %v6808_v51, 4  ;;  %v6828_v57 = vsel %vm12935_vm11, %v8206_v48, 4286644096  ;;  %v6917_v9 = vrot.slane %v6916_v49, 4 }
 0x3ee   :  { %v6929_v30 = vrot.slane %v6928_v21, 4  ;;  %v6936_v0 = vsel %vm12936_vm12, %v8207_v23, 4286644096  ;;  %v6989_v61 = vrot.slane %v6988_v13, 4  ;;  %v6763_v45 = vrot.slane %v6762_v43, 2 }
 0x3ef   :  { %v6774_v52 = vmax.f32 %v6772_v47, %v6773_v8  ;;  %v7001_v1 = vrot.slane %v7000_v2, 4  ;;  %v7013_v44 = vrot.slane %v7012_v24, 4  ;;  %v6820_v50 = vmax.f32 %v6818_v54, %v6819_v25 }
 0x3f0   :  { %v6830_v31 = vunpack.i.l.bf16 %v6828_v57  ;;  %v7025_v41 = vrot.slane %v7024_v22, 4  ;;  %v7032_v15 = vsel %vm12937_vm13, %v8208_v11, 4286644096  ;;  %v6786_v63 = vmax.f32 %v6784_v14, %v6785_v26 }
 0x3f1   :  { %v6798_v56 = vmax.f32 %v6796_v34, %v6797_v39  ;;  %v6810_v16 = vmax.f32 %v6808_v51, %v6809_v53  ;;  %v6938_v27 = vunpack.i.l.bf16 %v6936_v0  ;;  %v6918_v28 = vmax.f32 %v6916_v49, %v6917_v9 }
 0x3f2   :  { %v6930_v4 = vmax.f32 %v6928_v21, %v6929_v30  ;;  %v6939_v55 = vunpack.i.h.bf16 %v6936_v0  ;;  %v6990_v17 = vmax.f32 %v6988_v13, %v6989_v61  ;;  %v7002_v47 = vmax.f32 %v7000_v2, %v7001_v1 }
 0x3f3   :  { %v7014_v33 = vmax.f32 %v7012_v24, %v7013_v44  ;;  %v7034_v60 = vunpack.i.l.bf16 %v7032_v15  ;;  %v7035_v20 = vunpack.i.h.bf16 %v7032_v15  ;;  %v6764_v40 = vmax.f32 %v6762_v43, %v6763_v45 }
 0x3f4   :  { %v6775_v38 = vrot.slane %v6774_v52, 2  ;;  %v6831_v35 = vunpack.i.h.bf16 %v6828_v57  ;;  %v7026_v42 = vmax.f32 %v7024_v22, %v7025_v41  ;;  %v6787_v37 = vrot.slane %v6786_v63, 2 }
 0x3f5   :  { %v6799_v7 = vrot.slane %v6798_v56, 2  ;;  %v6821_v59 = vrot.slane %v6820_v50, 4  ;;  %v6840_v14 = vsel %vm12938_vm14, %v8209_v36, 4286644096  ;;  %v6811_v34 = vrot.slane %v6810_v16, 2 }
 0x3f6   :  { %v6919_v51 = vrot.slane %v6918_v28, 2  ;;  %v6931_v10 = vrot.slane %v6930_v4, 2  ;;  %v6940_v6 = vmax.f32 %v6938_v27, %v6939_v55  ;;  %v6991_v49 = vrot.slane %v6990_v17, 2 }
 0x3f7   :  { %v7003_v21 = vrot.slane %v7002_v47, 2  ;;  %v7015_v13 = vrot.slane %v7014_v33, 2  ;;  %v7036_v43 = vmax.f32 %v7034_v60, %v7035_v20  ;;  %v6765_v8 = vrot.slane %v6764_v40, 1 }
 0x3f8   :  { %v6776_v2 = vmax.f32 %v6774_v52, %v6775_v38  ;;  %v6832_v24 = vmax.f32 %v6830_v31, %v6831_v35  ;;  %v7027_v54 = vrot.slane %v7026_v42, 2  ;;  %v6788_v25 = vmax.f32 %v6786_v63, %v6787_v37 }
 0x3f9   :  { %v6800_v22 = vmax.f32 %v6798_v56, %v6799_v7  ;;  %v6842_v26 = vunpack.i.l.bf16 %v6840_v14  ;;  %v6843_v39 = vunpack.i.h.bf16 %v6840_v14  ;;  %v6812_v53 = vmax.f32 %v6810_v16, %v6811_v34 }
 0x3fa   :  { %v6920_v48 = vmax.f32 %v6918_v28, %v6919_v51  ;;  %v6932_v57 = vmax.f32 %v6930_v4, %v6931_v10  ;;  %v6941_v9 = vrot.slane %v6940_v6, 4  ;;  %v6992_v30 = vmax.f32 %v6990_v17, %v6991_v49 }
 0x3fb   :  { %v7004_v23 = vmax.f32 %v7002_v47, %v7003_v21  ;;  %v7016_v0 = vmax.f32 %v7014_v33, %v7015_v13  ;;  %v7037_v61 = vrot.slane %v7036_v43, 4  ;;  %v6777_v45 = vrot.slane %v6776_v2, 1 }
 0x3fc   :  { %v6822_v1 = vmax.f32 %v6820_v50, %v6821_v59  ;;  %v6833_v44 = vrot.slane %v6832_v24, 4  ;;  %v7028_v41 = vmax.f32 %v7026_v42, %v7027_v54  ;;  %v6766_v11 = vmax.f32 %v6764_v40, %v6765_v8 }
 0x3fd   :  { %v6789_v52 = vrot.slane %v6788_v25, 1  ;;  %v6801_v31 = vrot.slane %v6800_v22, 1  ;;  %v6844_v15 = vmax.f32 %v6842_v26, %v6843_v39  ;;  %v6813_v63 = vrot.slane %v6812_v53, 1 }
 0x3fe   :  { %v6921_v56 = vrot.slane %v6920_v48, 1  ;;  %v6933_v27 = vrot.slane %v6932_v57, 1  ;;  %v6942_v55 = vmax.f32 %v6940_v6, %v6941_v9  ;;  %v6993_v16 = vrot.slane %v6992_v30, 1 }
 0x3ff   :  { %v7005_v28 = vrot.slane %v7004_v23, 1  ;;  %v7017_v4 = vrot.slane %v7016_v0, 1  ;;  %v7038_v60 = vmax.f32 %v7036_v43, %v7037_v61  ;;  %v6778_v17 = vmax.f32 %v6776_v2, %v6777_v45 }
 0x400   :  { %v6823_v47 = vrot.slane %v6822_v1, 2  ;;  %v6834_v33 = vmax.f32 %v6832_v24, %v6833_v44  ;;  %v7029_v20 = vrot.slane %v7028_v41, 1  ;;  %v6767_v38 = vpack.i.bf16 %v6766_v11, %v6766_v11 }
 0x401   :  { %v6790_v50 = vmax.f32 %v6788_v25, %v6789_v52  ;;  %v6802_v35 = vmax.f32 %v6800_v22, %v6801_v31  ;;  %v6845_v42 = vrot.slane %v6844_v15, 4  ;;  %v6814_v40 = vmax.f32 %v6812_v53, %v6813_v63 }
 0x402   :  { %v6922_v37 = vmax.f32 %v6920_v48, %v6921_v56  ;;  %v6934_v7 = vmax.f32 %v6932_v57, %v6933_v27  ;;  %v6943_v59 = vrot.slane %v6942_v55, 2  ;;  %v6994_v36 = vmax.f32 %v6992_v30, %v6993_v16 }
 0x403   :  { %v7006_v14 = vmax.f32 %v7004_v23, %v7005_v28  ;;  %v7018_v34 = vmax.f32 %v7016_v0, %v7017_v4  ;;  %v7039_v51 = vrot.slane %v7038_v60, 2  ;;  %v6779_v10 = vpack.i.bf16 %v6778_v17, %v6778_v17  ;;  %v6593_v0 = vld [vmem:[%s12349_s7] sm:$0xf] }
 0x404   :  { %v6824_v6 = vmax.f32 %v6822_v1, %v6823_v47  ;;  %v6835_v49 = vrot.slane %v6834_v33, 2  ;;  %v7030_v21 = vmax.f32 %v7028_v41, %v7029_v20  ;;  %v7092_v13 = vunpack.c.l.b16 %v6767_v38  ;;  %7996 = vmatprep.subr.msk.bf16.mxu1 %vm370_vm0, %v6593_v0 }
 0x405   :  { %v6791_v43 = vpack.i.bf16 %v6790_v50, %v6790_v50  ;;  %v6803_v8 = vpack.i.bf16 %v6802_v35, %v6802_v35  ;;  %v6846_v2 = vmax.f32 %v6844_v15, %v6845_v42  ;;  %v6815_v24 = vpack.i.bf16 %v6814_v40, %v6814_v40 }
 0x406   :  { %v6923_v54 = vpack.i.bf16 %v6922_v37, %v6922_v37  ;;  %v6935_v25 = vpack.i.bf16 %v6934_v7, %v6934_v7  ;;  %v6944_v22 = vmax.f32 %v6942_v55, %v6943_v59  ;;  %v6995_v26 = vpack.i.bf16 %v6994_v36, %v6994_v36  ;;  %v12270_v55 = vld [vmem:[%s12351_s9] sm:$0xf] }
 0x407   :  { %v7007_v39 = vpack.i.bf16 %v7006_v14, %v7006_v14  ;;  %v7019_v53 = vpack.i.bf16 %v7018_v34, %v7018_v34  ;;  %v7040_v48 = vmax.f32 %v7038_v60, %v7039_v51  ;;  %v7093_v57 = vunpack.c.l.b16 %v6779_v10 }
 0x408   :  { %v6825_v9 = vrot.slane %v6824_v6, 1  ;;  %v6836_v30 = vmax.f32 %v6834_v33, %v6835_v49  ;;  %v7031_v23 = vpack.i.bf16 %v7030_v21, %v7030_v21  ;;  %v7094_v61 = vunpack.c.l.b16 %v6791_v43 }
 0x409   :  { %v7095_v45 = vunpack.c.l.b16 %v6803_v8  ;;  %v6847_v1 = vrot.slane %v6846_v2, 2  ;;  %v6608_v44 = vsel %vm370_vm0, %v6593_v0, 0  ;;  %v7096_v41 = vunpack.c.l.b16 %v6815_v24 }
 0x40a   :  { %v7105_v11 = vunpack.c.l.b16 %v6923_v54  ;;  %v7106_v52 = vunpack.c.l.b16 %v6935_v25  ;;  %v6945_v31 = vrot.slane %v6944_v22, 1  ;;  %7898 = vmatpush3.bf16.msra.mxu1 %v6608_v44  ;;  %v7111_v15 = vunpack.c.l.b16 %v6995_v26  ;;  %v12947_v54 = vld [vmem:[#allocation5_spill] sm:$0xff] }
 0x40b   :  { %v7112_v63 = vunpack.c.l.b16 %v7007_v39  ;;  %v7113_v56 = vunpack.c.l.b16 %v7019_v53  ;;  %v7041_v27 = vrot.slane %v7040_v48, 1  ;;  %v7114_v16 = vunpack.c.l.b16 %v7031_v23  ;;  %7997 = vmatprep.subr.msk.bf16.mxu1 %vm370_vm0, %v12270_v55 }
 0x40c   :  { %v6730_v28 = vmax.f32 %v12188_v19, %v6729_v3  ;;  %v6741_v4 = vrot.slane %v12200_v5, 1  ;;  %v6752_v60 = vmax.f32 %v12207_v29, %v6751_v12  ;;  %v6826_v17 = vmax.f32 %v6824_v6, %v6825_v9 }
 0x40d   :  { %v6837_v47 = vrot.slane %v6836_v30, 1  ;;  %v6848_v33 = vmax.f32 %v6846_v2, %v6847_v1  ;;  %vm12939_vm15 = vcmask 1041409   ;;  %vm12940_vm1 = vcmask 1042434  }
 0x40e   :  { %v7116_v20 = vsel %vm12939_vm15, %v12192_v18, %v12190_v62  ;;  %v6731_v38 = vpack.i.bf16 %v6730_v28, %v6730_v28  ;;  %v6742_v50 = vmax.f32 %v12200_v5, %v6741_v4  ;;  %v6753_v35 = vrot.slane %v6752_v60, 1  ;;  %vm12943_vm9 = vmmov %vm12939_vm15 }
 0x40f   :  { %v7117_v19 = vsel %vm12940_vm1, %v12198_v46, %v7116_v20  ;;  %v6827_v3 = vpack.i.bf16 %v6826_v17, %v6826_v17  ;;  %v6838_v42 = vmax.f32 %v6836_v30, %v6837_v47  ;;  %v6849_v40 = vrot.slane %v6848_v33, 1  ;;  %vm12944_vm10 = vmmov %vm12940_vm1  ;;  %v12948_v30 = vld [vmem:[#allocation6_spill] sm:$0xff] }
 0x410   :  { %vm12941_vm4 = vcmask 1043459   ;;  %v6743_v12 = vpack.i.bf16 %v6742_v50, %v6742_v50  ;;  %v6754_v37 = vmax.f32 %v6752_v60, %v6753_v35  ;;  %v7089_v7 = vunpack.c.l.b16 %v6731_v38  ;;  %vm12951_vm15 = vmmov %vm12938_vm14 }
 0x411   :  { %v7118_v29 = vsel %vm12941_vm4, %v12237_v32, %v7117_v19  ;;  %vm12942_vm5 = vcmask 1044484   ;;  %v6839_v62 = vpack.i.bf16 %v6838_v42, %v6838_v42  ;;  %v6850_v18 = vmax.f32 %v6848_v33, %v6849_v40  ;;  %vm12945_vm6 = vmmov %vm12941_vm4  ;;  %v7395_v40 = vld [vmem:[%s12350_s8] ss:$0 sm:$0xff]  ;;  %s8216_s8 = scalar_lea.vmem %s7231_s20, 512 }
 0x412   :  { %v7119_v59 = vsel %vm12942_vm5, %v12244_v58, %v7118_v29  ;;  %v7097_v36 = vunpack.c.l.b16 %v6827_v3  ;;  %v7123_v5 = vsel %vm12943_vm9, %v7093_v57, %v7092_v13  ;;  %v6755_v14 = vpack.i.bf16 %v6754_v37, %v6754_v37  ;;  %vm12946_vm8 = vmmov %vm12942_vm5  ;;  %v7398_v29 = vld [vmem:[%s12352_s10] ss:$0 sm:$0xff]  ;;  %p8217_p0 = scmp.ne.s32.totalorder %s7231_s20, %s8216_s8  ;;  %p8222_p2 = scmp.lt.s32.totalorder %s8216_s8, %s8216_s8 }
 0x413   :  { %v7090_v34 = vunpack.c.l.b16 %v6743_v12  ;;  %v7120_v46 = vsel %vm4724_vm7, %v7089_v7, %v7119_v59  ;;  %v7124_v51 = vsel %vm12944_vm10, %v7094_v61, %v7123_v5  ;;  %v6851_v10 = vpack.i.bf16 %v6850_v18, %v6850_v18  ;;  %vm12949_vm11 = vmmov %vm12941_vm4 }
 0x414   :  { %v7098_v6 = vunpack.c.l.b16 %v6839_v62  ;;  %v7125_v32 = vsel %vm12945_vm6, %v7095_v45, %v7124_v51  ;;  %v6946_v49 = vmax.f32 %v6944_v22, %v6945_v31  ;;  %v7091_v21 = vunpack.c.l.b16 %v6755_v14  ;;  %vm12950_vm12 = vmmov %vm12942_vm5  ;;  %p8223_p3 = por %p8222_p2, %p8221_p1 }
 0x415   :  { %v7121_v43 = vsel %vm4727_vm2, %v7090_v34, %v7120_v46  ;;  %v7126_v58 = vsel %vm12946_vm8, %v7096_v41, %v7125_v32  ;;  %v7042_v8 = vmax.f32 %v7040_v48, %v7041_v27  ;;  %v7099_v2 = vunpack.c.l.b16 %v6851_v10  ;;  %vm12952_vm1 = vmmov %vm12938_vm14 }
 0x416   :  { %v7127_v13 = vsel %vm4724_vm7, %v7097_v36, %v7126_v58  ;;  %v6947_v24 = vpack.i.bf16 %v6946_v49, %v6946_v49  ;;  %v7134_v25 = vsel %vm4724_vm7, %v7105_v11, %v12947_v54  ;;  %v7122_v26 = vsel %vm4730_vm3, %v7091_v21, %v7121_v43  ;;  %vm12953_vm4 = vmmov %vm12952_vm1  ;;  %p8224_p4 = pnand %p8223_p3, %p8217_p0 }
 0x417   :  { %v7128_v39 = vsel %vm4727_vm2, %v7098_v6, %v7127_v13  ;;  %v7043_v53 = vpack.i.bf16 %v7042_v8, %v7042_v8  ;;  %v7135_v22 = vsel %vm4727_vm2, %v7106_v52, %v7134_v25  ;;  %v7139_v48 = vsel %vm12949_vm11, %v7111_v15, %v12948_v30  ;;  %v7394_v52 = vld [vmem:[%s12348_s6] ss:$0 sm:$0xff] }
 0x418   :  { %v7129_v57 = vsel %vm4730_vm3, %v7099_v2, %v7128_v39  ;;  %v7107_v9 = vunpack.c.l.b16 %v6947_v24  ;;  %v7140_v61 = vsel %vm12950_vm12, %v7112_v63, %v7139_v48  ;;  %v7153_v42 = vsel %vm370_vm0, %v12270_v55, 0 }
 0x419   :  { %v7144_v23 = vpack.c.b16 %v7129_v57, %v7122_v26  ;;  %v7115_v0 = vunpack.c.l.b16 %v7043_v53  ;;  %v7141_v1 = vsel %vm4724_vm7, %v7113_v56, %v7140_v61  ;;  %v7917_v12 = vadd.f32 %v7398_v29, %v7395_v40 }
 0x41a   :  { %v7136_v45 = vsel %vm4730_vm3, %v7107_v9, %v7135_v22  ;;  %v7142_v44 = vsel %vm4727_vm2, %v7114_v16, %v7141_v1  ;;  %vm7220_vm0 = vcmask 261120  }
 0x41b   :  { %v7143_v41 = vsel %vm4730_vm3, %v7115_v0, %v7142_v44 }
 0x41c   :  { %v7145_v11 = vpack.c.b16 %v7143_v41, %v7136_v45 }
 0x4a3   :  { %v7895_v31 = vpop.f32.mrb[72].mxu0 }
 0x4a4   :  { %v6577_v27 = vadd.f32 %v7895_v31, %v7394_v52  ;;  %v6549_v15 = vpop.f32.mrb[73].mxu0 }
 0x4a5   :  { %v6575_v28 = vadd.f32 %v7394_v52, %v6549_v15  ;;  %v7896_v4 = vpop.f32.mrb[74].mxu0 }
 0x4a6   :  { %v6585_v60 = vmul.f32 0.1, %v6577_v27  ;;  %v6578_v63 = vadd.f32 %v7896_v4, %v7394_v52  ;;  %v6552_v17 = vpop.f32.mrb[75].mxu0  ;;  %vm6581_vm13 = vcmp.ge.f32.partialorder %v6577_v27, 0.0 }
 0x4a7   :  { %v6583_v47 = vmul.f32 0.1, %v6575_v28  ;;  %v6576_v56 = vadd.f32 %v7394_v52, %v6552_v17  ;;  %vm6579_vm7 = vcmp.ge.f32.partialorder %v6575_v28, 0.0 }
 0x4a8   :  { %vm6582_vm2 = vcmp.ge.f32.partialorder %v6578_v63, 0.0  ;;  %v6586_v16 = vmul.f32 0.1, %v6578_v63  ;;  %v6589_v20 = vsel %vm6581_vm13, %v6577_v27, %v6585_v60 }
 0x4a9   :  { %vm6580_vm3 = vcmp.ge.f32.partialorder %v6576_v56, 0.0  ;;  %v6584_v33 = vmul.f32 0.1, %v6576_v56  ;;  %v6587_v50 = vsel %vm6579_vm7, %v6575_v28, %v6583_v47 }
 0x4aa   :  { %v6590_v38 = vsel %vm6582_vm2, %v6578_v63, %v6586_v16 }
 0x4ab   :  { %v6592_v35 = vpack.c.bf16 %v6590_v38, %v6589_v20  ;;  %v6588_v19 = vsel %vm6580_vm3, %v6576_v56, %v6584_v33 }
 0x4ac   :  { %v6591_v3 = vpack.c.bf16 %v6588_v19, %v6587_v50 }
 0x4ae   :  { %7899 = vmatprep.mubr.msk.bf16.mxu1 %vm12938_vm14, %v6591_v3 }
 0x4af   :  { %7900 = vmatmul.mubr.msk.bf16.vlgmr.msra.gmra.mrb[120].mxu1 %vm12951_vm15, %v6592_v35 }
 0x4b0   :  { %7904 = vmatpush3.bf16.msra.mxu1 %v7153_v42  ;;  %7905 = vmatprep.mubr.msk.bf16.mxu1 %vm12952_vm1, %v7144_v23 }
 0x4bb   :  { %7906 = vmatmul.mubr.msk.bf16.vlgmr.msra.gmra.mrb[120].mxu1 %vm12953_vm4, %v7145_v11 }
 0x58e   :  { %v7907_v37 = vpop.f32.mrb[120].mxu1 }
 0x58f   :  { %v7911_v55 = vadd.f32 %v7907_v37, %v7395_v40  ;;  %v7189_v7 = vpop.f32.mrb[121].mxu1 }
 0x590   :  { %v7913_v59 = vadd.f32 %v7395_v40, %v7189_v7  ;;  %v7908_v62 = vpop.f32.mrb[122].mxu1 }
 0x591   :  { %v7912_v18 = vadd.f32 %v7911_v55, %v7398_v29  ;;  %v7916_v36 = vadd.f32 %v7917_v12, %v7908_v62  ;;  %v7192_v5 = vpop.f32.mrb[123].mxu1 }
 0x592   :  { %v7914_v14 = vadd.f32 %v7913_v59, %v7398_v29  ;;  %v7918_v34 = vadd.f32 %v7917_v12, %v7192_v5 }
 0x593   :  { %vm7210_vm5 = vcmp.ge.f32.partialorder %v7912_v18, 0.0  ;;  %v7214_v46 = vmul.f32 0.1, %v7912_v18  ;;  %vm7211_vm9 = vcmp.ge.f32.partialorder %v7916_v36, 0.0  ;;  %v7215_v51 = vmul.f32 0.1, %v7916_v36 }
 0x594   :  { %vm7208_vm10 = vcmp.ge.f32.partialorder %v7914_v14, 0.0  ;;  %v7212_v10 = vmul.f32 0.1, %v7914_v14  ;;  %vm7209_vm6 = vcmp.ge.f32.partialorder %v7918_v34, 0.0  ;;  %v7213_v6 = vmul.f32 0.1, %v7918_v34 }
 0x595   :  { %v7218_v32 = vsel %vm7210_vm5, %v7912_v18, %v7214_v46  ;;  %v7219_v49 = vsel %vm7211_vm9, %v7916_v36, %v7215_v51 }
 0x596   :  { %7223 = vst.msk [vmem:[#allocation2 + $0x10] sm:$0xff] %vm7220_vm0, %v7218_v32  ;;  %v7216_v21 = vsel %vm7208_vm10, %v7914_v14, %v7212_v10  ;;  %7224 = vst.msk [vmem:[#allocation2 + $0x18] sm:$0xff] %vm7220_vm0, %v7219_v49  ;;  %v7217_v43 = vsel %vm7209_vm6, %v7918_v34, %v7213_v6 }
 0x597   :  { %7221 = vst.msk [vmem:[#allocation2] sm:$0xff] %vm7220_vm0, %v7216_v21  ;;  %7222 = vst.msk [vmem:[#allocation2 + $0x8] sm:$0xff] %vm7220_vm0, %v7217_v43 }
 0x598   :  { %8227 = shalt.err (!%p8224_p4)
}
 0x599   :  { %s8228_s22 = scalar_lea.hbm %s12353_s11, 512 }
 0x59a   :  { %p8229_p5 = scmp.ne.s32.totalorder %s12353_s11, %s8228_s22  ;;  %p8232_p6 = scmp.lt.u32.totalorder %s8228_s22, %s12353_s11 }
 0x59c   :  { %p8234_p7 = pnand %p8232_p6, %p8229_p5 }
 0x59e   :  { %8237 = shalt.err (!%p8234_p7)
}
 0x59f   :  { %s8245_s26 = smov 128   ;;  %s8246_s27 = smov 8  }
 0x5a0   :  { %7236 = dma.vmem_to_hbm [thread:$0]  %s7231_s20, 512, %s12353_s11, [#allocation3], %s8245_s26, %s8245_s26, %s8246_s27  }
 0x5a1   :  { %8238 = dma.done.wait [#allocation3], 512  }
 0x5a2   :  { %8239 = vsyncadd [#allocation3], 4294966784 }
 0x5a3   :  { %7240 = vsyncpa [#allocation3], 1 }

</bundles_post_ra>
